<compile_context>
chip_gen: v5e
topology: v5e:2x2
jax: 0.10.0
libtpu: 0.0.40
codegen_flags: <defaults>
</compile_context>

<pallas_src>
import functools

import jax
import jax.numpy as jnp
from jax import lax
from jax.experimental import pallas as pl
from jax.experimental.pallas import tpu as pltpu


# ----------------------------- Pallas kernel --------------------------------

def _silu(y):
    return y * jax.nn.sigmoid(y)


def make_fused_bottleneck_kernel(TH, W, Cin, Cmid, Cout, shortcut, n_tiles):
    """Fused (1x1 conv + BN + SiLU) -> (3x3 conv + BN + SiLU) [+ residual].

    Per grid step (one batch image, one tile of TH output rows):
      xb_ref  : (TH*W, Cin)        bf16   body rows of x (auto-pipelined block)
      x_hbm   : (N, H*W, Cin)      bf16   whole x in HBM (pl.ANY) for halo DMA
      w1_ref  : (Cin, Cmid)        bf16
      w2_ref  : (9*Cmid, Cout)     bf16   im2col-reshaped 3x3 HWIO weights
      s*/b*   : (1, C)             f32    folded BN scale / bias
      o_ref   : (TH*W, Cout)       bf16 (default) output block
      h1p_ref : (TH+2, W+2, Cmid)  bf16 scratch  (zero-padded h1 tile)
      slab_ref: (TH*W, 9*Cmid)     bf16 scratch  (im2col slab)
      halo_ref: (2, W, Cin)        bf16 scratch  (row above / below the tile)
      halo_sem: DMA semaphores (2,)
    """
    has_halo = n_tiles > 1

    def kernel(xb_ref, x_hbm, w1_ref, w2_ref, s1_ref, b1_ref, s2_ref, b2_ref,
               o_ref, h1p_ref, slab_ref, halo_ref, halo_sem):
        n = pl.program_id(0)
        i = pl.program_id(1)

        if has_halo:
            # Kick off the tiny halo-row DMAs first so they overlap with the
            # body conv1 matmul below.  Rows are clamped at the image border;
            # their conv1 output is masked to zero further down, reproducing
            # "h1 padded with zeros" exactly.
            top_row = jnp.maximum(i * TH - 1, 0)
            bot_row = jnp.minimum(i * TH + TH, n_tiles * TH - 1)
            cp_top = pltpu.make_async_copy(
                x_hbm.at[n, pl.ds(pl.multiple_of(top_row * W, W), W)],
                halo_ref.at[0], halo_sem.at[0])
            cp_bot = pltpu.make_async_copy(
                x_hbm.at[n, pl.ds(pl.multiple_of(bot_row * W, W), W)],
                halo_ref.at[1], halo_sem.at[1])
            cp_top.start()
            cp_bot.start()

        w1 = w1_ref[...]
        s1 = s1_ref[...]
        b1 = b1_ref[...]

        # ---- layer 1 (body rows): 1x1 conv == matmul, + folded BN + SiLU ----
        xb = xb_ref[...]                                      # (TH*W, Cin) bf16
        y1 = jnp.dot(xb, w1, preferred_element_type=jnp.float32)
        y1 = y1 * s1 + b1
        h1_body = _silu(y1).astype(jnp.bfloat16)              # (TH*W, Cmid)

        # ---- assemble the zero-padded h1 tile in VMEM -----------------------
        h1p_ref[1:TH + 1, 1:W + 1, :] = h1_body.reshape(TH, W, Cmid)
        zcol = jnp.zeros((TH + 2, 1, Cmid), jnp.bfloat16)
        h1p_ref[:, 0:1, :] = zcol                             # left pad column
        h1p_ref[:, W + 1:W + 2, :] = zcol                     # right pad column
        # TODO(synk): the two pad-column stores are grid-invariant but cannot
        # be hoisted behind pl.when under ("parallel","parallel") semantics
        # without a per-core first-iteration predicate; their cost is tiny.

        if has_halo:
            # Layer 1 on the 2 halo rows.  Kept as a separate small matmul
            # rather than folded into the body matmul: concatenation would
            # force a full VMEM copy of the body block (ld+st of TH*W*Cin),
            # which costs more than the one extra small MXU drain it saves.
            cp_top.wait()
            cp_bot.wait()
            xh = halo_ref[...].reshape(2 * W, Cin)
            yh = jnp.dot(xh, w1, preferred_element_type=jnp.float32)
            yh = yh * s1 + b1
            hh = _silu(yh)                                    # (2W, Cmid) f32
            tmask = jnp.where(i > 0, 1.0, 0.0)
            bmask = jnp.where(i < n_tiles - 1, 1.0, 0.0)
            h_top = (hh[:W] * tmask).astype(jnp.bfloat16)
            h_bot = (hh[W:] * bmask).astype(jnp.bfloat16)
            h1p_ref[0:1, 1:W + 1, :] = h_top.reshape(1, W, Cmid)
            h1p_ref[TH + 1:TH + 2, 1:W + 1, :] = h_bot.reshape(1, W, Cmid)
        else:
            # Single row-tile: the halo rows are pure zero padding.
            zrow = jnp.zeros((1, W, Cmid), jnp.bfloat16)
            h1p_ref[0:1, 1:W + 1, :] = zrow
            h1p_ref[TH + 1:TH + 2, 1:W + 1, :] = zrow

        # ---- layer 2: 3x3 conv as ONE im2col contraction (K = 9*Cmid) -------
        for dy in range(3):
            for dx in range(3):
                tap = dy * 3 + dx
                win = h1p_ref[dy:dy + TH, dx:dx + W, :]       # (TH, W, Cmid)
                slab_ref[:, tap * Cmid:(tap + 1) * Cmid] = win.reshape(TH * W, Cmid)
        y2 = jnp.dot(slab_ref[...], w2_ref[...],
                     preferred_element_type=jnp.float32)      # (TH*W, Cout)
        y2 = y2 * s2_ref[...] + b2_ref[...]
        y2 = _silu(y2)
        if shortcut:
            # Residual uses the bf16-rounded x block (output is bf16 anyway,
            # so this stays well inside the comparison tolerance).
            y2 = y2 + xb.astype(jnp.float32)
        o_ref[...] = y2.astype(o_ref.dtype)

    return kernel


# ----------------------------- tiling helpers --------------------------------

def _vmem_capacity_bytes():
    try:
        return int(pltpu.get_tpu_info().vmem_capacity_bytes)
    except Exception:
        return 64 * 1024 * 1024   # conservative default (v7x per-core VMEM)


def _pick_tile_rows(N, H, W, Cin, Cmid, Cout, out_bytes, budget):
    """Largest row-tile (multiple of 8 dividing H) fitting the VMEM budget."""
    def vmem_use(th):
        x_blk = 2 * th * W * Cin * 2            # double-buffered bf16 input
        o_blk = 2 * th * W * Cout * out_bytes   # double-buffered output
        h1p = (th + 2) * (W + 2) * Cmid * 2
        slab = th * W * 9 * Cmid * 2
        halo = 2 * W * Cin * 2
        wts = 2 * (Cin * Cmid + 9 * Cmid * Cout) * 2
        live = th * W * (Cmid + Cout) * 4       # f32 intermediates headroom
        return x_blk + o_blk + h1p + slab + halo + wts + live

    cands = sorted({h for h in range(8, H + 1, 8) if H % h == 0} | {H},
                   reverse=True)
    feasible = [th for th in cands if vmem_use(th) <= budget]
    if not feasible:
        return cands[-1]
    if N < 2:
        # Keep the grid >= 2 steps so v7x's two TensorCores both get work.
        multi = [th for th in feasible if H // th >= 2]
        if multi:
            return multi[0]
    return feasible[0]


# ------------------------------- wrapper ------------------------------------

def yolo_bottleneck_forward(x_nhwc, params, *, shortcut: bool, tile_rows=None,
                            out_dtype=jnp.bfloat16):
    """NHWC in, NHWC out (no layout transposes in the hot path)."""
    w1, s1, b1, w2, s2, b2 = params
    N, H, W, Cin = x_nhwc.shape
    Cmid = w1.shape[1]
    Cout = w2.shape[-1]
    use_shortcut = shortcut and (Cin == Cout)

    # bf16 MXU operands; f32 accumulation happens inside the kernel.
    x_bf = x_nhwc.astype(jnp.bfloat16).reshape(N, H * W, Cin)   # free reshape
    w1_bf = w1.astype(jnp.bfloat16)
    w2_bf = w2.astype(jnp.bfloat16).reshape(9 * Cmid, Cout)     # im2col weight
    s1_2d = s1.reshape(1, Cmid).astype(jnp.float32)
    b1_2d = b1.reshape(1, Cmid).astype(jnp.float32)
    s2_2d = s2.reshape(1, Cout).astype(jnp.float32)
    b2_2d = b2.reshape(1, Cout).astype(jnp.float32)

    out_bytes = jnp.dtype(out_dtype).itemsize
    cap = _vmem_capacity_bytes()
    budget = cap // 2                    # double-buffered working-set target
    vmem_limit = (cap * 3) // 4          # scoped VMEM limit with headroom

    if tile_rows is None:
        tile_rows = _pick_tile_rows(N, H, W, Cin, Cmid, Cout, out_bytes, budget)
    TH = tile_rows
    assert H % TH == 0, (H, TH)
    assert (TH * W) % 8 == 0 or TH == H, (TH, W)
    n_tiles = H // TH

    kernel = make_fused_bottleneck_kernel(TH, W, Cin, Cmid, Cout,
                                          use_shortcut, n_tiles)

    in_specs = [
        pl.BlockSpec((None, TH * W, Cin), lambda n, i: (n, i, 0)),   # x blocks
        pl.BlockSpec(memory_space=pl.ANY),                           # x for halo DMA
        pl.BlockSpec((Cin, Cmid), lambda n, i: (0, 0)),              # w1
        pl.BlockSpec((9 * Cmid, Cout), lambda n, i: (0, 0)),         # w2 (im2col)
        pl.BlockSpec((1, Cmid), lambda n, i: (0, 0)),                # s1
        pl.BlockSpec((1, Cmid), lambda n, i: (0, 0)),                # b1
        pl.BlockSpec((1, Cout), lambda n, i: (0, 0)),                # s2
        pl.BlockSpec((1, Cout), lambda n, i: (0, 0)),                # b2
    ]
    out_spec = pl.BlockSpec((None, TH * W, Cout), lambda n, i: (n, i, 0))

    out2d = pl.pallas_call(
        kernel,
        out_shape=jax.ShapeDtypeStruct((N, H * W, Cout), out_dtype),
        grid_spec=pltpu.PrefetchScalarGridSpec(
            num_scalar_prefetch=0,
            grid=(N, n_tiles),
            in_specs=in_specs,
            out_specs=out_spec,
            scratch_shapes=[
                pltpu.VMEM((TH + 2, W + 2, Cmid), jnp.bfloat16),   # padded h1
                pltpu.VMEM((TH * W, 9 * Cmid), jnp.bfloat16),      # im2col slab
                pltpu.VMEM((2, W, Cin), jnp.bfloat16),             # halo rows
                pltpu.SemaphoreType.DMA((2,)),
            ],
        ),
        compiler_params=pltpu.CompilerParams(
            # no cross-iteration accumulation -> both axes shardable (megacore)
            dimension_semantics=("parallel", "parallel"),
            vmem_limit_bytes=vmem_limit,
        ),
    )(x_bf, x_bf, w1_bf, w2_bf, s1_2d, b1_2d, s2_2d, b2_2d)

    return out2d.reshape(N, H, W, Cout)   # free reshape, stays NHWC


def yolo_bottleneck_forward_nchw(x_nchw, params, *, shortcut: bool, **kw):
    """Compatibility adapter for PyTorch-style NCHW callers (adds two HBM
    transpose passes; prefer keeping activations NHWC end-to-end)."""
    x = jnp.transpose(x_nchw, (0, 2, 3, 1))
    y = yolo_bottleneck_forward(x, params, shortcut=shortcut, **kw)
    return jnp.transpose(y, (0, 3, 1, 2))


# ------------------------------ reference -----------------------------------

def reference_forward(x_nhwc, params, *, shortcut: bool):
    w1, s1, b1, w2, s2, b2 = params
    x = x_nhwc.astype(jnp.float32)
    y1 = jnp.einsum('nhwc,cm->nhwm', x, w1) * s1 + b1
    y1 = y1 * jax.nn.sigmoid(y1)
    y2 = lax.conv_general_dilated(
        y1, w2, window_strides=(1, 1), padding='SAME',
        dimension_numbers=('NHWC', 'HWIO', 'NHWC'))
    y2 = y2 * s2 + b2
    y2 = y2 * jax.nn.sigmoid(y2)
    if shortcut and x.shape[-1] == y2.shape[-1]:
        y2 = y2 + x
    return y2


# ------------------------------ param init ----------------------------------

def init_params(key, in_dim, out_dim, expand_ratio=0.5, eps=1e-5):
    inter_dim = int(out_dim * expand_ratio)
    ks = jax.random.split(key, 10)
    # conv weights (stored pre-transposed for NHWC compute)
    w1 = jax.random.normal(ks[0], (in_dim, inter_dim), jnp.float32) * 0.1         # 1x1
    w2 = jax.random.normal(ks[1], (3, 3, inter_dim, out_dim), jnp.float32) * 0.1  # HWIO
    # BatchNorm (inference-mode) params, folded into scale/bias
    g1 = 1.0 + 0.1 * jax.random.normal(ks[2], (inter_dim,), jnp.float32)
    be1 = 0.1 * jax.random.normal(ks[3], (inter_dim,), jnp.float32)
    m1 = 0.05 * jax.random.normal(ks[4], (inter_dim,), jnp.float32)
    v1 = 1.0 + 0.1 * jax.random.uniform(ks[5], (inter_dim,), jnp.float32)
    g2 = 1.0 + 0.1 * jax.random.normal(ks[6], (out_dim,), jnp.float32)
    be2 = 0.1 * jax.random.normal(ks[7], (out_dim,), jnp.float32)
    m2 = 0.05 * jax.random.normal(ks[8], (out_dim,), jnp.float32)
    v2 = 1.0 + 0.1 * jax.random.uniform(ks[9], (out_dim,), jnp.float32)
    s1 = g1 / jnp.sqrt(v1 + eps)
    b1 = be1 - m1 * s1
    s2 = g2 / jnp.sqrt(v2 + eps)
    b2 = be2 - m2 * s2
    return (w1, s1, b1, w2, s2, b2)


# --------------------------------- main --------------------------------------

if __name__ == "__main__":
    key = jax.random.PRNGKey(0)
    kx, kp = jax.random.split(key)

    # small shapes: batch=2, in_dim=out_dim=8 (shortcut applies), 16x16 spatial
    N, H, W, C = 2, 16, 16, 8
    shortcut = True

    x = jax.random.normal(kx, (N, H, W, C), jnp.float32)   # NHWC end-to-end
    params = init_params(kp, C, C, expand_ratio=0.5)

    ref = jax.block_until_ready(reference_forward(x, params, shortcut=shortcut))

    # default config (auto tile picker; whole image fits in one row tile)
    fwd = jax.jit(functools.partial(yolo_bottleneck_forward, shortcut=shortcut))
    out = jax.block_until_ready(fwd(x, params))
    assert out.shape == (N, H, W, C), out.shape
    err = float(jnp.max(jnp.abs(out.astype(jnp.float32) - ref)))
    assert err < 6e-2, err   # bf16 operands + bf16 output vs f32 reference

    # multi-row-tile config: exercises the in-kernel halo DMA + masking path
    fwd2 = jax.jit(functools.partial(yolo_bottleneck_forward,
                                     shortcut=shortcut, tile_rows=8))
    out2 = jax.block_until_ready(fwd2(x, params))
    err2 = float(jnp.max(jnp.abs(out2.astype(jnp.float32) - ref)))
    assert err2 < 6e-2, err2

    print("KERNEL_OK")
</pallas_src>

<mosaic_0001>
module attributes {stable_mosaic.version = 11 : i64} {
  func.func @kernel(%arg0: i32, %arg1: i32, %arg2: memref<1x256x8xbf16, #tpu.memory_space<vmem>>, %arg3: memref<2x256x8xbf16, #tpu.memory_space<any>>, %arg4: memref<8x4xbf16, #tpu.memory_space<vmem>>, %arg5: memref<36x8xbf16, #tpu.memory_space<vmem>>, %arg6: memref<1x4xf32, #tpu.memory_space<vmem>>, %arg7: memref<1x4xf32, #tpu.memory_space<vmem>>, %arg8: memref<1x8xf32, #tpu.memory_space<vmem>>, %arg9: memref<1x8xf32, #tpu.memory_space<vmem>>, %arg10: memref<1x256x8xbf16, #tpu.memory_space<vmem>>, %arg11: memref<18x18x4xbf16, #tpu.memory_space<vmem>>, %arg12: memref<256x36xbf16, #tpu.memory_space<vmem>>, %arg13: memref<2x16x8xbf16, #tpu.memory_space<vmem>>, %arg14: memref<2x!tpu.dma_semaphore, #tpu.memory_space<semaphore_mem>>) attributes {dimension_semantics = [#tpu.dimension_semantics<parallel>, #tpu.dimension_semantics<parallel>], iteration_bounds = array<i64: 2, 1>, scalar_prefetch = 0 : i64, scratch_operands = 4 : i64, tpu.core_type = #tpu.core_type<tc>, window_params = [{transform_indices = @transform_0, window_bounds = array<i64: 1, 256, 8>}, {}, {pipeline_mode = #tpu.pipeline_mode<synchronous>, transform_indices = @transform_2, window_bounds = array<i64: 8, 4>}, {pipeline_mode = #tpu.pipeline_mode<synchronous>, transform_indices = @transform_3, window_bounds = array<i64: 36, 8>}, {pipeline_mode = #tpu.pipeline_mode<synchronous>, transform_indices = @transform_4, window_bounds = array<i64: 1, 4>}, {pipeline_mode = #tpu.pipeline_mode<synchronous>, transform_indices = @transform_5, window_bounds = array<i64: 1, 4>}, {pipeline_mode = #tpu.pipeline_mode<synchronous>, transform_indices = @transform_6, window_bounds = array<i64: 1, 8>}, {pipeline_mode = #tpu.pipeline_mode<synchronous>, transform_indices = @transform_7, window_bounds = array<i64: 1, 8>}, {transform_indices = @transform_8, window_bounds = array<i64: 1, 256, 8>}]} {
    %c0 = arith.constant 0 : index
    %c0_0 = arith.constant 0 : index
    %0 = vector.load %arg4[%c0, %c0_0] : memref<8x4xbf16, #tpu.memory_space<vmem>>, vector<8x4xbf16>
    %c0_1 = arith.constant 0 : index
    %c0_2 = arith.constant 0 : index
    %1 = vector.load %arg6[%c0_1, %c0_2] : memref<1x4xf32, #tpu.memory_space<vmem>>, vector<1x4xf32>
    %c0_3 = arith.constant 0 : index
    %c0_4 = arith.constant 0 : index
    %2 = vector.load %arg7[%c0_3, %c0_4] : memref<1x4xf32, #tpu.memory_space<vmem>>, vector<1x4xf32>
    %c0_5 = arith.constant 0 : index
    %c0_6 = arith.constant 0 : index
    %c0_7 = arith.constant 0 : index
    %3 = vector.load %arg2[%c0_5, %c0_6, %c0_7] : memref<1x256x8xbf16, #tpu.memory_space<vmem>>, vector<1x256x8xbf16>
    %4 = vector.shape_cast %3 : vector<1x256x8xbf16> to vector<256x8xbf16>
    %cst = arith.constant dense<0.000000e+00> : vector<256x4xf32>
    %5 = tpu.matmul %4, %0, %cst {dimension_numbers = #tpu.dot_dimension_numbers<[1], [0], [0], [1], [0, 0, 1, 1], [], []>} : vector<256x8xbf16>, vector<8x4xbf16>, vector<256x4xf32> -> vector<256x4xf32>
    %6 = vector.broadcast %1 : vector<1x4xf32> to vector<256x4xf32>
    %7 = arith.mulf %5, %6 : vector<256x4xf32>
    %8 = vector.broadcast %2 : vector<1x4xf32> to vector<256x4xf32>
    %9 = arith.addf %7, %8 : vector<256x4xf32>
    %10 = arith.negf %9 : vector<256x4xf32>
    %11 = math.exp %10 : vector<256x4xf32>
    %cst_8 = arith.constant 1.000000e+00 : f32
    %12 = vector.broadcast %cst_8 : f32 to vector<256x4xf32>
    %13 = arith.addf %12, %11 : vector<256x4xf32>
    %14 = arith.divf %12, %13 : vector<256x4xf32>
    %15 = arith.mulf %9, %14 : vector<256x4xf32>
    %16 = arith.truncf %15 : vector<256x4xf32> to vector<256x4xbf16>
    %17 = vector.shape_cast %16 : vector<256x4xbf16> to vector<16x16x4xbf16>
    %c1 = arith.constant 1 : index
    %c1_9 = arith.constant 1 : index
    %c0_10 = arith.constant 0 : index
    %18 = vector.load %arg11[%c1, %c1_9, %c0_10] : memref<18x18x4xbf16, #tpu.memory_space<vmem>>, vector<16x16x4xbf16>
    tpu.vector_store %arg11[%c1, %c1_9, %c0_10], %17 {strides = array<i32>} : memref<18x18x4xbf16, #tpu.memory_space<vmem>>, vector<16x16x4xbf16>,
    %cst_11 = arith.constant 0.000000e+00 : bf16
    %19 = vector.broadcast %cst_11 : bf16 to vector<18x1x4xbf16>
    %c0_12 = arith.constant 0 : index
    %c0_13 = arith.constant 0 : index
    %c0_14 = arith.constant 0 : index
    %20 = vector.load %arg11[%c0_12, %c0_13, %c0_14] : memref<18x18x4xbf16, #tpu.memory_space<vmem>>, vector<18x1x4xbf16>
    tpu.vector_store %arg11[%c0_12, %c0_13, %c0_14], %19 {strides = array<i32>} : memref<18x18x4xbf16, #tpu.memory_space<vmem>>, vector<18x1x4xbf16>,
    %c0_15 = arith.constant 0 : index
    %c17 = arith.constant 17 : index
    %c0_16 = arith.constant 0 : index
    %21 = vector.load %arg11[%c0_15, %c17, %c0_16] : memref<18x18x4xbf16, #tpu.memory_space<vmem>>, vector<18x1x4xbf16>
    tpu.vector_store %arg11[%c0_15, %c17, %c0_16], %19 {strides = array<i32>} : memref<18x18x4xbf16, #tpu.memory_space<vmem>>, vector<18x1x4xbf16>,
    %cst_17 = arith.constant 0.000000e+00 : bf16
    %22 = vector.broadcast %cst_17 : bf16 to vector<1x16x4xbf16>
    %c0_18 = arith.constant 0 : index
    %c1_19 = arith.constant 1 : index
    %c0_20 = arith.constant 0 : index
    %23 = vector.load %arg11[%c0_18, %c1_19, %c0_20] : memref<18x18x4xbf16, #tpu.memory_space<vmem>>, vector<1x16x4xbf16>
    tpu.vector_store %arg11[%c0_18, %c1_19, %c0_20], %22 {strides = array<i32>} : memref<18x18x4xbf16, #tpu.memory_space<vmem>>, vector<1x16x4xbf16>,
    %c17_21 = arith.constant 17 : index
    %c1_22 = arith.constant 1 : index
    %c0_23 = arith.constant 0 : index
    %24 = vector.load %arg11[%c17_21, %c1_22, %c0_23] : memref<18x18x4xbf16, #tpu.memory_space<vmem>>, vector<1x16x4xbf16>
    tpu.vector_store %arg11[%c17_21, %c1_22, %c0_23], %22 {strides = array<i32>} : memref<18x18x4xbf16, #tpu.memory_space<vmem>>, vector<1x16x4xbf16>,
    %c0_24 = arith.constant 0 : index
    %c0_25 = arith.constant 0 : index
    %c0_26 = arith.constant 0 : index
    %25 = vector.load %arg11[%c0_24, %c0_25, %c0_26] : memref<18x18x4xbf16, #tpu.memory_space<vmem>>, vector<16x16x4xbf16>
    %26 = vector.shape_cast %25 : vector<16x16x4xbf16> to vector<256x4xbf16>
    %c0_27 = arith.constant 0 : index
    %c0_28 = arith.constant 0 : index
    %27 = vector.load %arg12[%c0_27, %c0_28] : memref<256x36xbf16, #tpu.memory_space<vmem>>, vector<256x4xbf16>
    tpu.vector_store %arg12[%c0_27, %c0_28], %26 {strides = array<i32>} : memref<256x36xbf16, #tpu.memory_space<vmem>>, vector<256x4xbf16>,
    %c0_29 = arith.constant 0 : index
    %c1_30 = arith.constant 1 : index
    %c0_31 = arith.constant 0 : index
    %28 = vector.load %arg11[%c0_29, %c1_30, %c0_31] : memref<18x18x4xbf16, #tpu.memory_space<vmem>>, vector<16x16x4xbf16>
    %29 = vector.shape_cast %28 : vector<16x16x4xbf16> to vector<256x4xbf16>
    %c0_32 = arith.constant 0 : index
    %c4 = arith.constant 4 : index
    %30 = vector.load %arg12[%c0_32, %c4] : memref<256x36xbf16, #tpu.memory_space<vmem>>, vector<256x4xbf16>
    tpu.vector_store %arg12[%c0_32, %c4], %29 {strides = array<i32>} : memref<256x36xbf16, #tpu.memory_space<vmem>>, vector<256x4xbf16>,
    %c0_33 = arith.constant 0 : index
    %c2 = arith.constant 2 : index
    %c0_34 = arith.constant 0 : index
    %31 = vector.load %arg11[%c0_33, %c2, %c0_34] : memref<18x18x4xbf16, #tpu.memory_space<vmem>>, vector<16x16x4xbf16>
    %32 = vector.shape_cast %31 : vector<16x16x4xbf16> to vector<256x4xbf16>
    %c0_35 = arith.constant 0 : index
    %c8 = arith.constant 8 : index
    %33 = vector.load %arg12[%c0_35, %c8] : memref<256x36xbf16, #tpu.memory_space<vmem>>, vector<256x4xbf16>
    tpu.vector_store %arg12[%c0_35, %c8], %32 {strides = array<i32>} : memref<256x36xbf16, #tpu.memory_space<vmem>>, vector<256x4xbf16>,
    %c1_36 = arith.constant 1 : index
    %c0_37 = arith.constant 0 : index
    %c0_38 = arith.constant 0 : index
    %34 = vector.load %arg11[%c1_36, %c0_37, %c0_38] : memref<18x18x4xbf16, #tpu.memory_space<vmem>>, vector<16x16x4xbf16>
    %35 = vector.shape_cast %34 : vector<16x16x4xbf16> to vector<256x4xbf16>
    %c0_39 = arith.constant 0 : index
    %c12 = arith.constant 12 : index
    %36 = vector.load %arg12[%c0_39, %c12] : memref<256x36xbf16, #tpu.memory_space<vmem>>, vector<256x4xbf16>
    tpu.vector_store %arg12[%c0_39, %c12], %35 {strides = array<i32>} : memref<256x36xbf16, #tpu.memory_space<vmem>>, vector<256x4xbf16>,
    %c1_40 = arith.constant 1 : index
    %c1_41 = arith.constant 1 : index
    %c0_42 = arith.constant 0 : index
    %37 = vector.load %arg11[%c1_40, %c1_41, %c0_42] : memref<18x18x4xbf16, #tpu.memory_space<vmem>>, vector<16x16x4xbf16>
    %38 = vector.shape_cast %37 : vector<16x16x4xbf16> to vector<256x4xbf16>
    %c0_43 = arith.constant 0 : index
    %c16 = arith.constant 16 : index
    %39 = vector.load %arg12[%c0_43, %c16] : memref<256x36xbf16, #tpu.memory_space<vmem>>, vector<256x4xbf16>
    tpu.vector_store %arg12[%c0_43, %c16], %38 {strides = array<i32>} : memref<256x36xbf16, #tpu.memory_space<vmem>>, vector<256x4xbf16>,
    %c1_44 = arith.constant 1 : index
    %c2_45 = arith.constant 2 : index
    %c0_46 = arith.constant 0 : index
    %40 = vector.load %arg11[%c1_44, %c2_45, %c0_46] : memref<18x18x4xbf16, #tpu.memory_space<vmem>>, vector<16x16x4xbf16>
    %41 = vector.shape_cast %40 : vector<16x16x4xbf16> to vector<256x4xbf16>
    %c0_47 = arith.constant 0 : index
    %c20 = arith.constant 20 : index
    %42 = vector.load %arg12[%c0_47, %c20] : memref<256x36xbf16, #tpu.memory_space<vmem>>, vector<256x4xbf16>
    tpu.vector_store %arg12[%c0_47, %c20], %41 {strides = array<i32>} : memref<256x36xbf16, #tpu.memory_space<vmem>>, vector<256x4xbf16>,
    %c2_48 = arith.constant 2 : index
    %c0_49 = arith.constant 0 : index
    %c0_50 = arith.constant 0 : index
    %43 = vector.load %arg11[%c2_48, %c0_49, %c0_50] : memref<18x18x4xbf16, #tpu.memory_space<vmem>>, vector<16x16x4xbf16>
    %44 = vector.shape_cast %43 : vector<16x16x4xbf16> to vector<256x4xbf16>
    %c0_51 = arith.constant 0 : index
    %c24 = arith.constant 24 : index
    %45 = vector.load %arg12[%c0_51, %c24] : memref<256x36xbf16, #tpu.memory_space<vmem>>, vector<256x4xbf16>
    tpu.vector_store %arg12[%c0_51, %c24], %44 {strides = array<i32>} : memref<256x36xbf16, #tpu.memory_space<vmem>>, vector<256x4xbf16>,
    %c2_52 = arith.constant 2 : index
    %c1_53 = arith.constant 1 : index
    %c0_54 = arith.constant 0 : index
    %46 = vector.load %arg11[%c2_52, %c1_53, %c0_54] : memref<18x18x4xbf16, #tpu.memory_space<vmem>>, vector<16x16x4xbf16>
    %47 = vector.shape_cast %46 : vector<16x16x4xbf16> to vector<256x4xbf16>
    %c0_55 = arith.constant 0 : index
    %c28 = arith.constant 28 : index
    %48 = vector.load %arg12[%c0_55, %c28] : memref<256x36xbf16, #tpu.memory_space<vmem>>, vector<256x4xbf16>
    tpu.vector_store %arg12[%c0_55, %c28], %47 {strides = array<i32>} : memref<256x36xbf16, #tpu.memory_space<vmem>>, vector<256x4xbf16>,
    %c2_56 = arith.constant 2 : index
    %c2_57 = arith.constant 2 : index
    %c0_58 = arith.constant 0 : index
    %49 = vector.load %arg11[%c2_56, %c2_57, %c0_58] : memref<18x18x4xbf16, #tpu.memory_space<vmem>>, vector<16x16x4xbf16>
    %50 = vector.shape_cast %49 : vector<16x16x4xbf16> to vector<256x4xbf16>
    %c0_59 = arith.constant 0 : index
    %c32 = arith.constant 32 : index
    %51 = vector.load %arg12[%c0_59, %c32] : memref<256x36xbf16, #tpu.memory_space<vmem>>, vector<256x4xbf16>
    tpu.vector_store %arg12[%c0_59, %c32], %50 {strides = array<i32>} : memref<256x36xbf16, #tpu.memory_space<vmem>>, vector<256x4xbf16>,
    %c0_60 = arith.constant 0 : index
    %c0_61 = arith.constant 0 : index
    %52 = vector.load %arg12[%c0_60, %c0_61] : memref<256x36xbf16, #tpu.memory_space<vmem>>, vector<256x36xbf16>
    %c0_62 = arith.constant 0 : index
    %c0_63 = arith.constant 0 : index
    %53 = vector.load %arg5[%c0_62, %c0_63] : memref<36x8xbf16, #tpu.memory_space<vmem>>, vector<36x8xbf16>
    %cst_64 = arith.constant dense<0.000000e+00> : vector<256x8xf32>
    %54 = tpu.matmul %52, %53, %cst_64 {dimension_numbers = #tpu.dot_dimension_numbers<[1], [0], [0], [1], [0, 0, 1, 1], [], []>} : vector<256x36xbf16>, vector<36x8xbf16>, vector<256x8xf32> -> vector<256x8xf32>
    %c0_65 = arith.constant 0 : index
    %c0_66 = arith.constant 0 : index
    %55 = vector.load %arg8[%c0_65, %c0_66] : memref<1x8xf32, #tpu.memory_space<vmem>>, vector<1x8xf32>
    %56 = vector.broadcast %55 : vector<1x8xf32> to vector<256x8xf32>
    %57 = arith.mulf %54, %56 : vector<256x8xf32>
    %c0_67 = arith.constant 0 : index
    %c0_68 = arith.constant 0 : index
    %58 = vector.load %arg9[%c0_67, %c0_68] : memref<1x8xf32, #tpu.memory_space<vmem>>, vector<1x8xf32>
    %59 = vector.broadcast %58 : vector<1x8xf32> to vector<256x8xf32>
    %60 = arith.addf %57, %59 : vector<256x8xf32>
    %61 = arith.negf %60 : vector<256x8xf32>
    %62 = math.exp %61 : vector<256x8xf32>
    %cst_69 = arith.constant 1.000000e+00 : f32
    %63 = vector.broadcast %cst_69 : f32 to vector<256x8xf32>
    %64 = arith.addf %63, %62 : vector<256x8xf32>
    %65 = arith.divf %63, %64 : vector<256x8xf32>
    %66 = arith.mulf %60, %65 : vector<256x8xf32>
    %67 = arith.extf %4 : vector<256x8xbf16> to vector<256x8xf32>
    %68 = arith.addf %66, %67 : vector<256x8xf32>
    %69 = arith.truncf %68 : vector<256x8xf32> to vector<256x8xbf16>
    %c0_70 = arith.constant 0 : index
    %c0_71 = arith.constant 0 : index
    %c0_72 = arith.constant 0 : index
    %70 = vector.load %arg10[%c0_70, %c0_71, %c0_72] : memref<1x256x8xbf16, #tpu.memory_space<vmem>>, vector<1x256x8xbf16>
    %71 = vector.shape_cast %70 : vector<1x256x8xbf16> to vector<256x8xbf16>
    %72 = vector.shape_cast %69 : vector<256x8xbf16> to vector<1x256x8xbf16>
    tpu.vector_store %arg10[%c0_70, %c0_71, %c0_72], %72 {strides = array<i32>} : memref<1x256x8xbf16, #tpu.memory_space<vmem>>, vector<1x256x8xbf16>,
    return
  }
  func.func @transform_0(%arg0: i32, %arg1: i32) -> (i32, i32, i32) {
    %c0_i32 = arith.constant 0 : i32
    %c0_i32_0 = arith.constant 0 : i32
    return %arg0, %arg1, %c0_i32 : i32, i32, i32
  }
  func.func @transform_2(%arg0: i32, %arg1: i32) -> (i32, i32) {
    %c0_i32 = arith.constant 0 : i32
    %c0_i32_0 = arith.constant 0 : i32
    %c0_i32_1 = arith.constant 0 : i32
    return %c0_i32, %c0_i32_0 : i32, i32
  }
  func.func @transform_3(%arg0: i32, %arg1: i32) -> (i32, i32) {
    %c0_i32 = arith.constant 0 : i32
    %c0_i32_0 = arith.constant 0 : i32
    %c0_i32_1 = arith.constant 0 : i32
    return %c0_i32, %c0_i32_0 : i32, i32
  }
  func.func @transform_4(%arg0: i32, %arg1: i32) -> (i32, i32) {
    %c0_i32 = arith.constant 0 : i32
    %c0_i32_0 = arith.constant 0 : i32
    %c0_i32_1 = arith.constant 0 : i32
    return %c0_i32, %c0_i32_0 : i32, i32
  }
  func.func @transform_5(%arg0: i32, %arg1: i32) -> (i32, i32) {
    %c0_i32 = arith.constant 0 : i32
    %c0_i32_0 = arith.constant 0 : i32
    %c0_i32_1 = arith.constant 0 : i32
    return %c0_i32, %c0_i32_0 : i32, i32
  }
  func.func @transform_6(%arg0: i32, %arg1: i32) -> (i32, i32) {
    %c0_i32 = arith.constant 0 : i32
    %c0_i32_0 = arith.constant 0 : i32
    %c0_i32_1 = arith.constant 0 : i32
    return %c0_i32, %c0_i32_0 : i32, i32
  }
  func.func @transform_7(%arg0: i32, %arg1: i32) -> (i32, i32) {
    %c0_i32 = arith.constant 0 : i32
    %c0_i32_0 = arith.constant 0 : i32
    %c0_i32_1 = arith.constant 0 : i32
    return %c0_i32, %c0_i32_0 : i32, i32
  }
  func.func @transform_8(%arg0: i32, %arg1: i32) -> (i32, i32, i32) {
    %c0_i32 = arith.constant 0 : i32
    %c0_i32_0 = arith.constant 0 : i32
    return %arg0, %arg1, %c0_i32 : i32, i32, i32
  }
}

</mosaic_0001>

<bundles_post_ra>
// kernel: yolo_bottleneck_forward.1
= control target key start
LH: loop header
LB: loop body
LE: loop exit
PB: predicated region body
PF: predicated region fallthrough
CT: control target
= control target key end

     0   :  { %s6963_s26 = smov 0   ;;  %s6965_s27 = smov 0   ;;  %s10343_s0 = inlined_call_operand.vmem [shape: bf16[2,256,8], index: 0, kind: input, shape index: {}, may-alias: {0,1}]   ;;  %s10344_s1 = inlined_call_operand.vmem [shape: bf16[2,256,8], index: 1, kind: input, shape index: {}, may-alias: {0,1}]   ;;  %s10345_s2 = inlined_call_operand.vmem [shape: bf16[8,4], index: 2, kind: input, shape index: {}]   ;;  %s10346_s3 = inlined_call_operand.vmem [shape: bf16[36,8], index: 3, kind: input, shape index: {}]   ;;  %s10347_s4 = inlined_call_operand.vmem [shape: f32[1,4], index: 4, kind: input, shape index: {}]   ;;  %s10348_s5 = inlined_call_operand.vmem [shape: f32[1,4], index: 5, kind: input, shape index: {}]   ;;  %s10349_s6 = inlined_call_operand.vmem [shape: f32[1,8], index: 6, kind: input, shape index: {}]   ;;  %s10350_s7 = inlined_call_operand.vmem [shape: f32[1,8], index: 7, kind: input, shape index: {}]   ;;  %s10351_s8 = inlined_call_operand.vmem [shape: bf16[2,256,8], index: 8, kind: output, shape index: {}]  }
   0x1   :  { %s6967_s28 = smov 0  }
   0x2 LB: > { %s30_s29 = sadd.s32 1, %s6903_s27  ;;  %p6255_p0 = scmp.ge.s32.totalorder %s6907_s28, 1  ;;  %s6907_s28 = sphi %s6967_s28, %s18_s28   ;;  %s6903_s27 = sphi %s6965_s27, %s10627_s27   ;;  %s6899_s26 = sphi %s6963_s26, %s10626_s26  }
   0x3   : > { %p32_p1 = scmp.ge.s32.totalorder %s30_s29, 2  ;;  %p259_p2 = scmp.lt.s32.totalorder %s6907_s28, 3 }
   0x5   : > { %s10629_s29 = smov (%p32_p1, %s30_s29), 0  ;;  %p260_p3 = pnand %p6255_p0, %p259_p2 }
   0x6   : > { %p300_p4 = scmp.lt.s32.totalorder (!%p260_p3), %s6899_s26, 1  ;;  %s6910_s18 = smov (!%p260_p3), 8  }
   0x7   : > { %263 = sbr.rel (%p260_p3) target bundleno = 1228 (0x4cc), region = 48  ;;  %s6911_s19 = smov (!%p260_p3), 4  }
   0x8   : > { %s6912_s20 = smov (!%p260_p3), 12   ;;  %s6913_s21 = smov (!%p260_p3), 16  }
   0x9   : > { %s6914_s17 = smov (!%p260_p3), 20  }
   0xc   : > { %v320_v0 = vld [vmem:[%s10345_s2] sm:$0xf]  ;;  %vm484_vm0 = vcmask 1043456   ;;  %s10631_s26 = smov (!%p300_p4, %s6899_s26), 1  ;;  %vm10354_vm1 = vcmask 64512   ;;  %vm1651_vm3 = vcmask 24576  }
   0xd   : > { %v486_v1 = vsel %vm484_vm0, %v320_v0, 0  ;;  %s6544_s10 = sshll.u32 %s10631_s26, 7  ;;  %vm1644_vm2 = vsmask.f32 7938  ;;  %v1816_v13 = vld [vmem:[#allocation2 + $0x8] sm:$0x1] }
   0xe   : > { %495 = vmatpush.bf16.msra.mxu0 %v486_v1  ;;  %6580 = vmatpush.bf16.msra.mxu3 %v486_v1  ;;  %s6992_s13 = scalar_lea.vmem %s10343_s0, %s6544_s10  ;;  %vm7015_vm4 = vmand %vm1651_vm3, %vm1644_vm2  ;;  %vm10353_vm5 = vsmask.f32 256  ;;  %vm10352_vm6 = vcmask 27648   ;;  %v6909_v16 = vmov 0   ;;  %v7033_v19 = vld [vmem:[%s10347_s4] ss:$0 sm:$0xff]  ;;  %s9943_s16 = scalar_lea.vmem %s10351_s8, %s6544_s10 }
   0xf   : > { %v6546_v2 = vld [vmem:[%s6992_s13] sm:$0xff]  ;;  %v6555_v3 = vld [vmem:[%s6992_s13 + $0x48] sm:$0xff]  ;;  %v6556_v5 = vld [vmem:[%s6992_s13 + $0x50] sm:$0xff]  ;;  %v1817_v14 = vsel %vm7015_vm4, 0, %v1816_v13  ;;  %1873 = vst.msk [vmem:[#allocation2 + $0x4] sm:$0xf] %vm10352_vm6, %v6909_v16 }
  0x10   : > { %v6547_v4 = vld [vmem:[%s6992_s13 + $0x8] sm:$0xff]  ;;  %v6548_v6 = vld [vmem:[%s6992_s13 + $0x10] sm:$0xff]  ;;  %v6557_v7 = vld [vmem:[%s6992_s13 + $0x58] sm:$0xff]  ;;  %1818 = vst [vmem:[#allocation2 + $0x8] sm:$0x1] %v1817_v14  ;;  %vm2609_vm8 = vcmask 1042432  }
  0x11   : > { %6324 = vmatmul.msk.bf16.vlgmr.msra.gmra.mxu0 %vm10354_vm1, %v6546_v2  ;;  %6333 = vmatmul.msk.bf16.vlgmr.msra.gmra.mxu3 %vm10354_vm1, %v6555_v3  ;;  %v6549_v8 = vld [vmem:[%s6992_s13 + $0x18] sm:$0xff]  ;;  %v6558_v9 = vld [vmem:[%s6992_s13 + $0x60] sm:$0xff]  ;;  %v6559_v11 = vld [vmem:[%s6992_s13 + $0x68] sm:$0xff]  ;;  %1881 = vst.msk [vmem:[#allocation2 + $0xd0] sm:$0xf] %vm10352_vm6, %v6909_v16  ;;  %vm2610_vm9 = vcmask 1046532  }
  0x12   : > { %v6550_v10 = vld [vmem:[%s6992_s13 + $0x20] sm:$0xff]  ;;  %vm7022_vm7 = vmand %vm1651_vm3, %vm10353_vm5  ;;  %vm1997_vm11 = vsmask.f32 3328  ;;  %vm1998_vm12 = vsmask.f32 7440  ;;  %v6551_v14 = vld [vmem:[%s6992_s13 + $0x28] sm:$0xff] }
  0x13   : > { %v7038_v20 = vld [vmem:[%s10348_s5] ss:$0 sm:$0xff]  ;;  %vm7050_vm10 = vmor %vm2609_vm8, %vm2610_vm9 }
  0x14   : > { %v1761_v55 = vld [vmem:[#allocation2] sm:$0x1]  ;;  %vm7087_vm13 = vmor %vm1997_vm11, %vm1998_vm12 }
  0x15   : > { %v1762_v62 = vsel %vm7022_vm7, 0, %v1761_v55  ;;  %vm7111_vm0 = vmand %vm10352_vm6, %vm1644_vm2 }
  0x16   : > { %v7041_v23 = vld [vmem:[#allocation2 + $0x4] sm:$0xf]  ;;  %1763 = vst [vmem:[#allocation2] sm:$0x1] %v1762_v62 }
  0x17   : > { %v1874_v17 = vld [vmem:[#allocation2 + $0x8] sm:$0x1]  ;;  %v2614_v25 = vrot.slane %v7041_v23, 5  ;;  %v1950_v39 = vld [vmem:[#allocation2 + $0x4] sm:$0xf] }
  0x18   : > { %v1875_v18 = vsel %vm7022_vm7, 0, %v1874_v17  ;;  %v2010_v40 = vshll.u32 %v1950_v39, 16  ;;  %v2014_v41 = vshrl.u32 %v1950_v39, 16 }
  0x19   : > { %1876 = vst [vmem:[#allocation2 + $0x8] sm:$0x1] %v1875_v18  ;;  %v2616_v28 = vrot.slane %v2614_v25, 4 }
  0x1a   : > { %v7069_v46 = vrot.slane %v2010_v40, 5  ;;  %v2016_v47 = vrot.slane %v2014_v41, 4 }
  0x1c   : > { %v2017_v53 = vor.u32 %v2016_v47, %v7069_v46 }
  0x1e   : > { %v2018_v60 = vrot.slane %v2017_v53, 4 }
  0x20   : > { %v2515_v26 = vld [vmem:[#allocation2 + $0x8] sm:$0x1] }
  0x21   : > { %6325 = vmatmul.msk.bf16.gmra.mxu0 %vm10354_vm1, %v6547_v4  ;;  %6334 = vmatmul.msk.bf16.gmra.mxu3 %vm10354_vm1, %v6556_v5  ;;  %v2617_v31 = vrot.slane %v2515_v26, 5  ;;  %v1951_v49 = vld [vmem:[#allocation2 + $0x8] sm:$0x1] }
  0x22   : > { %v2020_v54 = vshll.u32 %v1951_v49, 16 }
  0x23   : > { %v2618_v34 = vsel %vm7050_vm10, %v2616_v28, %v2617_v31 }
  0x24   : > { %2726 = vrot.lane.b32.xlu0 %v2618_v34, %s6910_s18  ;;  %v2022_v61 = vrot.slane %v2020_v54, 5 }
  0x31   : > { %6326 = vmatmul.msk.bf16.gmra.mxu0 %vm10354_vm1, %v6548_v6  ;;  %6335 = vmatmul.msk.bf16.gmra.mxu3 %vm10354_vm1, %v6557_v7 }
  0x41   : > { %6327 = vmatmul.msk.bf16.gmra.mxu0 %vm10354_vm1, %v6549_v8  ;;  %6336 = vmatmul.msk.bf16.gmra.mxu3 %vm10354_vm1, %v6558_v9  ;;  %v2023_v9 = vsel %vm7087_vm13, %v2018_v60, %v2022_v61 }
  0x42   : > { %2386 = vrot.lane.b32.xlu0 %v2023_v9, %s6911_s19 }
  0x51   : > { %6328 = vmatmul.msk.bf16.gmra.mxu0 %vm10354_vm1, %v6550_v10  ;;  %6337 = vmatmul.msk.bf16.gmra.mxu3 %vm10354_vm1, %v6559_v11 }
  0x61   : > { %6329 = vmatmul.msk.bf16.gmra.mxu0 %vm10354_vm1, %v6551_v14 }
  0x8e   : > { %v497_v21 = vpop.f32.mrf.mxu0 }
  0x8f   : > { %v580_v22 = vmul.f32 %v7033_v19, %v497_v21 }
  0x91   : > { %v7044_v24 = vadd.f32 %v7038_v20, %v580_v22 }
  0x93   : > { %v6340_v27 = vmul.f32 -1.442695, %v7044_v24 }
  0x94   : > { %v542_v29 = vpop.f32.mrf.mxu3 }
  0x95   : > { %6621 = vpow2.f32 %v6340_v27  ;;  %v598_v32 = vmul.f32 %v7033_v19, %v542_v29 }
  0x96   : > { %v499_v33 = vpop.f32.mrf.mxu0 }
  0x97   : > { %v7058_v35 = vadd.f32 %v7038_v20, %v598_v32  ;;  %v581_v36 = vmul.f32 %v7033_v19, %v499_v33 }
  0x99   : > { %v6358_v37 = vmul.f32 -1.442695, %v7058_v35  ;;  %v7064_v38 = vadd.f32 %v7038_v20, %v581_v36  ;;  %v1870_v36 = vld [vmem:[#allocation2] sm:$0xf] }
  0x9b   : > { %v6622_v42 = vpop.eup %6621  ;;  %6623 = vpow2.f32 %v6358_v37  ;;  %v6341_v43 = vmul.f32 -1.442695, %v7064_v38 }
  0x9c   : > { %v7067_v44 = vadd.f32 1.0, %v6622_v42  ;;  %v544_v45 = vpop.f32.mrf.mxu3  ;;  %v1871_v42 = vsel %vm7111_vm0, 0, %v1870_v36  ;;  %v1646_v36 = vld [vmem:[#allocation2 + $0xc] sm:$0xf] }
  0x9d   : > { %6625 = vpow2.f32 %v6341_v43  ;;  %v599_v48 = vmul.f32 %v7033_v19, %v544_v45  ;;  %1872 = vst [vmem:[#allocation2] sm:$0xf] %v1871_v42 }
  0x9e   : > { %6627 = vrcp.f32 %v7067_v44  ;;  %v502_v50 = vpop.f32.mrf.mxu0  ;;  %v784_v3 = vand.u32 2147483647, %v7067_v44  ;;  %v786_v6 = vand.u32 2147483648, %v7067_v44  ;;  %vm780_vm14 = vweird.f32 %v7067_v44 }
  0x9f   : > { %v7074_v51 = vadd.f32 %v7038_v20, %v599_v48  ;;  %v582_v52 = vmul.f32 %v7033_v19, %v502_v50 }
  0xa0   : > { %vm7105_vm15 = vcmp.eq.f32.partialorder %v784_v3, 8.507059e+37  ;;  %v787_v28 = vor.u32 1.1754944e-38, %v786_v6 }
  0xa1   : > { %v6624_v56 = vpop.eup %6623  ;;  %v6359_v57 = vmul.f32 -1.442695, %v7074_v51  ;;  %v7080_v58 = vadd.f32 %v7038_v20, %v582_v52 }
  0xa2   : > { %v7082_v59 = vadd.f32 1.0, %v6624_v56 }
  0xa3   : > { %v6626_v63 = vpop.eup %6625  ;;  %6629 = vpow2.f32 %v6359_v57  ;;  %v6342_v0 = vmul.f32 -1.442695, %v7080_v58 }
  0xa4   : > { %v6628_v2 = vpop.eup %6627  ;;  %6631 = vrcp.f32 %v7082_v59  ;;  %v547_v4 = vpop.f32.mrf.mxu3  ;;  %v7095_v7 = vadd.f32 1.0, %v6626_v63  ;;  %v1054_v11 = vand.u32 2147483647, %v7082_v59  ;;  %v1056_v18 = vand.u32 2147483648, %v7082_v59 }
  0xa5   : > { %v776_v5 = vmul.f32 %v6628_v2, %v7067_v44  ;;  %6633 = vpow2.f32 %v6342_v0  ;;  %v600_v8 = vmul.f32 %v7033_v19, %v547_v4  ;;  %vm781_vm3 = vweird.f32 %v6628_v2  ;;  %v6560_v4 = vld [vmem:[%s6992_s13 + $0x70] sm:$0xff] }
  0xa6   : > { %6635 = vrcp.f32 %v7095_v7  ;;  %v504_v13 = vpop.f32.mrf.mxu0  ;;  %v801_v21 = vand.u32 2147483648, %v7095_v7  ;;  %v799_v29 = vand.u32 2147483647, %v7095_v7  ;;  %vm1050_vm2 = vweird.f32 %v7082_v59  ;;  %vm782_vm9 = vmor %vm780_vm14, %vm781_vm3  ;;  %6338 = vmatmul.msk.bf16.gmra.mxu3 %vm10354_vm1, %v6560_v4 }
  0xa7   : > { %v777_v10 = vsub.f32 1.0, %v776_v5  ;;  %v7118_v22 = vadd.f32 %v7038_v20, %v600_v8  ;;  %v583_v34 = vmul.f32 %v7033_v19, %v504_v13  ;;  %vm7128_vm8 = vcmp.eq.f32.partialorder %v1054_v11, 8.507059e+37 }
  0xa8   : > { %v1057_v43 = vor.u32 1.1754944e-38, %v1056_v18  ;;  %vm795_vm11 = vweird.f32 %v7095_v7  ;;  %v802_v45 = vor.u32 1.1754944e-38, %v801_v21  ;;  %vm7144_vm12 = vcmp.eq.f32.partialorder %v799_v29, 8.507059e+37 }
  0xa9   : > { %v6630_v26 = vpop.eup %6629  ;;  %v778_v27 = vmul.f32 %v6628_v2, %v777_v10  ;;  %v6360_v33 = vmul.f32 -1.442695, %v7118_v22  ;;  %v7150_v55 = vadd.f32 %v7038_v20, %v583_v34 }
  0xaa   : > { %v6632_v31 = vpop.eup %6631  ;;  %v7123_v32 = vadd.f32 1.0, %v6630_v26 }
  0xab   : > { %v6634_v37 = vpop.eup %6633  ;;  %v779_v39 = vadd.f32 %v6628_v2, %v778_v27  ;;  %v1046_v40 = vmul.f32 %v6632_v31, %v7082_v59  ;;  %vm1051_vm14 = vweird.f32 %v6632_v31  ;;  %v6343_v8 = vmul.f32 -1.442695, %v7150_v55 }
  0xac   : > { %6637 = vrcp.f32 %v7123_v32  ;;  %v6636_v47 = vpop.eup %6635  ;;  %v7139_v50 = vadd.f32 1.0, %v6634_v37  ;;  %v1071_v54 = vand.u32 2147483648, %v7123_v32  ;;  %v1069_v61 = vand.u32 2147483647, %v7123_v32  ;;  %v549_v0 = vpop.f32.mrf.mxu3 }
  0xad   : > { %v783_v48 = vsel %vm782_vm9, %v6628_v2, %v779_v39  ;;  %v1047_v49 = vsub.f32 1.0, %v1046_v40  ;;  %6639 = vpow2.f32 %v6360_v33  ;;  %v791_v53 = vmul.f32 %v6636_v47, %v7095_v7  ;;  %vm1052_vm9 = vmor %vm1050_vm2, %vm1051_vm14 }
  0xae   : > { %v788_v52 = vsel %vm7105_vm15, %v787_v28, %v783_v48  ;;  %6641 = vrcp.f32 %v7139_v50  ;;  %v814_v62 = vand.u32 2147483647, %v7139_v50  ;;  %v816_v63 = vand.u32 2147483648, %v7139_v50 }
  0xaf   : > { %v1255_v56 = vmul.f32 %v788_v52, %v7044_v24  ;;  %v1048_v57 = vmul.f32 %v6632_v31, %v1047_v49  ;;  %v792_v60 = vsub.f32 1.0, %v791_v53  ;;  %vm796_vm15 = vweird.f32 %v6636_v47 }
  0xb0   : > { %vm1065_vm3 = vweird.f32 %v7123_v32  ;;  %v1072_v6 = vor.u32 1.1754944e-38, %v1071_v54  ;;  %vm810_vm6 = vweird.f32 %v7139_v50  ;;  %v601_v14 = vmul.f32 %v7033_v19, %v549_v0 }
  0xb1   : > { %v1287_v2 = vpack.c.bf16 %v1255_v56, %v1255_v56  ;;  %v1049_v3 = vadd.f32 %v6632_v31, %v1048_v57  ;;  %v793_v24 = vmul.f32 %v6636_v47, %v792_v60  ;;  %vm1320_vm2 = vsmask.f32 4368 }
  0xb2   : > { %v7159_v5 = vpop.eup %6637  ;;  %vm7171_vm14 = vcmp.eq.f32.partialorder %v1069_v61, 8.507059e+37  ;;  %vm7175_vm5 = vcmp.eq.f32.partialorder %v814_v62, 8.507059e+37  ;;  %v817_v26 = vor.u32 1.1754944e-38, %v816_v63 }
  0xb3   : > { %v6640_v9 = vpop.eup %6639  ;;  %v1323_v10 = vshrl.u32 %v1287_v2, 16  ;;  %v1053_v11 = vsel %vm1052_vm9, %v6632_v31, %v1049_v3  ;;  %v1061_v13 = vmul.f32 %v7159_v5, %v7123_v32  ;;  %v794_v16 = vadd.f32 %v6636_v47, %v793_v24  ;;  %v1712_v32 = vld [vmem:[#allocation2 + $0x78] sm:$0xf] }
  0xb4   : > { %v1058_v59 = vsel %vm7128_vm8, %v1057_v43, %v1053_v11  ;;  %v7179_v27 = vadd.f32 1.0, %v6640_v9  ;;  %v6642_v28 = vpop.eup %6641  ;;  %v1326_v31 = vshll.u32 %v1287_v2, 16  ;;  %vm797_vm8 = vmor %vm795_vm11, %vm796_vm15  ;;  %vm1066_vm9 = vweird.f32 %v7159_v5 }
  0xb5   : > { %v7181_v29 = vrot.slane %v1323_v10, 7  ;;  %v1273_v33 = vmul.f32 %v1058_v59, %v7058_v35  ;;  %v1062_v34 = vsub.f32 1.0, %v1061_v13  ;;  %v798_v37 = vsel %vm797_vm8, %v6636_v47, %v794_v16  ;;  %v507_v35 = vpop.f32.mrf.mxu0 }
  0xb6   : > { %v806_v39 = vmul.f32 %v6642_v28, %v7139_v50  ;;  %6643 = vrcp.f32 %v7179_v27  ;;  %v803_v42 = vsel %vm7144_vm12, %v802_v45, %v798_v37  ;;  %vm811_vm11 = vweird.f32 %v6642_v28  ;;  %vm7205_vm12 = vmor %vm1065_vm3, %vm1066_vm9 }
  0xb7   : > { %v1328_v40 = vor.u32 %v1326_v31, %v7181_v29  ;;  %v1305_v41 = vpack.c.bf16 %v1273_v33, %v1273_v33  ;;  %6645 = vpow2.f32 %v6343_v8  ;;  %v1256_v7 = vmul.f32 %v803_v42, %v7064_v38  ;;  %vm7213_vm15 = vmor %vm810_vm6, %vm811_vm11 }
  0xb8   : > { %v1063_v43 = vmul.f32 %v7159_v5, %v1062_v34  ;;  %v807_v48 = vsub.f32 1.0, %v806_v39  ;;  %v1084_v52 = vand.u32 2147483647, %v7179_v27  ;;  %v584_v53 = vmul.f32 %v7033_v19, %v507_v35 }
  0xb9   : > { %v1647_v47 = vsel %vm7111_vm0, %v1328_v40, %v1646_v36  ;;  %v1476_v49 = vshrl.u32 %v1305_v41, 16  ;;  %v1329_v54 = vrot.slane %v7181_v29, 4  ;;  %v1288_v45 = vpack.c.bf16 %v1256_v7, %v1256_v7 }
  0xba   : > { %1648 = vst [vmem:[#allocation2 + $0xc] sm:$0xf] %v1647_v47  ;;  %v1064_v44 = vadd.f32 %v7159_v5, %v1063_v43  ;;  %v808_v56 = vmul.f32 %v6642_v28, %v807_v48  ;;  %v1479_v60 = vshll.u32 %v1305_v41, 16  ;;  %vm1080_vm8 = vweird.f32 %v7179_v27 }
  0xbb   : > { %v7209_v57 = vrot.slane %v1476_v49, 7  ;;  %v1086_v62 = vand.u32 2147483648, %v7179_v27  ;;  %v1331_v0 = vshrl.u32 %v1288_v45, 16  ;;  %vm7222_vm3 = vcmp.eq.f32.partialorder %v1084_v52, 8.507059e+37 }
  0xbc   : > { %v6644_v63 = vpop.eup %6643  ;;  %v1068_v2 = vsel %vm7205_vm12, %v7159_v5, %v1064_v44  ;;  %v809_v3 = vadd.f32 %v6642_v28, %v808_v56  ;;  %v7231_v10 = vadd.f32 %v7038_v20, %v601_v14  ;;  %v1334_v13 = vshll.u32 %v1288_v45, 16 }
  0xbd   : > { %v6646_v50 = vpop.eup %6645  ;;  %v1481_v24 = vor.u32 %v1479_v60, %v7209_v57  ;;  %v1073_v8 = vsel %vm7171_vm14, %v1072_v6, %v1068_v2  ;;  %v1076_v9 = vmul.f32 %v6644_v63, %v7179_v27  ;;  %v1333_v11 = vrot.slane %v1331_v0, 7  ;;  %v1653_v6 = vld [vmem:[#allocation2 + $0x14] sm:$0x1]  ;;  %v509_v41 = vpop.f32.mrf.mxu0  ;;  %v1716_v27 = vld [vmem:[#allocation2 + $0x80] sm:$0x1] }
  0xbe   : > { %v1274_v5 = vmul.f32 %v1073_v8, %v7074_v51  ;;  %v813_v59 = vsel %vm7213_vm15, %v6642_v28, %v809_v3  ;;  %vm10385_vm6 = vsmask.f32 256  ;;  %vm1081_vm14 = vweird.f32 %v6644_v63  ;;  %v2513_v60 = vld [vmem:[#allocation2] sm:$0xe]  ;;  %v552_v3 = vpop.f32.mrf.mxu3 }
  0xbf   : > { %v1713_v16 = vsel %vm7111_vm0, %v1481_v24, %v1712_v32  ;;  %vm7240_vm9 = vmor %vm10385_vm6, %vm1320_vm2  ;;  %v818_v14 = vsel %vm7175_vm5, %v817_v26, %v813_v59  ;;  %v1077_v29 = vsub.f32 1.0, %v1076_v9  ;;  %v1336_v51 = vor.u32 %v1334_v13, %v1333_v11 }
  0xc0   : > { %1714 = vst [vmem:[#allocation2 + $0x78] sm:$0xf] %v1713_v16  ;;  %v1338_v31 = vrot.slane %v1333_v11, 4  ;;  %v1306_v33 = vpack.c.bf16 %v1274_v5, %v1274_v5  ;;  %v1257_v28 = vmul.f32 %v818_v14, %v7080_v58  ;;  %v1087_v37 = vor.u32 1.1754944e-38, %v1086_v62  ;;  %vm7259_vm5 = vmor %vm1080_vm8, %vm1081_vm14 }
  0xc1   : > { %v1764_v34 = vld [vmem:[#allocation2 + $0xc] sm:$0x1]  ;;  %v1078_v36 = vmul.f32 %v6644_v63, %v1077_v29  ;;  %v7247_v39 = vadd.f32 1.0, %v6646_v50  ;;  %v6361_v40 = vmul.f32 -1.442695, %v7231_v10  ;;  %v1337_v26 = vsel %vm7240_vm9, %v1329_v54, %v1336_v51 }
  0xc2   : > { %v1765_v21 = vsel %vm7022_vm7, 0, %v1764_v34  ;;  %v1654_v42 = vsel %vm7022_vm7, %v1338_v31, %v1653_v6  ;;  %v1484_v35 = vshrl.u32 %v1306_v33, 16  ;;  %v1289_v7 = vpack.c.bf16 %v1257_v28, %v1257_v28  ;;  %v1656_v50 = vld [vmem:[#allocation2 + $0x18] sm:$0xf] }
  0xc3   : > { %1766 = vst [vmem:[#allocation2 + $0xc] sm:$0x1] %v1765_v21  ;;  %v1079_v43 = vadd.f32 %v6644_v63, %v1078_v36  ;;  %6647 = vrcp.f32 %v7247_v39  ;;  %v7265_v48 = vadd.f32 %v7038_v20, %v584_v53  ;;  %vm10390_vm2 = vcmask 27648  }
  0xc4   : > { %1650 = vst.msk [vmem:[#allocation2 + $0x10] sm:$0xf] %vm10390_vm2, %v1337_v26  ;;  %v1486_v47 = vrot.slane %v1484_v35, 7  ;;  %v1487_v49 = vshll.u32 %v1306_v33, 16  ;;  %v585_v52 = vmul.f32 %v7033_v19, %v509_v41  ;;  %v1340_v54 = vshrl.u32 %v1289_v7, 16  ;;  %vm10391_vm11 = vmmov %vm10390_vm2 }
  0xc5   : > { %1655 = vst [vmem:[#allocation2 + $0x14] sm:$0x1] %v1654_v42  ;;  %v1083_v45 = vsel %vm7259_vm5, %v6644_v63, %v1079_v43  ;;  %6649 = vpow2.f32 %v6361_v40  ;;  %v1482_v44 = vrot.slane %v7209_v57, 4  ;;  %v1343_v32 = vshll.u32 %v1289_v7, 16  ;;  %v1949_v33 = vld [vmem:[#allocation2] sm:$0xf] }
  0xc6   : > { %v1489_v38 = vor.u32 %v1487_v49, %v1486_v47  ;;  %v1491_v56 = vrot.slane %v1486_v47, 4  ;;  %v1088_v53 = vsel %vm7222_vm3, %v1087_v37, %v1083_v45  ;;  %v7274_v62 = vrot.slane %v1340_v54, 7  ;;  %v1719_v42 = vld [vmem:[#allocation2 + $0x84] sm:$0xf] }
  0xc7   : > { %v1791_v61 = vld [vmem:[#allocation2 + $0x78] sm:$0x1]  ;;  %v1275_v0 = vmul.f32 %v1088_v53, %v7118_v22  ;;  %v6344_v2 = vmul.f32 -1.442695, %v7265_v48  ;;  %v7285_v24 = vadd.f32 %v7038_v20, %v585_v52  ;;  %v829_v11 = vand.u32 2147483647, %v7247_v39  ;;  %v554_v53 = vpop.f32.mrf.mxu3 }
  0xc8   : > { %v1792_v63 = vsel %vm7022_vm7, 0, %v1791_v61  ;;  %v1490_v57 = vsel %vm7240_vm9, %v1482_v44, %v1489_v38  ;;  %v1717_v4 = vsel %vm7022_vm7, %v1491_v56, %v1716_v27  ;;  %v1345_v22 = vor.u32 %v1343_v32, %v7274_v62 }
  0xc9   : > { %v7287_v8 = vpop.eup %6647  ;;  %1793 = vst [vmem:[#allocation2 + $0x78] sm:$0x1] %v1792_v63  ;;  %v1307_v9 = vpack.c.bf16 %v1275_v0, %v1275_v0  ;;  %6651 = vpow2.f32 %v6344_v2  ;;  %v831_v5 = vand.u32 2147483648, %v7247_v39  ;;  %v6345_v59 = vmul.f32 -1.442695, %v7285_v24 }
  0xca   : > { %1715 = vst.msk [vmem:[#allocation2 + $0x7c] sm:$0xf] %vm10391_vm11, %v1490_v57  ;;  %v821_v13 = vmul.f32 %v7287_v8, %v7247_v39  ;;  %v6372_v16 = vrot.slane %v2513_v60, 9  ;;  %v1657_v14 = vsel %vm7111_vm0, %v1345_v22, %v1656_v50  ;;  %v602_v31 = vmul.f32 %v7033_v19, %v552_v3  ;;  %v2853_v26 = vld [vmem:[#allocation2 + $0xc] sm:$0xf] }
  0xcb   : > { %v6650_v6 = vpop.eup %6649  ;;  %1718 = vst [vmem:[#allocation2 + $0x80] sm:$0x1] %v1717_v4  ;;  %v1493_v29 = vshrl.u32 %v1307_v9, 16  ;;  %v1496_v51 = vshll.u32 %v1307_v9, 16  ;;  %6653 = vpow2.f32 %v6345_v59  ;;  %vm825_vm12 = vweird.f32 %v7247_v39  ;;  %2917 = vrot.lane.b32.xlu1 %v2853_v26, %s6912_s20  ;;  %v2854_v56 = vld [vmem:[#allocation2 + $0x10] sm:$0xf] }
  0xcc   : > { %v1819_v28 = vld [vmem:[#allocation2 + $0x14] sm:$0x1]  ;;  %1658 = vst [vmem:[#allocation2 + $0x18] sm:$0xf] %v1657_v14  ;;  %v822_v34 = vsub.f32 1.0, %v821_v13  ;;  %v7299_v36 = vadd.f32 1.0, %v6650_v6  ;;  %v2615_v37 = vsel %vm7050_vm10, %v6372_v16, %v2614_v25  ;;  %v7312_v21 = vadd.f32 %v7038_v20, %v602_v31 }
  0xcd   : > { %v1820_v40 = vsel %vm7015_vm4, 0, %v1819_v28  ;;  %v7307_v41 = vrot.slane %v1493_v29, 7  ;;  %2724 = vrot.lane.b32.xlu2 %v2615_v37, %s6910_s18  ;;  %vm826_vm15 = vweird.f32 %v7287_v8  ;;  %vm7316_vm8 = vcmp.eq.f32.partialorder %v829_v11, 8.507059e+37 }
  0xce   : > { %1821 = vst [vmem:[#allocation2 + $0x14] sm:$0x1] %v1820_v40  ;;  %v823_v23 = vmul.f32 %v7287_v8, %v822_v34  ;;  %6655 = vrcp.f32 %v7299_v36  ;;  %v832_v7 = vor.u32 1.1754944e-38, %v831_v5  ;;  %v6362_v43 = vmul.f32 -1.442695, %v7312_v21  ;;  %vm7335_vm6 = vmor %vm825_vm12, %vm826_vm15 }
  0xcf   : > { %v6652_v35 = vpop.eup %6651  ;;  %v1498_v58 = vor.u32 %v1496_v51, %v7307_v41  ;;  %v2001_v47 = vshrl.u32 %v1949_v33, 16  ;;  %v1346_v49 = vrot.slane %v7274_v62, 4  ;;  %vm1095_vm3 = vweird.f32 %v7299_v36 }
  0xd0   : > { %v824_v52 = vadd.f32 %v7287_v8, %v823_v23  ;;  %v7327_v27 = vadd.f32 1.0, %v6652_v35  ;;  %v1099_v44 = vand.u32 2147483647, %v7299_v36  ;;  %6657 = vpow2.f32 %v6362_v43 }
  0xd1   : > { %v1720_v54 = vsel %vm7111_vm0, %v1498_v58, %v1719_v42  ;;  %v2004_v38 = vshll.u32 %v1949_v33, 16  ;;  %v6654_v60 = vpop.eup %6653  ;;  %v1499_v32 = vrot.slane %v7307_v41, 4  ;;  %v1101_v39 = vand.u32 2147483648, %v7299_v36 }
  0xd2   : > { %v1846_v61 = vld [vmem:[#allocation2 + $0x80] sm:$0x1]  ;;  %1721 = vst [vmem:[#allocation2 + $0x84] sm:$0xf] %v1720_v54  ;;  %v828_v0 = vsel %vm7335_vm6, %v7287_v8, %v824_v52  ;;  %6659 = vrcp.f32 %v7327_v27  ;;  %v844_v57 = vand.u32 2147483647, %v7327_v27  ;;  %v603_v11 = vmul.f32 %v7033_v19, %v554_v53 }
  0xd3   : > { %v1847_v2 = vsel %vm7015_vm4, 0, %v1846_v61  ;;  %v1767_v3 = vld [vmem:[#allocation2 + $0x18] sm:$0x1]  ;;  %v833_v63 = vsel %vm7316_vm8, %v832_v7, %v828_v0  ;;  %v2003_v4 = vrot.slane %v2001_v47, 4  ;;  %v7354_v9 = vadd.f32 1.0, %v6654_v60 }
  0xd4   : > { %v6656_v50 = vpop.eup %6655  ;;  %1848 = vst [vmem:[#allocation2 + $0x80] sm:$0x1] %v1847_v2  ;;  %v1768_v22 = vsel %vm7022_vm7, 0, %v1767_v3  ;;  %v1258_v8 = vmul.f32 %v833_v63, %v7150_v55  ;;  %vm7358_vm14 = vcmp.eq.f32.partialorder %v1099_v44, 8.507059e+37  ;;  %v846_v59 = vand.u32 2147483648, %v7327_v27 }
  0xd5   : > { %1769 = vst [vmem:[#allocation2 + $0x18] sm:$0x1] %v1768_v22  ;;  %v1091_v13 = vmul.f32 %v6656_v50, %v7299_v36  ;;  %v2006_v16 = vrot.slane %v2004_v38, 5  ;;  %2919 = vrot.lane.b32.xlu2 %v2854_v56, %s6912_s20  ;;  %v1102_v14 = vor.u32 1.1754944e-38, %v1101_v39  ;;  %vm840_vm5 = vweird.f32 %v7327_v27  ;;  %v1660_v52 = vld [vmem:[#allocation2 + $0x20] sm:$0x1] }
  0xd6   : > { %v1290_v6 = vpack.c.bf16 %v1258_v8, %v1258_v8  ;;  %6661 = vrcp.f32 %v7354_v9  ;;  %v6658_v55 = vpop.eup %6657  ;;  %vm1096_vm2 = vweird.f32 %v6656_v50  ;;  %vm7366_vm11 = vcmp.eq.f32.partialorder %v844_v57, 8.507059e+37  ;;  %v2872_v0 = vld [vmem:[#allocation2 + $0x7c] sm:$0xf]  ;;  %v2516_v57 = vld [vmem:[#allocation2 + $0xc] sm:$0xe] }
  0xd7   : > { %v1092_v29 = vsub.f32 1.0, %v1091_v13  ;;  %v859_v31 = vand.u32 2147483647, %v7354_v9  ;;  %v861_v33 = vand.u32 2147483648, %v7354_v9  ;;  %v7372_v37 = vadd.f32 1.0, %v6658_v55  ;;  %vm7384_vm15 = vmor %vm1095_vm3, %vm1096_vm2 }
  0xd8   : > { %v6660_v28 = vpop.eup %6659  ;;  %v1348_v34 = vshrl.u32 %v1290_v6, 16  ;;  %v2007_v40 = vor.u32 %v2006_v16, %v2003_v4  ;;  %v7375_v26 = vadd.f32 %v7038_v20, %v603_v11  ;;  %v847_v35 = vor.u32 1.1754944e-38, %v846_v59  ;;  %v7400_v4 = vld [vmem:[#allocation2 + $0x10] sm:$0xf]  ;;  %v3046_v16 = vld [vmem:[#allocation2 + $0xc] sm:$0xf] }
  0xd9   : > { %v1794_v42 = vld [vmem:[#allocation2 + $0x84] sm:$0x1]  ;;  %v1093_v23 = vmul.f32 %v6656_v50, %v1092_v29  ;;  %v836_v25 = vmul.f32 %v6660_v28, %v7327_v27  ;;  %vm855_vm12 = vweird.f32 %v7354_v9  ;;  %v1351_v43 = vshll.u32 %v1290_v6, 16 }
  0xda   : > { %v1795_v58 = vsel %vm7022_vm7, 0, %v1794_v42  ;;  %v1350_v7 = vrot.slane %v1348_v34, 7  ;;  %6663 = vrcp.f32 %v7372_v37  ;;  %vm841_vm8 = vweird.f32 %v6660_v28 }
  0xdb   : > { %1796 = vst [vmem:[#allocation2 + $0x84] sm:$0x1] %v1795_v58  ;;  %v1094_v54 = vadd.f32 %v6656_v50, %v1093_v23  ;;  %v837_v45 = vsub.f32 1.0, %v836_v25  ;;  %vm7389_vm6 = vcmp.eq.f32.partialorder %v859_v31, 8.507059e+37  ;;  %v862_v38 = vor.u32 1.1754944e-38, %v861_v33  ;;  %vm7413_vm2 = vmor %vm840_vm5, %vm841_vm8 }
  0xdc   : > { %v6662_v56 = vpop.eup %6661  ;;  %v1353_v53 = vor.u32 %v1351_v43, %v1350_v7  ;;  %v1355_v60 = vrot.slane %v1350_v7, 4  ;;  %vm1110_vm3 = vweird.f32 %v7372_v37  ;;  %v2008_v36 = vrot.slane %v2007_v40, 4 }
  0xdd   : > { %v6363_v61 = vmul.f32 -1.442695, %v7375_v26  ;;  %v1098_v39 = vsel %vm7384_vm15, %v6656_v50, %v1094_v54  ;;  %v838_v2 = vmul.f32 %v6660_v28, %v837_v45  ;;  %v851_v3 = vmul.f32 %v6662_v56, %v7354_v9  ;;  %2955 = vrot.lane.b32.xlu2 %v2872_v0, %s6912_s20  ;;  %v7446_v9 = vld [vmem:[#allocation2 + $0x10] sm:$0xf] }
  0xde   : > { %v1114_v63 = vand.u32 2147483647, %v7372_v37  ;;  %v1354_v22 = vsel %vm7240_vm9, %v1346_v49, %v1353_v53  ;;  %v1661_v8 = vsel %vm7022_vm7, %v1355_v60, %v1660_v52  ;;  %v1103_v50 = vsel %vm7358_vm14, %v1102_v14, %v1098_v39  ;;  %v1723_v53 = vld [vmem:[#allocation2 + $0x8c] sm:$0x1] }
  0xdf   : > { %v1116_v13 = vand.u32 2147483648, %v7372_v37  ;;  %vm10406_vm15 = vcmask 27648   ;;  %v1276_v62 = vmul.f32 %v1103_v50, %v7231_v10  ;;  %v839_v49 = vadd.f32 %v6660_v28, %v838_v2  ;;  %1662 = vst [vmem:[#allocation2 + $0x20] sm:$0x1] %v1661_v8 }
  0xe0   : > { %1659 = vst.msk [vmem:[#allocation2 + $0x1c] sm:$0xf] %vm10406_vm15, %v1354_v22  ;;  %v852_v59 = vsub.f32 1.0, %v851_v3  ;;  %vm856_vm1 = vweird.f32 %v6662_v56  ;;  %v6664_v6 = vpop.eup %6663  ;;  %v2013_v27 = vsel %vm7087_vm13, %v2008_v36, %v7069_v46  ;;  %6665 = vpow2.f32 %v6363_v61 }
  0xe1   : > { %v6373_v5 = vrot.slane %v2516_v57, 9  ;;  %v2621_v14 = vrot.slane %v7400_v4, 5  ;;  %v1308_v55 = vpack.c.bf16 %v1276_v62, %v1276_v62  ;;  %v843_v29 = vsel %vm7413_vm2, %v6660_v28, %v839_v49  ;;  %2384 = vrot.lane.b32.xlu0 %v2013_v27, %s6911_s19  ;;  %vm7432_vm14 = vmor %vm855_vm12, %vm856_vm1  ;;  %v1663_v62 = vld [vmem:[#allocation2 + $0x24] sm:$0xf]  ;;  %v3073_v27 = vld [vmem:[#allocation2 + $0x78] sm:$0xf] }
  0xe2   : > { %v853_v31 = vmul.f32 %v6662_v56, %v852_v59  ;;  %v1106_v10 = vmul.f32 %v6664_v6, %v7372_v37  ;;  %v848_v33 = vsel %vm7366_vm11, %v847_v35, %v843_v29  ;;  %vm7436_vm5 = vcmp.eq.f32.partialorder %v1114_v63, 8.507059e+37  ;;  %vm10413_vm12 = vmmov %vm10406_vm15  ;;  %v2518_v59 = vld [vmem:[#allocation2 + $0x14] sm:$0x1]  ;;  %v1726_v4 = vld [vmem:[#allocation2 + $0x90] sm:$0xf] }
  0xe3   : > { %v2622_v28 = vsel %vm7050_vm10, %v6373_v5, %v2621_v14  ;;  %v3095_v40 = vshrl.u32 %v3046_v16, 16  ;;  %v1501_v42 = vshrl.u32 %v1308_v55, 16  ;;  %v1259_v51 = vmul.f32 %v848_v33, %v7265_v48 }
  0xe4   : > { %v854_v23 = vadd.f32 %v6662_v56, %v853_v31  ;;  %v1117_v25 = vor.u32 1.1754944e-38, %v1116_v13  ;;  %2728 = vrot.lane.b32.xlu1 %v2622_v28, %s6910_s18  ;;  %v1504_v35 = vshll.u32 %v1308_v55, 16  ;;  %v1107_v58 = vsub.f32 1.0, %v1106_v10  ;;  %v2871_v13 = vld [vmem:[#allocation2 + $0x78] sm:$0xf] }
  0xe5   : > { %vm1111_vm1 = vweird.f32 %v6664_v6  ;;  %v3098_v7 = vshll.u32 %v3046_v16, 16  ;;  %v1503_v43 = vrot.slane %v1501_v42, 7  ;;  %v1291_v47 = vpack.c.bf16 %v1259_v51, %v1259_v51  ;;  %v7482_v31 = vld [vmem:[#allocation2 + $0x7c] sm:$0xf] }
  0xe6   : > { %v858_v52 = vsel %vm7432_vm14, %v6662_v56, %v854_v23  ;;  %v3097_v54 = vrot.slane %v3095_v40, 4  ;;  %v6666_v45 = vpop.eup %6665  ;;  %v1108_v60 = vmul.f32 %v6664_v6, %v1107_v58  ;;  %v3104_v61 = vshll.u32 %v7446_v9, 16  ;;  %v1822_v0 = vld [vmem:[#allocation2 + $0x20] sm:$0x1]  ;;  %vm7456_vm11 = vmor %vm1110_vm3, %vm1111_vm1  ;;  %v1667_v23 = vld [vmem:[#allocation2 + $0x2c] sm:$0x1] }
  0xe7   : > { %v863_v48 = vsel %vm7389_vm6, %v862_v38, %v858_v52  ;;  %v3100_v36 = vrot.slane %v3098_v7, 5  ;;  %v1506_v39 = vor.u32 %v1504_v35, %v1503_v43  ;;  %v1508_v2 = vrot.slane %v1503_v43, 4  ;;  %v512_v7 = vpop.f32.mrf.mxu0  ;;  %vm10416_vm3 = vmmov %vm10413_vm12 }
  0xe8   : > { %v1357_v3 = vshrl.u32 %v1291_v47, 16  ;;  %v1360_v63 = vshll.u32 %v1291_v47, 16  ;;  %v1823_v44 = vsel %vm7015_vm4, 0, %v1822_v0  ;;  %v1260_v38 = vmul.f32 %v863_v48, %v7285_v24  ;;  %vm10421_vm1 = vmmov %vm10416_vm3 }
  0xe9   : > { %v1109_v57 = vadd.f32 %v6664_v6, %v1108_v60  ;;  %v7463_v22 = vadd.f32 1.0, %v6666_v45  ;;  %1824 = vst [vmem:[#allocation2 + $0x20] sm:$0x1] %v1823_v44  ;;  %v1507_v8 = vsel %vm7240_vm9, %v1499_v32, %v1506_v39  ;;  %v1724_v37 = vsel %vm7022_vm7, %v1508_v2, %v1723_v53 }
  0xea   : > { %v1359_v50 = vrot.slane %v1357_v3, 7  ;;  %v3101_v11 = vor.u32 %v3100_v36, %v3097_v54  ;;  %1722 = vst.msk [vmem:[#allocation2 + $0x88] sm:$0xf] %vm10413_vm12, %v1507_v8  ;;  %v1292_v49 = vpack.c.bf16 %v1260_v38, %v1260_v38  ;;  %v7478_v16 = vrot.slane %v3104_v61, 5  ;;  %v1979_v36 = vld [vmem:[#allocation2 + $0x78] sm:$0xf] }
  0xeb   : > { %v1113_v24 = vsel %vm7456_vm11, %v6664_v6, %v1109_v57  ;;  %6667 = vrcp.f32 %v7463_v22  ;;  %1725 = vst [vmem:[#allocation2 + $0x8c] sm:$0x1] %v1724_v37  ;;  %vm1125_vm8 = vweird.f32 %v7463_v22  ;;  %v1129_v33 = vand.u32 2147483647, %v7463_v22 }
  0xec   : > { %v1362_v41 = vor.u32 %v1360_v63, %v1359_v50  ;;  %v1118_v32 = vsel %vm7436_vm5, %v1117_v25, %v1113_v24  ;;  %2953 = vrot.lane.b32.xlu1 %v2871_v13, %s6912_s20  ;;  %v1363_v5 = vrot.slane %v1359_v50, 4  ;;  %v1365_v55 = vshrl.u32 %v1292_v49, 16  ;;  %v6552_v63 = vld [vmem:[%s6992_s13 + $0x30] sm:$0xff]  ;;  %vm10420_vm5 = vmmov %vm10416_vm3 }
  0xed   : > { %v1368_v29 = vshll.u32 %v1292_v49, 16  ;;  %v1277_v6 = vmul.f32 %v1118_v32, %v7312_v21  ;;  %v1131_v46 = vand.u32 2147483648, %v7463_v22  ;;  %v3102_v34 = vrot.slane %v3101_v11, 4  ;;  %v7521_v11 = vld [vmem:[#allocation2 + $0x7c] sm:$0xf] }
  0xee   : > { %v1664_v10 = vsel %vm7111_vm0, %v1362_v41, %v1663_v62  ;;  %v1367_v28 = vrot.slane %v1365_v55, 7  ;;  %v2623_v42 = vrot.slane %v2621_v14, 4  ;;  %v2624_v51 = vrot.slane %v2518_v59, 5  ;;  %v2544_v55 = vld [vmem:[#allocation2 + $0x7c] sm:$0xf] }
  0xef   : > { %1665 = vst [vmem:[#allocation2 + $0x24] sm:$0xf] %v1664_v10  ;;  %v1309_v40 = vpack.c.bf16 %v1277_v6, %v1277_v6  ;;  %v3107_v21 = vsel %vm7087_vm13, %v3102_v34, %v7478_v16  ;;  %v3311_v25 = vshrl.u32 %v3073_v27, 16  ;;  %v3314_v35 = vshll.u32 %v3073_v27, 16 }
  0xf0   : > { %v3320_v58 = vshll.u32 %v7482_v31, 16  ;;  %v1370_v47 = vor.u32 %v1368_v29, %v1367_v28  ;;  %v1372_v52 = vrot.slane %v1367_v28, 4  ;;  %3478 = vrot.lane.b32.xlu0 %v3107_v21, %s6913_s21  ;;  %vm7499_vm6 = vcmp.eq.f32.partialorder %v1129_v33, 8.507059e+37  ;;  %v1952_v21 = vld [vmem:[#allocation2 + $0xc] sm:$0xf] }
  0xf1   : > { %v7494_v43 = vpop.eup %6667  ;;  %v1510_v54 = vshrl.u32 %v1309_v40, 16  ;;  %v1513_v45 = vshll.u32 %v1309_v40, 16  ;;  %v2625_v48 = vsel %vm7050_vm10, %v2623_v42, %v2624_v51  ;;  %v3313_v60 = vrot.slane %v3311_v25, 4  ;;  %v514_v51 = vpop.f32.mrf.mxu0 }
  0xf2   : > { %v1121_v14 = vmul.f32 %v7494_v43, %v7463_v22  ;;  %v1849_v61 = vld [vmem:[#allocation2 + $0x8c] sm:$0x1]  ;;  %v1371_v0 = vsel %vm7240_vm9, %v1363_v5, %v1370_v47  ;;  %v1668_v39 = vsel %vm7022_vm7, %v1372_v52, %v1667_v23  ;;  %2730 = vrot.lane.b32.xlu2 %v2625_v48, %s6910_s18  ;;  %v3316_v3 = vrot.slane %v3314_v35, 5  ;;  %v2543_v5 = vld [vmem:[#allocation2 + $0x78] sm:$0xe] }
  0xf3   : > { %v7509_v2 = vrot.slane %v1510_v54, 7  ;;  %v1850_v56 = vsel %vm7015_vm4, 0, %v1849_v61  ;;  %1666 = vst.msk [vmem:[#allocation2 + $0x28] sm:$0xf] %vm10416_vm3, %v1371_v0  ;;  %vm1126_vm2 = vweird.f32 %v7494_v43  ;;  %v1132_v38 = vor.u32 1.1754944e-38, %v1131_v46 }
  0xf4   : > { %v1122_v44 = vsub.f32 1.0, %v1121_v14  ;;  %1851 = vst [vmem:[#allocation2 + $0x8c] sm:$0x1] %v1850_v56  ;;  %v3317_v8 = vor.u32 %v3316_v3, %v3313_v60  ;;  %v7518_v37 = vrot.slane %v3320_v58, 5  ;;  %v586_v50 = vmul.f32 %v7033_v19, %v512_v7  ;;  %vm7533_vm14 = vmor %vm1125_vm8, %vm1126_vm2  ;;  %v2545_v23 = vld [vmem:[#allocation2 + $0x80] sm:$0x1] }
  0xf5   : > { %v1515_v57 = vor.u32 %v1513_v45, %v7509_v2  ;;  %vm10417_vm15 = vcmask 64512   ;;  %1669 = vst [vmem:[#allocation2 + $0x2c] sm:$0x1] %v1668_v39  ;;  %v2241_v49 = vshrl.u32 %v1979_v36, 16  ;;  %v2244_v24 = vshll.u32 %v1979_v36, 16 }
  0xf6   : > { %6330 = vmatmul.msk.bf16.gmra.mxu0 %vm10417_vm15, %v6552_v63  ;;  %v1770_v13 = vld [vmem:[#allocation2 + $0x24] sm:$0x1]  ;;  %v1123_v62 = vmul.f32 %v7494_v43, %v1122_v44  ;;  %v3318_v32 = vrot.slane %v3317_v8, 4  ;;  %v7538_v27 = vadd.f32 %v7038_v20, %v586_v50  ;;  %v2250_v33 = vshll.u32 %v7521_v11, 16  ;;  %v7557_v58 = vld [vmem:[%s10347_s4] ss:$0 sm:$0xff] }
  0xf7   : > { %v1771_v59 = vsel %vm7022_vm7, 0, %v1770_v13  ;;  %v1727_v41 = vsel %vm7111_vm0, %v1515_v57, %v1726_v4  ;;  %v2243_v6 = vrot.slane %v2241_v49, 4  ;;  %v2246_v10 = vrot.slane %v2244_v24, 5  ;;  %v7565_v45 = vld [vmem:[#allocation2 + $0x10] sm:$0xf] }
  0xf8   : > { %1772 = vst [vmem:[#allocation2 + $0x24] sm:$0x1] %v1771_v59  ;;  %v1124_v29 = vadd.f32 %v7494_v43, %v1123_v62  ;;  %v3108_v22 = vshrl.u32 %v7446_v9, 16  ;;  %v3323_v46 = vsel %vm7087_vm13, %v3318_v32, %v7518_v37  ;;  %v6346_v34 = vmul.f32 -1.442695, %v7538_v27 }
  0xf9   : > { %1728 = vst [vmem:[#allocation2 + $0x90] sm:$0xf] %v1727_v41  ;;  %3514 = vrot.lane.b32.xlu0 %v3323_v46, %s6913_s21  ;;  %v2247_v28 = vor.u32 %v2246_v10, %v2243_v6  ;;  %v6382_v40 = vrot.slane %v2543_v5, 9  ;;  %v2684_v42 = vrot.slane %v2544_v55, 5  ;;  %v1516_v25 = vrot.slane %v7509_v2, 4 }
  0xfa   : > { %v1128_v20 = vsel %vm7533_vm14, %v7494_v43, %v1124_v29  ;;  %6669 = vpow2.f32 %v6346_v34  ;;  %v587_v7 = vmul.f32 %v7557_v58, %v514_v51  ;;  %v7561_v52 = vrot.slane %v2250_v33, 5  ;;  %v7571_v14 = vld [vmem:[%s10348_s5] ss:$0 sm:$0xff]  ;;  %v7581_v3 = vld [vmem:[#allocation2 + $0x1c] sm:$0xf]  ;;  %vm10427_vm14 = vmmov %vm10421_vm1 }
  0xfb   : > { %v1133_v35 = vsel %vm7499_vm6, %v1132_v38, %v1128_v20  ;;  %v2248_v47 = vrot.slane %v2247_v28, 4  ;;  %v2685_v54 = vsel %vm7050_vm10, %v6382_v40, %v2684_v42  ;;  %v2025_v48 = vshrl.u32 %v1952_v21, 16  ;;  %v1955_v63 = vld [vmem:[#allocation2 + $0x18] sm:$0xf]  ;;  %v7591_v5 = vld [vmem:[#allocation2 + $0x1c] sm:$0xf]  ;;  %vm10424_vm6 = vmmov %vm10421_vm1 }
  0xfc   : > { %v1278_v43 = vmul.f32 %v1133_v35, %v7375_v26  ;;  %v1825_v4 = vld [vmem:[#allocation2 + $0x2c] sm:$0x1]  ;;  %2764 = vrot.lane.b32.xlu1 %v2685_v54, %s6910_s18  ;;  %v7574_v53 = vadd.f32 %v7571_v14, %v587_v7  ;;  %v2687_v26 = vrot.slane %v2545_v23, 5  ;;  %v2028_v60 = vshll.u32 %v1952_v21, 16  ;;  %v2855_v56 = vld [vmem:[#allocation2 + $0x18] sm:$0xf] }
  0xfd   : > { %v1826_v36 = vsel %vm7015_vm4, 0, %v1825_v4  ;;  %v2253_v0 = vsel %vm7087_vm13, %v2248_v47, %v7561_v52  ;;  %v2686_v39 = vrot.slane %v2684_v42, 4  ;;  %v2027_v38 = vrot.slane %v2025_v48, 4  ;;  %v2519_v8 = vld [vmem:[#allocation2 + $0x18] sm:$0xe] }
  0xfe   : > { %v1310_v61 = vpack.c.bf16 %v1278_v43, %v1278_v43  ;;  %1827 = vst [vmem:[#allocation2 + $0x2c] sm:$0x1] %v1826_v36  ;;  %2424 = vrot.lane.b32.xlu2 %v2253_v0, %s6911_s19  ;;  %v6347_v44 = vmul.f32 -1.442695, %v7574_v53  ;;  %v2030_v57 = vrot.slane %v2028_v60, 5  ;;  %v2254_v49 = vshrl.u32 %v7521_v11, 16 }
  0xff   : > { %v2034_v24 = vshll.u32 %v7565_v45, 16  ;;  %v2688_v19 = vsel %vm7050_vm10, %v2686_v39, %v2687_v26  ;;  %v1905_v55 = vld [vmem:[#allocation2 + $0x78] sm:$0xf]  ;;  %v2038_v10 = vshrl.u32 %v7565_v45, 16  ;;  %v2628_v34 = vrot.slane %v7581_v3, 5 }
 0x100   : > { %v1797_v50 = vld [vmem:[#allocation2 + $0x90] sm:$0x1]  ;;  %v1518_v13 = vshrl.u32 %v1310_v61, 16  ;;  %v1521_v62 = vshll.u32 %v1310_v61, 16  ;;  %v6670_v59 = vpop.eup %6669  ;;  %6671 = vpow2.f32 %v6347_v44  ;;  %v2031_v32 = vor.u32 %v2030_v57, %v2027_v38  ;;  %v1730_v33 = vld [vmem:[#allocation2 + $0x98] sm:$0x1]  ;;  %v557_v57 = vpop.f32.mrf.mxu3 }
 0x101   : > { %v1798_v41 = vsel %vm7022_vm7, 0, %v1797_v50  ;;  %v7593_v6 = vadd.f32 1.0, %v6670_v59  ;;  %2921 = vrot.lane.b32.xlu0 %v2855_v56, %s6912_s20  ;;  %v2036_v11 = vrot.slane %v2034_v24, 5  ;;  %v2049_v20 = vshrl.u32 %v1955_v63, 16  ;;  %1937 = vst.msk [vmem:[#allocation3 + $0x50] sm:$0xf] %vm10420_vm5, %v1905_v55 }
 0x102   : > { %1799 = vst [vmem:[#allocation2 + $0x90] sm:$0x1] %v1798_v41  ;;  %v1520_v29 = vrot.slane %v1518_v13, 7  ;;  %v2032_v46 = vrot.slane %v2031_v32, 4  ;;  %v2052_v28 = vshll.u32 %v1955_v63, 16  ;;  %v6374_v51 = vrot.slane %v2519_v8, 9 }
 0x103   : > { %6673 = vrcp.f32 %v7593_v6  ;;  %v874_v23 = vand.u32 2147483647, %v7593_v6  ;;  %v876_v21 = vand.u32 2147483648, %v7593_v6  ;;  %v2058_v7 = vshll.u32 %v7591_v5, 16  ;;  %v1954_v43 = vld [vmem:[#allocation2 + $0x14] sm:$0x1] }
 0x104   : > { %v1523_v40 = vor.u32 %v1521_v62, %v1520_v29  ;;  %v1525_v42 = vrot.slane %v1520_v29, 4  ;;  %v2037_v35 = vsel %vm7087_vm13, %v2032_v46, %v2036_v11  ;;  %v2051_v45 = vrot.slane %v2049_v20, 4  ;;  %v3049_v48 = vld [vmem:[#allocation2 + $0x18] sm:$0xf]  ;;  %v7642_v20 = vld [vmem:[#allocation2 + $0x1c] sm:$0xf] }
 0x105   : > { %2388 = vrot.lane.b32.xlu1 %v2037_v35, %s6911_s19  ;;  %v2054_v4 = vrot.slane %v2052_v28, 5  ;;  %vm870_vm11 = vweird.f32 %v7593_v6  ;;  %v2629_v2 = vsel %vm7050_vm10, %v6374_v51, %v2628_v34  ;;  %v2040_v61 = vrot.slane %v2038_v10, 4  ;;  %v2856_v39 = vld [vmem:[#allocation2 + $0x1c] sm:$0xf] }
 0x106   : > { %v1524_v47 = vsel %vm7240_vm9, %v1516_v25, %v1523_v40  ;;  %v1731_v54 = vsel %vm7022_vm7, %v1525_v42, %v1730_v33  ;;  %v6672_v26 = vpop.eup %6671  ;;  %2766 = vrot.lane.b32.xlu2 %v2688_v19, %s6910_s18  ;;  %v1981_v25 = vld [vmem:[#allocation2 + $0x80] sm:$0x1]  ;;  %v2044_v0 = vshll.u32 %v1954_v43, 16  ;;  %vm7621_vm12 = vcmp.eq.f32.partialorder %v874_v23, 8.507059e+37  ;;  %v1889_v19 = vld [vmem:[#allocation2 + $0x18] sm:$0xf] }
 0x107   : > { %1729 = vst.msk [vmem:[#allocation2 + $0x94] sm:$0xf] %vm10421_vm1, %v1524_v47  ;;  %v7619_v60 = vadd.f32 1.0, %v6672_v26  ;;  %v2055_v36 = vor.u32 %v2054_v4, %v2051_v45  ;;  %v7625_v63 = vor.u32 1.1754944e-38, %v876_v21  ;;  %v7627_v56 = vrot.slane %v2058_v7, 5 }
 0x108   : > { %1732 = vst [vmem:[#allocation2 + $0x98] sm:$0x1] %v1731_v54  ;;  %v2256_v44 = vrot.slane %v2254_v49, 4  ;;  %v2260_v8 = vshll.u32 %v1981_v25, 16  ;;  %v3119_v50 = vshrl.u32 %v3049_v48, 16  ;;  %v3122_v13 = vshll.u32 %v3049_v48, 16 }
 0x109   : > { %v6674_v38 = vpop.eup %6673  ;;  %6675 = vrcp.f32 %v7619_v60  ;;  %2732 = vrot.lane.b32.xlu0 %v2629_v2, %s6910_s18  ;;  %v604_v24 = vmul.f32 %v7557_v58, %v557_v57  ;;  %v2056_v59 = vrot.slane %v2055_v36, 4  ;;  %v2062_v41 = vshrl.u32 %v7591_v5, 16  ;;  %1921 = vst.msk [vmem:[#allocation3 + $0x10] sm:$0xf] %vm10424_vm6, %v1889_v19  ;;  %v3048_v4 = vld [vmem:[#allocation2 + $0x14] sm:$0x1]  ;;  %vm10434_vm6 = vmmov %vm10421_vm1 }
 0x10a   : > { %v866_v62 = vmul.f32 %v6674_v38, %v7593_v6  ;;  %vm871_vm8 = vweird.f32 %v6674_v38  ;;  %v889_v49 = vand.u32 2147483647, %v7619_v60  ;;  %v2041_v32 = vor.u32 %v2040_v61, %v2036_v11  ;;  %v1957_v26 = vld [vmem:[#allocation2 + $0x20] sm:$0x1]  ;;  %v1887_v6 = vld [vmem:[#allocation2 + $0xc] sm:$0xf] }
 0x10b   : > { %v2046_v55 = vrot.slane %v2044_v0, 5  ;;  %v7636_v10 = vadd.f32 %v7571_v14, %v604_v24  ;;  %v2061_v33 = vsel %vm7087_vm13, %v2056_v59, %v7627_v56  ;;  %v2257_v46 = vor.u32 %v2256_v44, %v7561_v52  ;;  %vm7655_vm3 = vmor %vm870_vm11, %vm871_vm8  ;;  %v1888_v48 = vld [vmem:[#allocation2 + $0x10] sm:$0xf]  ;;  %v6561_v61 = vld [vmem:[%s6992_s13 + $0x78] sm:$0xff]  ;;  %1919 = vst.msk [vmem:[#allocation3 + $0x8] sm:$0xf] %vm10427_vm14, %v1887_v6 }
 0x10c   : > { %v867_v29 = vsub.f32 1.0, %v866_v62  ;;  %v2042_v28 = vrot.slane %v2041_v32, 4  ;;  %v2262_v5 = vrot.slane %v2260_v8, 5  ;;  %v3121_v40 = vrot.slane %v3119_v50, 4  ;;  %1920 = vst.msk [vmem:[#allocation3 + $0xc] sm:$0xf] %vm10421_vm1, %v1888_v48  ;;  %vm10433_vm8 = vmmov %vm10421_vm1 }
 0x10d   : > { %v3124_v42 = vrot.slane %v3122_v13, 5  ;;  %v891_v23 = vand.u32 2147483648, %v7619_v60  ;;  %v6364_v21 = vmul.f32 -1.442695, %v7636_v10  ;;  %v2258_v35 = vrot.slane %v2257_v46, 4 }
 0x10e   : > { %v868_v51 = vmul.f32 %v6674_v38, %v867_v29  ;;  %2392 = vrot.lane.b32.xlu2 %v2061_v33, %s6911_s19  ;;  %v2047_v47 = vsel %vm7087_vm13, %v2042_v28, %v2046_v55  ;;  %v3128_v45 = vshll.u32 %v7642_v20, 16  ;;  %vm885_vm2 = vweird.f32 %v7619_v60  ;;  %v3076_v32 = vld [vmem:[#allocation2 + $0x84] sm:$0xf]  ;;  %v1906_v55 = vld [vmem:[#allocation2 + $0x7c] sm:$0xf] }
 0x10f   : > { %v1852_v11 = vld [vmem:[#allocation2 + $0x98] sm:$0x1]  ;;  %v7648_v7 = vpop.eup %6675  ;;  %v3125_v54 = vor.u32 %v3124_v42, %v3121_v40  ;;  %6677 = vpow2.f32 %v6364_v21  ;;  %2390 = vrot.lane.b32.xlu1 %v2047_v47, %s6911_s19  ;;  %v2263_v36 = vsel %vm7087_vm13, %v2258_v35, %v2262_v5  ;;  %v3110_v44 = vrot.slane %v3108_v22, 4  ;;  %v7683_v22 = vld [vmem:[#allocation2 + $0x88] sm:$0xf] }
 0x110   : > { %v1853_v52 = vsel %vm7015_vm4, 0, %v1852_v11  ;;  %v869_v2 = vadd.f32 %v6674_v38, %v868_v51  ;;  %v881_v25 = vmul.f32 %v7648_v7, %v7619_v60  ;;  %vm886_vm15 = vweird.f32 %v7648_v7  ;;  %v1890_v33 = vld [vmem:[#allocation2 + $0x1c] sm:$0xf]  ;;  %v559_v60 = vpop.f32.mrf.mxu3  ;;  %1938 = vst.msk [vmem:[#allocation3 + $0x54] sm:$0xf] %vm10434_vm6, %v1906_v55 }
 0x111   : > { %1854 = vst [vmem:[#allocation2 + $0x98] sm:$0x1] %v1853_v52  ;;  %v3126_v0 = vrot.slane %v3125_v54, 4  ;;  %2426 = vrot.lane.b32.xlu0 %v2263_v36, %s6911_s19  ;;  %v3114_v50 = vshll.u32 %v3048_v4, 16  ;;  %v2064_v13 = vrot.slane %v2062_v41, 4  ;;  %vm10428_vm5 = vcmask 64512   ;;  %vm7692_vm11 = vmor %vm885_vm2, %vm886_vm15 }
 0x112   : > { %v873_v57 = vsel %vm7655_vm3, %v6674_v38, %v869_v2  ;;  %v882_v8 = vsub.f32 1.0, %v881_v25  ;;  %6339 = vmatmul.msk.bf16.gmra.mxu3 %vm10428_vm5, %v6561_v61  ;;  %v7680_v24 = vrot.slane %v3128_v45, 5  ;;  %v3111_v9 = vor.u32 %v3110_v44, %v7478_v16  ;;  %1922 = vst.msk [vmem:[#allocation3 + $0x14] sm:$0xf] %vm10433_vm8, %v1890_v33  ;;  %v1670_v54 = vld [vmem:[#allocation2 + $0x30] sm:$0xf]  ;;  %vm10435_vm3 = vmmov %vm10421_vm1 }
 0x113   : > { %v878_v62 = vsel %vm7621_vm12, %v7625_v63, %v873_v57  ;;  %v3116_v19 = vrot.slane %v3114_v50, 5  ;;  %v2068_v41 = vshll.u32 %v1957_v26, 16  ;;  %vm7696_vm12 = vcmp.eq.f32.partialorder %v889_v49, 8.507059e+37  ;;  %v2546_v49 = vld [vmem:[#allocation2 + $0x84] sm:$0xe]  ;;  %vm10436_vm14 = vmmov %vm10428_vm5 }
 0x114   : > { %v1261_v38 = vmul.f32 %v878_v62, %v7538_v27  ;;  %v883_v59 = vmul.f32 %v7648_v7, %v882_v8  ;;  %v892_v63 = vor.u32 1.1754944e-38, %v891_v23  ;;  %v3131_v27 = vsel %vm7087_vm13, %v3126_v0, %v7680_v24  ;;  %v2873_v4 = vld [vmem:[#allocation2 + $0x84] sm:$0xf]  ;;  %v7727_v48 = vld [vmem:[#allocation2 + $0x88] sm:$0xf] }
 0x115   : > { %v3112_v29 = vrot.slane %v3111_v9, 4  ;;  %v6678_v46 = vpop.eup %6677  ;;  %v2065_v40 = vor.u32 %v2064_v13, %v7627_v56  ;;  %v2691_v42 = vrot.slane %v7683_v22, 5  ;;  %v605_v51 = vmul.f32 %v7557_v58, %v559_v60  ;;  %v3075_v50 = vld [vmem:[#allocation2 + $0x80] sm:$0x1]  ;;  %v1674_v60 = vld [vmem:[#allocation2 + $0x38] sm:$0x1] }
 0x116   : > { %v1293_v28 = vpack.c.bf16 %v1261_v38, %v1261_v38  ;;  %v884_v5 = vadd.f32 %v7648_v7, %v883_v59  ;;  %3482 = vrot.lane.b32.xlu2 %v3131_v27, %s6913_s21  ;;  %v7708_v11 = vadd.f32 1.0, %v6678_v46  ;;  %v3335_v21 = vshrl.u32 %v3076_v32, 16 }
 0x117   : > { %v3117_v23 = vsel %vm7087_vm13, %v3112_v29, %v3116_v19  ;;  %v2070_v43 = vrot.slane %v2068_v41, 5  ;;  %v3324_v47 = vshrl.u32 %v7482_v31, 16  ;;  %v6383_v26 = vrot.slane %v2546_v49, 9  ;;  %v1908_v31 = vld [vmem:[#allocation2 + $0x88] sm:$0xf] }
 0x118   : > { %v1374_v35 = vshrl.u32 %v1293_v28, 16  ;;  %v1377_v52 = vshll.u32 %v1293_v28, 16  ;;  %v888_v56 = vsel %vm7692_vm11, %v7648_v7, %v884_v5  ;;  %3480 = vrot.lane.b32.xlu1 %v3117_v23, %s6913_s21  ;;  %6679 = vrcp.f32 %v7708_v11  ;;  %1940 = vst.msk [vmem:[#allocation3 + $0x5c] sm:$0xf] %vm10435_vm3, %v1908_v31  ;;  %v6553_v5 = vld [vmem:[%s6992_s13 + $0x38] sm:$0xff] }
 0x119   : > { %v893_v45 = vsel %vm7696_vm12, %v892_v63, %v888_v56  ;;  %v7724_v6 = vadd.f32 %v7571_v14, %v605_v51  ;;  %2957 = vrot.lane.b32.xlu0 %v2873_v4, %s6912_s20  ;;  %v2066_v7 = vrot.slane %v2065_v40, 4  ;;  %v3132_v36 = vshrl.u32 %v7642_v20, 16  ;;  %6331 = vmatmul.msk.bf16.gmra.mxu0 %vm10436_vm14, %v6553_v5  ;;  %v2522_v4 = vld [vmem:[#allocation2 + $0x24] sm:$0xe]  ;;  %vm10441_vm12 = vmmov %vm10421_vm1 }
 0x11a   : > { %v1376_v2 = vrot.slane %v1374_v35, 7  ;;  %v1262_v25 = vmul.f32 %v893_v45, %v7574_v53  ;;  %v2692_v61 = vsel %vm7050_vm10, %v6383_v26, %v2691_v42  ;;  %v3337_v0 = vrot.slane %v3335_v21, 4  ;;  %v7762_v26 = vld [vmem:[#allocation2 + $0x28] sm:$0xf]  ;;  %vm10445_vm14 = vmmov %vm10421_vm1 }
 0x11b   : > { %v3338_v44 = vshll.u32 %v3076_v32, 16  ;;  %vm1140_vm2 = vweird.f32 %v7708_v11  ;;  %v2071_v8 = vsel %vm7087_vm13, %v2066_v7, %v2070_v43  ;;  %v1144_v13 = vand.u32 2147483647, %v7708_v11  ;;  %v3051_v32 = vld [vmem:[#allocation2 + $0x20] sm:$0x1] }
 0x11c   : > { %v1379_v53 = vor.u32 %v1377_v52, %v1376_v2  ;;  %v1294_v57 = vpack.c.bf16 %v1262_v25, %v1262_v25  ;;  %v6365_v20 = vmul.f32 -1.442695, %v7724_v6  ;;  %v3344_v9 = vshll.u32 %v7727_v48, 16 }
 0x11d   : > { %v3340_v62 = vrot.slane %v3338_v44, 5  ;;  %v3326_v41 = vrot.slane %v3324_v47, 4  ;;  %v3330_v63 = vshll.u32 %v3075_v50, 16  ;;  %v3134_v27 = vrot.slane %v3132_v36, 4 }
 0x11e   : > { %v1671_v38 = vsel %vm7111_vm0, %v1379_v53, %v1670_v54  ;;  %v1382_v59 = vshrl.u32 %v1294_v57, 16  ;;  %v1385_v19 = vshll.u32 %v1294_v57, 16  ;;  %2394 = vrot.lane.b32.xlu2 %v2071_v8, %s6911_s19  ;;  %v6680_v55 = vpop.eup %6679  ;;  %6681 = vpow2.f32 %v6365_v20  ;;  %v517_v57 = vpop.f32.mrf.mxu0  ;;  %v1983_v20 = vld [vmem:[#allocation2 + $0x88] sm:$0xf] }
 0x11f   : > { %1672 = vst [vmem:[#allocation2 + $0x30] sm:$0xf] %v1671_v38  ;;  %v3341_v16 = vor.u32 %v3340_v62, %v3337_v0  ;;  %v1380_v29 = vrot.slane %v1376_v2, 4  ;;  %v1136_v46 = vmul.f32 %v6680_v55, %v7708_v11  ;;  %v1146_v28 = vand.u32 2147483648, %v7708_v11  ;;  %v2521_v38 = vld [vmem:[#allocation2 + $0x20] sm:$0x1] }
 0x120   : > { %v1384_v33 = vrot.slane %v1382_v59, 7  ;;  %2923 = vrot.lane.b32.xlu1 %v2856_v39, %s6912_s20  ;;  %vm1141_vm15 = vweird.f32 %v6680_v55  ;;  %v3327_v49 = vor.u32 %v3326_v41, %v7518_v37  ;;  %v3138_v51 = vshll.u32 %v3051_v32, 16  ;;  %v1982_v41 = vld [vmem:[#allocation2 + $0x84] sm:$0xf] }
 0x121   : > { %v3342_v40 = vrot.slane %v3341_v16, 4  ;;  %v1137_v35 = vsub.f32 1.0, %v1136_v46  ;;  %2768 = vrot.lane.b32.xlu0 %v2692_v61, %s6910_s18  ;;  %v3135_v52 = vor.u32 %v3134_v27, %v7680_v24  ;;  %v7752_v56 = vrot.slane %v3344_v9, 5  ;;  %vm7768_vm11 = vmor %vm1140_vm2, %vm1141_vm15  ;;  %v1907_v32 = vld [vmem:[#allocation2 + $0x84] sm:$0xf] }
 0x122   : > { %v1387_v23 = vor.u32 %v1385_v19, %v1384_v33  ;;  %v1389_v21 = vrot.slane %v1384_v33, 4  ;;  %v3332_v43 = vrot.slane %v3330_v63, 5  ;;  %vm7758_vm5 = vcmp.eq.f32.partialorder %v1144_v13, 8.507059e+37  ;;  %1939 = vst.msk [vmem:[#allocation3 + $0x58] sm:$0xf] %vm10441_vm12, %v1907_v32  ;;  %vm10444_vm15 = vmmov %vm10421_vm1 }
 0x123   : > { %v1138_v37 = vmul.f32 %v6680_v55, %v1137_v35  ;;  %v1147_v25 = vor.u32 1.1754944e-38, %v1146_v28  ;;  %v3347_v7 = vsel %vm7087_vm13, %v3342_v40, %v7752_v56  ;;  %v3328_v31 = vrot.slane %v3327_v49, 4  ;;  %v2857_v28 = vld [vmem:[#allocation2 + $0x24] sm:$0xf]  ;;  %v1984_v49 = vld [vmem:[#allocation2 + $0x8c] sm:$0x1] }
 0x124   : > { %v1388_v47 = vsel %vm7240_vm9, %v1380_v29, %v1387_v23  ;;  %v1675_v54 = vsel %vm7022_vm7, %v1389_v21, %v1674_v60  ;;  %v6682_v2 = vpop.eup %6681  ;;  %v3140_v36 = vrot.slane %v3138_v51, 5  ;;  %v3136_v53 = vrot.slane %v3135_v52, 4 }
 0x125   : > { %1673 = vst.msk [vmem:[#allocation2 + $0x34] sm:$0xf] %vm10421_vm1, %v1388_v47  ;;  %v1139_v0 = vadd.f32 %v6680_v55, %v1138_v37  ;;  %v7775_v44 = vadd.f32 1.0, %v6682_v2  ;;  %v3333_v8 = vsel %vm7087_vm13, %v3328_v31, %v3332_v43  ;;  %v6375_v50 = vrot.slane %v2522_v4, 9  ;;  %v1958_v31 = vld [vmem:[#allocation2 + $0x24] sm:$0xf] }
 0x126   : > { %v1773_v61 = vld [vmem:[#allocation2 + $0x30] sm:$0x1]  ;;  %1676 = vst [vmem:[#allocation2 + $0x38] sm:$0x1] %v1675_v54  ;;  %3518 = vrot.lane.b32.xlu2 %v3347_v7, %s6913_s21  ;;  %v2635_v13 = vrot.slane %v7762_v26, 5  ;;  %v3348_v9 = vshrl.u32 %v7727_v48, 16  ;;  %v3141_v19 = vsel %vm7087_vm13, %v3136_v53, %v3140_v36  ;;  %v588_v16 = vmul.f32 %v7557_v58, %v517_v57  ;;  %v519_v2 = vpop.f32.mrf.mxu0  ;;  %v562_v26 = vpop.f32.mrf.mxu3 }
 0x127   : > { %v1774_v11 = vsel %vm7022_vm7, 0, %v1773_v61  ;;  %v1143_v62 = vsel %vm7768_vm11, %v6680_v55, %v1139_v0  ;;  %6683 = vrcp.f32 %v7775_v44  ;;  %v2630_v48 = vrot.slane %v2628_v34, 4  ;;  %v3078_v55 = vld [vmem:[#allocation2 + $0x8c] sm:$0x1]  ;;  %v2874_v34 = vld [vmem:[#allocation2 + $0x88] sm:$0xf] }
 0x128   : > { %1775 = vst [vmem:[#allocation2 + $0x30] sm:$0x1] %v1774_v11  ;;  %3516 = vrot.lane.b32.xlu1 %v3333_v8, %s6913_s21  ;;  %v1148_v59 = vsel %vm7758_vm5, %v1147_v25, %v1143_v62  ;;  %v2636_v63 = vsel %vm7050_vm10, %v6375_v50, %v2635_v13  ;;  %v2631_v27 = vrot.slane %v2521_v38, 5  ;;  %v2274_v29 = vshll.u32 %v1983_v20, 16  ;;  %v1733_v36 = vld [vmem:[#allocation2 + $0x9c] sm:$0xf] }
 0x129   : > { %v1279_v39 = vmul.f32 %v1148_v59, %v7636_v10  ;;  %3484 = vrot.lane.b32.xlu0 %v3141_v19, %s6913_s21  ;;  %v2278_v33 = vshrl.u32 %v1983_v20, 16  ;;  %v7803_v10 = vadd.f32 %v7571_v14, %v588_v16  ;;  %v3350_v5 = vrot.slane %v3348_v9, 4  ;;  %v2858_v0 = vld [vmem:[#allocation2 + $0x28] sm:$0xf]  ;;  %v2548_v59 = vld [vmem:[#allocation2 + $0x8c] sm:$0x1] }
 0x12a   : > { %v2265_v60 = vshrl.u32 %v1982_v41, 16  ;;  %v3354_v40 = vshll.u32 %v3078_v55, 16  ;;  %v7805_v51 = vrot.slane %v2274_v29, 5  ;;  %v2268_v21 = vshll.u32 %v1982_v41, 16  ;;  %v3052_v55 = vld [vmem:[#allocation2 + $0x24] sm:$0xf] }
 0x12b   : > { %v1311_v46 = vpack.c.bf16 %v1279_v39, %v1279_v39  ;;  %v2280_v23 = vrot.slane %v2278_v33, 4  ;;  %v6348_v54 = vmul.f32 -1.442695, %v7803_v10  ;;  %vm1155_vm8 = vweird.f32 %v7775_v44 }
 0x12c   : > { %v1159_v45 = vand.u32 2147483647, %v7775_v44  ;;  %v1161_v4 = vand.u32 2147483648, %v7775_v44  ;;  %v589_v25 = vmul.f32 %v7557_v58, %v519_v2  ;;  %v2267_v7 = vrot.slane %v2265_v60, 4 }
 0x12d   : > { %v1828_v3 = vld [vmem:[#allocation2 + $0x38] sm:$0x1]  ;;  %v6684_v35 = vpop.eup %6683  ;;  %v1527_v43 = vshrl.u32 %v1311_v46, 16  ;;  %v1530_v47 = vshll.u32 %v1311_v46, 16  ;;  %6685 = vpow2.f32 %v6348_v54  ;;  %v3351_v53 = vor.u32 %v3350_v5, %v7752_v56  ;;  %v7853_v54 = vld [vmem:[#allocation2 + $0x94] sm:$0xf] }
 0x12e   : > { %v1829_v52 = vsel %vm7015_vm4, 0, %v1828_v3  ;;  %2925 = vrot.lane.b32.xlu2 %v2857_v28, %s6912_s20  ;;  %v1151_v37 = vmul.f32 %v6684_v35, %v7775_v44  ;;  %vm1156_vm6 = vweird.f32 %v6684_v35  ;;  %v2270_v11 = vrot.slane %v2268_v21, 5  ;;  %v7843_v3 = vld [vmem:[#allocation2 + $0x28] sm:$0xf] }
 0x12f   : > { %1830 = vst [vmem:[#allocation2 + $0x38] sm:$0x1] %v1829_v52  ;;  %v7815_v24 = vrot.slane %v1527_v43, 7  ;;  %v7822_v8 = vadd.f32 %v7571_v14, %v589_v25  ;;  %v2281_v50 = vor.u32 %v2280_v23, %v7805_v51  ;;  %v2284_v20 = vshll.u32 %v1984_v49, 16  ;;  %vm7833_vm3 = vmor %vm1155_vm8, %vm1156_vm6  ;;  %v7865_v25 = vld [vmem:[#allocation2 + $0x28] sm:$0xf] }
 0x130   : > { %2959 = vrot.lane.b32.xlu1 %v2874_v34, %s6912_s20  ;;  %v1152_v61 = vsub.f32 1.0, %v1151_v37  ;;  %v1162_v9 = vor.u32 1.1754944e-38, %v1161_v4  ;;  %v2632_v38 = vsel %vm7050_vm10, %v2630_v48, %v2631_v27  ;;  %v2073_v19 = vshrl.u32 %v1958_v31, 16  ;;  %v1891_v37 = vld [vmem:[#allocation2 + $0x24] sm:$0xf]  ;;  %vm10449_vm8 = vmmov %vm10445_vm14 }
 0x131   : > { %v1532_v57 = vor.u32 %v1530_v47, %v7815_v24  ;;  %2927 = vrot.lane.b32.xlu0 %v2858_v0, %s6912_s20  ;;  %v6349_v32 = vmul.f32 -1.442695, %v7822_v8  ;;  %v2271_v39 = vor.u32 %v2270_v11, %v2267_v7  ;;  %v2076_v16 = vshll.u32 %v1958_v31, 16  ;;  %1923 = vst.msk [vmem:[#allocation3 + $0x18] sm:$0xf] %vm10444_vm15, %v1891_v37 }
 0x132   : > { %v1153_v62 = vmul.f32 %v6684_v35, %v1152_v61  ;;  %vm1160_vm2 = vcmp.eq.f32.partialorder %v1159_v45, 8.507059e+37  ;;  %v3352_v48 = vrot.slane %v3351_v53, 4  ;;  %v3356_v27 = vrot.slane %v3354_v40, 5  ;;  %v1892_v31 = vld [vmem:[#allocation2 + $0x28] sm:$0xf] }
 0x133   : > { %v1734_v56 = vsel %vm7111_vm0, %v1532_v57, %v1733_v36  ;;  %v6686_v33 = vpop.eup %6685  ;;  %6687 = vpow2.f32 %v6349_v32  ;;  %v2282_v46 = vrot.slane %v2281_v50, 4  ;;  %v2286_v44 = vrot.slane %v2284_v20, 5  ;;  %1924 = vst.msk [vmem:[#allocation3 + $0x1c] sm:$0xf] %vm10445_vm14, %v1892_v31  ;;  %v3054_v37 = vld [vmem:[#allocation2 + $0x2c] sm:$0x1]  ;;  %v7939_v31 = vpop.permute.xlu0 %2726  ;;  %vm10454_vm14 = vmmov %vm10449_vm8 }
 0x134   : > { %1735 = vst [vmem:[#allocation2 + $0x9c] sm:$0xf] %v1734_v56  ;;  %v1154_v29 = vadd.f32 %v6684_v35, %v1153_v62  ;;  %v2694_v28 = vrot.slane %v2548_v59, 5  ;;  %v7841_v60 = vadd.f32 1.0, %v6686_v33  ;;  %v2075_v34 = vrot.slane %v2073_v19, 4  ;;  %v6554_v59 = vld [vmem:[%s6992_s13 + $0x40] sm:$0xff] }
 0x135   : > { %v2078_v49 = vrot.slane %v2076_v16, 5  ;;  %v2272_v40 = vrot.slane %v2271_v39, 4  ;;  %v2693_v21 = vrot.slane %v2691_v42, 4  ;;  %v3143_v52 = vshrl.u32 %v3052_v55, 16  ;;  %v1737_v16 = vld [vmem:[#allocation2 + $0xa4] sm:$0x1] }
 0x136   : > { %2736 = vrot.lane.b32.xlu2 %v2636_v63, %s6910_s18  ;;  %v1158_v5 = vsel %vm7833_vm3, %v6684_v35, %v1154_v29  ;;  %v2549_v63 = vld [vmem:[#allocation2 + $0x90] sm:$0xe]  ;;  %v1533_v43 = vrot.slane %v7815_v24, 4  ;;  %6689 = vrcp.f32 %v7841_v60  ;;  %v3357_v35 = vsel %vm7087_vm13, %v3352_v48, %v3356_v27 }
 0x137   : > { %v1163_v23 = vsel %vm1160_vm2, %v1162_v9, %v1158_v5  ;;  %v2287_v22 = vsel %vm7087_vm13, %v2282_v46, %v2286_v44  ;;  %v7860_v42 = vsel %vm7050_vm10, %v2693_v21, %v2694_v28  ;;  %v2082_v45 = vshll.u32 %v7843_v3, 16  ;;  %v2876_v5 = vld [vmem:[#allocation2 + $0x94] sm:$0xf] }
 0x138   : > { %2734 = vrot.lane.b32.xlu1 %v2632_v38, %s6910_s18  ;;  %v1280_v47 = vmul.f32 %v1163_v23, %v7724_v6  ;;  %v2086_v6 = vshrl.u32 %v7843_v3, 16  ;;  %v2079_v2 = vor.u32 %v2078_v49, %v2075_v34  ;;  %v6384_v24 = vrot.slane %v2549_v63, 9 }
 0x139   : > { %3520 = vrot.lane.b32.xlu0 %v3357_v35, %s6913_s21  ;;  %v3146_v7 = vshll.u32 %v3052_v55, 16  ;;  %v6688_v36 = vpop.eup %6687  ;;  %v904_v0 = vand.u32 2147483647, %v7841_v60  ;;  %v2277_v53 = vsel %vm7087_vm13, %v2272_v40, %v7805_v51  ;;  %v2698_v11 = vrot.slane %v7853_v54, 5  ;;  %v1985_v40 = vld [vmem:[#allocation2 + $0x90] sm:$0xf] }
 0x13a   : > { %v1312_v4 = vpack.c.bf16 %v1280_v47, %v1280_v47  ;;  %v3145_v57 = vrot.slane %v3143_v52, 4  ;;  %v7874_v9 = vadd.f32 1.0, %v6688_v36  ;;  %vm900_vm5 = vweird.f32 %v7841_v60  ;;  %v2524_v35 = vld [vmem:[#allocation2 + $0x2c] sm:$0x1] }
 0x13b   : > { %v1800_v61 = vld [vmem:[#allocation2 + $0x9c] sm:$0x1]  ;;  %v906_v38 = vand.u32 2147483648, %v7841_v60  ;;  %v7881_v51 = vrot.slane %v2082_v45, 5  ;;  %v3148_v19 = vrot.slane %v3146_v7, 5  ;;  %v7886_v32 = vrot.slane %v2079_v2, 4 }
 0x13c   : > { %v1801_v50 = vsel %vm7022_vm7, 0, %v1800_v61  ;;  %v1535_v20 = vshrl.u32 %v1312_v4, 16  ;;  %v1538_v62 = vshll.u32 %v1312_v4, 16  ;;  %v7883_v56 = vpop.eup %6689  ;;  %6691 = vrcp.f32 %v7874_v9  ;;  %v2875_v45 = vld [vmem:[#allocation2 + $0x90] sm:$0xf] }
 0x13d   : > { %1802 = vst [vmem:[#allocation2 + $0x9c] sm:$0x1] %v1801_v50  ;;  %v3152_v39 = vshll.u32 %v7865_v25, 16  ;;  %v896_v55 = vmul.f32 %v7883_v56, %v7841_v60  ;;  %vm10446_vm1 = vcmask 64512   ;;  %v7897_v29 = vsel %vm7050_vm10, %v6384_v24, %v2698_v11  ;;  %v1909_v50 = vld [vmem:[#allocation2 + $0x90] sm:$0xf] }
 0x13e   : > { %2430 = vrot.lane.b32.xlu2 %v2287_v22, %s6911_s19  ;;  %v1537_v41 = vrot.slane %v1535_v20, 7  ;;  %6332 = vmatmul.msk.bf16.gmra.mxu0 %vm10446_vm1, %v6554_v59  ;;  %v3149_v48 = vor.u32 %v3148_v19, %v3145_v57  ;;  %v3156_v27 = vshrl.u32 %v7865_v25, 16  ;;  %v919_v44 = vand.u32 2147483647, %v7874_v9  ;;  %v1960_v57 = vld [vmem:[#allocation2 + $0x2c] sm:$0x1] }
 0x13f   : > { %v921_v28 = vand.u32 2147483648, %v7874_v9  ;;  %v897_v34 = vsub.f32 1.0, %v896_v55  ;;  %vm901_vm11 = vweird.f32 %v7883_v56  ;;  %vm7903_vm12 = vcmp.eq.f32.partialorder %v904_v0, 8.507059e+37  ;;  %1941 = vst.msk [vmem:[#allocation3 + $0x60] sm:$0xf] %vm10454_vm14, %v1909_v50 }
 0x140   : > { %2428 = vrot.lane.b32.xlu1 %v2277_v53, %s6911_s19  ;;  %v1540_v33 = vor.u32 %v1538_v62, %v1537_v41  ;;  %v1542_v46 = vrot.slane %v1537_v41, 4  ;;  %v907_v23 = vor.u32 1.1754944e-38, %v906_v38  ;;  %v7912_v52 = vrot.slane %v3149_v48, 4  ;;  %vm7931_vm3 = vmor %vm900_vm5, %vm901_vm11 }
 0x141   : > { %2963 = vrot.lane.b32.xlu0 %v2876_v5, %s6912_s20  ;;  %v7914_v47 = vrot.slane %v3152_v39, 5  ;;  %v898_v22 = vmul.f32 %v7883_v56, %v897_v34  ;;  %vm915_vm6 = vweird.f32 %v7874_v9  ;;  %v2637_v4 = vrot.slane %v2635_v13, 4  ;;  %v7964_v39 = vld [vmem:[#allocation2 + $0x94] sm:$0xf]  ;;  %vm10455_vm5 = vmmov %vm10449_vm8 }
 0x142   : > { %v1541_v21 = vsel %vm7240_vm9, %v1533_v43, %v1540_v33  ;;  %v1738_v63 = vsel %vm7022_vm7, %v1542_v46, %v1737_v16  ;;  %v2085_v43 = vsel %vm7087_vm13, %v7886_v32, %v7881_v51  ;;  %v7925_v2 = vpop.eup %6691  ;;  %vm7935_vm2 = vcmp.eq.f32.partialorder %v919_v44, 8.507059e+37  ;;  %v7960_v32 = vpop.permute.xlu2 %2724  ;;  %vm10458_vm11 = vmmov %vm10455_vm5 }
 0x143   : > { %1736 = vst.msk [vmem:[#allocation2 + $0xa0] sm:$0xf] %vm10449_vm8, %v1541_v21  ;;  %v922_v7 = vor.u32 1.1754944e-38, %v921_v28  ;;  %v3158_v13 = vrot.slane %v3156_v27, 4  ;;  %v2289_v36 = vshrl.u32 %v1985_v40, 16  ;;  %v899_v61 = vadd.f32 %v7883_v56, %v898_v22 }
 0x144   : > { %1739 = vst [vmem:[#allocation2 + $0xa4] sm:$0x1] %v1738_v63  ;;  %v911_v0 = vmul.f32 %v7925_v2, %v7874_v9  ;;  %v606_v60 = vmul.f32 %v7557_v58, %v562_v26  ;;  %v2638_v53 = vrot.slane %v2524_v35, 5  ;;  %vm916_vm15 = vweird.f32 %v7925_v2  ;;  %v1910_v27 = vld [vmem:[#allocation2 + $0x94] sm:$0xf] }
 0x145   : > { %v3155_v20 = vsel %vm7087_vm13, %v7912_v52, %v7914_v47  ;;  %v3162_v62 = vshll.u32 %v3054_v37, 16  ;;  %v2088_v38 = vrot.slane %v2086_v6, 4  ;;  %v903_v59 = vsel %vm7931_vm3, %v7883_v56, %v899_v61  ;;  %v3079_v56 = vld [vmem:[#allocation2 + $0x90] sm:$0xf]  ;;  %1942 = vst.msk [vmem:[#allocation3 + $0x64] sm:$0xf] %vm10455_vm5, %v1910_v27  ;;  %vm7978_vm1 = vmor %vm915_vm6, %vm916_vm15 }
 0x146   : > { %2961 = vrot.lane.b32.xlu2 %v2875_v45, %s6912_s20  ;;  %v912_v19 = vsub.f32 1.0, %v911_v0  ;;  %v7958_v41 = vadd.f32 %v7571_v14, %v606_v60  ;;  %v2292_v16 = vshll.u32 %v1985_v40, 16  ;;  %v908_v3 = vsel %vm7903_vm12, %v907_v23, %v903_v59  ;;  %v1886_v52 = vld [vmem:[#allocation2 + $0x4] sm:$0xf]  ;;  %v3080_v26 = vld [vmem:[#allocation2 + $0x94] sm:$0xf] }
 0x147   : > { %v3159_v6 = vor.u32 %v3158_v13, %v7914_v47  ;;  %v2092_v55 = vshll.u32 %v1960_v57, 16  ;;  %v2291_v48 = vrot.slane %v2289_v36, 4  ;;  %v1263_v33 = vmul.f32 %v908_v3, %v7803_v10  ;;  %1918 = vst.msk [vmem:[#allocation3 + $0x4] sm:$0xf] %vm10458_vm11, %v1886_v52 }
 0x148   : > { %2770 = vrot.lane.b32.xlu1 %v7860_v42, %s6910_s18  ;;  %v913_v46 = vmul.f32 %v7925_v2, %v912_v19  ;;  %v6366_v44 = vmul.f32 -1.442695, %v7958_v41  ;;  %v2294_v42 = vrot.slane %v2292_v16, 5  ;;  %v2639_v10 = vsel %vm7050_vm10, %v2637_v4, %v2638_v53  ;;  %v564_v4 = vpop.f32.mrf.mxu3  ;;  %v1677_v53 = vld [vmem:[#allocation2 + $0x3c] sm:$0xf] }
 0x149   : > { %2396 = vrot.lane.b32.xlu0 %v2085_v43, %s6911_s19  ;;  %v7984_v5 = vrot.slane %v3162_v62, 5  ;;  %v2089_v34 = vor.u32 %v2088_v38, %v7881_v51  ;;  %v2298_v49 = vshll.u32 %v7964_v39, 16  ;;  %v1295_v40 = vpack.c.bf16 %v1263_v33, %v1263_v33  ;;  %v2387_v43 = vpop.permute.xlu0 %2386  ;;  %v3055_v33 = vld [vmem:[#allocation2 + $0x30] sm:$0xf] }
 0x14a   : > { %v914_v21 = vadd.f32 %v7925_v2, %v913_v46  ;;  %6693 = vpow2.f32 %v6366_v44  ;;  %v3359_v63 = vshrl.u32 %v3079_v56, 16  ;;  %v3160_v47 = vrot.slane %v3159_v6, 4  ;;  %v2551_v6 = vld [vmem:[#allocation2 + $0x98] sm:$0x1] }
 0x14b   : > { %v1855_v23 = vld [vmem:[#allocation2 + $0xa4] sm:$0x1]  ;;  %v7991_v35 = vrot.slane %v2092_v55, 5  ;;  %v3362_v37 = vshll.u32 %v3079_v56, 16  ;;  %v1391_v22 = vshrl.u32 %v1295_v40, 16  ;;  %v1394_v45 = vshll.u32 %v1295_v40, 16 }
 0x14c   : > { %v1856_v9 = vsel %vm7015_vm4, 0, %v1855_v23  ;;  %v918_v51 = vsel %vm7978_vm1, %v7925_v2, %v914_v21  ;;  %v2295_v24 = vor.u32 %v2294_v42, %v2291_v48  ;;  %vm10357_vm12 = vcmask 60448   ;;  %v3081_v55 = vld [vmem:[#allocation2 + $0x98] sm:$0x1]  ;;  %v1681_v42 = vld [vmem:[#allocation2 + $0x44] sm:$0x1] }
 0x14d   : > { %1857 = vst [vmem:[#allocation2 + $0xa4] sm:$0x1] %v1856_v9  ;;  %v923_v13 = vsel %vm7935_vm2, %v922_v7, %v918_v51  ;;  %v607_v36 = vmul.f32 %v7557_v58, %v564_v4  ;;  %v2090_v61 = vrot.slane %v2089_v34, 4  ;;  %v1393_v0 = vrot.slane %v1391_v22, 7  ;;  %vm10459_vm2 = vmmov %vm10455_vm5 }
 0x14e   : > { %2772 = vrot.lane.b32.xlu2 %v7897_v29, %s6910_s18  ;;  %v1264_v60 = vmul.f32 %v923_v13, %v7822_v8  ;;  %2482 = vst.msk [vmem:[#allocation3 + $0x4] sm:$0xf] %vm10357_vm12, %v2387_v43  ;;  %v8005_v2 = vrot.slane %v2298_v49, 5  ;;  %v3361_v29 = vrot.slane %v3359_v63, 4  ;;  %vm10356_vm8 = vcmask 93248   ;;  %v2920_v8 = vpop.permute.xlu2 %2919 }
 0x14f   : > { %v8008_v25 = vadd.f32 %v7571_v14, %v607_v36  ;;  %v3364_v7 = vrot.slane %v3362_v37, 5  ;;  %v3368_v57 = vshll.u32 %v3080_v26, 16  ;;  %v1396_v58 = vor.u32 %v1394_v45, %v1393_v0  ;;  %2822 = vst.msk [vmem:[#allocation3 + $0x4] sm:$0xf] %vm10356_vm8, %v7939_v31  ;;  %v8034_v63 = vld [vmem:[#allocation2 + $0x34] sm:$0xf] }
 0x150   : > { %3486 = vrot.lane.b32.xlu1 %v3155_v20, %s6913_s21  ;;  %v6694_v50 = vpop.eup %6693  ;;  %v1296_v62 = vpack.c.bf16 %v1264_v60, %v1264_v60  ;;  %vm10355_vm6 = vcmask 126048   ;;  %v2296_v20 = vrot.slane %v2295_v24, 4  ;;  %v3372_v14 = vshrl.u32 %v3080_v26, 16  ;;  %v1962_v45 = vld [vmem:[#allocation2 + $0x34] sm:$0xf] }
 0x151   : > { %2738 = vrot.lane.b32.xlu0 %v2639_v10, %s6910_s18  ;;  %v8013_v38 = vadd.f32 1.0, %v6694_v50  ;;  %v6367_v59 = vmul.f32 -1.442695, %v8008_v25  ;;  %3015 = vst.msk [vmem:[#allocation3 + $0x4] sm:$0xf] %vm10355_vm6, %v2920_v8  ;;  %v1678_v19 = vsel %vm7111_vm0, %v1396_v58, %v1677_v53  ;;  %v3165_v31 = vsel %vm7087_vm13, %v3160_v47, %v7984_v5 }
 0x152   : > { %v1399_v16 = vshrl.u32 %v1296_v62, 16  ;;  %v1402_v3 = vshll.u32 %v1296_v62, 16  ;;  %1679 = vst [vmem:[#allocation2 + $0x3c] sm:$0xf] %v1678_v19  ;;  %v2095_v48 = vsel %vm7087_vm13, %v2090_v61, %v7991_v35  ;;  %v3365_v56 = vor.u32 %v3364_v7, %v3361_v29  ;;  %v2860_v24 = vld [vmem:[#allocation2 + $0x34] sm:$0xf] }
 0x153   : > { %6695 = vrcp.f32 %v8013_v38  ;;  %v3370_v27 = vrot.slane %v3368_v57, 5  ;;  %v1397_v46 = vrot.slane %v1393_v0, 4  ;;  %v2301_v28 = vsel %vm7087_vm13, %v2296_v20, %v8005_v2  ;;  %v8054_v61 = vld [vmem:[#allocation2 + $0x30] sm:$0xe]  ;;  %v8066_v8 = vld [vmem:[#allocation2 + $0x34] sm:$0xf] }
 0x154   : > { %v1401_v44 = vrot.slane %v1399_v16, 7  ;;  %6697 = vpow2.f32 %v6367_v59  ;;  %v1174_v10 = vand.u32 2147483647, %v8013_v38  ;;  %v2700_v5 = vrot.slane %v2698_v11, 4  ;;  %v2859_v43 = vld [vmem:[#allocation2 + $0x30] sm:$0xf] }
 0x155   : > { %v2701_v34 = vrot.slane %v2551_v6, 5  ;;  %v3374_v49 = vrot.slane %v3372_v14, 4  ;;  %v3378_v21 = vshll.u32 %v3081_v55, 16  ;;  %v3167_v9 = vshrl.u32 %v3055_v33, 16 }
 0x156   : > { %3488 = vrot.lane.b32.xlu2 %v3165_v31, %s6913_s21  ;;  %v1404_v23 = vor.u32 %v1402_v3, %v1401_v44  ;;  %v1406_v40 = vrot.slane %v1401_v44, 4  ;;  %v1176_v52 = vand.u32 2147483648, %v8013_v38  ;;  %v3366_v47 = vrot.slane %v3365_v56, 4  ;;  %v8051_v4 = vpop.permute.xlu2 %2955  ;;  %v1961_v31 = vld [vmem:[#allocation2 + $0x30] sm:$0xf] }
 0x157   : > { %v3375_v35 = vor.u32 %v3374_v49, %v3370_v27  ;;  %v3170_v37 = vshll.u32 %v3055_v33, 16  ;;  %vm1170_vm3 = vweird.f32 %v8013_v38  ;;  %v2302_v11 = vshrl.u32 %v7964_v39, 16  ;;  %v1963_v56 = vld [vmem:[#allocation2 + $0x38] sm:$0x1] }
 0x158   : > { %2398 = vrot.lane.b32.xlu1 %v2095_v48, %s6911_s19  ;;  %v1405_v22 = vsel %vm7240_vm9, %v1397_v46, %v1404_v23  ;;  %v1682_v54 = vsel %vm7022_vm7, %v1406_v40, %v1681_v42  ;;  %vm8047_vm15 = vcmp.eq.f32.partialorder %v1174_v10, 8.507059e+37  ;;  %v3169_v26 = vrot.slane %v3167_v9, 4  ;;  %v1987_v49 = vld [vmem:[#allocation2 + $0x98] sm:$0x1] }
 0x159   : > { %2432 = vrot.lane.b32.xlu0 %v2301_v28, %s6911_s19  ;;  %v8044_v51 = vpop.eup %6695  ;;  %1680 = vst.msk [vmem:[#allocation2 + $0x40] sm:$0xf] %vm10459_vm2, %v1405_v22  ;;  %v3172_v13 = vrot.slane %v3170_v37, 5  ;;  %v3176_v36 = vshll.u32 %v8034_v63, 16  ;;  %v1776_v0 = vld [vmem:[#allocation2 + $0x3c] sm:$0x1]  ;;  %v2702_v29 = vsel %vm7050_vm10, %v2700_v5, %v2701_v34  ;;  %v3371_v62 = vsel %vm7087_vm13, %v3366_v47, %v3370_v27  ;;  %v522_v5 = vpop.f32.mrf.mxu0 }
 0x15a   : > { %v6698_v39 = vpop.eup %6697  ;;  %1683 = vst [vmem:[#allocation2 + $0x44] sm:$0x1] %v1682_v54  ;;  %v1166_v60 = vmul.f32 %v8044_v51, %v8013_v38  ;;  %v3376_v53 = vrot.slane %v3375_v35, 4  ;;  %v3380_v7 = vrot.slane %v3378_v21, 5  ;;  %v1777_v57 = vsel %vm7022_vm7, 0, %v1776_v0 }
 0x15b   : > { %v1177_v50 = vor.u32 1.1754944e-38, %v1176_v52  ;;  %v8062_v58 = vadd.f32 1.0, %v6698_v39  ;;  %1778 = vst [vmem:[#allocation2 + $0x3c] sm:$0x1] %v1777_v57  ;;  %vm1171_vm14 = vweird.f32 %v8044_v51  ;;  %v2106_v59 = vshll.u32 %v1962_v45, 16 }
 0x15c   : > { %v1167_v20 = vsub.f32 1.0, %v1166_v60  ;;  %v2110_v14 = vshrl.u32 %v1962_v45, 16  ;;  %v3173_v19 = vor.u32 %v3172_v13, %v3169_v26  ;;  %v8071_v16 = vrot.slane %v3176_v36, 5  ;;  %vm8085_vm5 = vmor %vm1170_vm3, %vm1171_vm14  ;;  %v1893_v45 = vld [vmem:[#allocation2 + $0x30] sm:$0xf] }
 0x15d   : > { %6699 = vrcp.f32 %v8062_v58  ;;  %v3180_v3 = vshrl.u32 %v8034_v63, 16  ;;  %v3381_v55 = vsel %vm7087_vm13, %v3376_v53, %v3380_v7  ;;  %v6376_v48 = vrot.slane %v8054_v61, 9  ;;  %vm10466_vm3 = vmmov %vm10459_vm2  ;;  %v8191_v63 = vld [vmem:[#allocation2 + $0xa0] sm:$0xf] }
 0x15e   : > { %2931 = vrot.lane.b32.xlu2 %v2860_v24, %s6912_s20  ;;  %v1168_v6 = vmul.f32 %v8044_v51, %v1167_v20  ;;  %v8079_v27 = vrot.slane %v2106_v59, 5  ;;  %vm1185_vm1 = vweird.f32 %v8062_v58  ;;  %v1189_v46 = vand.u32 2147483647, %v8062_v58  ;;  %v8095_v40 = vpop.permute.xlu2 %2730  ;;  %1925 = vst.msk [vmem:[#allocation3 + $0x20] sm:$0xf] %vm10466_vm3, %v1893_v45  ;;  %vm10468_vm14 = vmmov %vm10466_vm3 }
 0x15f   : > { %v2642_v44 = vrot.slane %v8066_v8, 5  ;;  %v2112_v42 = vrot.slane %v2110_v14, 4  ;;  %v1191_v10 = vand.u32 2147483648, %v8062_v58  ;;  %v2097_v34 = vshrl.u32 %v1961_v31, 16  ;;  %v8139_v14 = vld [vmem:[#allocation2 + $0x38] sm:$0x1] }
 0x160   : > { %3522 = vrot.lane.b32.xlu1 %v3371_v62, %s6913_s21  ;;  %v1169_v28 = vadd.f32 %v8044_v51, %v1168_v6  ;;  %v2100_v38 = vshll.u32 %v1961_v31, 16  ;;  %v3174_v21 = vrot.slane %v3173_v19, 4  ;;  %v2116_v52 = vshll.u32 %v1963_v56, 16  ;;  %v1885_v31 = vld [vmem:[#allocation2] sm:$0xf] }
 0x161   : > { %2774 = vrot.lane.b32.xlu0 %v2702_v29, %s6910_s18  ;;  %v1831_v23 = vld [vmem:[#allocation2 + $0x44] sm:$0x1]  ;;  %v2113_v9 = vor.u32 %v2112_v42, %v8079_v27  ;;  %v2304_v47 = vrot.slane %v2302_v11, 4  ;;  %v2099_v22 = vrot.slane %v2097_v34, 4  ;;  %v8110_v11 = vld [vmem:[%s10347_s4] ss:$0 sm:$0xff] }
 0x162   : > { %v1832_v35 = vsel %vm7015_vm4, 0, %v1831_v23  ;;  %v1173_v37 = vsel %vm8085_vm5, %v8044_v51, %v1169_v28  ;;  %v2102_v54 = vrot.slane %v2100_v38, 5  ;;  %v590_v13 = vmul.f32 %v8110_v11, %v522_v5  ;;  %v2385_v28 = vpop.permute.xlu0 %2384  ;;  %1917 = vst.msk [vmem:[#allocation3] sm:$0xf] %vm10468_vm14, %v1885_v31  ;;  %v3082_v5 = vld [vmem:[#allocation2 + $0x9c] sm:$0xf] }
 0x163   : > { %v8103_v24 = vpop.eup %6699  ;;  %1833 = vst [vmem:[#allocation2 + $0x44] sm:$0x1] %v1832_v35  ;;  %v1178_v26 = vsel %vm8047_vm15, %v1177_v50, %v1173_v37  ;;  %v2305_v36 = vor.u32 %v2304_v47, %v8005_v2  ;;  %v2308_v39 = vshll.u32 %v1987_v49, 16  ;;  %vm8117_vm11 = vcmp.eq.f32.partialorder %v1189_v46, 8.507059e+37  ;;  %v8126_v2 = vld [vmem:[%s10348_s5] ss:$0 sm:$0xff]  ;;  %vm10467_vm15 = vmmov %vm10466_vm3 }
 0x164   : > { %v1281_v51 = vmul.f32 %v1178_v26, %v7958_v41  ;;  %v1181_v0 = vmul.f32 %v8103_v24, %v8062_v58  ;;  %v2103_v29 = vor.u32 %v2102_v54, %v2099_v22  ;;  %v1192_v53 = vor.u32 1.1754944e-38, %v1191_v10  ;;  %v1894_v50 = vld [vmem:[#allocation2 + $0x34] sm:$0xf]  ;;  %v524_v10 = vpop.f32.mrf.mxu0  ;;  %v1740_v34 = vld [vmem:[#allocation2 + $0xa8] sm:$0xf]  ;;  %v2918_v58 = vpop.permute.xlu1 %2917 }
 0x165   : > { %v8129_v41 = vadd.f32 %v8126_v2, %v590_v13  ;;  %v8131_v7 = vrot.slane %v2113_v9, 4  ;;  %v8133_v57 = vrot.slane %v2116_v52, 5  ;;  %vm1186_vm2 = vweird.f32 %v8103_v24  ;;  %1926 = vst.msk [vmem:[#allocation3 + $0x24] sm:$0xf] %vm10467_vm15, %v1894_v50 }
 0x166   : > { %3524 = vrot.lane.b32.xlu2 %v3381_v55, %s6913_s21  ;;  %v1313_v62 = vpack.c.bf16 %v1281_v51, %v1281_v51  ;;  %v1182_v20 = vsub.f32 1.0, %v1181_v0  ;;  %v8137_v59 = vrot.slane %v2305_v36, 4  ;;  %v3179_v6 = vsel %vm7087_vm13, %v3174_v21, %v8071_v16  ;;  %vm8157_vm5 = vmor %vm1185_vm1, %vm1186_vm2  ;;  %2481 = vst.msk [vmem:[#allocation3] sm:$0xf] %vm10357_vm12, %v2385_v28  ;;  %v2425_v23 = vpop.permute.xlu2 %2424  ;;  %v2878_v21 = vld [vmem:[#allocation2 + $0xa0] sm:$0xf] }
 0x167   : > { %v6350_v19 = vmul.f32 -1.442695, %v8129_v41  ;;  %v8146_v55 = vrot.slane %v2103_v29, 4  ;;  %v8148_v56 = vrot.slane %v2308_v39, 5  ;;  %v591_v49 = vmul.f32 %v8110_v11, %v524_v10  ;;  %2821 = vst.msk [vmem:[#allocation3] sm:$0xf] %vm10356_vm8, %v7960_v32 }
 0x168   : > { %2929 = vrot.lane.b32.xlu1 %v2859_v43, %s6912_s20  ;;  %v1544_v33 = vshrl.u32 %v1313_v62, 16  ;;  %v1547_v46 = vshll.u32 %v1313_v62, 16  ;;  %v1183_v42 = vmul.f32 %v8103_v24, %v1182_v20  ;;  %v3383_v9 = vshrl.u32 %v3082_v5, 16  ;;  %2501 = vst.msk [vmem:[#allocation3 + $0x50] sm:$0xf] %vm10357_vm12, %v2425_v23 }
 0x169   : > { %3490 = vrot.lane.b32.xlu0 %v3179_v6, %s6913_s21  ;;  %6701 = vpow2.f32 %v6350_v19  ;;  %v3386_v52 = vshll.u32 %v3082_v5, 16  ;;  %v2644_v37 = vrot.slane %v2642_v44, 4  ;;  %v2645_v22 = vrot.slane %v8139_v14, 5  ;;  %3014 = vst.msk [vmem:[#allocation3] sm:$0xf] %vm10355_vm6, %v2918_v58 }
 0x16a   : > { %v8163_v47 = vrot.slane %v1544_v33, 7  ;;  %v1184_v35 = vadd.f32 %v8103_v24, %v1183_v42  ;;  %v8172_v54 = vadd.f32 %v8126_v2, %v591_v49  ;;  %v3385_v45 = vrot.slane %v3383_v9, 4  ;;  %v8216_v20 = vld [vmem:[#allocation2 + $0xa0] sm:$0xf]  ;;  %v3479_v28 = vpop.permute.xlu0 %3478 }
 0x16b   : > { %v3388_v26 = vrot.slane %v3386_v52, 5  ;;  %v8177_v13 = vrot.slane %v3180_v3, 4  ;;  %v2643_v39 = vsel %vm7050_vm10, %v6376_v48, %v2642_v44  ;;  %v1988_v3 = vld [vmem:[#allocation2 + $0x9c] sm:$0xf]  ;;  %v3392_v43 = vshll.u32 %v8191_v63, 16 }
 0x16c   : > { %v1549_v36 = vor.u32 %v1547_v46, %v8163_v47  ;;  %v1188_v32 = vsel %vm8157_vm5, %v8103_v24, %v1184_v35  ;;  %v6351_v0 = vmul.f32 -1.442695, %v8172_v54  ;;  %v2119_v48 = vsel %vm7087_vm13, %v8131_v7, %v8133_v57  ;;  %v1744_v46 = vld [vmem:[#allocation2 + $0xb0] sm:$0x1] }
 0x16d   : > { %v1193_v51 = vsel %vm8117_vm11, %v1192_v53, %v1188_v32  ;;  %v3389_v24 = vor.u32 %v3388_v26, %v3385_v45  ;;  %v2311_v44 = vsel %vm7087_vm13, %v8137_v59, %v8148_v56  ;;  %v2313_v60 = vshrl.u32 %v1988_v3, 16  ;;  %vm10471_vm11 = vmmov %vm10466_vm3 }
 0x16e   : > { %2967 = vrot.lane.b32.xlu2 %v2878_v21, %s6912_s20  ;;  %v1741_v29 = vsel %vm7111_vm0, %v1549_v36, %v1740_v34  ;;  %v1282_v8 = vmul.f32 %v1193_v51, %v8008_v25  ;;  %6703 = vpow2.f32 %v6351_v0  ;;  %v567_v25 = vpop.f32.mrf.mxu3  ;;  %v2109_v62 = vsel %vm7087_vm13, %v8146_v55, %v8079_v27  ;;  %v8218_v57 = vpop.permute.xlu2 %2766  ;;  %v2553_v55 = vld [vmem:[#allocation2 + $0xa0] sm:$0xf]  ;;  %v2552_v34 = vld [vmem:[#allocation2 + $0x9c] sm:$0xe] }
 0x16f   : > { %v6702_v61 = vpop.eup %6701  ;;  %1742 = vst [vmem:[#allocation2 + $0xa8] sm:$0xf] %v1741_v29  ;;  %v2316_v7 = vshll.u32 %v1988_v3, 16  ;;  %v3390_v14 = vrot.slane %v3389_v24, 4  ;;  %v8220_v19 = vrot.slane %v3392_v43, 5  ;;  %v8224_v59 = vsel %vm7050_vm10, %v2644_v37, %v2645_v22  ;;  %v8230_v27 = vpop.permute.xlu1 %2728 }
 0x170   : > { %2740 = vrot.lane.b32.xlu1 %v2643_v39, %s6910_s18  ;;  %v1314_v53 = vpack.c.bf16 %v1282_v8, %v1282_v8  ;;  %v8209_v50 = vadd.f32 1.0, %v6702_v61  ;;  %v3183_v31 = vor.u32 %v8177_v13, %v8071_v16  ;;  %v1550_v6 = vrot.slane %v8163_v47, 4  ;;  %v8245_v37 = vld [vmem:[#allocation2 + $0x38] sm:$0x1]  ;;  %v1965_v16 = vld [vmem:[#allocation2 + $0x40] sm:$0xf] }
 0x171   : > { %2402 = vrot.lane.b32.xlu0 %v2119_v48, %s6911_s19  ;;  %v608_v42 = vmul.f32 %v8110_v11, %v567_v25  ;;  %vm10358_vm1 = vcmask 158848   ;;  %v2315_v10 = vrot.slane %v2313_v60, 4  ;;  %v2322_v5 = vshll.u32 %v8216_v20, 16 }
 0x172   : > { %v1552_v56 = vshrl.u32 %v1314_v53, 16  ;;  %v1555_v33 = vshll.u32 %v1314_v53, 16  ;;  %6705 = vrcp.f32 %v8209_v50  ;;  %3575 = vst.msk [vmem:[#allocation3] sm:$0xf] %vm10358_vm1, %v3479_v28  ;;  %v3396_v49 = vshrl.u32 %v8191_v63, 16 }
 0x173   : > { %v2318_v23 = vrot.slane %v2316_v7, 5  ;;  %v2326_v21 = vshrl.u32 %v8216_v20, 16  ;;  %v934_v52 = vand.u32 2147483647, %v8209_v50  ;;  %v8240_v47 = vadd.f32 %v8126_v2, %v608_v42  ;;  %v8272_v53 = vld [vmem:[#allocation2 + $0xa4] sm:$0x1] }
 0x174   : > { %v1554_v38 = vrot.slane %v1552_v56, 7  ;;  %v6704_v9 = vpop.eup %6703  ;;  %v3395_v35 = vsel %vm7087_vm13, %v3390_v14, %v8220_v19  ;;  %v2705_v58 = vrot.slane %v2553_v55, 5  ;;  %v936_v36 = vand.u32 2147483648, %v8209_v50  ;;  %v3058_v42 = vld [vmem:[#allocation2 + $0x3c] sm:$0xf] }
 0x175   : > { %v8248_v32 = vadd.f32 1.0, %v6704_v9  ;;  %v6368_v3 = vmul.f32 -1.442695, %v8240_v47  ;;  %v8254_v51 = vrot.slane %v2322_v5, 5  ;;  %v6385_v0 = vrot.slane %v2552_v34, 9 }
 0x176   : > { %2400 = vrot.lane.b32.xlu2 %v2109_v62, %s6911_s19  ;;  %v1803_v22 = vld [vmem:[#allocation2 + $0xa8] sm:$0x1]  ;;  %v1557_v45 = vor.u32 %v1555_v33, %v1554_v38  ;;  %v1559_v26 = vrot.slane %v1554_v38, 4  ;;  %v569_v8 = vpop.f32.mrf.mxu3  ;;  %v2319_v61 = vor.u32 %v2318_v23, %v2315_v10  ;;  %vm930_vm3 = vweird.f32 %v8209_v50  ;;  %v2393_v60 = vpop.permute.xlu2 %2392  ;;  %v2877_v33 = vld [vmem:[#allocation2 + $0x9c] sm:$0xf] }
 0x177   : > { %v1804_v39 = vsel %vm7022_vm7, 0, %v1803_v22  ;;  %6707 = vrcp.f32 %v8248_v32  ;;  %vm8268_vm2 = vcmp.eq.f32.partialorder %v934_v52, 8.507059e+37  ;;  %v8274_v25 = vrot.slane %v2705_v58, 4  ;;  %v8277_v7 = vpop.permute.xlu1 %2953  ;;  %2485 = vst.msk [vmem:[#allocation3 + $0x10] sm:$0xf] %vm10357_vm12, %v2393_v60 }
 0x178   : > { %2434 = vrot.lane.b32.xlu1 %v2311_v44, %s6911_s19  ;;  %v8256_v24 = vpop.eup %6705  ;;  %1805 = vst [vmem:[#allocation2 + $0xa8] sm:$0x1] %v1804_v39  ;;  %v1558_v43 = vsel %vm7240_vm9, %v1550_v6, %v1557_v45  ;;  %v1745_v29 = vsel %vm7022_vm7, %v1559_v26, %v1744_v46  ;;  %v937_v62 = vor.u32 1.1754944e-38, %v936_v36  ;;  %6709 = vpow2.f32 %v6368_v3  ;;  %v1990_v6 = vld [vmem:[#allocation2 + $0xa4] sm:$0x1]  ;;  %v8319_v26 = vpop.permute.xlu0 %3514 }
 0x179   : > { %3526 = vrot.lane.b32.xlu0 %v3395_v35, %s6913_s21  ;;  %1743 = vst.msk [vmem:[#allocation2 + $0xac] sm:$0xf] %vm10471_vm11, %v1558_v43  ;;  %v926_v48 = vmul.f32 %v8256_v24, %v8209_v50  ;;  %v609_v20 = vmul.f32 %v8110_v11, %v569_v8  ;;  %v3186_v14 = vshll.u32 %v8245_v37, 16  ;;  %vm931_vm15 = vweird.f32 %v8256_v24  ;;  %v1911_v38 = vld [vmem:[#allocation2 + $0x9c] sm:$0xf] }
 0x17a   : > { %1746 = vst [vmem:[#allocation2 + $0xb0] sm:$0x1] %v1745_v29  ;;  %v8284_v55 = vsel %vm7050_vm10, %v6385_v0, %v2705_v58  ;;  %v2328_v46 = vrot.slane %v2326_v21, 4  ;;  %v2320_v10 = vrot.slane %v2319_v61, 4  ;;  %v2708_v5 = vrot.slane %v8272_v53, 5  ;;  %vm8309_vm5 = vmor %vm930_vm3, %vm931_vm15 }
 0x17b   : > { %v927_v56 = vsub.f32 1.0, %v926_v48  ;;  %v8287_v28 = vadd.f32 %v8126_v2, %v609_v20  ;;  %v8295_v34 = vrot.slane %v3183_v31, 4  ;;  %vm945_vm14 = vweird.f32 %v8248_v32  ;;  %v2528_v9 = vld [vmem:[#allocation2 + $0x3c] sm:$0xe]  ;;  %v8300_v52 = vld [vmem:[#allocation2 + $0x40] sm:$0xf] }
 0x17c   : > { %v949_v21 = vand.u32 2147483647, %v8248_v32  ;;  %v951_v13 = vand.u32 2147483648, %v8248_v32  ;;  %v2332_v58 = vshll.u32 %v1990_v6, 16  ;;  %v3191_v37 = vshrl.u32 %v3058_v42, 16 }
 0x17d   : > { %v928_v23 = vmul.f32 %v8256_v24, %v927_v56  ;;  %v8303_v35 = vpop.eup %6707  ;;  %v6369_v31 = vmul.f32 -1.442695, %v8287_v28  ;;  %v2861_v50 = vld [vmem:[#allocation2 + $0x3c] sm:$0xf]  ;;  %v6377_v36 = vrot.slane %v2528_v9, 9  ;;  %v8321_v39 = vrot.slane %v3186_v14, 5 }
 0x17e   : > { %2742 = vrot.lane.b32.xlu2 %v8224_v59, %s6910_s18  ;;  %v2329_v59 = vor.u32 %v2328_v46, %v8254_v51  ;;  %v941_v45 = vmul.f32 %v8303_v35, %v8248_v32  ;;  %v6710_v3 = vpop.eup %6709  ;;  %vm946_vm11 = vweird.f32 %v8303_v35  ;;  %v2649_v0 = vrot.slane %v8300_v52, 5  ;;  %v8366_v9 = vpop.permute.xlu2 %3482 }
 0x17f   : > { %v929_v22 = vadd.f32 %v8256_v24, %v928_v23  ;;  %6711 = vpow2.f32 %v6369_v31  ;;  %vm10476_vm3 = vcmask 27648   ;;  %v8332_v48 = vadd.f32 1.0, %v6710_v3  ;;  %v2765_v14 = vpop.permute.xlu1 %2764 }
 0x180   : > { %2965 = vrot.lane.b32.xlu1 %v2877_v33, %s6912_s20  ;;  %v8326_v43 = vrot.slane %v2329_v59, 4  ;;  %1943 = vst.msk [vmem:[#allocation3 + $0x68] sm:$0xf] %vm10476_vm3, %v1911_v38  ;;  %v942_v61 = vsub.f32 1.0, %v941_v45  ;;  %v3194_v60 = vshll.u32 %v3058_v42, 16  ;;  %v8338_v6 = vrot.slane %v2332_v58, 5 }
 0x181   : > { %2933 = vrot.lane.b32.xlu0 %v2861_v50, %s6912_s20  ;;  %v1858_v29 = vld [vmem:[#allocation2 + $0xb0] sm:$0x1]  ;;  %v933_v8 = vsel %vm8309_vm5, %v8256_v24, %v929_v22  ;;  %v3193_v56 = vrot.slane %v3191_v37, 4  ;;  %6713 = vrcp.f32 %v8332_v48  ;;  %v2325_v24 = vsel %vm7087_vm13, %v2320_v10, %v8254_v51  ;;  %v8346_v42 = vld [vmem:[#allocation2 + $0x40] sm:$0xf] }
 0x182   : > { %v1859_v53 = vsel %vm7015_vm4, 0, %v1858_v29  ;;  %v938_v20 = vsel %vm8268_vm2, %v937_v62, %v933_v8  ;;  %v943_v46 = vmul.f32 %v8303_v35, %v942_v61  ;;  %v1912_v38 = vld [vmem:[#allocation2 + $0xa0] sm:$0xf]  ;;  %vm8352_vm2 = vmor %vm945_vm14, %vm946_vm11  ;;  %vm8356_vm15 = vcmp.eq.f32.partialorder %v949_v21, 8.507059e+37  ;;  %2841 = vst.msk [vmem:[#allocation3 + $0x50] sm:$0xf] %vm10356_vm8, %v2765_v14 }
 0x183   : > { %1860 = vst [vmem:[#allocation2 + $0xb0] sm:$0x1] %v1859_v53  ;;  %v1265_v33 = vmul.f32 %v938_v20, %v8129_v41  ;;  %v952_v62 = vor.u32 1.1754944e-38, %v951_v13  ;;  %v2709_v51 = vsel %vm7050_vm10, %v8274_v25, %v2708_v5  ;;  %v3196_v10 = vrot.slane %v3194_v60, 5  ;;  %vm10481_vm14 = vmmov %vm10476_vm3  ;;  %v1684_v8 = vld [vmem:[#allocation2 + $0x48] sm:$0xf] }
 0x184   : > { %v944_v32 = vadd.f32 %v8303_v35, %v943_v46  ;;  %v2650_v21 = vsel %vm7050_vm10, %v6377_v36, %v2649_v0  ;;  %v3189_v59 = vsel %vm7087_vm13, %v8295_v34, %v8321_v39  ;;  %1944 = vst.msk [vmem:[#allocation3 + $0x6c] sm:$0xf] %vm10481_vm14, %v1912_v38  ;;  %vm1200_vm5 = vweird.f32 %v8332_v48 }
 0x185   : > { %v1297_v23 = vpack.c.bf16 %v1265_v33, %v1265_v33  ;;  %v6712_v25 = vpop.eup %6711  ;;  %v2335_v5 = vsel %vm7087_vm13, %v8326_v43, %v8338_v6  ;;  %v3197_v13 = vor.u32 %v3196_v10, %v3193_v56  ;;  %v3200_v31 = vshll.u32 %v8346_v42, 16  ;;  %v1966_v10 = vld [vmem:[#allocation2 + $0x44] sm:$0x1] }
 0x186   : > { %2436 = vrot.lane.b32.xlu2 %v2325_v24, %s6911_s19  ;;  %v948_v34 = vsel %vm8352_vm2, %v8303_v35, %v944_v32  ;;  %v8388_v22 = vadd.f32 1.0, %v6712_v25  ;;  %v2130_v50 = vshll.u32 %v1965_v16, 16  ;;  %v2134_v36 = vshrl.u32 %v1965_v16, 16  ;;  %v2922_v35 = vpop.permute.xlu0 %2921  ;;  %v8473_v25 = vld [vmem:[#allocation2 + $0x44] sm:$0x1] }
 0x187   : > { %v1408_v58 = vshrl.u32 %v1297_v23, 16  ;;  %v1411_v37 = vshll.u32 %v1297_v23, 16  ;;  %v953_v45 = vsel %vm8356_vm15, %v952_v62, %v948_v34  ;;  %v6714_v39 = vpop.eup %6713  ;;  %v1206_v29 = vand.u32 2147483648, %v8332_v48  ;;  %v3084_v34 = vld [vmem:[#allocation2 + $0xa4] sm:$0x1] }
 0x188   : > { %2776 = vrot.lane.b32.xlu1 %v8284_v55, %s6910_s18  ;;  %v1204_v55 = vand.u32 2147483647, %v8332_v48  ;;  %v1266_v43 = vmul.f32 %v953_v45, %v8172_v54  ;;  %6715 = vrcp.f32 %v8388_v22  ;;  %v1196_v61 = vmul.f32 %v6714_v39, %v8332_v48  ;;  %v1688_v45 = vld [vmem:[#allocation2 + $0x50] sm:$0x1] }
 0x189   : > { %2744 = vrot.lane.b32.xlu0 %v2650_v21, %s6910_s18  ;;  %v1410_v3 = vrot.slane %v1408_v58, 7  ;;  %v3198_v60 = vrot.slane %v3197_v13, 4  ;;  %v8398_v53 = vrot.slane %v3200_v31, 5  ;;  %v3204_v20 = vshrl.u32 %v8346_v42, 16  ;;  %v2395_v58 = vpop.permute.xlu2 %2394 }
 0x18a   : > { %v1298_v6 = vpack.c.bf16 %v1266_v43, %v1266_v43  ;;  %v1219_v56 = vand.u32 2147483647, %v8388_v22  ;;  %v1221_v33 = vand.u32 2147483648, %v8388_v22  ;;  %v1197_v54 = vsub.f32 1.0, %v1196_v61  ;;  %2486 = vst.msk [vmem:[#allocation3 + $0x14] sm:$0xf] %vm10357_vm12, %v2395_v58 }
 0x18b   : > { %v1413_v14 = vor.u32 %v1411_v37, %v1410_v3  ;;  %vm1201_vm11 = vweird.f32 %v6714_v39  ;;  %v8404_v46 = vrot.slane %v2130_v50, 5  ;;  %v2136_v24 = vrot.slane %v2134_v36, 4  ;;  %v2389_v37 = vpop.permute.xlu1 %2388  ;;  %v527_v50 = vpop.f32.mrf.mxu0 }
 0x18c   : > { %v1416_v44 = vshrl.u32 %v1298_v6, 16  ;;  %v1419_v41 = vshll.u32 %v1298_v6, 16  ;;  %vm8408_vm3 = vcmp.eq.f32.partialorder %v1204_v55, 8.507059e+37  ;;  %v1414_v23 = vrot.slane %v1410_v3, 4  ;;  %vm8419_vm15 = vmor %vm1200_vm5, %vm1201_vm11  ;;  %2483 = vst.msk [vmem:[#allocation3 + $0x8] sm:$0xf] %vm10357_vm12, %v2389_v37 }
 0x18d   : > { %v1685_v38 = vsel %vm7111_vm0, %v1413_v14, %v1684_v8  ;;  %v1198_v32 = vmul.f32 %v6714_v39, %v1197_v54  ;;  %v1207_v21 = vor.u32 1.1754944e-38, %v1206_v29  ;;  %vm1215_vm2 = vweird.f32 %v8388_v22  ;;  %2823 = vst.msk [vmem:[#allocation3 + $0x8] sm:$0xf] %vm10356_vm8, %v8230_v27 }
 0x18e   : > { %2778 = vrot.lane.b32.xlu2 %v2709_v51, %s6910_s18  ;;  %1686 = vst [vmem:[#allocation2 + $0x48] sm:$0xf] %v1685_v38  ;;  %v8414_v51 = vpop.eup %6715  ;;  %v1418_v16 = vrot.slane %v1416_v44, 7  ;;  %vm8423_vm14 = vcmp.eq.f32.partialorder %v1219_v56, 8.507059e+37  ;;  %v1222_v31 = vor.u32 1.1754944e-38, %v1221_v33  ;;  %v2137_v36 = vor.u32 %v2136_v24, %v8404_v46 }
 0x18f   : > { %v1199_v55 = vadd.f32 %v6714_v39, %v1198_v32  ;;  %v1211_v48 = vmul.f32 %v8414_v51, %v8388_v22  ;;  %v2140_v3 = vshll.u32 %v1966_v10, 16  ;;  %v592_v8 = vmul.f32 %v8110_v11, %v527_v50  ;;  %3016 = vst.msk [vmem:[#allocation3 + $0x8] sm:$0xf] %vm10355_vm6, %v2922_v35  ;;  %v3085_v33 = vld [vmem:[#allocation2 + $0xa8] sm:$0xf] }
 0x190   : > { %3492 = vrot.lane.b32.xlu1 %v3189_v59, %s6913_s21  ;;  %v3203_v59 = vsel %vm7087_vm13, %v3198_v60, %v8398_v53  ;;  %v1421_v43 = vor.u32 %v1419_v41, %v1418_v16  ;;  %v1423_v29 = vrot.slane %v1418_v16, 4  ;;  %v3398_v61 = vrot.slane %v3396_v49, 4  ;;  %v2733_v49 = vpop.permute.xlu0 %2732  ;;  %v2862_v24 = vld [vmem:[#allocation2 + $0x40] sm:$0xf]  ;;  %v2879_v22 = vld [vmem:[#allocation2 + $0xa8] sm:$0xf] }
 0x191   : > { %2438 = vrot.lane.b32.xlu0 %v2335_v5, %s6911_s19  ;;  %v1203_v60 = vsel %vm8419_vm15, %v6714_v39, %v1199_v55  ;;  %v1212_v14 = vsub.f32 1.0, %v1211_v48  ;;  %vm1216_vm5 = vweird.f32 %v8414_v51  ;;  %v3402_v5 = vshll.u32 %v3084_v34, 16  ;;  %2825 = vst.msk [vmem:[#allocation3 + $0x10] sm:$0xf] %vm10356_vm8, %v2733_v49  ;;  %v2555_v16 = vld [vmem:[#allocation2 + $0xa8] sm:$0xe] }
 0x192   : > { %v1422_v6 = vsel %vm7240_vm9, %v1414_v23, %v1421_v43  ;;  %v1689_v56 = vsel %vm7022_vm7, %v1423_v29, %v1688_v45  ;;  %v1208_v63 = vsel %vm8408_vm3, %v1207_v21, %v1203_v60  ;;  %v8452_v39 = vadd.f32 %v8126_v2, %v592_v8  ;;  %vm8462_vm3 = vmor %vm1215_vm2, %vm1216_vm5  ;;  %3577 = vst.msk [vmem:[#allocation3 + $0x8] sm:$0xf] %vm10358_vm1, %v8366_v9  ;;  %v8485_v48 = vld [vmem:[#allocation2 + $0xac] sm:$0xf]  ;;  %v1964_v43 = vld [vmem:[#allocation2 + $0x3c] sm:$0xf] }
 0x193   : > { %vm10488_vm11 = vcmask 27648   ;;  %v1283_v27 = vmul.f32 %v1208_v63, %v8240_v47  ;;  %v1213_v54 = vmul.f32 %v8414_v51, %v1212_v14  ;;  %v2138_v38 = vrot.slane %v2137_v36, 4  ;;  %1690 = vst [vmem:[#allocation2 + $0x50] sm:$0x1] %v1689_v56  ;;  %v1747_v29 = vld [vmem:[#allocation2 + $0xb4] sm:$0xf]  ;;  %v8498_v56 = vpop.permute.xlu2 %3518 }
 0x194   : > { %1687 = vst.msk [vmem:[#allocation2 + $0x4c] sm:$0xf] %vm10488_vm11, %v1422_v6  ;;  %v2142_v44 = vrot.slane %v2140_v3, 5  ;;  %v6352_v62 = vmul.f32 -1.442695, %v8452_v39  ;;  %v3399_v47 = vor.u32 %v3398_v61, %v8220_v19  ;;  %v3407_v21 = vshrl.u32 %v3085_v33, 16  ;;  %vm10491_vm2 = vmmov %vm10488_vm11 }
 0x195   : > { %v1779_v41 = vld [vmem:[#allocation2 + $0x48] sm:$0x1]  ;;  %v1315_v23 = vpack.c.bf16 %v1283_v27, %v1283_v27  ;;  %v1214_v32 = vadd.f32 %v8414_v51, %v1213_v54  ;;  %v3404_v55 = vrot.slane %v3402_v5, 5  ;;  %v3206_v50 = vrot.slane %v3204_v20, 4  ;;  %vm10492_vm15 = vmmov %vm10491_vm2 }
 0x196   : > { %3494 = vrot.lane.b32.xlu2 %v3203_v59, %s6913_s21  ;;  %v1780_v10 = vsel %vm7022_vm7, 0, %v1779_v41  ;;  %6717 = vpow2.f32 %v6352_v62  ;;  %v8481_v59 = vld [vmem:[#allocation2 + $0xac] sm:$0xf]  ;;  %v3400_v45 = vrot.slane %v3399_v47, 4  ;;  %v2143_v9 = vsel %vm7087_vm13, %v2138_v38, %v2142_v44  ;;  %v2391_v44 = vpop.permute.xlu1 %2390  ;;  %v1751_v41 = vld [vmem:[#allocation2 + $0xbc] sm:$0x1] }
 0x197   : > { %1781 = vst [vmem:[#allocation2 + $0x48] sm:$0x1] %v1780_v10  ;;  %v1561_v58 = vshrl.u32 %v1315_v23, 16  ;;  %v1564_v37 = vshll.u32 %v1315_v23, 16  ;;  %v1218_v19 = vsel %vm8462_vm3, %v8414_v51, %v1214_v32  ;;  %v3410_v3 = vshll.u32 %v3085_v33, 16  ;;  %vm10495_vm3 = vmmov %vm10491_vm2 }
 0x198   : > { %2935 = vrot.lane.b32.xlu1 %v2862_v24, %s6912_s20  ;;  %v1223_v34 = vsel %vm8423_vm14, %v1222_v31, %v1218_v19  ;;  %v6386_v8 = vrot.slane %v2555_v16, 9  ;;  %v2712_v13 = vrot.slane %v8481_v59, 5  ;;  %v3409_v31 = vrot.slane %v3407_v21, 4  ;;  %v2427_v35 = vpop.permute.xlu0 %2426  ;;  %2484 = vst.msk [vmem:[#allocation3 + $0xc] sm:$0xf] %vm10357_vm12, %v2391_v44 }
 0x199   : > { %2969 = vrot.lane.b32.xlu0 %v2879_v22, %s6912_s20  ;;  %v1563_v36 = vrot.slane %v1561_v58, 7  ;;  %v1284_v51 = vmul.f32 %v1223_v34, %v8287_v28  ;;  %v3416_v61 = vshll.u32 %v8485_v48, 16  ;;  %v3412_v42 = vrot.slane %v3410_v3, 5  ;;  %v1896_v21 = vld [vmem:[#allocation2 + $0x40] sm:$0xf]  ;;  %v529_v34 = vpop.f32.mrf.mxu0 }
 0x19a   : > { %v1834_v60 = vld [vmem:[#allocation2 + $0x50] sm:$0x1]  ;;  %v3210_v28 = vshll.u32 %v8473_v25, 16  ;;  %v3405_v63 = vsel %vm7087_vm13, %v3400_v45, %v3404_v55  ;;  %v3207_v49 = vor.u32 %v3206_v50, %v8398_v53  ;;  %v2121_v33 = vshrl.u32 %v1964_v43, 16  ;;  %2824 = vst.msk [vmem:[#allocation3 + $0xc] sm:$0xf] %vm10356_vm8, %v8095_v40 }
 0x19b   : > { %v1566_v14 = vor.u32 %v1564_v37, %v1563_v36  ;;  %v1316_v5 = vpack.c.bf16 %v1284_v51, %v1284_v51  ;;  %v1835_v6 = vsel %vm7015_vm4, 0, %v1834_v60  ;;  %v2713_v53 = vsel %vm7050_vm10, %v6386_v8, %v2712_v13  ;;  %2502 = vst.msk [vmem:[#allocation3 + $0x54] sm:$0xf] %vm10357_vm12, %v2427_v35  ;;  %v2926_v3 = vpop.permute.xlu2 %2925  ;;  %v1991_v8 = vld [vmem:[#allocation2 + $0xa8] sm:$0xf] }
 0x19c   : > { %v6718_v20 = vpop.eup %6717  ;;  %1836 = vst [vmem:[#allocation2 + $0x50] sm:$0x1] %v1835_v6  ;;  %v3413_v62 = vor.u32 %v3412_v42, %v3409_v31  ;;  %v8512_v47 = vrot.slane %v3416_v61, 5  ;;  %v2124_v10 = vshll.u32 %v1964_v43, 16  ;;  %v1567_v23 = vrot.slane %v1563_v36, 4 }
 0x19d   : > { %v1748_v27 = vsel %vm7111_vm0, %v1566_v14, %v1747_v29  ;;  %v1569_v54 = vshrl.u32 %v1316_v5, 16  ;;  %v1572_v24 = vshll.u32 %v1316_v5, 16  ;;  %v8505_v38 = vadd.f32 1.0, %v6718_v20  ;;  %2842 = vst.msk [vmem:[#allocation3 + $0x54] sm:$0xf] %vm10356_vm8, %v8218_v57 }
 0x19e   : > { %2406 = vrot.lane.b32.xlu2 %v2143_v9, %s6911_s19  ;;  %1749 = vst [vmem:[#allocation2 + $0xb4] sm:$0xf] %v1748_v27  ;;  %v3414_v22 = vrot.slane %v3413_v62, 4  ;;  %v3420_v16 = vshrl.u32 %v8485_v48, 16  ;;  %v2123_v25 = vrot.slane %v2121_v33, 4  ;;  %v2126_v58 = vrot.slane %v2124_v10, 5  ;;  %v3481_v60 = vpop.permute.xlu1 %3480 }
 0x19f   : > { %v1571_v32 = vrot.slane %v1569_v54, 7  ;;  %6719 = vrcp.f32 %v8505_v38  ;;  %v3208_v45 = vrot.slane %v3207_v49, 4  ;;  %v3212_v55 = vrot.slane %v3210_v28, 5  ;;  %v1992_v36 = vld [vmem:[#allocation2 + $0xac] sm:$0xf] }
 0x1a0   : > { %3528 = vrot.lane.b32.xlu1 %v3405_v63, %s6913_s21  ;;  %v593_v50 = vmul.f32 %v8110_v11, %v529_v34  ;;  %v3419_v40 = vsel %vm7087_vm13, %v3414_v22, %v8512_v47  ;;  %v2880_v9 = vld [vmem:[#allocation2 + $0xac] sm:$0xf]  ;;  %1928 = vst.msk [vmem:[#allocation3 + $0x2c] sm:$0xf] %vm10491_vm2, %v1896_v21  ;;  %v2127_v43 = vor.u32 %v2126_v58, %v2123_v25  ;;  %v3087_v29 = vld [vmem:[#allocation2 + $0xb0] sm:$0x1]  ;;  %v2958_v63 = vpop.permute.xlu0 %2957  ;;  %vm960_vm14 = vweird.f32 %v8505_v38 }
 0x1a1   : > { %2780 = vrot.lane.b32.xlu0 %v2713_v53, %s6910_s18  ;;  %v1574_v37 = vor.u32 %v1572_v24, %v1571_v32  ;;  %v1576_v19 = vrot.slane %v1571_v32, 4  ;;  %v3213_v14 = vsel %vm7087_vm13, %v3208_v45, %v3212_v55  ;;  %v3422_v5 = vrot.slane %v3420_v16, 4  ;;  %3018 = vst.msk [vmem:[#allocation3 + $0x10] sm:$0xf] %vm10355_vm6, %v2926_v3  ;;  %v2530_v54 = vld [vmem:[#allocation2 + $0x44] sm:$0x1] }
 0x1a2   : > { %v8535_v57 = vadd.f32 %v8126_v2, %v593_v50  ;;  %v2346_v42 = vshll.u32 %v1992_v36, 16  ;;  %v2350_v49 = vshrl.u32 %v1992_v36, 16  ;;  %v964_v33 = vand.u32 2147483647, %v8505_v38  ;;  %v1895_v24 = vld [vmem:[#allocation2 + $0x3c] sm:$0xf] }
 0x1a3   : > { %v1575_v48 = vsel %vm7240_vm9, %v1567_v23, %v1574_v37  ;;  %v1752_v51 = vsel %vm7022_vm7, %v1576_v19, %v1751_v41  ;;  %v966_v27 = vand.u32 2147483648, %v8505_v38  ;;  %3576 = vst.msk [vmem:[#allocation3 + $0x4] sm:$0xf] %vm10358_vm1, %v3481_v60  ;;  %v2128_v41 = vrot.slane %v2127_v43, 4  ;;  %v1993_v35 = vld [vmem:[#allocation2 + $0xb0] sm:$0x1] }
 0x1a4   : > { %1750 = vst.msk [vmem:[#allocation2 + $0xb8] sm:$0xf] %vm10492_vm15, %v1575_v48  ;;  %v6353_v6 = vmul.f32 -1.442695, %v8535_v57  ;;  %v3423_v53 = vor.u32 %v3422_v5, %v8512_v47  ;;  %v3426_v62 = vshll.u32 %v3087_v29, 16  ;;  %v2337_v10 = vshrl.u32 %v1991_v8, 16  ;;  %vm10498_vm15 = vmmov %vm10495_vm3 }
 0x1a5   : > { %v8537_v31 = vpop.eup %6719  ;;  %v1806_v61 = vld [vmem:[#allocation2 + $0xb4] sm:$0x1]  ;;  %1753 = vst [vmem:[#allocation2 + $0xbc] sm:$0x1] %v1752_v51  ;;  %v2340_v23 = vshll.u32 %v1991_v8, 16  ;;  %v8559_v21 = vrot.slane %v2346_v42, 5  ;;  %v2133_v50 = vsel %vm7087_vm13, %v2128_v41, %v8404_v46 }
 0x1a6   : > { %3530 = vrot.lane.b32.xlu2 %v3419_v40, %s6913_s21  ;;  %v1807_v28 = vsel %vm7022_vm7, 0, %v1806_v61  ;;  %v956_v20 = vmul.f32 %v8537_v31, %v8505_v38  ;;  %vm961_vm5 = vweird.f32 %v8537_v31  ;;  %6721 = vpow2.f32 %v6353_v6  ;;  %3034 = vst.msk [vmem:[#allocation3 + $0x50] sm:$0xf] %vm10355_vm6, %v2958_v63  ;;  %v2557_v16 = vld [vmem:[#allocation2 + $0xb0] sm:$0x1]  ;;  %v8577_v38 = vpop.permute.xlu2 %2736  ;;  %v572_v6 = vpop.f32.mrf.mxu3 }
 0x1a7   : > { %1808 = vst [vmem:[#allocation2 + $0xb4] sm:$0x1] %v1807_v28  ;;  %v2352_v22 = vrot.slane %v2350_v49, 4  ;;  %v1914_v25 = vld [vmem:[#allocation2 + $0xac] sm:$0xf]  ;;  %vm8565_vm11 = vmor %vm960_vm14, %vm961_vm5  ;;  %v967_v47 = vor.u32 1.1754944e-38, %v966_v27 }
 0x1a8   : > { %2971 = vrot.lane.b32.xlu1 %v2880_v9, %s6912_s20  ;;  %v957_v44 = vsub.f32 1.0, %v956_v20  ;;  %3595 = vst.msk [vmem:[#allocation3 + $0x50] sm:$0xf] %vm10358_vm1, %v8498_v56  ;;  %v2651_v37 = vrot.slane %v2649_v0, 4  ;;  %v2339_v19 = vrot.slane %v2337_v10, 4  ;;  %v2342_v34 = vrot.slane %v2340_v23, 5  ;;  %v2924_v0 = vpop.permute.xlu1 %2923  ;;  %v8593_v3 = vpop.permute.xlu0 %2768 }
 0x1a9   : > { %3496 = vrot.lane.b32.xlu0 %v3213_v14, %s6913_s21  ;;  %1946 = vst.msk [vmem:[#allocation3 + $0x74] sm:$0xf] %vm10495_vm3, %v1914_v25  ;;  %vm8573_vm2 = vcmp.eq.f32.partialorder %v964_v33, 8.507059e+37  ;;  %v2652_v40 = vrot.slane %v2530_v54, 5  ;;  %v8586_v36 = vrot.slane %v3423_v53, 4  ;;  %v8588_v48 = vrot.slane %v3426_v62, 5  ;;  %v532_v33 = vpop.f32.mrf.mxu0 }
 0x1aa   : > { %v958_v32 = vmul.f32 %v8537_v31, %v957_v44  ;;  %1927 = vst.msk [vmem:[#allocation3 + $0x28] sm:$0xf] %vm10498_vm15, %v1895_v24  ;;  %v2356_v51 = vshll.u32 %v1993_v35, 16  ;;  %v2863_v43 = vld [vmem:[#allocation2 + $0x48] sm:$0xf]  ;;  %v2353_v29 = vor.u32 %v2352_v22, %v8559_v21  ;;  %v2343_v8 = vor.u32 %v2342_v34, %v2339_v19 }
 0x1ab   : > { %v2714_v61 = vrot.slane %v2712_v13, 4  ;;  %3017 = vst.msk [vmem:[#allocation3 + $0xc] sm:$0xf] %vm10355_vm6, %v2924_v0  ;;  %v2715_v5 = vrot.slane %v2557_v16, 5  ;;  %v2653_v59 = vsel %vm7050_vm10, %v2651_v37, %v2652_v40  ;;  %v3061_v24 = vld [vmem:[#allocation2 + $0x48] sm:$0xf]  ;;  %v3429_v41 = vsel %vm7087_vm13, %v8586_v36, %v8588_v48 }
 0x1ac   : > { %v1861_v56 = vld [vmem:[#allocation2 + $0xbc] sm:$0x1]  ;;  %v959_v45 = vadd.f32 %v8537_v31, %v958_v32  ;;  %v6722_v9 = vpop.eup %6721  ;;  %v8608_v13 = vrot.slane %v2356_v51, 5  ;;  %v8611_v27 = vrot.slane %v2353_v29, 4  ;;  %v8613_v54 = vrot.slane %v2343_v8, 4 }
 0x1ad   : > { %v1862_v52 = vsel %vm7015_vm4, 0, %v1861_v56  ;;  %v8600_v14 = vadd.f32 1.0, %v6722_v9  ;;  %v2531_v44 = vld [vmem:[#allocation2 + $0x48] sm:$0xe]  ;;  %v8621_v35 = vsel %vm7050_vm10, %v2714_v61, %v2715_v5  ;;  %v610_v32 = vmul.f32 %v8110_v11, %v572_v6  ;;  %v8625_v16 = vld [vmem:[#allocation2 + $0x4c] sm:$0xf] }
 0x1ae   : > { %1863 = vst [vmem:[#allocation2 + $0xbc] sm:$0x1] %v1862_v52  ;;  %v963_v46 = vsel %vm8565_vm11, %v8537_v31, %v959_v45  ;;  %2937 = vrot.lane.b32.xlu2 %v2863_v43, %s6912_s20  ;;  %v1967_v31 = vld [vmem:[#allocation2 + $0x48] sm:$0xf]  ;;  %v2431_v22 = vpop.permute.xlu2 %2430  ;;  %v6378_v25 = vrot.slane %v2531_v44, 9  ;;  %v594_v58 = vmul.f32 %v8110_v11, %v532_v33  ;;  %v2656_v37 = vrot.slane %v8625_v16, 5  ;;  %v574_v61 = vpop.f32.mrf.mxu3 }
 0x1af   : > { %v968_v60 = vsel %vm8573_vm2, %v967_v47, %v963_v46  ;;  %v2145_v28 = vshrl.u32 %v1967_v31, 16  ;;  %v2148_v20 = vshll.u32 %v1967_v31, 16  ;;  %6723 = vrcp.f32 %v8600_v14  ;;  %2504 = vst.msk [vmem:[#allocation3 + $0x5c] sm:$0xf] %vm10357_vm12, %v2431_v22  ;;  %v8634_v19 = vld [vmem:[#allocation2 + $0x4c] sm:$0xf] }
 0x1b0   : > { %2404 = vrot.lane.b32.xlu1 %v2133_v50, %s6911_s19  ;;  %v1267_v42 = vmul.f32 %v968_v60, %v8452_v39  ;;  %v979_v49 = vand.u32 2147483647, %v8600_v14  ;;  %v2864_v39 = vld [vmem:[#allocation2 + $0x4c] sm:$0xf]  ;;  %vm975_vm14 = vweird.f32 %v8600_v14  ;;  %v8630_v47 = vpop.permute.xlu1 %3516  ;;  %v3215_v34 = vshrl.u32 %v3061_v24, 16  ;;  %v3485_v11 = vpop.permute.xlu0 %3484 }
 0x1b1   : > { %v2147_v53 = vrot.slane %v2145_v28, 4  ;;  %v2150_v62 = vrot.slane %v2148_v20, 5  ;;  %2939 = vrot.lane.b32.xlu0 %v2864_v39, %s6912_s20  ;;  %v1691_v45 = vld [vmem:[#allocation2 + $0x54] sm:$0xf]  ;;  %v981_v55 = vand.u32 2147483648, %v8600_v14  ;;  %v8640_v50 = vadd.f32 %v8126_v2, %v610_v32  ;;  %v534_v20 = vpop.f32.mrf.mxu0 }
 0x1b2   : > { %v1299_v63 = vpack.c.bf16 %v1267_v42, %v1267_v42  ;;  %v2349_v40 = vsel %vm7087_vm13, %v8613_v54, %v8559_v21  ;;  %vm8648_vm5 = vcmp.eq.f32.partialorder %v979_v49, 8.507059e+37  ;;  %v8653_v36 = vadd.f32 %v8126_v2, %v594_v58  ;;  %3578 = vst.msk [vmem:[#allocation3 + $0xc] sm:$0xf] %vm10358_vm1, %v3485_v11  ;;  %v3062_v9 = vld [vmem:[#allocation2 + $0x4c] sm:$0xf] }
 0x1b3   : > { %v2657_v48 = vsel %vm7050_vm10, %v6378_v25, %v2656_v37  ;;  %v2151_v51 = vor.u32 %v2150_v62, %v2147_v53  ;;  %v2154_v43 = vshll.u32 %v8634_v19, 16  ;;  %v3217_v2 = vrot.slane %v3215_v34, 4  ;;  %v8673_v42 = vld [vmem:[%s10347_s4] ss:$0 sm:$0xff]  ;;  %v3063_v44 = vld [vmem:[#allocation2 + $0x50] sm:$0x1] }
 0x1b4   : > { %v1425_v10 = vshrl.u32 %v1299_v63, 16  ;;  %v1428_v23 = vshll.u32 %v1299_v63, 16  ;;  %v6370_v29 = vmul.f32 -1.442695, %v8640_v50  ;;  %v6354_v8 = vmul.f32 -1.442695, %v8653_v36 }
 0x1b5   : > { %v8646_v52 = vpop.eup %6723  ;;  %v3218_v60 = vshll.u32 %v3061_v24, 16  ;;  %v611_v28 = vmul.f32 %v8673_v42, %v574_v61  ;;  %v3224_v6 = vshll.u32 %v3062_v9, 16  ;;  %v595_v63 = vmul.f32 %v8673_v42, %v534_v20  ;;  %v8681_v54 = vld [vmem:[%s10348_s5] ss:$0 sm:$0xff]  ;;  %v2533_v32 = vld [vmem:[#allocation2 + $0x50] sm:$0x1] }
 0x1b6   : > { %v8636_v56 = vrot.slane %v1425_v10, 7  ;;  %v971_v46 = vmul.f32 %v8646_v52, %v8600_v14  ;;  %2748 = vrot.lane.b32.xlu2 %v2657_v48, %s6910_s18  ;;  %vm976_vm11 = vweird.f32 %v8646_v52  ;;  %6725 = vpow2.f32 %v6370_v29  ;;  %v8706_v14 = vpop.permute.xlu2 %2961  ;;  %v1969_v61 = vld [vmem:[#allocation2 + $0x50] sm:$0x1] }
 0x1b7   : > { %v3220_v49 = vrot.slane %v3218_v60, 5  ;;  %6727 = vpow2.f32 %v6354_v8  ;;  %v8684_v24 = vadd.f32 %v8681_v54, %v611_v28  ;;  %v2158_v39 = vshrl.u32 %v8634_v19, 16  ;;  %vm8692_vm3 = vmor %vm975_vm14, %vm976_vm11 }
 0x1b8   : > { %2746 = vrot.lane.b32.xlu1 %v2653_v59, %s6910_s18  ;;  %v1430_v21 = vor.u32 %v1428_v23, %v8636_v56  ;;  %v972_v31 = vsub.f32 1.0, %v971_v46  ;;  %v982_v59 = vor.u32 1.1754944e-38, %v981_v55  ;;  %v8697_v62 = vadd.f32 %v8681_v54, %v595_v63  ;;  %v2960_v58 = vpop.permute.xlu1 %2959  ;;  %v2928_v55 = vpop.permute.xlu0 %2927 }
 0x1b9   : > { %3532 = vrot.lane.b32.xlu0 %v3429_v41, %s6913_s21  ;;  %v8700_v10 = vrot.slane %v2151_v51, 4  ;;  %v8702_v23 = vrot.slane %v3224_v6, 5  ;;  %v3228_v41 = vshrl.u32 %v3062_v9, 16  ;;  %v6371_v25 = vmul.f32 -1.442695, %v8684_v24 }
 0x1ba   : > { %v1692_v5 = vsel %vm7111_vm0, %v1430_v21, %v1691_v45  ;;  %v973_v33 = vmul.f32 %v8646_v52, %v972_v31  ;;  %v8708_v19 = vrot.slane %v2154_v43, 5  ;;  %v3221_v34 = vor.u32 %v3220_v49, %v3217_v2  ;;  %3035 = vst.msk [vmem:[#allocation3 + $0x54] sm:$0xf] %vm10355_vm6, %v2960_v58  ;;  %v2558_v6 = vld [vmem:[#allocation2 + $0xb4] sm:$0xe] }
 0x1bb   : > { %1693 = vst [vmem:[#allocation2 + $0x54] sm:$0xf] %v1692_v5  ;;  %v6355_v45 = vmul.f32 -1.442695, %v8697_v62  ;;  %v2359_v11 = vsel %vm7087_vm13, %v8611_v27, %v8608_v13  ;;  %v3234_v48 = vshll.u32 %v3063_v44, 16  ;;  %6729 = vpow2.f32 %v6371_v25 }
 0x1bc   : > { %v974_v22 = vadd.f32 %v8646_v52, %v973_v33  ;;  %v2658_v9 = vrot.slane %v2656_v37, 4  ;;  %v2659_v21 = vrot.slane %v2533_v32, 5  ;;  %v6726_v46 = vpop.eup %6725  ;;  %v1431_v43 = vrot.slane %v8636_v56, 4  ;;  %v2882_v5 = vld [vmem:[#allocation2 + $0xb8] sm:$0xf] }
 0x1bd   : > { %6731 = vpow2.f32 %v6355_v45  ;;  %v6728_v27 = vpop.eup %6727  ;;  %v8727_v8 = vadd.f32 1.0, %v6726_v46  ;;  %v2157_v16 = vsel %vm7087_vm13, %v8700_v10, %v8708_v19  ;;  %v8733_v37 = vrot.slane %v3221_v34, 4  ;;  %v8754_v49 = vld [vmem:[#allocation2 + $0xb8] sm:$0xf]  ;;  %v1695_v46 = vld [vmem:[#allocation2 + $0x5c] sm:$0x1] }
 0x1be   : > { %v978_v51 = vsel %vm8692_vm3, %v8646_v52, %v974_v22  ;;  %2442 = vrot.lane.b32.xlu2 %v2359_v11, %s6911_s19  ;;  %v8737_v60 = vadd.f32 1.0, %v6728_v27  ;;  %v8739_v31 = vrot.slane %v3234_v48, 5  ;;  %v8741_v28 = vrot.slane %v2158_v39, 4  ;;  %v8771_v48 = vpop.permute.xlu2 %2772 }
 0x1bf   : > { %v983_v2 = vsel %vm8648_vm5, %v982_v59, %v978_v51  ;;  %6733 = vrcp.f32 %v8727_v8  ;;  %v1234_v20 = vand.u32 2147483647, %v8727_v8  ;;  %v8748_v59 = vsel %vm7050_vm10, %v2658_v9, %v2659_v21 }
 0x1c0   : > { %2440 = vrot.lane.b32.xlu1 %v2349_v40, %s6911_s19  ;;  %v3230_v40 = vrot.slane %v3228_v41, 4  ;;  %v1268_v52 = vmul.f32 %v983_v2, %v8535_v57  ;;  %v1236_v63 = vand.u32 2147483648, %v8727_v8  ;;  %6735 = vrcp.f32 %v8737_v60  ;;  %v2735_v41 = vpop.permute.xlu1 %2734  ;;  %v3521_v51 = vpop.permute.xlu0 %3520 }
 0x1c1   : > { %2975 = vrot.lane.b32.xlu0 %v2882_v5, %s6912_s20  ;;  %v6387_v33 = vrot.slane %v2558_v6, 9  ;;  %v6730_v44 = vpop.eup %6729  ;;  %v2719_v32 = vrot.slane %v8754_v49, 5  ;;  %v2164_v22 = vshll.u32 %v1969_v61, 16  ;;  %vm1230_vm2 = vweird.f32 %v8727_v8  ;;  %2826 = vst.msk [vmem:[#allocation3 + $0x14] sm:$0xf] %vm10356_vm8, %v2735_v41 }
 0x1c2   : > { %v3231_v13 = vor.u32 %v3230_v40, %v8702_v23  ;;  %v1782_v29 = vld [vmem:[#allocation2 + $0x54] sm:$0x1]  ;;  %v1300_v57 = vpack.c.bf16 %v1268_v52, %v1268_v52  ;;  %v8760_v58 = vor.u32 1.1754944e-38, %v1236_v63  ;;  %v8762_v34 = vadd.f32 1.0, %v6730_v44  ;;  %3019 = vst.msk [vmem:[#allocation3 + $0x14] sm:$0xf] %vm10355_vm6, %v2928_v55 }
 0x1c3   : > { %v1783_v0 = vsel %vm7022_vm7, 0, %v1782_v29  ;;  %v6732_v25 = vpop.eup %6731  ;;  %v3227_v45 = vsel %vm7087_vm13, %v8733_v37, %v8702_v23  ;;  %v2161_v21 = vor.u32 %v8741_v28, %v8708_v19  ;;  %vm8781_vm15 = vcmp.eq.f32.partialorder %v1234_v20, 8.507059e+37  ;;  %3596 = vst.msk [vmem:[#allocation3 + $0x54] sm:$0xf] %vm10358_vm1, %v3521_v51  ;;  %v8814_v6 = vld [vmem:[#allocation2 + $0xb4] sm:$0xf] }
 0x1c4   : > { %1784 = vst [vmem:[#allocation2 + $0x54] sm:$0x1] %v1783_v0  ;;  %v8756_v39 = vrot.slane %v3231_v13, 4  ;;  %v1433_v53 = vshrl.u32 %v1300_v57, 16  ;;  %v1436_v10 = vshll.u32 %v1300_v57, 16  ;;  %v8769_v40 = vadd.f32 1.0, %v6732_v25 }
 0x1c5   : > { %v994_v2 = vand.u32 2147483647, %v8737_v60  ;;  %v996_v55 = vand.u32 2147483648, %v8737_v60  ;;  %6737 = vrcp.f32 %v8762_v34  ;;  %v2720_v13 = vsel %vm7050_vm10, %v6387_v33, %v2719_v32  ;;  %v6734_v27 = vpop.eup %6733  ;;  %v537_v33 = vpop.f32.mrf.mxu0 }
 0x1c6   : > { %v1435_v11 = vrot.slane %v1433_v53, 7  ;;  %v3237_v9 = vsel %vm7087_vm13, %v8756_v39, %v8739_v31  ;;  %vm990_vm14 = vweird.f32 %v8737_v60  ;;  %v8793_v19 = vrot.slane %v2164_v22, 5  ;;  %v8795_v37 = vpop.eup %6735 }
 0x1c7   : > { %v1226_v61 = vmul.f32 %v6734_v27, %v8727_v8  ;;  %vm1231_vm5 = vweird.f32 %v6734_v27  ;;  %v1249_v0 = vand.u32 2147483647, %v8762_v34  ;;  %v986_v57 = vmul.f32 %v8795_v37, %v8737_v60 }
 0x1c8   : > { %2782 = vrot.lane.b32.xlu1 %v8621_v35, %s6910_s18  ;;  %v2881_v35 = vld [vmem:[#allocation2 + $0xb4] sm:$0xf]  ;;  %v1438_v29 = vor.u32 %v1436_v10, %v1435_v11  ;;  %v1440_v52 = vrot.slane %v1435_v11, 4  ;;  %vm8809_vm3 = vcmp.eq.f32.partialorder %v994_v2, 8.507059e+37  ;;  %vm10507_vm6 = vcmask 27648   ;;  %vm8833_vm11 = vmor %vm1230_vm2, %vm1231_vm5 }
 0x1c9   : > { %2973 = vrot.lane.b32.xlu2 %v2881_v35, %s6912_s20  ;;  %2408 = vrot.lane.b32.xlu0 %v2157_v16, %s6911_s19  ;;  %v1227_v56 = vsub.f32 1.0, %v1226_v61  ;;  %v997_v63 = vor.u32 1.1754944e-38, %v996_v55  ;;  %6739 = vrcp.f32 %v8769_v40  ;;  %v987_v44 = vsub.f32 1.0, %v986_v57  ;;  %v3489_v61 = vpop.permute.xlu2 %3488  ;;  %v2429_v57 = vpop.permute.xlu1 %2428 }
 0x1ca   : > { %v1439_v5 = vsel %vm7240_vm9, %v1431_v43, %v1438_v29  ;;  %v1696_v28 = vsel %vm7022_vm7, %v1440_v52, %v1695_v46  ;;  %v1251_v43 = vand.u32 2147483648, %v8762_v34  ;;  %vm991_vm8 = vweird.f32 %v8795_v37 }
 0x1cb   : > { %1694 = vst.msk [vmem:[#allocation2 + $0x58] sm:$0xf] %vm10507_vm6, %v1439_v5  ;;  %v596_v53 = vmul.f32 %v8673_v42, %v537_v33  ;;  %v2162_v16 = vrot.slane %v2161_v21, 4  ;;  %v8822_v10 = vpop.eup %6737  ;;  %v1228_v41 = vmul.f32 %v6734_v27, %v1227_v56  ;;  %vm8824_vm6 = vcmp.eq.f32.partialorder %v1249_v0, 8.507059e+37  ;;  %vm8846_vm1 = vmor %vm990_vm14, %vm991_vm8 }
 0x1cc   : > { %1697 = vst [vmem:[#allocation2 + $0x5c] sm:$0x1] %v1696_v28  ;;  %v1009_v25 = vand.u32 2147483647, %v8769_v40  ;;  %v2361_v35 = vshrl.u32 %v8814_v6, 16  ;;  %v988_v11 = vmul.f32 %v8795_v37, %v987_v44  ;;  %v1241_v51 = vmul.f32 %v8822_v10, %v8762_v34 }
 0x1cd   : > { %v1252_v21 = vor.u32 1.1754944e-38, %v1251_v43  ;;  %vm1005_vm12 = vweird.f32 %v8769_v40  ;;  %v1229_v46 = vadd.f32 %v6734_v27, %v1228_v41  ;;  %vm1246_vm2 = vweird.f32 %v8822_v10 }
 0x1ce   : > { %v1011_v2 = vand.u32 2147483648, %v8769_v40  ;;  %v8853_v55 = vadd.f32 %v8681_v54, %v596_v53  ;;  %v989_v29 = vadd.f32 %v8795_v37, %v988_v11  ;;  %v1242_v52 = vsub.f32 1.0, %v1241_v51  ;;  %v2964_v53 = vpop.permute.xlu0 %2963 }
 0x1cf   : > { %vm8856_vm5 = vcmp.eq.f32.partialorder %v1009_v25, 8.507059e+37  ;;  %v2167_v60 = vsel %vm7087_vm13, %v2162_v16, %v8793_v19  ;;  %v8863_v0 = vpop.eup %6739  ;;  %v1233_v5 = vsel %vm8833_vm11, %v6734_v27, %v1229_v46  ;;  %vm10516_vm8 = vcmask 158848   ;;  %v8880_v16 = vld [vmem:[#allocation2 + $0xb8] sm:$0xf] }
 0x1d0   : > { %3498 = vrot.lane.b32.xlu1 %v3227_v45, %s6913_s21  ;;  %v6356_v28 = vmul.f32 -1.442695, %v8853_v55  ;;  %3580 = vst.msk [vmem:[#allocation3 + $0x14] sm:$0xf] %vm10516_vm8, %v3489_v61  ;;  %v2363_v56 = vrot.slane %v2361_v35, 4  ;;  %v2364_v43 = vshll.u32 %v8814_v6, 16  ;;  %v1238_v33 = vsel %vm8781_vm15, %v8760_v58, %v1233_v5 }
 0x1d1   : > { %2784 = vrot.lane.b32.xlu2 %v2720_v13, %s6910_s18  ;;  %v993_v19 = vsel %vm8846_vm1, %v8795_v37, %v989_v29  ;;  %v1243_v44 = vmul.f32 %v8822_v10, %v1242_v52  ;;  %v1001_v27 = vmul.f32 %v8863_v0, %v8769_v40  ;;  %vm10517_vm14 = vcmask 60448   ;;  %2750 = vrot.lane.b32.xlu0 %v8748_v59, %s6910_s18  ;;  %v8929_v39 = vpop.permute.xlu2 %2931  ;;  %v2771_v40 = vpop.permute.xlu1 %2770  ;;  %v3088_v5 = vld [vmem:[#allocation2 + $0xb4] sm:$0xf] }
 0x1d2   : > { %2503 = vst.msk [vmem:[#allocation3 + $0x58] sm:$0xf] %vm10517_vm14, %v2429_v57  ;;  %v1285_v6 = vmul.f32 %v1238_v33, %v8640_v50  ;;  %v998_v58 = vsel %vm8809_vm3, %v997_v63, %v993_v19  ;;  %vm10518_vm1 = vweird.f32 %v8762_v34  ;;  %vm1006_vm11 = vweird.f32 %v8863_v0  ;;  %v1698_v57 = vld [vmem:[#allocation2 + $0x60] sm:$0xf] }
 0x1d3   : > { %v1837_v41 = vld [vmem:[#allocation2 + $0x5c] sm:$0x1]  ;;  %vm8889_vm15 = vmor %vm10518_vm1, %vm1246_vm2  ;;  %6741 = vpow2.f32 %v6356_v28  ;;  %vm10521_vm8 = vcmask 93248   ;;  %v1269_v34 = vmul.f32 %v998_v58, %v8653_v36  ;;  %v1244_v37 = vadd.f32 %v8822_v10, %v1243_v44 }
 0x1d4   : > { %2843 = vst.msk [vmem:[#allocation3 + $0x58] sm:$0xf] %vm10521_vm8, %v8593_v3  ;;  %v1838_v50 = vsel %vm7015_vm4, 0, %v1837_v41  ;;  %v1002_v20 = vsub.f32 1.0, %v1001_v27  ;;  %vm10522_vm3 = vcmask 126048   ;;  %v1317_v63 = vpack.c.bf16 %v1285_v6, %v1285_v6  ;;  %v539_v3 = vpop.f32.mrf.mxu0  ;;  %vm8923_vm2 = vmor %vm1005_vm12, %vm1006_vm11 }
 0x1d5   : > { %3036 = vst.msk [vmem:[#allocation3 + $0x58] sm:$0xf] %vm10522_vm3, %v8706_v14  ;;  %v1012_v25 = vor.u32 1.1754944e-38, %v1011_v2  ;;  %v2366_v35 = vrot.slane %v2364_v43, 5  ;;  %v2370_v59 = vshll.u32 %v8880_v16, 16  ;;  %v1301_v45 = vpack.c.bf16 %v1269_v34, %v1269_v34  ;;  %vm10525_vm12 = vmmov %vm10521_vm8 }
 0x1d6   : > { %1839 = vst [vmem:[#allocation2 + $0x5c] sm:$0x1] %v1838_v50  ;;  %v1248_v11 = vsel %vm8889_vm15, %v8822_v10, %v1244_v37  ;;  %v1003_v36 = vmul.f32 %v8863_v0, %v1002_v20  ;;  %v597_v51 = vmul.f32 %v8673_v42, %v539_v3  ;;  %v1578_v14 = vshrl.u32 %v1317_v63, 16  ;;  %v2397_v33 = vpop.permute.xlu0 %2396  ;;  %v1758_v37 = vld [vmem:[#allocation2 + $0xc8] sm:$0x1] }
 0x1d7   : > { %v1581_v46 = vshll.u32 %v1317_v63, 16  ;;  %v1253_v8 = vsel %vm8824_vm6, %v1252_v21, %v1248_v11  ;;  %v2367_v42 = vor.u32 %v2366_v35, %v2363_v56  ;;  %v1442_v2 = vshrl.u32 %v1301_v45, 16  ;;  %v1754_v21 = vld [vmem:[#allocation2 + $0xc0] sm:$0xf]  ;;  %2844 = vst.msk [vmem:[#allocation3 + $0x5c] sm:$0xf] %vm10525_vm12, %v2771_v40  ;;  %vm10526_vm6 = vmmov %vm10522_vm3 }
 0x1d8   : > { %2410 = vrot.lane.b32.xlu1 %v2167_v60, %s6911_s19  ;;  %v1445_v29 = vshll.u32 %v1301_v45, 16  ;;  %v1286_v52 = vmul.f32 %v1253_v8, %v8684_v24  ;;  %v1004_v31 = vadd.f32 %v8863_v0, %v1003_v36  ;;  %v1580_v22 = vrot.slane %v1578_v14, 7  ;;  %3037 = vst.msk [vmem:[#allocation3 + $0x5c] sm:$0xf] %vm10526_vm6, %v2964_v53  ;;  %v3090_v14 = vld [vmem:[#allocation2 + $0xbc] sm:$0x1] }
 0x1d9   : > { %3500 = vrot.lane.b32.xlu2 %v3237_v9, %s6913_s21  ;;  %v6742_v9 = vpop.eup %6741  ;;  %v8932_v61 = vadd.f32 %v8681_v54, %v597_v51  ;;  %v8934_v60 = vrot.slane %v2370_v59, 5  ;;  %v8936_v28 = vrot.slane %v1442_v2, 7  ;;  %v2368_v27 = vrot.slane %v2367_v42, 4  ;;  %2487 = vst.msk [vmem:[#allocation3 + $0x18] sm:$0xf] %vm10517_vm14, %v2397_v33  ;;  %v3525_v36 = vpop.permute.xlu2 %3524 }
 0x1da   : > { %v1318_v56 = vpack.c.bf16 %v1286_v52, %v1286_v52  ;;  %v1008_v24 = vsel %vm8923_vm2, %v8863_v0, %v1004_v31  ;;  %v8941_v43 = vadd.f32 1.0, %v6742_v9  ;;  %v1583_v19 = vor.u32 %v1581_v46, %v1580_v22  ;;  %v3089_v0 = vld [vmem:[#allocation2 + $0xb8] sm:$0xf]  ;;  %v3487_v10 = vpop.permute.xlu1 %3486 }
 0x1db   : > { %v1013_v54 = vsel %vm8856_vm5, %v1012_v25, %v1008_v24  ;;  %v6357_v44 = vmul.f32 -1.442695, %v8932_v61  ;;  %v1447_v41 = vor.u32 %v1445_v29, %v8936_v28  ;;  %v3431_v23 = vshrl.u32 %v3088_v5, 16  ;;  %vm10527_vm5 = vmmov %vm10521_vm8  ;;  %v2560_v25 = vld [vmem:[#allocation2 + $0xbc] sm:$0x1] }
 0x1dc   : > { %v1586_v6 = vshrl.u32 %v1318_v56, 16  ;;  %v1589_v58 = vshll.u32 %v1318_v56, 16  ;;  %v1584_v50 = vrot.slane %v1580_v22, 4  ;;  %v1755_v34 = vsel %vm7111_vm0, %v1583_v19, %v1754_v21  ;;  %2827 = vst.msk [vmem:[#allocation3 + $0x18] sm:$0xf] %vm10527_vm5, %v8577_v38 }
 0x1dd   : > { %v1270_v13 = vmul.f32 %v1013_v54, %v8697_v62  ;;  %6743 = vrcp.f32 %v8941_v43  ;;  %1756 = vst [vmem:[#allocation2 + $0xc0] sm:$0xf] %v1755_v34  ;;  %v1448_v53 = vrot.slane %v8936_v28, 4  ;;  %v1699_v20 = vsel %vm7111_vm0, %v1447_v41, %v1698_v57  ;;  %v2866_v38 = vld [vmem:[#allocation2 + $0x58] sm:$0xf] }
 0x1de   : > { %v1588_v63 = vrot.slane %v1586_v6, 7  ;;  %vm1020_vm1 = vweird.f32 %v8941_v43  ;;  %1700 = vst [vmem:[#allocation2 + $0x60] sm:$0xf] %v1699_v20  ;;  %v1024_v35 = vand.u32 2147483647, %v8941_v43  ;;  %6745 = vpow2.f32 %v6357_v44  ;;  %v2739_v31 = vpop.permute.xlu0 %2738 }
 0x1df   : > { %v1302_v3 = vpack.c.bf16 %v1270_v13, %v1270_v13  ;;  %v2373_v62 = vsel %vm7087_vm13, %v2368_v27, %v8934_v60  ;;  %v1026_v11 = vand.u32 2147483648, %v8941_v43  ;;  %v3433_v51 = vrot.slane %v3431_v23, 4  ;;  %v1702_v56 = vld [vmem:[#allocation2 + $0x68] sm:$0x1] }
 0x1e0   : > { %v1591_v59 = vor.u32 %v1589_v58, %v1588_v63  ;;  %v1593_v45 = vrot.slane %v1588_v63, 4  ;;  %2444 = vrot.lane.b32.xlu0 %v2373_v62, %s6911_s19  ;;  %vm10528_vm15 = vcmask 158848   ;;  %v3434_v42 = vshll.u32 %v3088_v5, 16  ;;  %v3064_v63 = vld [vmem:[#allocation2 + $0x54] sm:$0xf] }
 0x1e1   : > { %2943 = vrot.lane.b32.xlu2 %v2866_v38, %s6912_s20  ;;  %v1450_v46 = vshrl.u32 %v1302_v3, 16  ;;  %v1453_v8 = vshll.u32 %v1302_v3, 16  ;;  %3598 = vst.msk [vmem:[#allocation3 + $0x5c] sm:$0xf] %vm10528_vm15, %v3525_v36  ;;  %v3440_v2 = vshll.u32 %v3089_v0, 16  ;;  %vm10529_vm11 = vmmov %vm10528_vm15  ;;  %v3444_v9 = vshrl.u32 %v3089_v0, 16  ;;  %v8999_v38 = vpop.permute.xlu2 %2967 }
 0x1e2   : > { %v1592_v29 = vsel %vm7240_vm9, %v1584_v50, %v1591_v59  ;;  %v1759_v52 = vsel %vm7022_vm7, %v1593_v45, %v1758_v37  ;;  %3579 = vst.msk [vmem:[#allocation3 + $0x10] sm:$0xf] %vm10529_vm11, %v3487_v10  ;;  %v2721_v22 = vrot.slane %v2719_v32, 4  ;;  %vm10530_vm8 = vcmask 27648   ;;  %v2399_v45 = vpop.permute.xlu1 %2398  ;;  %vm10539_vm11 = vmmov %vm10517_vm14 }
 0x1e3   : > { %v8975_v21 = vpop.eup %6743  ;;  %1757 = vst.msk [vmem:[#allocation2 + $0xc4] sm:$0xf] %vm10530_vm8, %v1592_v29  ;;  %v1452_v40 = vrot.slane %v1450_v46, 7  ;;  %v3436_v5 = vrot.slane %v3434_v42, 5  ;;  %v3442_v28 = vrot.slane %v3440_v2, 5  ;;  %v2722_v57 = vrot.slane %v2560_v25, 5  ;;  %vm10533_vm12 = vmmov %vm10530_vm8 }
 0x1e4   : > { %1760 = vst [vmem:[#allocation2 + $0xc8] sm:$0x1] %v1759_v52  ;;  %v1016_v24 = vmul.f32 %v8975_v21, %v8941_v43  ;;  %vm1021_vm3 = vweird.f32 %v8975_v21  ;;  %v3446_v33 = vrot.slane %v3444_v9, 4  ;;  %v3450_v19 = vshll.u32 %v3090_v14, 16  ;;  %v6746_v54 = vpop.eup %6745  ;;  %v1809_v49 = vld [vmem:[#allocation2 + $0xc0] sm:$0x1]  ;;  %vm10540_vm8 = vmmov %vm10527_vm5 }
 0x1e5   : > { %v1455_v32 = vor.u32 %v1453_v8, %v1452_v40  ;;  %v1457_v44 = vrot.slane %v1452_v40, 4  ;;  %v3437_v27 = vor.u32 %v3436_v5, %v3433_v51  ;;  %v2723_v41 = vsel %vm7050_vm10, %v2721_v22, %v2722_v57  ;;  %v1785_v58 = vld [vmem:[#allocation2 + $0x60] sm:$0x1]  ;;  %vm9009_vm6 = vmor %vm1020_vm1, %vm1021_vm3  ;;  %2488 = vst.msk [vmem:[#allocation3 + $0x1c] sm:$0xf] %vm10517_vm14, %v2399_v45 }
 0x1e6   : > { %v1810_v6 = vsel %vm7022_vm7, 0, %v1809_v49  ;;  %v1017_v0 = vsub.f32 1.0, %v1016_v24  ;;  %v8985_v23 = vadd.f32 1.0, %v6746_v54  ;;  %v3447_v50 = vor.u32 %v3446_v33, %v3442_v28  ;;  %v2433_v8 = vpop.permute.xlu0 %2432  ;;  %2828 = vst.msk [vmem:[#allocation3 + $0x1c] sm:$0xf] %vm10527_vm5, %v2739_v31 }
 0x1e7   : > { %1811 = vst [vmem:[#allocation2 + $0xc0] sm:$0x1] %v1810_v6  ;;  %v1786_v34 = vsel %vm7022_vm7, 0, %v1785_v58  ;;  %v1456_v37 = vsel %vm7240_vm9, %v1448_v53, %v1455_v32  ;;  %v1703_v13 = vsel %vm7022_vm7, %v1457_v44, %v1702_v56  ;;  %v3438_v20 = vrot.slane %v3437_v27, 4  ;;  %v9002_v53 = vld [vmem:[#allocation2 + $0x58] sm:$0xf] }
 0x1e8   : > { %1787 = vst [vmem:[#allocation2 + $0x60] sm:$0x1] %v1786_v34  ;;  %v1018_v25 = vmul.f32 %v8975_v21, %v1017_v0  ;;  %vm8994_vm2 = vcmp.eq.f32.partialorder %v1024_v35, 8.507059e+37  ;;  %v1027_v62 = vor.u32 1.1754944e-38, %v1026_v11  ;;  %6747 = vrcp.f32 %v8985_v23  ;;  %2786 = vrot.lane.b32.xlu0 %v2723_v41, %s6910_s18  ;;  %v2865_v54 = vld [vmem:[#allocation2 + $0x54] sm:$0xf] }
 0x1e9   : > { %1701 = vst.msk [vmem:[#allocation2 + $0x64] sm:$0xf] %vm10533_vm12, %v1456_v37  ;;  %v1039_v59 = vand.u32 2147483647, %v8985_v23  ;;  %v3443_v11 = vsel %vm7087_vm13, %v3438_v20, %v3442_v28  ;;  %v3448_v36 = vrot.slane %v3447_v50, 4  ;;  %v3452_v51 = vrot.slane %v3450_v19, 5  ;;  %vm10541_vm12 = vmmov %vm10539_vm11 }
 0x1ea   : > { %1704 = vst [vmem:[#allocation2 + $0x68] sm:$0x1] %v1703_v13  ;;  %v1019_v14 = vadd.f32 %v8975_v21, %v1018_v25  ;;  %v1041_v46 = vand.u32 2147483648, %v8985_v23  ;;  %3534 = vrot.lane.b32.xlu1 %v3443_v11, %s6913_s21  ;;  %v3239_v43 = vshrl.u32 %v3064_v63, 16  ;;  %v3242_v10 = vshll.u32 %v3064_v63, 16  ;;  %v3523_v50 = vpop.permute.xlu1 %3522 }
 0x1eb   : > { %v1864_v42 = vld [vmem:[#allocation2 + $0xc8] sm:$0x1]  ;;  %v3453_v2 = vsel %vm7087_vm13, %v3448_v36, %v3452_v51  ;;  %v3248_v29 = vshll.u32 %v9002_v53, 16  ;;  %vm9032_vm1 = vcmp.eq.f32.partialorder %v1039_v59, 8.507059e+37  ;;  %v2374_v57 = vshrl.u32 %v8880_v16, 16 }
 0x1ec   : > { %v1865_v52 = vsel %vm7015_vm4, 0, %v1864_v42  ;;  %v1023_v9 = vsel %vm9009_vm6, %v8975_v21, %v1019_v14  ;;  %3536 = vrot.lane.b32.xlu2 %v3453_v2, %s6913_s21  ;;  %v3241_v22 = vrot.slane %v3239_v43, 4  ;;  %v3244_v40 = vrot.slane %v3242_v10, 5  ;;  %2505 = vst.msk [vmem:[#allocation3 + $0x60] sm:$0xf] %vm10539_vm11, %v2433_v8 }
 0x1ed   : > { %1866 = vst [vmem:[#allocation2 + $0xc8] sm:$0x1] %v1865_v52  ;;  %v1028_v5 = vsel %vm8994_vm2, %v1027_v62, %v1023_v9  ;;  %v1042_v21 = vor.u32 1.1754944e-38, %v1041_v46  ;;  %vm10538_vm15 = vcmask 126048   ;;  %v9040_v33 = vrot.slane %v3248_v29, 5 }
 0x1ee   : > { %v6748_v56 = vpop.eup %6747  ;;  %v1271_v24 = vmul.f32 %v1028_v5, %v8853_v55  ;;  %3021 = vst.msk [vmem:[#allocation3 + $0x1c] sm:$0xf] %vm10538_vm15, %v8929_v39  ;;  %v3245_v31 = vor.u32 %v3244_v40, %v3241_v22  ;;  %v2534_v49 = vld [vmem:[#allocation2 + $0x54] sm:$0xe]  ;;  %v1971_v32 = vld [vmem:[#allocation2 + $0x58] sm:$0xf]  ;;  %v2401_v55 = vpop.permute.xlu2 %2400  ;;  %vm1035_vm3 = vweird.f32 %v8985_v23  ;;  %vm10545_vm5 = vmmov %vm10538_vm15 }
 0x1ef   : > { %v1031_v19 = vmul.f32 %v6748_v56, %v8985_v23  ;;  %v1972_v44 = vld [vmem:[#allocation2 + $0x5c] sm:$0x1]  ;;  %2845 = vst.msk [vmem:[#allocation3 + $0x60] sm:$0xf] %vm10540_vm8, %v8771_v48  ;;  %v9046_v41 = vld [vmem:[#allocation2 + $0x58] sm:$0xf]  ;;  %vm1036_vm2 = vweird.f32 %v6748_v56  ;;  %v9053_v63 = vpop.permute.xlu0 %2774  ;;  %vm10547_vm15 = vmmov %vm10539_vm11 }
 0x1f0   : > { %v1303_v27 = vpack.c.bf16 %v1271_v24, %v1271_v24  ;;  %v3246_v16 = vrot.slane %v3245_v31, 4  ;;  %v2178_v39 = vshll.u32 %v1971_v32, 16  ;;  %v1970_v6 = vld [vmem:[#allocation2 + $0x54] sm:$0xf]  ;;  %2489 = vst.msk [vmem:[#allocation3 + $0x20] sm:$0xf] %vm10541_vm12, %v2401_v55  ;;  %vm9065_vm14 = vmor %vm1035_vm3, %vm1036_vm2 }
 0x1f1   : > { %v1840_v58 = vld [vmem:[#allocation2 + $0x68] sm:$0x1]  ;;  %v1032_v0 = vsub.f32 1.0, %v1031_v19  ;;  %v2884_v34 = vld [vmem:[#allocation2 + $0xc4] sm:$0xf]  ;;  %v2182_v37 = vshrl.u32 %v1971_v32, 16  ;;  %vm10548_vm11 = vmmov %vm10540_vm8 }
 0x1f2   : > { %v1841_v13 = vsel %vm7015_vm4, 0, %v1840_v58  ;;  %v1459_v48 = vshrl.u32 %v1303_v27, 16  ;;  %v1462_v20 = vshll.u32 %v1303_v27, 16  ;;  %vm10542_vm6 = vcmask 158848   ;;  %2941 = vrot.lane.b32.xlu1 %v2865_v54, %s6912_s20  ;;  %v1705_v46 = vld [vmem:[#allocation2 + $0x6c] sm:$0xf]  ;;  %v2930_v54 = vpop.permute.xlu1 %2929  ;;  %vm10551_vm3 = vmmov %vm10548_vm11 }
 0x1f3   : > { %3597 = vst.msk [vmem:[#allocation3 + $0x58] sm:$0xf] %vm10542_vm6, %v3523_v50  ;;  %v3251_v25 = vsel %vm7087_vm13, %v3246_v16, %v9040_v33  ;;  %v1033_v3 = vmul.f32 %v6748_v56, %v1032_v0  ;;  %v2180_v62 = vrot.slane %v2178_v39, 5  ;;  %v2184_v35 = vrot.slane %v2182_v37, 4  ;;  %v1996_v9 = vld [vmem:[#allocation2 + $0xbc] sm:$0x1] }
 0x1f4   : > { %1842 = vst [vmem:[#allocation2 + $0x68] sm:$0x1] %v1841_v13  ;;  %3502 = vrot.lane.b32.xlu0 %v3251_v25, %s6913_s21  ;;  %v2188_v59 = vshll.u32 %v1972_v44, 16  ;;  %v9060_v45 = vrot.slane %v1459_v48, 7  ;;  %2979 = vrot.lane.b32.xlu2 %v2884_v34, %s6912_s20  ;;  %v6379_v36 = vrot.slane %v2534_v49, 9  ;;  %v2169_v51 = vshrl.u32 %v1970_v6, 16 }
 0x1f5   : > { %v2172_v14 = vshll.u32 %v1970_v6, 16  ;;  %v1034_v8 = vadd.f32 %v6748_v56, %v1033_v3  ;;  %v2663_v43 = vrot.slane %v9046_v41, 5  ;;  %v2185_v10 = vor.u32 %v2184_v35, %v2180_v62  ;;  %3020 = vst.msk [vmem:[#allocation3 + $0x18] sm:$0xf] %vm10545_vm5, %v2930_v54  ;;  %v2536_v39 = vld [vmem:[#allocation2 + $0x5c] sm:$0x1] }
 0x1f6   : > { %v2376_v42 = vrot.slane %v2374_v57, 4  ;;  %v1464_v2 = vor.u32 %v1462_v20, %v9060_v45  ;;  %v2190_v29 = vrot.slane %v2188_v59, 5  ;;  %v2171_v52 = vrot.slane %v2169_v51, 4  ;;  %v9078_v31 = vpop.permute.xlu2 %2742  ;;  %v1709_v34 = vld [vmem:[#allocation2 + $0x74] sm:$0x1] }
 0x1f7   : > { %v2174_v23 = vrot.slane %v2172_v14, 5  ;;  %v1038_v22 = vsel %vm9065_vm14, %v6748_v56, %v1034_v8  ;;  %v2186_v40 = vrot.slane %v2185_v10, 4  ;;  %v2664_v49 = vsel %vm7050_vm10, %v6379_v36, %v2663_v43  ;;  %v3491_v44 = vpop.permute.xlu0 %3490  ;;  %v2867_v59 = vld [vmem:[#allocation2 + $0x60] sm:$0xf]  ;;  %v9101_v11 = vld [vmem:[#allocation2 + $0x64] sm:$0xf]  ;;  %vm10555_vm14 = vmmov %vm10545_vm5 }
 0x1f8   : > { %v1706_v5 = vsel %vm7111_vm0, %v1464_v2, %v1705_v46  ;;  %v1043_v24 = vsel %vm9032_vm1, %v1042_v21, %v1038_v22  ;;  %v2377_v32 = vor.u32 %v2376_v42, %v8934_v60  ;;  %v2380_v56 = vshll.u32 %v1996_v9, 16  ;;  %vm10546_vm1 = vmmov %vm10542_vm6  ;;  %v3067_v14 = vld [vmem:[#allocation2 + $0x60] sm:$0xf]  ;;  %v3066_v22 = vld [vmem:[#allocation2 + $0x5c] sm:$0x1] }
 0x1f9   : > { %v2175_v19 = vor.u32 %v2174_v23, %v2171_v52  ;;  %1707 = vst [vmem:[#allocation2 + $0x6c] sm:$0xf] %v1706_v5  ;;  %v1272_v57 = vmul.f32 %v1043_v24, %v8932_v61  ;;  %v2191_v28 = vsel %vm7087_vm13, %v2186_v40, %v2190_v29  ;;  %v1465_v6 = vrot.slane %v9060_v45, 4  ;;  %v1974_v5 = vld [vmem:[#allocation2 + $0x64] sm:$0xf]  ;;  %vm10554_vm6 = vmmov %vm10545_vm5 }
 0x1fa   : > { %2752 = vrot.lane.b32.xlu1 %v2664_v49, %s6910_s18  ;;  %3581 = vst.msk [vmem:[#allocation3 + $0x18] sm:$0xf] %vm10546_vm1, %v3491_v44  ;;  %v2378_v16 = vrot.slane %v2377_v32, 4  ;;  %v2382_v41 = vrot.slane %v2380_v56, 5  ;;  %v3252_v0 = vshrl.u32 %v9002_v53, 16  ;;  %v2665_v13 = vrot.slane %v2663_v43, 4  ;;  %vm10556_vm5 = vmmov %vm10546_vm1 }
 0x1fb   : > { %v2176_v21 = vrot.slane %v2175_v19, 4  ;;  %v1304_v27 = vpack.c.bf16 %v1272_v57, %v1272_v57  ;;  %v2666_v48 = vrot.slane %v2536_v39, 5  ;;  %v2537_v53 = vld [vmem:[#allocation2 + $0x60] sm:$0xe]  ;;  %vm10549_vm8 = vcmask 27648   ;;  %vm10557_vm1 = vmmov %vm10554_vm6 }
 0x1fc   : > { %2414 = vrot.lane.b32.xlu0 %v2191_v28, %s6911_s19  ;;  %v2383_v35 = vsel %vm7087_vm13, %v2378_v16, %v2382_v41  ;;  %v3254_v46 = vrot.slane %v3252_v0, 4  ;;  %v3068_v43 = vld [vmem:[#allocation2 + $0x64] sm:$0xf]  ;;  %v3263_v10 = vshrl.u32 %v3067_v14, 16  ;;  %v3266_v42 = vshll.u32 %v3067_v14, 16 }
 0x1fd   : > { %v2181_v61 = vsel %vm7087_vm13, %v2176_v21, %v2180_v62  ;;  %v1467_v55 = vshrl.u32 %v1304_v27, 16  ;;  %v1470_v60 = vshll.u32 %v1304_v27, 16  ;;  %v2741_v62 = vpop.permute.xlu1 %2740  ;;  %v2667_v8 = vsel %vm7050_vm10, %v2665_v13, %v2666_v48  ;;  %v3069_v57 = vld [vmem:[#allocation2 + $0x68] sm:$0x1]  ;;  %v2883_v44 = vld [vmem:[#allocation2 + $0xc0] sm:$0xf] }
 0x1fe   : > { %2412 = vrot.lane.b32.xlu2 %v2181_v61, %s6911_s19  ;;  %v2437_v37 = vpop.permute.xlu2 %2436  ;;  %2829 = vst.msk [vmem:[#allocation3 + $0x20] sm:$0xf] %vm10548_vm11, %v2741_v62  ;;  %v6380_v18 = vrot.slane %v2537_v53, 9  ;;  %v2670_v2 = vrot.slane %v9101_v11, 5  ;;  %v3272_v29 = vshll.u32 %v3068_v43, 16  ;;  %v3276_v52 = vshrl.u32 %v3068_v43, 16 }
 0x1ff   : > { %v1469_v58 = vrot.slane %v1467_v55, 7  ;;  %2507 = vst.msk [vmem:[#allocation3 + $0x68] sm:$0xf] %vm10547_vm15, %v2437_v37  ;;  %v2403_v45 = vpop.permute.xlu0 %2402  ;;  %v3265_v23 = vrot.slane %v3263_v10, 4  ;;  %v3268_v9 = vrot.slane %v3266_v42, 5  ;;  %v2202_v49 = vshll.u32 %v1974_v5, 16  ;;  %vm10558_vm15 = vmmov %vm10556_vm5 }
 0x200   : > { %v1788_v50 = vld [vmem:[#allocation2 + $0x6c] sm:$0x1]  ;;  %v3274_v40 = vrot.slane %v3272_v29, 5  ;;  %v3278_v54 = vrot.slane %v3276_v52, 4  ;;  %v2206_v32 = vshrl.u32 %v1974_v5, 16  ;;  %v2671_v28 = vsel %vm7050_vm10, %v6380_v18, %v2670_v2 }
 0x201   : > { %v1789_v20 = vsel %vm7022_vm7, 0, %v1788_v50  ;;  %v1472_v25 = vor.u32 %v1470_v60, %v1469_v58  ;;  %v1474_v3 = vrot.slane %v1469_v58, 4  ;;  %v3269_v19 = vor.u32 %v3268_v9, %v3265_v23  ;;  %v1975_v39 = vld [vmem:[#allocation2 + $0x68] sm:$0x1]  ;;  %v1973_v48 = vld [vmem:[#allocation2 + $0x60] sm:$0xf] }
 0x202   : > { %1790 = vst [vmem:[#allocation2 + $0x6c] sm:$0x1] %v1789_v20  ;;  %2446 = vrot.lane.b32.xlu1 %v2383_v35, %s6911_s19  ;;  %v3255_v21 = vor.u32 %v3254_v46, %v9040_v33  ;;  %v3258_v27 = vshll.u32 %v3066_v22, 16  ;;  %v3279_v60 = vor.u32 %v3278_v54, %v3274_v40  ;;  %v9126_v16 = vrot.slane %v2202_v49, 5  ;;  %v2540_v54 = vld [vmem:[#allocation2 + $0x6c] sm:$0xe] }
 0x203   : > { %v1473_v36 = vsel %vm7240_vm9, %v1465_v6, %v1472_v25  ;;  %v1710_v51 = vsel %vm7022_vm7, %v1474_v3, %v1709_v34  ;;  %vm10550_vm9 = vmmov %vm10541_vm12  ;;  %v3270_v55 = vrot.slane %v3269_v19, 4  ;;  %v2208_v41 = vrot.slane %v2206_v32, 4 }
 0x204   : > { %2945 = vrot.lane.b32.xlu0 %v2867_v59, %s6912_s20  ;;  %1708 = vst.msk [vmem:[#allocation2 + $0x70] sm:$0xf] %vm10549_vm8, %v1473_v36  ;;  %vm10552_vm2 = vmmov %vm10550_vm9  ;;  %v2212_v0 = vshll.u32 %v1975_v39, 16  ;;  %v3256_v34 = vrot.slane %v3255_v21, 4  ;;  %v3280_v37 = vrot.slane %v3279_v60, 4  ;;  %v2193_v35 = vshrl.u32 %v1973_v48, 16 }
 0x205   : > { %1711 = vst [vmem:[#allocation2 + $0x74] sm:$0x1] %v1710_v51  ;;  %v2435_v56 = vpop.permute.xlu1 %2434  ;;  %vm10553_vm12 = vmmov %vm10551_vm3  ;;  %v3275_v33 = vsel %vm7087_vm13, %v3270_v55, %v3274_v40  ;;  %v2209_v58 = vor.u32 %v2208_v41, %v9126_v16  ;;  %v2196_v59 = vshll.u32 %v1973_v48, 16  ;;  %v6381_v21 = vrot.slane %v2540_v54, 9  ;;  %v1913_v39 = vld [vmem:[#allocation2 + $0xa8] sm:$0xf] }
 0x206   : > { %2754 = vrot.lane.b32.xlu2 %v2667_v8, %s6910_s18  ;;  %2490 = vst.msk [vmem:[#allocation3 + $0x24] sm:$0xf] %vm10550_vm9, %v2403_v45  ;;  %v9117_v24 = vpop.permute.xlu2 %2778  ;;  %v2195_v51 = vrot.slane %v2193_v35, 4  ;;  %v2868_v8 = vld [vmem:[#allocation2 + $0x64] sm:$0xf]  ;;  %vm10559_vm11 = vmmov %vm10552_vm2 }
 0x207   : > { %2830 = vst.msk [vmem:[#allocation3 + $0x24] sm:$0xf] %vm10551_vm3, %v9078_v31  ;;  %v3282_v31 = vshll.u32 %v3069_v57, 16  ;;  %v3527_v61 = vpop.permute.xlu0 %3526  ;;  %v2210_v25 = vrot.slane %v2209_v58, 4  ;;  %v2198_v14 = vrot.slane %v2196_v59, 5  ;;  %vm10560_vm8 = vmmov %vm10551_vm3 }
 0x208   : > { %2506 = vst.msk [vmem:[#allocation3 + $0x64] sm:$0xf] %vm10552_vm2, %v2435_v56  ;;  %vm10561_vm9 = vmmov %vm10556_vm5  ;;  %v3607_v48 = vld [vmem:[#allocation2 + $0xc] sm:$0xe]  ;;  %v3091_v35 = vld [vmem:[#allocation2 + $0xc0] sm:$0xf] }
 0x209   : > { %2846 = vst.msk [vmem:[#allocation3 + $0x64] sm:$0xf] %vm10553_vm12, %v9053_v63  ;;  %v3260_v63 = vrot.slane %v3258_v27, 5  ;;  %v3284_v13 = vrot.slane %v3282_v31, 5  ;;  %v2199_v42 = vor.u32 %v2198_v14, %v2195_v51  ;;  %v1976_v18 = vld [vmem:[#allocation2 + $0x6c] sm:$0xf]  ;;  %vm10562_vm3 = vmmov %vm10552_vm2 }
 0x20a   : > { %2977 = vrot.lane.b32.xlu1 %v2883_v44, %s6912_s20  ;;  %3039 = vst.msk [vmem:[#allocation3 + $0x64] sm:$0xf] %vm10554_vm6, %v8999_v38  ;;  %v2214_v38 = vrot.slane %v2212_v0, 5  ;;  %v2217_v23 = vshrl.u32 %v1976_v18, 16  ;;  %v2220_v9 = vshll.u32 %v1976_v18, 16  ;;  %vm10563_vm2 = vmmov %vm10560_vm8  ;;  %vm10564_vm12 = vcmask 27648  }
 0x20b   : > { %v3261_v62 = vsel %vm7087_vm13, %v3256_v34, %v3260_v63  ;;  %v3285_v53 = vsel %vm7087_vm13, %v3280_v37, %v3284_v13  ;;  %v2870_v43 = vld [vmem:[#allocation2 + $0x70] sm:$0xf]  ;;  %v2869_v40 = vld [vmem:[#allocation2 + $0x6c] sm:$0xf]  ;;  %v2200_v57 = vrot.slane %v2199_v42, 4  ;;  %v3458_v51 = vshll.u32 %v3091_v35, 16  ;;  %vm10565_vm6 = vmmov %vm10557_vm1 }
 0x20c   : > { %2756 = vrot.lane.b32.xlu0 %v2671_v28, %s6910_s18  ;;  %v1843_v6 = vld [vmem:[#allocation2 + $0x74] sm:$0x1]  ;;  %v2215_v36 = vsel %vm7087_vm13, %v2210_v25, %v2214_v38  ;;  %v9153_v29 = vld [vmem:[#allocation2 + $0x70] sm:$0xf]  ;;  %v2219_v5 = vrot.slane %v2217_v23, 4  ;;  %v2222_v19 = vrot.slane %v2220_v9, 5 }
 0x20d   : > { %v1844_v50 = vsel %vm7015_vm4, 0, %v1843_v6  ;;  %v2966_v3 = vpop.permute.xlu1 %2965  ;;  %v2226_v22 = vshll.u32 %v9153_v29, 16  ;;  %v2541_v49 = vld [vmem:[#allocation2 + $0x70] sm:$0xf]  ;;  %v2539_v31 = vld [vmem:[#allocation2 + $0x68] sm:$0x1]  ;;  %v2205_v55 = vsel %vm7087_vm13, %v2200_v57, %v9126_v16 }
 0x20e   : > { %3506 = vrot.lane.b32.xlu2 %v3275_v33, %s6913_s21  ;;  %1845 = vst [vmem:[#allocation2 + $0x74] sm:$0x1] %v1844_v50  ;;  %v3495_v20 = vpop.permute.xlu2 %3494  ;;  %v2223_v32 = vor.u32 %v2222_v19, %v2219_v5  ;;  %v2677_v27 = vrot.slane %v2541_v49, 5  ;;  %v2672_v6 = vrot.slane %v2670_v2, 4  ;;  %v2673_v33 = vrot.slane %v2539_v31, 5 }
 0x20f   : > { %3038 = vst.msk [vmem:[#allocation3 + $0x60] sm:$0xf] %vm10555_vm14, %v2966_v3  ;;  %v2934_v45 = vpop.permute.xlu0 %2933  ;;  %v9162_v56 = vrot.slane %v2226_v22, 5  ;;  %v3070_v0 = vld [vmem:[#allocation2 + $0x6c] sm:$0xf]  ;;  %vm10566_vm14 = vmmov %vm10557_vm1  ;;  %v3460_v23 = vrot.slane %v3458_v51, 5 }
 0x210   : > { %3599 = vst.msk [vmem:[#allocation3 + $0x60] sm:$0xf] %vm10556_vm5, %v3527_v61  ;;  %v2224_v28 = vrot.slane %v2223_v32, 4  ;;  %v2678_v16 = vsel %vm7050_vm10, %v6381_v21, %v2677_v27  ;;  %v3071_v50 = vld [vmem:[#allocation2 + $0x70] sm:$0xf]  ;;  %v3287_v63 = vshrl.u32 %v3070_v0, 16  ;;  %v2674_v38 = vsel %vm7050_vm10, %v2672_v6, %v2673_v33 }
 0x211   : > { %3022 = vst.msk [vmem:[#allocation3 + $0x20] sm:$0xf] %vm10557_vm1, %v2934_v45  ;;  %v9181_v34 = vld [vmem:[#allocation2 + $0x10] sm:$0xf]  ;;  %v3290_v37 = vshll.u32 %v3070_v0, 16  ;;  %v2679_v11 = vrot.slane %v2677_v27, 4  ;;  %vm10567_vm1 = vmmov %vm10556_vm5 }
 0x212   : > { %3504 = vrot.lane.b32.xlu1 %v3261_v62, %s6913_s21  ;;  %3583 = vst.msk [vmem:[#allocation3 + $0x20] sm:$0xf] %vm10558_vm15, %v3495_v20  ;;  %v2229_v41 = vsel %vm7087_vm13, %v2224_v28, %v9162_v56  ;;  %v3296_v13 = vshll.u32 %v3071_v50, 16  ;;  %v3289_v20 = vrot.slane %v3287_v63, 4  ;;  %v3705_v3 = vrot.slane %v9181_v34, 5  ;;  %vm10568_vm15 = vmmov %vm10562_vm3 }
 0x213   : > { %1945 = vst.msk [vmem:[#allocation3 + $0x70] sm:$0xf] %vm10564_vm12, %v1913_v39  ;;  %v3292_v25 = vrot.slane %v3290_v37, 5  ;;  %v3300_v62 = vshrl.u32 %v3071_v50, 16  ;;  %v3092_v59 = vld [vmem:[#allocation2 + $0xc4] sm:$0xf] }
 0x214   : > { %3508 = vrot.lane.b32.xlu0 %v3285_v53, %s6913_s21  ;;  %v3464_v14 = vshll.u32 %v3092_v59, 16  ;;  %v3468_v42 = vshrl.u32 %v3092_v59, 16  ;;  %v3093_v28 = vld [vmem:[#allocation2 + $0xc8] sm:$0x1]  ;;  %v3612_v34 = vld [vmem:[#allocation2 + $0x20] sm:$0x1] }
 0x215   : > { %v2777_v10 = vpop.permute.xlu1 %2776  ;;  %v2542_v58 = vld [vmem:[#allocation2 + $0x74] sm:$0x1]  ;;  %v3293_v53 = vor.u32 %v3292_v25, %v3289_v20  ;;  %v3302_v5 = vrot.slane %v3300_v62, 4  ;;  %v3474_v39 = vshll.u32 %v3093_v28, 16  ;;  %v3715_v20 = vrot.slane %v3612_v34, 5 }
 0x216   : > { %2418 = vrot.lane.b32.xlu2 %v2215_v36, %s6911_s19  ;;  %v2407_v46 = vpop.permute.xlu2 %2406  ;;  %2847 = vst.msk [vmem:[#allocation3 + $0x68] sm:$0xf] %vm10560_vm8, %v2777_v10  ;;  %v2680_v2 = vrot.slane %v2542_v58, 5  ;;  %v3455_v36 = vshrl.u32 %v3091_v35, 16  ;;  %v3298_v10 = vrot.slane %v3296_v13, 5  ;;  %v3466_v57 = vrot.slane %v3464_v14, 5  ;;  %vm10570_vm8 = vmmov %vm10567_vm1 }
 0x217   : > { %2492 = vst.msk [vmem:[#allocation3 + $0x2c] sm:$0xf] %vm10559_vm11, %v2407_v46  ;;  %v9156_v52 = vpop.permute.xlu0 %2744  ;;  %v3294_v22 = vrot.slane %v3293_v53, 4  ;;  %v3470_v49 = vrot.slane %v3468_v42, 4  ;;  %v3609_v58 = vld [vmem:[#allocation2 + $0x14] sm:$0x1]  ;;  %vm10569_vm11 = vmmov %vm10565_vm6 }
 0x218   : > { %v3457_v18 = vrot.slane %v3455_v36, 4  ;;  %v3303_v32 = vor.u32 %v3302_v5, %v3298_v10  ;;  %v3476_v50 = vrot.slane %v3474_v39, 5  ;;  %v3708_v37 = vrot.slane %v3609_v58, 5  ;;  %v3614_v36 = vld [vmem:[#allocation2 + $0x28] sm:$0xf] }
 0x219   : > { %v1897_v51 = vld [vmem:[#allocation2 + $0x48] sm:$0xf]  ;;  %v3719_v42 = vrot.slane %v3614_v36, 5  ;;  %v3615_v39 = vld [vmem:[#allocation2 + $0x2c] sm:$0x1] }
 0x21a   : > { %2947 = vrot.lane.b32.xlu1 %v2868_v8, %s6912_s20  ;;  %v2681_v8 = vsel %vm7050_vm10, %v2679_v11, %v2680_v2  ;;  %v3461_v19 = vor.u32 %v3460_v23, %v3457_v18  ;;  %v3304_v31 = vrot.slane %v3303_v32, 4  ;;  %v1978_v2 = vld [vmem:[#allocation2 + $0x74] sm:$0x1]  ;;  %v3610_v32 = vld [vmem:[#allocation2 + $0x18] sm:$0xe] }
 0x21b   : > { %v2236_v35 = vshll.u32 %v1978_v2, 16  ;;  %v1915_v34 = vld [vmem:[#allocation2 + $0xb4] sm:$0xf]  ;;  %v3619_v36 = vld [vmem:[#allocation2 + $0x3c] sm:$0xe] }
 0x21c   : > { %2951 = vrot.lane.b32.xlu0 %v2870_v43, %s6912_s20  ;;  %v6388_v43 = vrot.slane %v3607_v48, 9  ;;  %v3462_v21 = vrot.slane %v3461_v19, 4  ;;  %v3707_v48 = vrot.slane %v3705_v3, 4  ;;  %v4161_v30 = vld [vmem:[#allocation2 + $0x74] sm:$0x1] }
 0x21d   : > { %v3493_v61 = vpop.permute.xlu1 %3492 }
 0x21e   : > { %2949 = vrot.lane.b32.xlu2 %v2869_v40, %s6912_s20  ;;  %v3531_v44 = vpop.permute.xlu2 %3530  ;;  %3582 = vst.msk [vmem:[#allocation3 + $0x1c] sm:$0xf] %vm10561_vm9, %v3493_v61  ;;  %v3706_v9 = vsel %vm7050_vm10, %v6388_v43, %v3705_v3  ;;  %v3072_v40 = vld [vmem:[#allocation2 + $0x74] sm:$0x1]  ;;  %v3467_v33 = vsel %vm7087_vm13, %v3462_v21, %v3466_v57  ;;  %v3613_v3 = vld [vmem:[#allocation2 + $0x24] sm:$0xe]  ;;  %vm10571_vm9 = vmmov %vm10564_vm12 }
 0x21f   : > { %v2439_v60 = vpop.permute.xlu0 %2438  ;;  %v3306_v54 = vshll.u32 %v3072_v40, 16  ;;  %1929 = vst.msk [vmem:[#allocation3 + $0x30] sm:$0xf] %vm10571_vm9, %v1897_v51  ;;  %v3617_v43 = vld [vmem:[#allocation2 + $0x34] sm:$0xf]  ;;  %vm10572_vm12 = vmmov %vm10565_vm6  ;;  %s6917_s20 = smov 32  }
 0x220   : > { %2508 = vst.msk [vmem:[#allocation3 + $0x6c] sm:$0xf] %vm10562_vm3, %v2439_v60  ;;  %v3299_v60 = vsel %vm7087_vm13, %v3294_v22, %v3298_v10  ;;  %v6390_v10 = vrot.slane %v3613_v3, 9  ;;  %v3621_v21 = vld [vmem:[#allocation2 + $0x44] sm:$0x1] }
 0x221   : > { %2848 = vst.msk [vmem:[#allocation3 + $0x6c] sm:$0xf] %vm10563_vm2, %v9117_v24  ;;  %v9279_v51 = vld [vmem:[#allocation2 + $0x70] sm:$0xf] }
 0x222   : > { %2416 = vrot.lane.b32.xlu1 %v2205_v55, %s6911_s19  ;;  %v2230_v55 = vshrl.u32 %v9153_v29, 16  ;;  %v3720_v19 = vsel %vm7050_vm10, %v6390_v10, %v3719_v42  ;;  %v6392_v10 = vrot.slane %v3619_v36, 9 }
 0x224   : > { %2420 = vrot.lane.b32.xlu0 %v2229_v41, %s6911_s19  ;;  %v3471_v41 = vor.u32 %v3470_v49, %v3466_v57  ;;  %v2232_v63 = vrot.slane %v2230_v55, 4  ;;  %v9239_v57 = vld [vmem:[#allocation2 + $0x40] sm:$0xf] }
 0x225   : > { %v2936_v45 = vpop.permute.xlu1 %2935  ;;  %v3733_v28 = vrot.slane %v9239_v57, 5 }
 0x226   : > { %2760 = vrot.lane.b32.xlu2 %v2678_v16, %s6910_s18  ;;  %v9184_v24 = vpop.permute.xlu2 %2937  ;;  %3023 = vst.msk [vmem:[#allocation3 + $0x24] sm:$0xf] %vm10565_vm6, %v2936_v45  ;;  %v9211_v16 = vld [vmem:[#allocation2 + $0x1c] sm:$0xf]  ;;  %v3472_v0 = vrot.slane %v3471_v41, 4  ;;  %v2233_v62 = vor.u32 %v2232_v63, %v9162_v56  ;;  %v3709_v45 = vsel %vm7050_vm10, %v3707_v48, %v3708_v37  ;;  %vm10573_vm6 = vmmov %vm10563_vm2  ;;  %v3721_v63 = vrot.slane %v3719_v42, 4 }
 0x227   : > { %v2970_v46 = vpop.permute.xlu0 %2969  ;;  %v3712_v11 = vrot.slane %v9211_v16, 5  ;;  %v3722_v37 = vrot.slane %v3615_v39, 5  ;;  %v3626_v48 = vld [vmem:[#allocation2 + $0x58] sm:$0xf]  ;;  %v3633_v42 = vld [vmem:[#allocation2 + $0x74] sm:$0x1] }
 0x228   : > { %3040 = vst.msk [vmem:[#allocation3 + $0x68] sm:$0xf] %vm10566_vm14, %v2970_v46  ;;  %v2234_v14 = vrot.slane %v2233_v62, 4  ;;  %v2238_v46 = vrot.slane %v2236_v35, 5  ;;  %vm10574_vm14 = vmmov %vm10569_vm11  ;;  %v3747_v62 = vrot.slane %v3626_v48, 5 }
 0x229   : > { %3601 = vst.msk [vmem:[#allocation3 + $0x68] sm:$0xf] %vm10556_vm5, %v3531_v44  ;;  %v3308_v44 = vrot.slane %v3306_v54, 5  ;;  %v3714_v53 = vrot.slane %v3712_v11, 4  ;;  %v3618_v54 = vld [vmem:[#allocation2 + $0x38] sm:$0x1]  ;;  %vm10575_vm5 = vmmov %vm10567_vm1 }
 0x22a   : > { %2758 = vrot.lane.b32.xlu1 %v2674_v38, %s6910_s18  ;;  %v3477_v38 = vsel %vm7087_vm13, %v3472_v0, %v3476_v50  ;;  %v2239_v40 = vsel %vm7087_vm13, %v2234_v14, %v2238_v46  ;;  %v1898_v0 = vld [vmem:[#allocation2 + $0x4c] sm:$0xf]  ;;  %v3761_v46 = vrot.slane %v9279_v51, 5  ;;  %v3961_v39 = vld [vmem:[#allocation2 + $0x78] sm:$0xf] }
 0x22b   : > { %v3309_v29 = vsel %vm7087_vm13, %v3304_v31, %v3308_v44  ;;  %v3716_v56 = vsel %vm7050_vm10, %v3714_v53, %v3715_v20  ;;  %v3729_v44 = vrot.slane %v3618_v54, 5  ;;  %v1899_v20 = vld [vmem:[#allocation2 + $0x54] sm:$0xf]  ;;  %v3734_v54 = vsel %vm7050_vm10, %v6392_v10, %v3733_v28 }
 0x22c   : > { %2762 = vrot.lane.b32.xlu0 %v2681_v8, %s6910_s18  ;;  %v3616_v8 = vld [vmem:[#allocation2 + $0x30] sm:$0xe]  ;;  %s6915_s18 = smov 24  }
 0x22d   : > { %v3529_v61 = vpop.permute.xlu1 %3528  ;;  %v6391_v23 = vrot.slane %v3616_v8, 9 }
 0x22e   : > { %3815 = vrot.lane.b32.xlu2 %v3706_v9, %s6914_s17  ;;  %v9199_v27 = vpop.permute.xlu2 %2748  ;;  %3600 = vst.msk [vmem:[#allocation3 + $0x64] sm:$0xf] %vm10567_vm1, %v3529_v61  ;;  %v3726_v9 = vrot.slane %v3617_v43, 5  ;;  %v6389_v61 = vrot.slane %v3610_v32, 9  ;;  %vm10576_vm1 = vmmov %vm10571_vm9 }
 0x22f   : > { %v9205_v6 = vpop.permute.xlu0 %2780  ;;  %1930 = vst.msk [vmem:[#allocation3 + $0x34] sm:$0xf] %vm10576_vm1, %v1898_v0  ;;  %vm10580_vm9 = vmmov %vm10562_vm3 }
 0x230   : > { %v3727_v49 = vsel %vm7050_vm10, %v6391_v23, %v3726_v9  ;;  %v3728_v31 = vrot.slane %v3726_v9, 4  ;;  %v3749_v23 = vrot.slane %v3747_v62, 4 }
 0x232   : > { %3510 = vrot.lane.b32.xlu1 %v3299_v60, %s6913_s21  ;;  %v3736_v60 = vrot.slane %v3621_v21, 5  ;;  %v3730_v16 = vsel %vm7050_vm10, %v3728_v31, %v3729_v44  ;;  %v3624_v31 = vld [vmem:[#allocation2 + $0x50] sm:$0x1] }
 0x234   : > { %3538 = vrot.lane.b32.xlu0 %v3467_v33, %s6913_s21  ;;  %v3622_v33 = vld [vmem:[#allocation2 + $0x48] sm:$0xe] }
 0x235   : > { %v2972_v25 = vpop.permute.xlu1 %2971 }
 0x236   : > { %3512 = vrot.lane.b32.xlu2 %v3309_v29, %s6913_s21  ;;  %v2443_v13 = vpop.permute.xlu2 %2442  ;;  %3041 = vst.msk [vmem:[#allocation3 + $0x6c] sm:$0xf] %vm10569_vm11, %v2972_v25  ;;  %v9260_v29 = vld [vmem:[#allocation2 + $0x4c] sm:$0xf]  ;;  %vm10578_vm11 = vmmov %vm10576_vm1 }
 0x237   : > { %2510 = vst.msk [vmem:[#allocation3 + $0x74] sm:$0xf] %vm10568_vm15, %v2443_v13  ;;  %v3497_v59 = vpop.permute.xlu0 %3496  ;;  %v3740_v2 = vrot.slane %v9260_v29, 5  ;;  %vm10577_vm15 = vmmov %vm10576_vm1  ;;  %v3625_v13 = vld [vmem:[#allocation2 + $0x54] sm:$0xe] }
 0x238   : > { %3584 = vst.msk [vmem:[#allocation3 + $0x24] sm:$0xf] %vm10570_vm8, %v3497_v59  ;;  %vm10579_vm8 = vmmov %vm10575_vm5  ;;  %v3723_v59 = vsel %vm7050_vm10, %v3721_v63, %v3722_v37  ;;  %v3631_v63 = vld [vmem:[#allocation2 + $0x6c] sm:$0xe]  ;;  %v1900_v37 = vld [vmem:[#allocation2 + $0x58] sm:$0xf] }
 0x239   : > { %1947 = vst.msk [vmem:[#allocation3 + $0x78] sm:$0xf] %vm10577_vm15, %v1915_v34  ;;  %vm10587_vm1 = vmmov %vm10579_vm8  ;;  %v4138_v34 = vld [vmem:[#allocation2 + $0x18] sm:$0xf] }
 0x23a   : > { %3540 = vrot.lane.b32.xlu1 %v3477_v38, %s6913_s21  ;;  %v6394_v38 = vrot.slane %v3625_v13, 9  ;;  %1931 = vst.msk [vmem:[#allocation3 + $0x38] sm:$0xf] %vm10578_vm11, %v1899_v20  ;;  %vm10588_vm15 = vmmov %vm10587_vm1  ;;  %v4187_v48 = vshrl.u32 %v4138_v34, 16  ;;  %v4190_v20 = vshll.u32 %v4138_v34, 16 }
 0x23b   : > { %1932 = vst.msk [vmem:[#allocation3 + $0x3c] sm:$0xf] %vm10578_vm11, %v1900_v37 }
 0x23c   : > { %3817 = vrot.lane.b32.xlu0 %v3709_v45, %s6914_s17  ;;  %v4162_v45 = vld [vmem:[#allocation2 + $0x78] sm:$0xf]  ;;  %v3748_v14 = vsel %vm7050_vm10, %v6394_v38, %v3747_v62  ;;  %v4725_v38 = vld [vmem:[#allocation2 + $0x80] sm:$0x1]  ;;  %v4189_v36 = vrot.slane %v4187_v48, 4 }
 0x23d   : > { %v2405_v22 = vpop.permute.xlu1 %2404  ;;  %v4379_v8 = vshrl.u32 %v4162_v45, 16  ;;  %v4382_v43 = vshll.u32 %v4162_v45, 16 }
 0x23e   : > { %3821 = vrot.lane.b32.xlu2 %v3716_v56, %s6914_s17  ;;  %v9231_v18 = vpop.permute.xlu2 %2973  ;;  %2491 = vst.msk [vmem:[#allocation3 + $0x28] sm:$0xf] %vm10562_vm3, %v2405_v22  ;;  %vm10581_vm3 = vmmov %vm10563_vm2  ;;  %v3627_v56 = vld [vmem:[#allocation2 + $0x5c] sm:$0x1]  ;;  %v3763_v22 = vrot.slane %v3761_v46, 4 }
 0x23f   : > { %v2940_v5 = vpop.permute.xlu0 %2939  ;;  %2831 = vst.msk [vmem:[#allocation3 + $0x28] sm:$0xf] %vm10563_vm2, %v9156_v52  ;;  %v3735_v52 = vrot.slane %v3733_v28, 4  ;;  %vm10582_vm2 = vmmov %vm10572_vm12  ;;  %v3750_v9 = vrot.slane %v3627_v56, 5  ;;  %v4192_v56 = vrot.slane %v4190_v20, 5 }
 0x240   : > { %3024 = vst.msk [vmem:[#allocation3 + $0x28] sm:$0xf] %vm10572_vm12, %v9184_v24  ;;  %v3713_v24 = vsel %vm7050_vm10, %v6389_v61, %v3712_v11  ;;  %v6393_v11 = vrot.slane %v3622_v33, 9  ;;  %vm10583_vm12 = vmmov %vm10581_vm3 }
 0x241   : > { %v3737_v50 = vsel %vm7050_vm10, %v3735_v52, %v3736_v60  ;;  %v3751_v21 = vsel %vm7050_vm10, %v3749_v23, %v3750_v9  ;;  %v3742_v52 = vrot.slane %v3740_v2, 4  ;;  %v3743_v60 = vrot.slane %v3624_v31, 5  ;;  %v3945_v31 = vld [vmem:[#allocation2 + $0x18] sm:$0xf] }
 0x242   : > { %2422 = vrot.lane.b32.xlu1 %v2239_v40, %s6911_s19  ;;  %v3741_v3 = vsel %vm7050_vm10, %v6393_v11, %v3740_v2  ;;  %v3764_v40 = vrot.slane %v3633_v42, 5  ;;  %v9317_v11 = vld [vmem:[#allocation2 + $0x7c] sm:$0xf]  ;;  %s6916_s19 = smov 28   ;;  %v4193_v9 = vor.u32 %v4192_v56, %v4189_v36  ;;  %v3963_v56 = vld [vmem:[#allocation2 + $0x84] sm:$0xf] }
 0x243   : > { %v3744_v0 = vsel %vm7050_vm10, %v3742_v52, %v3743_v60  ;;  %v4701_v52 = vld [vmem:[#allocation2 + $0x20] sm:$0x1] }
 0x244   : > { %3823 = vrot.lane.b32.xlu0 %v3720_v19, %s6914_s17  ;;  %v3765_v57 = vsel %vm7050_vm10, %v3763_v22, %v3764_v40 }
 0x245   : > { %v2747_v41 = vpop.permute.xlu1 %2746 }
 0x246   : > { %3827 = vrot.lane.b32.xlu2 %v3727_v49, %s6914_s17  ;;  %v9250_v55 = vpop.permute.xlu2 %2784  ;;  %2832 = vst.msk [vmem:[#allocation3 + $0x2c] sm:$0xf] %vm10573_vm6, %v2747_v41  ;;  %v4163_v49 = vld [vmem:[#allocation2 + $0x7c] sm:$0xf]  ;;  %vm10584_vm6 = vmmov %vm10582_vm2  ;;  %v4164_v41 = vld [vmem:[#allocation2 + $0x80] sm:$0x1] }
 0x247   : > { %v3533_v58 = vpop.permute.xlu0 %3532  ;;  %3025 = vst.msk [vmem:[#allocation3 + $0x2c] sm:$0xf] %vm10574_vm14, %v2940_v5  ;;  %v4384_v5 = vrot.slane %v4382_v43, 5  ;;  %vm10585_vm14 = vmmov %vm10580_vm9  ;;  %v4388_v44 = vshll.u32 %v4163_v49, 16  ;;  %v4392_v61 = vshrl.u32 %v4163_v49, 16 }
 0x248   : > { %3602 = vst.msk [vmem:[#allocation3 + $0x6c] sm:$0xf] %vm10575_vm5, %v3533_v58  ;;  %vm10586_vm5 = vmmov %vm10581_vm3  ;;  %v4139_v43 = vld [vmem:[#allocation2 + $0x1c] sm:$0xf] }
 0x249   : > { %v4390_v58 = vrot.slane %v4388_v44, 5  ;;  %v4196_v22 = vshll.u32 %v4139_v43, 16  ;;  %v4200_v40 = vshrl.u32 %v4139_v43, 16  ;;  %v4723_v44 = vld [vmem:[#allocation2 + $0x78] sm:$0xe] }
 0x24a   : > { %3819 = vrot.lane.b32.xlu1 %v3713_v24, %s6914_s17 }
 0x24c   : > { %3829 = vrot.lane.b32.xlu0 %v3730_v16, %s6914_s17  ;;  %v4394_v16 = vrot.slane %v4392_v61, 4 }
 0x24d   : > { %v2441_v35 = vpop.permute.xlu1 %2440 }
 0x24e   : > { %3833 = vrot.lane.b32.xlu2 %v3737_v50, %s6914_s17  ;;  %v3501_v25 = vpop.permute.xlu2 %3500  ;;  %2509 = vst.msk [vmem:[#allocation3 + $0x70] sm:$0xf] %vm10580_vm9, %v2441_v35  ;;  %v4398_v50 = vshll.u32 %v4164_v41, 16  ;;  %v4395_v13 = vor.u32 %v4394_v16, %v4390_v58  ;;  %v4853_v35 = vrot.slane %v9317_v11, 5  ;;  %v3634_v11 = vld [vmem:[#allocation2 + $0x78] sm:$0xe] }
 0x24f   : > { %3586 = vst.msk [vmem:[#allocation3 + $0x2c] sm:$0xf] %vm10579_vm8, %v3501_v25  ;;  %v2976_v53 = vpop.permute.xlu0 %2975  ;;  %v6396_v25 = vrot.slane %v3631_v63, 9  ;;  %vm10589_vm8 = vmmov %vm10578_vm11  ;;  %v4166_v63 = vld [vmem:[#allocation2 + $0x88] sm:$0xf] }
 0x250   : > { %2849 = vst.msk [vmem:[#allocation3 + $0x70] sm:$0xf] %vm10581_vm3, %v9205_v6  ;;  %v4400_v62 = vrot.slane %v4398_v50, 5  ;;  %v4396_v45 = vrot.slane %v4395_v13, 4  ;;  %v4855_v23 = vrot.slane %v4853_v35, 4  ;;  %vm10595_vm11 = vmmov %vm10587_vm1  ;;  %v4412_v13 = vshll.u32 %v4166_v63, 16 }
 0x251   : > { %3042 = vst.msk [vmem:[#allocation3 + $0x70] sm:$0xf] %vm10582_vm2, %v9231_v18  ;;  %v4381_v18 = vrot.slane %v4379_v8, 4  ;;  %v3762_v8 = vsel %vm7050_vm10, %v6396_v25, %v3761_v46  ;;  %v1916_v46 = vld [vmem:[#allocation2 + $0xb8] sm:$0xf]  ;;  %v4416_v48 = vshrl.u32 %v4166_v63, 16 }
 0x252   : > { %3825 = vrot.lane.b32.xlu1 %v3723_v59, %s6914_s17  ;;  %v4401_v42 = vsel %vm7087_vm13, %v4396_v45, %v4400_v62  ;;  %v6397_v25 = vrot.slane %v3634_v11, 9  ;;  %v3946_v62 = vld [vmem:[#allocation2 + $0x1c] sm:$0xf] }
 0x253   : > { %v4385_v28 = vor.u32 %v4384_v5, %v4381_v18  ;;  %v4140_v18 = vld [vmem:[#allocation2 + $0x20] sm:$0x1]  ;;  %v4418_v36 = vrot.slane %v4416_v48, 4 }
 0x254   : > { %3835 = vrot.lane.b32.xlu0 %v3741_v3, %s6914_s17  ;;  %v1902_v3 = vld [vmem:[#allocation2 + $0x64] sm:$0xf] }
 0x255   : > { %v2783_v19 = vpop.permute.xlu1 %2782  ;;  %v4386_v33 = vrot.slane %v4385_v28, 4  ;;  %1934 = vst.msk [vmem:[#allocation3 + $0x44] sm:$0xf] %vm10589_vm8, %v1902_v3  ;;  %v9369_v3 = vrot.slane %v4412_v13, 5 }
 0x256   : > { %3839 = vrot.lane.b32.xlu2 %v3748_v14, %s6914_s17  ;;  %v9290_v6 = vpop.permute.xlu2 %2943  ;;  %2850 = vst.msk [vmem:[#allocation3 + $0x74] sm:$0xf] %vm10583_vm12, %v2783_v19  ;;  %vm10590_vm12 = vmmov %vm10580_vm9  ;;  %v4198_v19 = vrot.slane %v4196_v22, 5 }
 0x257   : > { %v2409_v32 = vpop.permute.xlu0 %2408  ;;  %3043 = vst.msk [vmem:[#allocation3 + $0x74] sm:$0xf] %vm10584_vm6, %v2976_v53  ;;  %v4391_v2 = vsel %vm7087_vm13, %v4386_v33, %v4390_v58  ;;  %v4856_v53 = vrot.slane %v4725_v38, 5  ;;  %vm10591_vm6 = vmmov %vm10581_vm3  ;;  %v4800_v58 = vrot.slane %v4701_v52, 5  ;;  %v4419_v43 = vor.u32 %v4418_v36, %v9369_v3  ;;  %v4728_v36 = vld [vmem:[#allocation2 + $0x8c] sm:$0x1] }
 0x258   : > { %2493 = vst.msk [vmem:[#allocation3 + $0x30] sm:$0xf] %vm10585_vm14, %v2409_v32  ;;  %vm10592_vm14 = vmmov %vm10589_vm8  ;;  %v3962_v32 = vld [vmem:[#allocation2 + $0x7c] sm:$0xf] }
 0x259   : > { %2833 = vst.msk [vmem:[#allocation3 + $0x30] sm:$0xf] %vm10586_vm5, %v9199_v27  ;;  %v4857_v51 = vsel %vm7050_vm10, %v4855_v23, %v4856_v53  ;;  %vm10593_vm5 = vmmov %vm10580_vm9 }
 0x25a   : > { %3831 = vrot.lane.b32.xlu1 %v3734_v54, %s6914_s17  ;;  %1948 = vst.msk [vmem:[#allocation3 + $0x7c] sm:$0xf] %vm10592_vm14, %v1916_v46  ;;  %v4202_v54 = vrot.slane %v4200_v40, 4  ;;  %vm10596_vm8 = vmmov %vm10581_vm3  ;;  %v3636_v46 = vld [vmem:[#allocation2 + $0x80] sm:$0x1] }
 0x25c   : > { %3841 = vrot.lane.b32.xlu0 %v3751_v21, %s6914_s17  ;;  %v4203_v61 = vor.u32 %v4202_v54, %v4198_v19  ;;  %v4420_v54 = vrot.slane %v4419_v43, 4  ;;  %v4863_v43 = vrot.slane %v4728_v36, 5 }
 0x25d   : > { %v3499_v29 = vpop.permute.xlu1 %3498 }
 0x25e   : > { %3849 = vrot.lane.b32.xlu2 %v3765_v57, %s6914_s17  ;;  %v3537_v24 = vpop.permute.xlu2 %3536  ;;  %3585 = vst.msk [vmem:[#allocation3 + $0x28] sm:$0xf] %vm10588_vm15, %v3499_v29  ;;  %v4206_v57 = vshll.u32 %v4140_v18, 16  ;;  %v4204_v33 = vrot.slane %v4203_v61, 4  ;;  %vm10594_vm15 = vmmov %vm10582_vm2  ;;  %v1903_v61 = vld [vmem:[#allocation2 + $0x6c] sm:$0xf] }
 0x25f   : > { %3604 = vst.msk [vmem:[#allocation3 + $0x74] sm:$0xf] %vm10587_vm1, %v3537_v24  ;;  %v2751_v27 = vpop.permute.xlu0 %2750  ;;  %v6412_v24 = vrot.slane %v4723_v44, 9  ;;  %vm10601_vm14 = vmmov %vm10594_vm15 }
 0x260   : > { %v4208_v60 = vrot.slane %v4206_v57, 5 }
 0x261   : > { %v4854_v29 = vsel %vm7050_vm10, %v6412_v24, %v4853_v35  ;;  %v4167_v35 = vld [vmem:[#allocation2 + $0x8c] sm:$0x1] }
 0x262   : > { %3837 = vrot.lane.b32.xlu1 %v3744_v0, %s6914_s17  ;;  %v4209_v50 = vsel %vm7087_vm13, %v4204_v33, %v4208_v60 }
 0x264   : > { %4041 = vrot.lane.b32.xlu0 %v3961_v39, %s6915_s18 }
 0x265   : > { %v2411_v14 = vpop.permute.xlu1 %2410 }
 0x266   : > { %4602 = vrot.lane.b32.xlu2 %v4391_v2, %s6916_s19  ;;  %v9323_v59 = vpop.permute.xlu2 %2979  ;;  %2494 = vst.msk [vmem:[#allocation3 + $0x34] sm:$0xf] %vm10580_vm9, %v2411_v14  ;;  %vm10597_vm9 = vmmov %vm10593_vm5  ;;  %v4699_v14 = vld [vmem:[#allocation2 + $0x18] sm:$0xe] }
 0x267   : > { %v2445_v10 = vpop.permute.xlu0 %2444  ;;  %2834 = vst.msk [vmem:[#allocation3 + $0x34] sm:$0xf] %vm10581_vm3, %v2751_v27  ;;  %v3635_v27 = vld [vmem:[#allocation2 + $0x7c] sm:$0xf] }
 0x268   : > { %3027 = vst.msk [vmem:[#allocation3 + $0x34] sm:$0xf] %vm10582_vm2, %v9290_v6  ;;  %v4194_v6 = vrot.slane %v4193_v9, 4  ;;  %v3768_v2 = vrot.slane %v3635_v27, 5  ;;  %vm10598_vm2 = vmmov %vm10593_vm5  ;;  %v3947_v27 = vld [vmem:[#allocation2 + $0x24] sm:$0xf] }
 0x269   : > { %2511 = vst.msk [vmem:[#allocation3 + $0x78] sm:$0xf] %vm10590_vm12, %v2445_v10  ;;  %v4165_v10 = vld [vmem:[#allocation2 + $0x84] sm:$0xf]  ;;  %vm10599_vm12 = vmmov %vm10598_vm2 }
 0x26a   : > { %3847 = vrot.lane.b32.xlu1 %v3762_v8, %s6914_s17  ;;  %2851 = vst.msk [vmem:[#allocation3 + $0x78] sm:$0xf] %vm10591_vm6, %v9250_v55  ;;  %v4700_v55 = vld [vmem:[#allocation2 + $0x1c] sm:$0xf]  ;;  %v4199_v28 = vsel %vm7087_vm13, %v4194_v6, %v4198_v19  ;;  %v3769_v53 = vsel %vm7050_vm10, %v6397_v25, %v3768_v2  ;;  %v4422_v8 = vshll.u32 %v4167_v35, 16  ;;  %v4403_v40 = vshrl.u32 %v4165_v10, 16  ;;  %vm10600_vm6 = vmmov %vm10581_vm3 }
 0x26b   : > { %v4797_v41 = vrot.slane %v4700_v55, 5  ;;  %v4406_v18 = vshll.u32 %v4165_v10, 16  ;;  %v3964_v19 = vld [vmem:[#allocation2 + $0x88] sm:$0xf]  ;;  %v1901_v55 = vld [vmem:[#allocation2 + $0x60] sm:$0xf] }
 0x26c   : > { %4604 = vrot.lane.b32.xlu0 %v4401_v42, %s6916_s19  ;;  %v6404_v42 = vrot.slane %v4699_v14, 9  ;;  %v4703_v14 = vld [vmem:[#allocation2 + $0x28] sm:$0xf] }
 0x26d   : > { %v3535_v49 = vpop.permute.xlu1 %3534  ;;  %v4799_v34 = vrot.slane %v4797_v41, 4  ;;  %v4408_v52 = vrot.slane %v4406_v18, 5 }
 0x26e   : > { %4941 = vrot.lane.b32.xlu2 %v4857_v51, %s6917_s20  ;;  %v2413_v5 = vpop.permute.xlu2 %2412  ;;  %3603 = vst.msk [vmem:[#allocation3 + $0x70] sm:$0xf] %vm10587_vm1, %v3535_v49  ;;  %v4424_v51 = vrot.slane %v4422_v8, 5  ;;  %v4798_v22 = vsel %vm7050_vm10, %v6404_v42, %v4797_v41  ;;  %v3771_v49 = vrot.slane %v3636_v46, 5  ;;  %v3770_v41 = vrot.slane %v3768_v2, 4 }
 0x26f   : > { %2495 = vst.msk [vmem:[#allocation3 + $0x38] sm:$0xf] %vm10593_vm5, %v2413_v5  ;;  %v9347_v21 = vpop.permute.xlu0 %2786  ;;  %v4801_v37 = vsel %vm7050_vm10, %v4799_v34, %v4800_v58  ;;  %v4142_v5 = vld [vmem:[#allocation2 + $0x28] sm:$0xf]  ;;  %vm10602_vm5 = vmmov %vm10601_vm14  ;;  %v4141_v2 = vld [vmem:[#allocation2 + $0x24] sm:$0xf] }
 0x270   : > { %v4425_v57 = vsel %vm7087_vm13, %v4420_v54, %v4424_v51  ;;  %v4224_v44 = vshrl.u32 %v4142_v5, 16  ;;  %v4214_v35 = vshll.u32 %v4141_v2, 16  ;;  %v4804_v51 = vrot.slane %v4703_v14, 5 }
 0x272   : > { %4043 = vrot.lane.b32.xlu1 %v3962_v32, %s6915_s18  ;;  %v4726_v32 = vld [vmem:[#allocation2 + $0x84] sm:$0xe]  ;;  %v4226_v33 = vrot.slane %v4224_v44, 4  ;;  %v4216_v42 = vrot.slane %v4214_v35, 5 }
 0x273   : > { %v6413_v24 = vrot.slane %v4726_v32, 9 }
 0x274   : > { %4009 = vrot.lane.b32.xlu0 %v3945_v31, %s6915_s18  ;;  %v4727_v31 = vld [vmem:[#allocation2 + $0x88] sm:$0xf] }
 0x275   : > { %v2942_v16 = vpop.permute.xlu1 %2941  ;;  %v4860_v60 = vrot.slane %v4727_v31, 5 }
 0x276   : > { %4570 = vrot.lane.b32.xlu2 %v4199_v28, %s6916_s19  ;;  %v2755_v39 = vpop.permute.xlu2 %2754  ;;  %3026 = vst.msk [vmem:[#allocation3 + $0x30] sm:$0xf] %vm10594_vm15, %v2942_v16  ;;  %v4220_v28 = vshll.u32 %v4142_v5, 16  ;;  %vm10603_vm15 = vcmask 27648   ;;  %v3772_v16 = vsel %vm7050_vm10, %v3770_v41, %v3771_v49 }
 0x277   : > { %v3503_v0 = vpop.permute.xlu0 %3502  ;;  %1933 = vst.msk [vmem:[#allocation3 + $0x40] sm:$0xf] %vm10603_vm15, %v1901_v55  ;;  %v4861_v34 = vsel %vm7050_vm10, %v6413_v24, %v4860_v60  ;;  %v4862_v46 = vrot.slane %v4860_v60, 4  ;;  %v3639_v55 = vld [vmem:[#allocation2 + $0x8c] sm:$0x1] }
 0x278   : > { %3587 = vst.msk [vmem:[#allocation3 + $0x30] sm:$0xf] %vm10595_vm11, %v3503_v0  ;;  %vm10604_vm11 = vmmov %vm10603_vm15  ;;  %v4143_v0 = vld [vmem:[#allocation2 + $0x2c] sm:$0x1]  ;;  %v4169_v60 = vld [vmem:[#allocation2 + $0x94] sm:$0xf] }
 0x279   : > { %1935 = vst.msk [vmem:[#allocation3 + $0x48] sm:$0xf] %vm10604_vm11, %v1903_v61  ;;  %v3778_v61 = vrot.slane %v3639_v55, 5  ;;  %v4706_v55 = vld [vmem:[#allocation2 + $0x34] sm:$0xf] }
 0x27a   : > { %4939 = vrot.lane.b32.xlu1 %v4854_v29, %s6917_s20 }
 0x27c   : > { %4572 = vrot.lane.b32.xlu0 %v4209_v50, %s6916_s19 }
 0x27d   : > { %v2753_v38 = vpop.permute.xlu1 %2752 }
 0x27e   : > { %4909 = vrot.lane.b32.xlu2 %v4801_v37, %s6917_s20  ;;  %v3507_v20 = vpop.permute.xlu2 %3506  ;;  %2835 = vst.msk [vmem:[#allocation3 + $0x38] sm:$0xf] %vm10596_vm8, %v2753_v38  ;;  %vm10605_vm8 = vmmov %vm10602_vm5  ;;  %v4230_v37 = vshll.u32 %v4143_v0, 16 }
 0x27f   : > { %v2415_v45 = vpop.permute.xlu0 %2414 }
 0x280   : > { %2496 = vst.msk [vmem:[#allocation3 + $0x3c] sm:$0xf] %vm10597_vm9, %v2415_v45  ;;  %vm10606_vm9 = vmmov %vm10587_vm1 }
 0x281   : > { %2836 = vst.msk [vmem:[#allocation3 + $0x3c] sm:$0xf] %vm10581_vm3, %v2755_v39  ;;  %v9395_v39 = vrot.slane %v4220_v28, 5  ;;  %vm3911_vm3 = vcmask 191648  }
 0x282   : > { %4011 = vrot.lane.b32.xlu1 %v3946_v62, %s6915_s18  ;;  %v4211_v62 = vshrl.u32 %v4141_v2, 16  ;;  %v4730_v2 = vld [vmem:[#allocation2 + $0x94] sm:$0xf] }
 0x283   : > { %v4227_v63 = vor.u32 %v4226_v33, %v9395_v39 }
 0x284   : > { %3851 = vrot.lane.b32.xlu0 %v3769_v53, %s6914_s17  ;;  %v3948_v53 = vld [vmem:[#allocation2 + $0x28] sm:$0xf]  ;;  %v4213_v10 = vrot.slane %v4211_v62, 4 }
 0x285   : > { %v2447_v9 = vpop.permute.xlu1 %2446  ;;  %v4228_v48 = vrot.slane %v4227_v63, 4  ;;  %v4806_v63 = vrot.slane %v4804_v51, 4 }
 0x286   : > { %4045 = vrot.lane.b32.xlu2 %v3963_v56, %s6915_s18  ;;  %v2419_v23 = vpop.permute.xlu2 %2418  ;;  %2512 = vst.msk [vmem:[#allocation3 + $0x7c] sm:$0xf] %vm10599_vm12, %v2447_v9  ;;  %v4702_v56 = vld [vmem:[#allocation2 + $0x24] sm:$0xe]  ;;  %vm10608_vm12 = vmmov %vm10587_vm1 }
 0x287   : > { %2498 = vst.msk [vmem:[#allocation3 + $0x44] sm:$0xf] %vm10598_vm2, %v2419_v23  ;;  %v2946_v6 = vpop.permute.xlu0 %2945  ;;  %v6405_v23 = vrot.slane %v4702_v56, 9  ;;  %v3637_v9 = vld [vmem:[#allocation2 + $0x84] sm:$0xe]  ;;  %vm10607_vm2 = vmmov %vm10602_vm5 }
 0x288   : > { %2852 = vst.msk [vmem:[#allocation3 + $0x7c] sm:$0xf] %vm10600_vm6, %v9347_v21  ;;  %v4405_v21 = vrot.slane %v4403_v40, 4  ;;  %v6398_v32 = vrot.slane %v3637_v9, 9  ;;  %vm10609_vm6 = vcmask 60448   ;;  %vm10614_vm11 = vmmov %vm10607_vm2 }
 0x289   : > { %3045 = vst.msk [vmem:[#allocation3 + $0x7c] sm:$0xf] %vm10601_vm14, %v9323_v59  ;;  %v4805_v49 = vsel %vm7050_vm10, %v6405_v23, %v4804_v51  ;;  %vm10610_vm14 = vcmask 93248   ;;  %v4731_v56 = vld [vmem:[#allocation2 + $0x98] sm:$0x1] }
 0x28a   : > { %4907 = vrot.lane.b32.xlu1 %v4798_v22, %s6917_s20  ;;  %3028 = vst.msk [vmem:[#allocation3 + $0x38] sm:$0xf] %vm10602_vm5, %v2946_v6  ;;  %v4409_v29 = vor.u32 %v4408_v52, %v4405_v21  ;;  %v4168_v22 = vld [vmem:[#allocation2 + $0x90] sm:$0xf]  ;;  %v4864_v6 = vsel %vm7050_vm10, %v4862_v46, %v4863_v43  ;;  %vm10611_vm5 = vmmov %vm10607_vm2  ;;  %v4145_v51 = vld [vmem:[#allocation2 + $0x34] sm:$0xf] }
 0x28b   : > { %3589 = vst.msk [vmem:[#allocation3 + $0x38] sm:$0xf] %vm10587_vm1, %v3507_v20  ;;  %v4232_v20 = vrot.slane %v4230_v37, 5  ;;  %v4427_v31 = vshrl.u32 %v4168_v22, 16  ;;  %vm10612_vm1 = vmmov %vm10609_vm6 }
 0x28c   : > { %4047 = vrot.lane.b32.xlu0 %v3964_v19, %s6915_s18  ;;  %v4410_v11 = vrot.slane %v4409_v29, 4  ;;  %v4217_v19 = vor.u32 %v4216_v42, %v4213_v10  ;;  %vm10613_vm15 = vmmov %vm10610_vm14  ;;  %v4170_v10 = vld [vmem:[#allocation2 + $0x98] sm:$0x1] }
 0x28d   : > { %v2978_v58 = vpop.permute.xlu1 %2977  ;;  %v4233_v8 = vsel %vm7087_vm13, %v4228_v48, %v4232_v20  ;;  %v4429_v21 = vrot.slane %v4427_v31, 4 }
 0x28e   : > { %4608 = vrot.lane.b32.xlu2 %v4425_v57, %s6916_s19  ;;  %v9392_v59 = vpop.permute.xlu2 %2949  ;;  %3044 = vst.msk [vmem:[#allocation3 + $0x78] sm:$0xf] %vm10605_vm8, %v2978_v58  ;;  %v4415_v38 = vsel %vm7087_vm13, %v4410_v11, %v9369_v3  ;;  %v3638_v3 = vld [vmem:[#allocation2 + $0x88] sm:$0xf]  ;;  %v4430_v57 = vshll.u32 %v4168_v22, 16  ;;  %v4218_v44 = vrot.slane %v4217_v19, 4  ;;  %vm10615_vm8 = vmmov %vm10606_vm9 }
 0x28f   : > { %v9400_v50 = vpop.permute.xlu0 %2756  ;;  %v3775_v18 = vrot.slane %v3638_v3, 5  ;;  %v4729_v11 = vld [vmem:[#allocation2 + $0x90] sm:$0xe]  ;;  %v4870_v3 = vrot.slane %v4731_v56, 5 }
 0x290   : > { %v4432_v52 = vrot.slane %v4430_v57, 5  ;;  %v4223_v58 = vsel %vm7087_vm13, %v4218_v44, %v9395_v39  ;;  %v3966_v39 = vld [vmem:[#allocation2 + $0x94] sm:$0xf]  ;;  %v3965_v22 = vld [vmem:[#allocation2 + $0x90] sm:$0xf] }
 0x291   : > { %v3776_v28 = vsel %vm7050_vm10, %v6398_v32, %v3775_v18  ;;  %v3777_v24 = vrot.slane %v3775_v18, 4  ;;  %v4446_v18 = vshll.u32 %v4170_v10, 16  ;;  %v4705_v57 = vld [vmem:[#allocation2 + $0x30] sm:$0xe] }
 0x292   : > { %3853 = vrot.lane.b32.xlu1 %v3772_v16, %s6914_s17  ;;  %v4704_v16 = vld [vmem:[#allocation2 + $0x2c] sm:$0x1] }
 0x293   : > { %v3779_v0 = vsel %vm7050_vm10, %v3777_v24, %v3778_v61  ;;  %v4807_v37 = vrot.slane %v4704_v16, 5  ;;  %v4448_v31 = vrot.slane %v4446_v18, 5  ;;  %v9511_v18 = vld [vmem:[#allocation2 + $0xa0] sm:$0xf] }
 0x294   : > { %4943 = vrot.lane.b32.xlu0 %v4861_v34, %s6917_s20  ;;  %v4433_v34 = vor.u32 %v4432_v52, %v4429_v21  ;;  %v6406_v21 = vrot.slane %v4705_v57, 9  ;;  %v4811_v52 = vrot.slane %v4706_v55, 5 }
 0x295   : > { %v3505_v25 = vpop.permute.xlu1 %3504  ;;  %v4808_v35 = vsel %vm7050_vm10, %v4806_v63, %v4807_v37  ;;  %v3642_v37 = vld [vmem:[#allocation2 + $0x98] sm:$0x1] }
 0x296   : > { %4013 = vrot.lane.b32.xlu2 %v3947_v27, %s6915_s18  ;;  %v9408_v13 = vpop.permute.xlu2 %2760  ;;  %3588 = vst.msk [vmem:[#allocation3 + $0x34] sm:$0xf] %vm10606_vm9, %v3505_v25  ;;  %v4436_v27 = vshll.u32 %v4169_v60, 16  ;;  %v4434_v48 = vrot.slane %v4433_v34, 4  ;;  %v6414_v25 = vrot.slane %v4729_v11, 9  ;;  %vm10616_vm9 = vmmov %vm10610_vm14  ;;  %v4812_v34 = vsel %vm7050_vm10, %v6406_v21, %v4811_v52 }
 0x297   : > { %v3509_v45 = vpop.permute.xlu0 %3508  ;;  %v4148_v21 = vld [vmem:[#allocation2 + $0x40] sm:$0xf] }
 0x298   : > { %v4438_v20 = vrot.slane %v4436_v27, 5 }
 0x29a   : > { %4606 = vrot.lane.b32.xlu1 %v4415_v38, %s6916_s19  ;;  %v4867_v38 = vrot.slane %v4730_v2, 5  ;;  %v4813_v2 = vrot.slane %v4811_v52, 4 }
 0x29c   : > { %4015 = vrot.lane.b32.xlu0 %v3948_v53, %s6915_s18  ;;  %v4868_v14 = vsel %vm7050_vm10, %v6414_v25, %v4867_v38  ;;  %v4869_v43 = vrot.slane %v4867_v38, 4  ;;  %v3785_v38 = vrot.slane %v3642_v37, 5 }
 0x29d   : > { %v2948_v5 = vpop.permute.xlu1 %2947 }
 0x29e   : > { %4576 = vrot.lane.b32.xlu2 %v4233_v8, %s6916_s19  ;;  %v3816_v40 = vpop.permute.xlu2 %3815  ;;  %3029 = vst.msk [vmem:[#allocation3 + $0x3c] sm:$0xf] %vm10607_vm2, %v2948_v5 }
 0x29f   : > { %3912 = vst.msk [vmem:[#allocation3] sm:$0xf] %vm3911_vm3, %v3816_v40  ;;  %v2952_v54 = vpop.permute.xlu0 %2951 }
 0x2a0   : > { %3590 = vst.msk [vmem:[#allocation3 + $0x3c] sm:$0xf] %vm10608_vm12, %v3509_v45  ;;  %v4440_v45 = vshrl.u32 %v4169_v60, 16  ;;  %vm10617_vm12 = vmmov %vm10615_vm8  ;;  %v9475_v60 = vld [vmem:[#allocation2 + $0x94] sm:$0xf] }
 0x2a1   : > { %v3782_v27 = vrot.slane %v9475_v60, 5 }
 0x2a2   : > { %4945 = vrot.lane.b32.xlu1 %v4864_v6, %s6917_s20  ;;  %v4442_v8 = vrot.slane %v4440_v45, 4  ;;  %v4871_v6 = vsel %vm7050_vm10, %v4869_v43, %v4870_v3 }
 0x2a3   : > { %v3784_v25 = vrot.slane %v3782_v27, 4 }
 0x2a4   : > { %4911 = vrot.lane.b32.xlu0 %v4805_v49, %s6917_s20  ;;  %v4443_v40 = vor.u32 %v4442_v8, %v4438_v20  ;;  %v3950_v49 = vld [vmem:[#allocation2 + $0x34] sm:$0xf] }
 0x2a5   : > { %v2417_v33 = vpop.permute.xlu1 %2416  ;;  %v3786_v43 = vsel %vm7050_vm10, %v3784_v25, %v3785_v38  ;;  %v3968_v25 = vld [vmem:[#allocation2 + $0xa0] sm:$0xf]  ;;  %v4732_v38 = vld [vmem:[#allocation2 + $0x9c] sm:$0xe] }
 0x2a6   : > { %3855 = vrot.lane.b32.xlu2 %v3776_v28, %s6914_s17  ;;  %v3513_v41 = vpop.permute.xlu2 %3512  ;;  %2497 = vst.msk [vmem:[#allocation3 + $0x40] sm:$0xf] %vm10609_vm6, %v2417_v33  ;;  %vm10618_vm6 = vcmask 27648   ;;  %v4444_v32 = vrot.slane %v4443_v40, 4  ;;  %v4248_v33 = vshrl.u32 %v4145_v51, 16 }
 0x2a7   : > { %v2421_v29 = vpop.permute.xlu0 %2420  ;;  %2837 = vst.msk [vmem:[#allocation3 + $0x40] sm:$0xf] %vm10610_vm14, %v9400_v50  ;;  %v4144_v50 = vld [vmem:[#allocation2 + $0x30] sm:$0xf]  ;;  %vm10619_vm14 = vmmov %vm10615_vm8 }
 0x2a8   : > { %3030 = vst.msk [vmem:[#allocation3 + $0x40] sm:$0xf] %vm10611_vm5, %v9392_v59  ;;  %v4235_v53 = vshrl.u32 %v4144_v50, 16  ;;  %v4238_v36 = vshll.u32 %v4144_v50, 16  ;;  %vm10620_vm5 = vmmov %vm10615_vm8  ;;  %v4449_v24 = vsel %vm7087_vm13, %v4444_v32, %v4448_v31  ;;  %v4250_v11 = vrot.slane %v4248_v33, 4 }
 0x2a9   : > { %2499 = vst.msk [vmem:[#allocation3 + $0x48] sm:$0xf] %vm10612_vm1, %v2421_v29  ;;  %vm10621_vm1 = vmmov %vm10620_vm5  ;;  %v4172_v50 = vld [vmem:[#allocation2 + $0xa0] sm:$0xf]  ;;  %v4874_v32 = vrot.slane %v9511_v18, 5 }
 0x2aa   : > { %4574 = vrot.lane.b32.xlu1 %v4223_v58, %s6916_s19  ;;  %2839 = vst.msk [vmem:[#allocation3 + $0x48] sm:$0xf] %vm10613_vm15, %v9408_v13  ;;  %v4237_v42 = vrot.slane %v4235_v53, 4  ;;  %v4240_v23 = vrot.slane %v4238_v36, 5  ;;  %v4171_v58 = vld [vmem:[#allocation2 + $0x9c] sm:$0xf] }
 0x2ab   : > { %3032 = vst.msk [vmem:[#allocation3 + $0x48] sm:$0xf] %vm10614_vm11, %v8277_v7  ;;  %v4439_v7 = vsel %vm7087_vm13, %v4434_v48, %v4438_v20  ;;  %v4454_v63 = vshll.u32 %v4171_v58, 16  ;;  %v4146_v20 = vld [vmem:[#allocation2 + $0x38] sm:$0x1]  ;;  %vm10622_vm15 = vcmask 60448   ;;  %vm10623_vm11 = vmmov %vm10616_vm9 }
 0x2ac   : > { %3857 = vrot.lane.b32.xlu0 %v3779_v0, %s6914_s17  ;;  %3593 = vst.msk [vmem:[#allocation3 + $0x48] sm:$0xf] %vm10615_vm8, %v8319_v26  ;;  %v1904_v26 = vld [vmem:[#allocation2 + $0x70] sm:$0xf]  ;;  %v4241_v19 = vor.u32 %v4240_v23, %v4237_v42  ;;  %v4707_v0 = vld [vmem:[#allocation2 + $0x38] sm:$0x1]  ;;  %vm10624_vm8 = vmmov %vm10607_vm2 }
 0x2ad   : > { %v2759_v62 = vpop.permute.xlu1 %2758  ;;  %1936 = vst.msk [vmem:[#allocation3 + $0x4c] sm:$0xf] %vm10618_vm6, %v1904_v26  ;;  %v4814_v48 = vrot.slane %v4707_v0, 5  ;;  %v4254_v53 = vshll.u32 %v4146_v20, 16  ;;  %v4464_v8 = vshrl.u32 %v4172_v50, 16  ;;  %vm4666_vm6 = vcmask 257248  }
 0x2ae   : > { %4051 = vrot.lane.b32.xlu2 %v3966_v39, %s6915_s18  ;;  %v3822_v59 = vpop.permute.xlu2 %3821  ;;  %2838 = vst.msk [vmem:[#allocation3 + $0x44] sm:$0xf] %vm10616_vm9, %v2759_v62  ;;  %v4242_v28 = vrot.slane %v4241_v19, 4  ;;  %v4451_v39 = vshrl.u32 %v4171_v58, 16  ;;  %vm10625_vm9 = vmmov %vm10621_vm1  ;;  %v3643_v18 = vld [vmem:[#allocation2 + $0x9c] sm:$0xe] }
 0x2af   : > { %3915 = vst.msk [vmem:[#allocation3 + $0xc] sm:$0xf] %vm3911_vm3, %v3822_v59  ;;  %v9455_v13 = vpop.permute.xlu0 %2762  ;;  %v4815_v56 = vsel %vm7050_vm10, %v4813_v2, %v4814_v48  ;;  %v4256_v42 = vrot.slane %v4254_v53, 5  ;;  %v4149_v2 = vld [vmem:[#allocation2 + $0x44] sm:$0x1] }
 0x2b0   : > { %3031 = vst.msk [vmem:[#allocation3 + $0x44] sm:$0xf] %vm10607_vm2, %v2952_v54  ;;  %v4244_v54 = vshll.u32 %v4145_v51, 16  ;;  %v4453_v62 = vrot.slane %v4451_v39, 4  ;;  %v4173_v51 = vld [vmem:[#allocation2 + $0xa4] sm:$0x1] }
 0x2b1   : > { %3592 = vst.msk [vmem:[#allocation3 + $0x44] sm:$0xf] %vm10617_vm12, %v3513_v41  ;;  %v4268_v39 = vshll.u32 %v4148_v21, 16  ;;  %v4278_v53 = vshll.u32 %v4149_v2, 16  ;;  %vm5217_vm2 = vcmask 1041408   ;;  %vm4105_vm12 = vcmask 224448  }
 0x2b2   : > { %4913 = vrot.lane.b32.xlu1 %v4808_v35, %s6917_s20  ;;  %v4246_v44 = vrot.slane %v4244_v54, 5  ;;  %v4456_v35 = vrot.slane %v4454_v63, 5  ;;  %v4470_v54 = vshll.u32 %v4173_v51, 16  ;;  %v4272_v63 = vshrl.u32 %v4148_v21, 16  ;;  %v4176_v21 = vld [vmem:[#allocation2 + $0xb0] sm:$0x1] }
 0x2b4   : > { %4610 = vrot.lane.b32.xlu0 %v4439_v7, %s6916_s19  ;;  %v4247_v29 = vsel %vm7087_vm13, %v4242_v28, %v4246_v44  ;;  %v3949_v7 = vld [vmem:[#allocation2 + $0x30] sm:$0xf]  ;;  %v4251_v26 = vor.u32 %v4250_v11, %v4246_v44  ;;  %v4457_v3 = vor.u32 %v4456_v35, %v4453_v62  ;;  %v4734_v28 = vld [vmem:[#allocation2 + $0xa4] sm:$0x1]  ;;  %v4274_v11 = vrot.slane %v4272_v63, 4 }
 0x2b5   : > { %v3511_v9 = vpop.permute.xlu1 %3510  ;;  %v9543_v35 = vld [vmem:[#allocation2 + $0x40] sm:$0xf] }
 0x2b6   : > { %4947 = vrot.lane.b32.xlu2 %v4868_v14, %s6917_s20  ;;  %v3828_v46 = vpop.permute.xlu2 %3827  ;;  %3591 = vst.msk [vmem:[#allocation3 + $0x40] sm:$0xf] %vm10619_vm14, %v3511_v9  ;;  %v4460_v14 = vshll.u32 %v4172_v50, 16  ;;  %v4252_v10 = vrot.slane %v4251_v26, 4  ;;  %v4458_v9 = vrot.slane %v4457_v3, 4  ;;  %vm5003_vm14 = vcmask 290048  }
 0x2b7   : > { %3918 = vst.msk [vmem:[#allocation3 + $0x18] sm:$0xf] %vm3911_vm3, %v3828_v46  ;;  %v3539_v5 = vpop.permute.xlu0 %3538  ;;  %v5072_v50 = vld [vmem:[%s10346_s3 + $0x10] sm:$0x3]  ;;  %v4710_v3 = vld [vmem:[#allocation2 + $0x44] sm:$0x1] }
 0x2b8   : > { %3605 = vst.msk [vmem:[#allocation3 + $0x78] sm:$0xf] %vm10620_vm5, %v3539_v5  ;;  %v4462_v23 = vrot.slane %v4460_v14, 5  ;;  %v4257_v40 = vsel %vm7087_vm13, %v4252_v10, %v4256_v42  ;;  %v4147_v5 = vld [vmem:[#allocation2 + $0x3c] sm:$0xf]  ;;  %v5162_v62 = vunpack.c.l.b16 %v5072_v50  ;;  %v4818_v14 = vrot.slane %v9543_v35, 5 }
 0x2b9   : > { %v4259_v31 = vshrl.u32 %v4147_v5, 16  ;;  %v4262_v57 = vshll.u32 %v4147_v5, 16  ;;  %v4280_v42 = vrot.slane %v4278_v53, 5  ;;  %v3970_v50 = vld [vmem:[#allocation2 + $0xac] sm:$0xf]  ;;  %vm5168_vm5 = vcmask 293888  }
 0x2ba   : > { %4049 = vrot.lane.b32.xlu1 %v3965_v22, %s6915_s18  ;;  %v3640_v22 = vld [vmem:[#allocation2 + $0x90] sm:$0xe]  ;;  %v4820_v51 = vrot.slane %v4818_v14, 4 }
 0x2bb   : > { %v6399_v55 = vrot.slane %v3640_v22, 9  ;;  %v4261_v33 = vrot.slane %v4259_v31, 4  ;;  %v4264_v58 = vrot.slane %v4262_v57, 5 }
 0x2bc   : > { %4949 = vrot.lane.b32.xlu0 %v4871_v6, %s6917_s20 }
 0x2bd   : > { %v3541_v41 = vpop.permute.xlu1 %3540  ;;  %v4265_v37 = vor.u32 %v4264_v58, %v4261_v33  ;;  %v4708_v33 = vld [vmem:[#allocation2 + $0x3c] sm:$0xe]  ;;  %v3969_v58 = vld [vmem:[#allocation2 + $0xa8] sm:$0xf] }
 0x2be   : > { %4019 = vrot.lane.b32.xlu2 %v3950_v49, %s6915_s18  ;;  %v3834_v61 = vpop.permute.xlu2 %3833  ;;  %3606 = vst.msk [vmem:[#allocation3 + $0x7c] sm:$0xf] %vm10621_vm1, %v3541_v41  ;;  %v4463_v49 = vsel %vm7087_vm13, %v4458_v9, %v4462_v23  ;;  %v4876_v41 = vrot.slane %v4874_v32, 4  ;;  %vm6118_vm1 = vcmask 60416  }
 0x2bf   : > { %3921 = vst.msk [vmem:[#allocation3 + $0x24] sm:$0xf] %vm3911_vm3, %v3834_v61  ;;  %v3818_v16 = vpop.permute.xlu0 %3817  ;;  %v4472_v61 = vrot.slane %v4470_v54, 5  ;;  %v4266_v20 = vrot.slane %v4265_v37, 4 }
 0x2c0   : > { %3913 = vst.msk [vmem:[#allocation3 + $0x4] sm:$0xf] %vm3911_vm3, %v3818_v16 }
 0x2c2   : > { %4612 = vrot.lane.b32.xlu1 %v4449_v24, %s6916_s19  ;;  %v4877_v24 = vrot.slane %v4734_v28, 5 }
 0x2c4   : > { %4578 = vrot.lane.b32.xlu0 %v4247_v29, %s6916_s19  ;;  %v3783_v29 = vsel %vm7050_vm10, %v6399_v55, %v3782_v27  ;;  %v4878_v60 = vsel %vm7050_vm10, %v4876_v41, %v4877_v24  ;;  %v4270_v27 = vrot.slane %v4268_v39, 5 }
 0x2c5   : > { %v2423_v45 = vpop.permute.xlu1 %2422 }
 0x2c6   : > { %4915 = vrot.lane.b32.xlu2 %v4812_v34, %s6917_s20  ;;  %v3840_v59 = vpop.permute.xlu2 %3839  ;;  %2500 = vst.msk [vmem:[#allocation3 + $0x4c] sm:$0xf] %vm10622_vm15, %v2423_v45  ;;  %v4275_v26 = vor.u32 %v4274_v11, %v4270_v27 }
 0x2c7   : > { %3924 = vst.msk [vmem:[#allocation3 + $0x30] sm:$0xf] %vm3911_vm3, %v3840_v59  ;;  %v3824_v36 = vpop.permute.xlu0 %3823 }
 0x2c8   : > { %2840 = vst.msk [vmem:[#allocation3 + $0x4c] sm:$0xf] %vm10623_vm11, %v9455_v13  ;;  %v4466_v13 = vrot.slane %v4464_v8, 4  ;;  %v6415_v8 = vrot.slane %v4732_v38, 9  ;;  %v4276_v10 = vrot.slane %v4275_v26, 4 }
 0x2c9   : > { %3033 = vst.msk [vmem:[#allocation3 + $0x4c] sm:$0xf] %vm10624_vm8, %v8051_v4  ;;  %v4736_v38 = vld [vmem:[#allocation2 + $0xac] sm:$0xf] }
 0x2ca   : > { %4017 = vrot.lane.b32.xlu1 %v3949_v7, %s6915_s18  ;;  %3916 = vst.msk [vmem:[#allocation3 + $0x10] sm:$0xf] %vm3911_vm3, %v3824_v36  ;;  %v4467_v19 = vor.u32 %v4466_v13, %v4462_v23  ;;  %v3951_v7 = vld [vmem:[#allocation2 + $0x3c] sm:$0xf]  ;;  %v5165_v36 = vpack.c.b16 %v5162_v62, %v5162_v62  ;;  %v6579_v23 = vld [vmem:[%s10346_s3 + $0x8] sm:$0xff]  ;;  %v4875_v22 = vsel %vm7050_vm10, %v6415_v8, %v4874_v32  ;;  %v6400_v32 = vrot.slane %v3643_v18, 9 }
 0x2cb   : > { %3594 = vst.msk [vmem:[#allocation3 + $0x4c] sm:$0xf] %vm10625_vm9, %v8630_v47  ;;  %v3967_v47 = vld [vmem:[#allocation2 + $0x9c] sm:$0xf]  ;;  %v4281_v5 = vsel %vm7087_vm13, %v4276_v10, %v4280_v42 }
 0x2cc   : > { %4917 = vrot.lane.b32.xlu0 %v4815_v56, %s6917_s20  ;;  %v4468_v44 = vrot.slane %v4467_v19, 4  ;;  %v4271_v56 = vsel %vm7087_vm13, %v4266_v20, %v4270_v27 }
 0x2cd   : > { %v3820_v4 = vpop.permute.xlu1 %3819 }
 0x2ce   : > { %3861 = vrot.lane.b32.xlu2 %v3786_v43, %s6914_s17  ;;  %v3850_v46 = vpop.permute.xlu2 %3849  ;;  %3914 = vst.msk [vmem:[#allocation3 + $0x8] sm:$0xf] %vm3911_vm3, %v3820_v4  ;;  %v4473_v34 = vsel %vm7087_vm13, %v4468_v44, %v4472_v61  ;;  %v5219_v43 = vsel %vm5217_vm2, %v5165_v36, 0  ;;  %v4175_v4 = vld [vmem:[#allocation2 + $0xac] sm:$0xf] }
 0x2cf   : > { %3929 = vst.msk [vmem:[#allocation3 + $0x44] sm:$0xf] %vm3911_vm3, %v3850_v46  ;;  %v3830_v6 = vpop.permute.xlu0 %3829  ;;  %6581 = vmatpush.bf16.msra.mxu2 %v5219_v43  ;;  %5226 = vmatpush.bf16.msra.mxu1 %v5219_v43  ;;  %v4821_v46 = vrot.slane %v4710_v3, 5  ;;  %v4484_v54 = vshll.u32 %v4175_v4, 16  ;;  %v3952_v61 = vld [vmem:[#allocation2 + $0x40] sm:$0xf] }
 0x2d0   : > { %3919 = vst.msk [vmem:[#allocation3 + $0x1c] sm:$0xf] %vm3911_vm3, %v3830_v6  ;;  %v6578_v6 = vld [vmem:[%s10346_s3] sm:$0xff] }
 0x2d1   : > { %v4822_v19 = vsel %vm7050_vm10, %v4820_v51, %v4821_v46  ;;  %v9575_v55 = vrot.slane %v4484_v54, 5  ;;  %v3953_v46 = vld [vmem:[#allocation2 + $0x48] sm:$0xf] }
 0x2d2   : > { %4580 = vrot.lane.b32.xlu1 %v4257_v40, %s6916_s19 }
 0x2d3   : > { %6582 = vmatpush.bf16.msra.mxu2 %v6579_v23  ;;  %5227 = vmatpush.bf16.msra.mxu1 %v6579_v23  ;;  %v4152_v23 = vld [vmem:[#allocation2 + $0x50] sm:$0x1] }
 0x2d4   : > { %4053 = vrot.lane.b32.xlu0 %v3967_v47, %s6915_s18  ;;  %v3644_v47 = vld [vmem:[#allocation2 + $0xa0] sm:$0xf] }
 0x2d5   : > { %v3826_v16 = vpop.permute.xlu1 %3825  ;;  %v3789_v31 = vrot.slane %v3644_v47, 5 }
 0x2d6   : > { %4614 = vrot.lane.b32.xlu2 %v4463_v49, %s6916_s19  ;;  %v9521_v52 = vpop.permute.xlu2 %4602  ;;  %3917 = vst.msk [vmem:[#allocation3 + $0x14] sm:$0xf] %vm3911_vm3, %v3826_v16  ;;  %v4488_v49 = vshrl.u32 %v4175_v4, 16 }
 0x2d7   : > { %v3836_v0 = vpop.permute.xlu0 %3835  ;;  %6583 = vmatpush.bf16.msra.mxu2 %v6578_v6  ;;  %5228 = vmatpush.bf16.msra.mxu1 %v6578_v6  ;;  %v3790_v24 = vsel %vm7050_vm10, %v6400_v32, %v3789_v31 }
 0x2d8   : > { %3922 = vst.msk [vmem:[#allocation3 + $0x28] sm:$0xf] %vm3911_vm3, %v3836_v0  ;;  %v4490_v28 = vrot.slane %v4488_v49, 4  ;;  %v6407_v0 = vrot.slane %v4708_v33, 9 }
 0x2da   : > { %3859 = vrot.lane.b32.xlu1 %v3783_v29, %s6914_s17  ;;  %v4491_v16 = vor.u32 %v4490_v28, %v9575_v55  ;;  %v4494_v29 = vshll.u32 %v4176_v21, 16  ;;  %v4819_v27 = vsel %vm7050_vm10, %v6407_v0, %v4818_v14  ;;  %v4881_v14 = vrot.slane %v4736_v38, 5  ;;  %v3954_v28 = vld [vmem:[#allocation2 + $0x4c] sm:$0xf] }
 0x2db   : > { %v4712_v21 = vld [vmem:[#allocation2 + $0x4c] sm:$0xf] }
 0x2dc   : > { %4616 = vrot.lane.b32.xlu0 %v4473_v34, %s6916_s19  ;;  %v4174_v34 = vld [vmem:[#allocation2 + $0xa8] sm:$0xf]  ;;  %v4492_v63 = vrot.slane %v4491_v16, 4  ;;  %v4883_v33 = vrot.slane %v4881_v14, 4 }
 0x2dd   : > { %v3832_v59 = vpop.permute.xlu1 %3831  ;;  %v4475_v11 = vshrl.u32 %v4174_v34, 16  ;;  %v4478_v2 = vshll.u32 %v4174_v34, 16  ;;  %v4825_v34 = vrot.slane %v4712_v21, 5 }
 0x2de   : > { %4953 = vrot.lane.b32.xlu2 %v4878_v60, %s6917_s20  ;;  %v9538_v48 = vpop.permute.xlu2 %4941  ;;  %3920 = vst.msk [vmem:[#allocation3 + $0x20] sm:$0xf] %vm3911_vm3, %v3832_v59  ;;  %v4496_v60 = vrot.slane %v4494_v29, 5  ;;  %v3645_v59 = vld [vmem:[#allocation2 + $0xa4] sm:$0x1] }
 0x2df   : > { %v3842_v45 = vpop.permute.xlu0 %3841  ;;  %v3792_v26 = vrot.slane %v3645_v59, 5  ;;  %v4477_v53 = vrot.slane %v4475_v11, 4  ;;  %v4480_v36 = vrot.slane %v4478_v2, 5  ;;  %v3648_v59 = vld [vmem:[#allocation2 + $0xb0] sm:$0x1] }
 0x2e0   : > { %3925 = vst.msk [vmem:[#allocation3 + $0x34] sm:$0xf] %vm3911_vm3, %v3842_v45  ;;  %v4497_v62 = vsel %vm7087_vm13, %v4492_v63, %v4496_v60  ;;  %v4177_v63 = vld [vmem:[#allocation2 + $0xb4] sm:$0xf] }
 0x2e1   : > { %v4481_v42 = vor.u32 %v4480_v36, %v4477_v53 }
 0x2e2   : > { %4055 = vrot.lane.b32.xlu1 %v3968_v25, %s6915_s18  ;;  %v4735_v25 = vld [vmem:[#allocation2 + $0xa8] sm:$0xe] }
 0x2e3   : > { %v4482_v4 = vrot.slane %v4481_v42, 4 }
 0x2e4   : > { %4021 = vrot.lane.b32.xlu0 %v3951_v7, %s6915_s18  ;;  %v3791_v7 = vrot.slane %v3789_v31, 4 }
 0x2e5   : > { %v3838_v9 = vpop.permute.xlu1 %3837  ;;  %v4487_v54 = vsel %vm7087_vm13, %v4482_v4, %v9575_v55 }
 0x2e6   : > { %4582 = vrot.lane.b32.xlu2 %v4271_v56, %s6916_s19  ;;  %v9556_v13 = vpop.permute.xlu2 %4570  ;;  %3923 = vst.msk [vmem:[#allocation3 + $0x2c] sm:$0xf] %vm3911_vm3, %v3838_v9  ;;  %v6416_v56 = vrot.slane %v4735_v25, 9  ;;  %v3793_v10 = vsel %vm7050_vm10, %v3791_v7, %v3792_v26  ;;  %v4178_v26 = vld [vmem:[#allocation2 + $0xb8] sm:$0xf] }
 0x2e7   : > { %v4042_v40 = vpop.permute.xlu0 %4041 }
 0x2ea   : > { %4951 = vrot.lane.b32.xlu1 %v4875_v22, %s6917_s20  ;;  %v4302_v22 = vshll.u32 %v4152_v23, 16  ;;  %v4508_v23 = vshll.u32 %v4178_v26, 16 }
 0x2ec   : > { %4584 = vrot.lane.b32.xlu0 %v4281_v5, %s6916_s19  ;;  %v4304_v18 = vrot.slane %v4302_v22, 5  ;;  %v4510_v4 = vrot.slane %v4508_v23, 5 }
 0x2ed   : > { %v3848_v44 = vpop.permute.xlu1 %3847 }
 0x2ee   : > { %4921 = vrot.lane.b32.xlu2 %v4822_v19, %s6917_s20  ;;  %v9573_v57 = vpop.permute.xlu2 %4909  ;;  %3928 = vst.msk [vmem:[#allocation3 + $0x40] sm:$0xf] %vm3911_vm3, %v3848_v44  ;;  %v4737_v44 = vld [vmem:[#allocation2 + $0xb0] sm:$0x1] }
 0x2ef   : > { %v4605_v41 = vpop.permute.xlu0 %4604  ;;  %4122 = vst.msk [vmem:[#allocation3 + $0x40] sm:$0xf] %vm4105_vm12, %v4042_v40  ;;  %v4150_v40 = vld [vmem:[#allocation2 + $0x48] sm:$0xf] }
 0x2f0   : > { %4683 = vst.msk [vmem:[#allocation3 + $0x40] sm:$0xf] %vm4666_vm6, %v9521_v52  ;;  %v4151_v52 = vld [vmem:[#allocation2 + $0x4c] sm:$0xf]  ;;  %v4283_v49 = vshrl.u32 %v4150_v40, 16  ;;  %v4286_v32 = vshll.u32 %v4150_v40, 16 }
 0x2f1   : > { %v4292_v35 = vshll.u32 %v4151_v52, 16  ;;  %v4296_v45 = vshrl.u32 %v4151_v52, 16  ;;  %v4153_v40 = vld [vmem:[#allocation2 + $0x54] sm:$0xf] }
 0x2f2   : > { %4023 = vrot.lane.b32.xlu1 %v3952_v61, %s6915_s18  ;;  %v4711_v61 = vld [vmem:[#allocation2 + $0x48] sm:$0xe]  ;;  %v4285_v16 = vrot.slane %v4283_v49, 4  ;;  %v4288_v29 = vrot.slane %v4286_v32, 5  ;;  %v4307_v32 = vshrl.u32 %v4153_v40, 16 }
 0x2f3   : > { %v4298_v43 = vrot.slane %v4296_v45, 4  ;;  %v6408_v0 = vrot.slane %v4711_v61, 9 }
 0x2f4   : > { %3863 = vrot.lane.b32.xlu0 %v3790_v24, %s6914_s17  ;;  %v3647_v24 = vld [vmem:[#allocation2 + $0xac] sm:$0xf]  ;;  %v4289_v2 = vor.u32 %v4288_v29, %v4285_v16 }
 0x2f5   : > { %v4044_v37 = vpop.permute.xlu1 %4043 }
 0x2f6   : > { %4057 = vrot.lane.b32.xlu2 %v3969_v58, %s6915_s18  ;;  %v9587_v39 = vpop.permute.xlu2 %4045  ;;  %4123 = vst.msk [vmem:[#allocation3 + $0x44] sm:$0xf] %vm4105_vm12, %v4044_v37  ;;  %v4884_v58 = vrot.slane %v4737_v44, 5  ;;  %v3796_v37 = vrot.slane %v3647_v24, 5  ;;  %v4290_v38 = vrot.slane %v4289_v2, 4  ;;  %v4309_v24 = vrot.slane %v4307_v32, 4 }
 0x2f7   : > { %v4010_v20 = vpop.permute.xlu0 %4009  ;;  %4684 = vst.msk [vmem:[#allocation3 + $0x44] sm:$0xf] %vm4666_vm6, %v4605_v41  ;;  %v3646_v41 = vld [vmem:[#allocation2 + $0xa8] sm:$0xe] }
 0x2f8   : > { %5021 = vst.msk [vmem:[#allocation3 + $0x44] sm:$0xf] %vm5003_vm14, %v9538_v48  ;;  %v9605_v48 = vrot.slane %v4292_v35, 5  ;;  %v6401_v60 = vrot.slane %v3646_v41, 9  ;;  %v4885_v11 = vsel %vm7050_vm10, %v4883_v33, %v4884_v58  ;;  %v3799_v35 = vrot.slane %v3648_v59, 5 }
 0x2f9   : > { %4106 = vst.msk [vmem:[#allocation3] sm:$0xf] %vm4105_vm12, %v4010_v20  ;;  %v4499_v20 = vshrl.u32 %v4177_v63, 16  ;;  %v4179_v41 = vld [vmem:[#allocation2 + $0xbc] sm:$0x1] }
 0x2fa   : > { %4919 = vrot.lane.b32.xlu1 %v4819_v27, %s6917_s20  ;;  %4667 = vst.msk [vmem:[#allocation3] sm:$0xf] %vm4666_vm6, %v9556_v13  ;;  %v4882_v13 = vsel %vm7050_vm10, %v6416_v56, %v4881_v14  ;;  %v4299_v9 = vor.u32 %v4298_v43, %v9605_v48  ;;  %v3797_v25 = vsel %vm7050_vm10, %v6401_v60, %v3796_v37  ;;  %v4154_v58 = vld [vmem:[#allocation2 + $0x58] sm:$0xf] }
 0x2fb   : > { %v4501_v45 = vrot.slane %v4499_v20, 4  ;;  %v4295_v14 = vsel %vm7087_vm13, %v4290_v38, %v9605_v48  ;;  %v3972_v48 = vld [vmem:[#allocation2 + $0xb8] sm:$0xf] }
 0x2fc   : > { %4059 = vrot.lane.b32.xlu0 %v3970_v50, %s6915_s18  ;;  %v4300_v6 = vrot.slane %v4299_v9, 4  ;;  %v4502_v50 = vshll.u32 %v4177_v63, 16  ;;  %v4739_v9 = vld [vmem:[#allocation2 + $0xb8] sm:$0xf]  ;;  %v4518_v63 = vshll.u32 %v4179_v41, 16 }
 0x2fd   : > { %v4940_v3 = vpop.permute.xlu1 %4939  ;;  %v4715_v20 = vld [vmem:[#allocation2 + $0x58] sm:$0xf] }
 0x2fe   : > { %4620 = vrot.lane.b32.xlu2 %v4497_v62, %s6916_s19  ;;  %v9603_v8 = vpop.permute.xlu2 %4608  ;;  %5020 = vst.msk [vmem:[#allocation3 + $0x40] sm:$0xf] %vm5003_vm14, %v4940_v3  ;;  %v4305_v55 = vsel %vm7087_vm13, %v4300_v6, %v4304_v18  ;;  %v3798_v62 = vrot.slane %v3796_v37, 4  ;;  %v4504_v7 = vrot.slane %v4502_v50, 5  ;;  %v4888_v18 = vrot.slane %v4739_v9, 5 }
 0x2ff   : > { %v4573_v51 = vpop.permute.xlu0 %4572  ;;  %v4155_v9 = vld [vmem:[#allocation2 + $0x5c] sm:$0x1] }
 0x300   : > { %v3800_v3 = vsel %vm7050_vm10, %v3798_v62, %v3799_v35  ;;  %v4505_v42 = vor.u32 %v4504_v7, %v4501_v45  ;;  %v4890_v21 = vrot.slane %v4888_v18, 4  ;;  %v4832_v62 = vrot.slane %v4715_v20, 5  ;;  %v9683_v35 = vld [vmem:[#allocation2 + $0xb8] sm:$0xf] }
 0x302   : > { %3865 = vrot.lane.b32.xlu1 %v3793_v10, %s6914_s17  ;;  %v4713_v10 = vld [vmem:[#allocation2 + $0x50] sm:$0x1]  ;;  %v4506_v22 = vrot.slane %v4505_v42, 4 }
 0x304   : > { %4955 = vrot.lane.b32.xlu0 %v4882_v13, %s6917_s20  ;;  %v4828_v13 = vrot.slane %v4713_v10, 5  ;;  %v4511_v49 = vsel %vm7087_vm13, %v4506_v22, %v4510_v4  ;;  %v3803_v10 = vrot.slane %v9683_v35, 5  ;;  %v4181_v22 = vld [vmem:[#allocation2 + $0xc4] sm:$0xf] }
 0x305   : > { %v4012_v47 = vpop.permute.xlu1 %4011  ;;  %v6570_v19 = vld [vmem:[#allocation3 + $0x40] sm:$0xff] }
 0x306   : > { %4025 = vrot.lane.b32.xlu2 %v3953_v46, %s6915_s18  ;;  %v4014_v5 = vpop.permute.xlu2 %4013  ;;  %4107 = vst.msk [vmem:[#allocation3 + $0x4] sm:$0xf] %vm4105_vm12, %v4012_v47  ;;  %6500 = vmatmul.msk.bf16.vlgmr.msra.gmra.mxu2 %vm5168_vm5, %v6570_v19  ;;  %v4738_v46 = vld [vmem:[#allocation2 + $0xb4] sm:$0xe] }
 0x307   : > { %4108 = vst.msk [vmem:[#allocation3 + $0x8] sm:$0xf] %vm4105_vm12, %v4014_v5  ;;  %v3852_v31 = vpop.permute.xlu0 %3851  ;;  %v6417_v6 = vrot.slane %v4738_v46, 9 }
 0x308   : > { %4668 = vst.msk [vmem:[#allocation3 + $0x4] sm:$0xf] %vm4666_vm6, %v4573_v51  ;;  %v4827_v51 = vrot.slane %v4825_v34, 4 }
 0x309   : > { %5005 = vst.msk [vmem:[#allocation3 + $0x4] sm:$0xf] %vm5003_vm14, %v9573_v57  ;;  %v4889_v44 = vsel %vm7050_vm10, %v6417_v6, %v4888_v18 }
 0x30a   : > { %4618 = vrot.lane.b32.xlu1 %v4487_v54, %s6916_s19  ;;  %3930 = vst.msk [vmem:[#allocation3 + $0x48] sm:$0xf] %vm3911_vm3, %v3852_v31  ;;  %v4829_v19 = vsel %vm7050_vm10, %v4827_v51, %v4828_v13  ;;  %v4512_v54 = vshrl.u32 %v4178_v26, 16  ;;  %v4310_v31 = vshll.u32 %v4153_v40, 16  ;;  %v4834_v13 = vrot.slane %v4832_v62, 4 }
 0x30b   : > { %4124 = vst.msk [vmem:[#allocation3 + $0x48] sm:$0xf] %vm4105_vm12, %v9587_v39  ;;  %v4826_v39 = vsel %vm7050_vm10, %v6408_v0, %v4825_v34  ;;  %v3971_v0 = vld [vmem:[#allocation2 + $0xb4] sm:$0xf]  ;;  %v3805_v40 = vrot.slane %v3803_v10, 4 }
 0x30c   : > { %4027 = vrot.lane.b32.xlu0 %v3954_v28, %s6915_s18  ;;  %v4740_v28 = vld [vmem:[#allocation2 + $0xbc] sm:$0x1]  ;;  %v4514_v61 = vrot.slane %v4512_v54, 4  ;;  %v4312_v33 = vrot.slane %v4310_v31, 5  ;;  %v3955_v54 = vld [vmem:[#allocation2 + $0x54] sm:$0xf] }
 0x30d   : > { %v4908_v27 = vpop.permute.xlu1 %4907  ;;  %v4532_v31 = vshll.u32 %v4181_v22, 16 }
 0x30e   : > { %4588 = vrot.lane.b32.xlu2 %v4305_v55, %s6916_s19  ;;  %v9633_v57 = vpop.permute.xlu2 %4576  ;;  %5004 = vst.msk [vmem:[#allocation3] sm:$0xf] %vm5003_vm14, %v4908_v27  ;;  %v4891_v55 = vrot.slane %v4740_v28, 5  ;;  %v4515_v34 = vor.u32 %v4514_v61, %v4510_v4  ;;  %v4313_v37 = vor.u32 %v4312_v33, %v4309_v24  ;;  %v4316_v27 = vshll.u32 %v4154_v58, 16  ;;  %v4182_v33 = vld [vmem:[#allocation2 + $0xc8] sm:$0x1] }
 0x30f   : > { %v4048_v52 = vpop.permute.xlu0 %4047  ;;  %v4536_v28 = vshrl.u32 %v4181_v22, 16  ;;  %v4534_v41 = vrot.slane %v4532_v31, 5 }
 0x310   : > { %v4516_v2 = vrot.slane %v4515_v34, 4  ;;  %v4314_v50 = vrot.slane %v4313_v37, 4  ;;  %v4318_v59 = vrot.slane %v4316_v27, 5  ;;  %v4156_v34 = vld [vmem:[#allocation2 + $0x60] sm:$0xf] }
 0x311   : > { %v4538_v24 = vrot.slane %v4536_v28, 4  ;;  %v9717_v37 = vld [vmem:[#allocation2 + $0xc4] sm:$0xf] }
 0x312   : > { %4957 = vrot.lane.b32.xlu1 %v4885_v11, %s6917_s20  ;;  %v3956_v11 = vld [vmem:[#allocation2 + $0x58] sm:$0xf]  ;;  %v4895_v20 = vrot.slane %v9717_v37, 5  ;;  %v1812_v37 = vld [vmem:[#allocation2 + $0xcc] sm:$0x1] }
 0x314   : > { %4923 = vrot.lane.b32.xlu0 %v4826_v39, %s6917_s20  ;;  %v4714_v39 = vld [vmem:[#allocation2 + $0x54] sm:$0xe] }
 0x315   : > { %v3854_v36 = vpop.permute.xlu1 %3853  ;;  %v6562_v56 = vld [vmem:[#allocation3] sm:$0xff]  ;;  %v6409_v38 = vrot.slane %v4714_v39, 9 }
 0x316   : > { %3867 = vrot.lane.b32.xlu2 %v3797_v25, %s6914_s17  ;;  %v3856_v53 = vpop.permute.xlu2 %3855  ;;  %3931 = vst.msk [vmem:[#allocation3 + $0x4c] sm:$0xf] %vm3911_vm3, %v3854_v36  ;;  %6492 = vmatmul.msk.bf16.vlgmr.msra.gmra.mxu1 %vm5168_vm5, %v6562_v56  ;;  %v4180_v36 = vld [vmem:[#allocation2 + $0xc0] sm:$0xf] }
 0x317   : > { %3932 = vst.msk [vmem:[#allocation3 + $0x50] sm:$0xf] %vm3911_vm3, %v3856_v53  ;;  %v4944_v43 = vpop.permute.xlu0 %4943  ;;  %v4320_v53 = vshrl.u32 %v4154_v58, 16  ;;  %v4523_v42 = vshrl.u32 %v4180_v36, 16  ;;  %v4526_v23 = vshll.u32 %v4180_v36, 16 }
 0x318   : > { %4125 = vst.msk [vmem:[#allocation3 + $0x4c] sm:$0xf] %vm4105_vm12, %v4048_v52  ;;  %v4520_v52 = vrot.slane %v4518_v63, 5 }
 0x319   : > { %4686 = vst.msk [vmem:[#allocation3 + $0x4c] sm:$0xf] %vm4666_vm6, %v9603_v8  ;;  %v4322_v51 = vrot.slane %v4320_v53, 4  ;;  %v4525_v18 = vrot.slane %v4523_v42, 4  ;;  %v4897_v53 = vrot.slane %v4895_v20, 4 }
 0x31a   : > { %4586 = vrot.lane.b32.xlu1 %v4295_v14, %s6916_s19  ;;  %v4521_v26 = vsel %vm7087_vm13, %v4516_v2, %v4520_v52  ;;  %v4319_v14 = vsel %vm7087_vm13, %v4314_v50, %v4318_v59  ;;  %v4539_v2 = vor.u32 %v4538_v24, %v4534_v41  ;;  %v4542_v52 = vshll.u32 %v4182_v33, 16 }
 0x31b   : > { %v4331_v50 = vshrl.u32 %v4156_v34, 16 }
 0x31c   : > { %3869 = vrot.lane.b32.xlu0 %v3800_v3, %s6914_s17  ;;  %v4833_v3 = vsel %vm7050_vm10, %v6409_v38, %v4832_v62  ;;  %v4743_v38 = vld [vmem:[#allocation2 + $0xc8] sm:$0x1]  ;;  %v4540_v62 = vrot.slane %v4539_v2, 4 }
 0x31d   : > { %v4607_v47 = vpop.permute.xlu1 %4606  ;;  %v4898_v36 = vrot.slane %v4743_v38, 5 }
 0x31e   : > { %4063 = vrot.lane.b32.xlu2 %v3972_v48, %s6915_s18  ;;  %v9659_v5 = vpop.permute.xlu2 %4051  ;;  %4685 = vst.msk [vmem:[#allocation3 + $0x48] sm:$0xf] %vm4666_vm6, %v4607_v47  ;;  %v3651_v48 = vld [vmem:[#allocation2 + $0xbc] sm:$0x1]  ;;  %v4528_v47 = vrot.slane %v4526_v23, 5 }
 0x31f   : > { %v4016_v8 = vpop.permute.xlu0 %4015  ;;  %5022 = vst.msk [vmem:[#allocation3 + $0x48] sm:$0xf] %vm5003_vm14, %v4944_v43  ;;  %v4716_v43 = vld [vmem:[#allocation2 + $0x5c] sm:$0x1]  ;;  %v3806_v6 = vrot.slane %v3651_v48, 5  ;;  %v4899_v35 = vsel %vm7050_vm10, %v4897_v53, %v4898_v36 }
 0x320   : > { %4109 = vst.msk [vmem:[#allocation3 + $0xc] sm:$0xf] %vm4105_vm12, %v4016_v8  ;;  %v4835_v46 = vrot.slane %v4716_v43, 5  ;;  %v4323_v8 = vor.u32 %v4322_v51, %v4318_v59  ;;  %v4529_v61 = vor.u32 %v4528_v47, %v4525_v18  ;;  %v4334_v59 = vshll.u32 %v4156_v34, 16  ;;  %v3957_v18 = vld [vmem:[#allocation2 + $0x60] sm:$0xf] }
 0x321   : > { %4670 = vst.msk [vmem:[#allocation3 + $0xc] sm:$0xf] %vm4666_vm6, %v9633_v57  ;;  %v4892_v57 = vsel %vm7050_vm10, %v4890_v21, %v4891_v55  ;;  %v9747_v47 = vld [vmem:[#allocation2 + $0x64] sm:$0xf]  ;;  %v3976_v36 = vld [vmem:[#allocation2 + $0xd0] sm:$0xf] }
 0x322   : > { %4925 = vrot.lane.b32.xlu1 %v4829_v19, %s6917_s20  ;;  %v4836_v32 = vsel %vm7050_vm10, %v4834_v13, %v4835_v46  ;;  %v4324_v21 = vrot.slane %v4323_v8, 4  ;;  %v4158_v46 = vld [vmem:[#allocation2 + $0x68] sm:$0x1]  ;;  %v4741_v8 = vld [vmem:[#allocation2 + $0xc0] sm:$0xe]  ;;  %v4839_v31 = vrot.slane %v9747_v47, 5 }
 0x323   : > { %v6418_v28 = vrot.slane %v4741_v8, 9  ;;  %v3653_v34 = vld [vmem:[#allocation2 + $0xc4] sm:$0xf] }
 0x324   : > { %4622 = vrot.lane.b32.xlu0 %v4511_v49, %s6916_s19 }
 0x325   : > { %v4946_v29 = vpop.permute.xlu1 %4945 }
 0x326   : > { %4959 = vrot.lane.b32.xlu2 %v4889_v44, %s6917_s20  ;;  %v9675_v16 = vpop.permute.xlu2 %4947  ;;  %5023 = vst.msk [vmem:[#allocation3 + $0x4c] sm:$0xf] %vm5003_vm14, %v4946_v29  ;;  %v3807_v44 = vsel %vm7050_vm10, %v3805_v40, %v3806_v6  ;;  %v4530_v29 = vrot.slane %v4529_v61, 4  ;;  %v3974_v6 = vld [vmem:[#allocation2 + $0xc4] sm:$0xf] }
 0x327   : > { %v4912_v60 = vpop.permute.xlu0 %4911 }
 0x328   : > { %v4535_v39 = vsel %vm7087_vm13, %v4530_v29, %v4534_v41  ;;  %v4841_v41 = vrot.slane %v4839_v31, 4 }
 0x32a   : > { %4061 = vrot.lane.b32.xlu1 %v3971_v0, %s6915_s18  ;;  %v3649_v0 = vld [vmem:[#allocation2 + $0xb4] sm:$0xe] }
 0x32c   : > { %4961 = vrot.lane.b32.xlu0 %v4892_v57, %s6917_s20 }
 0x32d   : > { %v4575_v45 = vpop.permute.xlu1 %4574  ;;  %v6571_v7 = vld [vmem:[#allocation3 + $0x48] sm:$0xff] }
 0x32e   : > { %4031 = vrot.lane.b32.xlu2 %v3956_v11, %s6915_s18  ;;  %v4020_v25 = vpop.permute.xlu2 %4019  ;;  %4669 = vst.msk [vmem:[#allocation3 + $0x8] sm:$0xf] %vm4666_vm6, %v4575_v45  ;;  %6501 = vmatmul.msk.bf16.gmra.mxu2 %vm5168_vm5, %v6571_v7  ;;  %v3973_v11 = vld [vmem:[#allocation2 + $0xc0] sm:$0xf]  ;;  %v4544_v45 = vrot.slane %v4542_v52, 5 }
 0x32f   : > { %4111 = vst.msk [vmem:[#allocation3 + $0x14] sm:$0xf] %vm4105_vm12, %v4020_v25  ;;  %v3858_v56 = vpop.permute.xlu0 %3857  ;;  %v6402_v25 = vrot.slane %v3649_v0, 9  ;;  %v4157_v7 = vld [vmem:[#allocation2 + $0x64] sm:$0xf] }
 0x330   : > { %5006 = vst.msk [vmem:[#allocation3 + $0x8] sm:$0xf] %vm5003_vm14, %v4912_v60  ;;  %v4545_v42 = vsel %vm7087_vm13, %v4540_v62, %v4544_v45  ;;  %v4340_v23 = vshll.u32 %v4157_v7, 16  ;;  %v4344_v48 = vshrl.u32 %v4157_v7, 16  ;;  %v3652_v0 = vld [vmem:[#allocation2 + $0xc0] sm:$0xe] }
 0x331   : > { %3933 = vst.msk [vmem:[#allocation3 + $0x54] sm:$0xf] %vm3911_vm3, %v3858_v56  ;;  %v4333_v56 = vrot.slane %v4331_v50, 4  ;;  %v3804_v43 = vsel %vm7050_vm10, %v6402_v25, %v3803_v10  ;;  %v3958_v52 = vld [vmem:[#allocation2 + $0x64] sm:$0xf] }
 0x332   : > { %4624 = vrot.lane.b32.xlu1 %v4521_v26, %s6916_s19  ;;  %4127 = vst.msk [vmem:[#allocation3 + $0x54] sm:$0xf] %vm4105_vm12, %v9659_v5  ;;  %v4326_v5 = vshll.u32 %v4155_v9, 16  ;;  %v4342_v10 = vrot.slane %v4340_v23, 5  ;;  %v4346_v13 = vrot.slane %v4344_v48, 4 }
 0x333   : > { %v1867_v25 = vld [vmem:[#allocation2 + $0xd4] sm:$0x1] }
 0x334   : > { %4590 = vrot.lane.b32.xlu0 %v4319_v14, %s6916_s19  ;;  %v4328_v55 = vrot.slane %v4326_v5, 5  ;;  %v4347_v5 = vor.u32 %v4346_v13, %v4342_v10  ;;  %v1868_v38 = vsel %vm7015_vm4, 0, %v1867_v25 }
 0x335   : > { %v4914_v19 = vpop.permute.xlu1 %4913  ;;  %1869 = vst [vmem:[#allocation2 + $0xd4] sm:$0x1] %v1868_v38  ;;  %v3628_v38 = vld [vmem:[#allocation2 + $0x60] sm:$0xe] }
 0x336   : > { %4927 = vrot.lane.b32.xlu2 %v4833_v3, %s6917_s20  ;;  %v9702_v4 = vpop.permute.xlu2 %4915  ;;  %5007 = vst.msk [vmem:[#allocation3 + $0xc] sm:$0xf] %vm5003_vm14, %v4914_v19  ;;  %v4329_v57 = vsel %vm7087_vm13, %v4324_v21, %v4328_v55  ;;  %v4348_v61 = vrot.slane %v4347_v5, 4 }
 0x337   : > { %v4611_v49 = vpop.permute.xlu0 %4610 }
 0x33a   : > { %4029 = vrot.lane.b32.xlu1 %v3955_v54, %s6915_s18 }
 0x33c   : > { %4929 = vrot.lane.b32.xlu0 %v4836_v32, %s6917_s20 }
 0x33d   : > { %v4050_v63 = vpop.permute.xlu1 %4049  ;;  %v6563_v60 = vld [vmem:[#allocation3 + $0x8] sm:$0xff] }
 0x33e   : > { %3873 = vrot.lane.b32.xlu2 %v3807_v44, %s6914_s17  ;;  %v3862_v58 = vpop.permute.xlu2 %3861  ;;  %4126 = vst.msk [vmem:[#allocation3 + $0x50] sm:$0xf] %vm4105_vm12, %v4050_v63  ;;  %6493 = vmatmul.msk.bf16.gmra.mxu1 %vm5168_vm5, %v6563_v60  ;;  %v4719_v44 = vld [vmem:[#allocation2 + $0x68] sm:$0x1]  ;;  %v6403_v60 = vrot.slane %v3652_v0, 9 }
 0x33f   : > { %3935 = vst.msk [vmem:[#allocation3 + $0x5c] sm:$0xf] %vm3911_vm3, %v3862_v58  ;;  %v4950_v27 = vpop.permute.xlu0 %4949  ;;  %v4842_v24 = vrot.slane %v4719_v44, 5 }
 0x340   : > { %4687 = vst.msk [vmem:[#allocation3 + $0x50] sm:$0xf] %vm4666_vm6, %v4611_v49  ;;  %v4350_v49 = vshll.u32 %v4158_v46, 16 }
 0x341   : > { %5024 = vst.msk [vmem:[#allocation3 + $0x50] sm:$0xf] %vm5003_vm14, %v9675_v16  ;;  %v4336_v16 = vrot.slane %v4334_v59, 5  ;;  %v4843_v63 = vsel %vm7050_vm10, %v4841_v41, %v4842_v24 }
 0x342   : > { %4592 = vrot.lane.b32.xlu1 %v4329_v57, %s6916_s19  ;;  %v4352_v21 = vrot.slane %v4350_v49, 5  ;;  %v3810_v57 = vrot.slane %v3653_v34, 5 }
 0x343   : > { %v4337_v51 = vor.u32 %v4336_v16, %v4333_v56  ;;  %v4184_v56 = vld [vmem:[#allocation2 + $0xd0] sm:$0xf] }
 0x344   : > { %4065 = vrot.lane.b32.xlu0 %v3973_v11, %s6915_s18  ;;  %v4353_v29 = vsel %vm7087_vm13, %v4348_v61, %v4352_v21  ;;  %v3811_v59 = vsel %vm7050_vm10, %v6403_v60, %v3810_v57  ;;  %v4560_v17 = vshrl.u32 %v4184_v56, 16  ;;  %v3812_v48 = vrot.slane %v3810_v57, 4  ;;  %v9820_v57 = vld [vmem:[#allocation2 + $0x70] sm:$0xf] }
 0x345   : > { %v4613_v14 = vpop.permute.xlu1 %4612  ;;  %v4338_v22 = vrot.slane %v4337_v51, 4  ;;  %v9804_v51 = vld [vmem:[#allocation2 + $0x64] sm:$0xf]  ;;  %v4364_v25 = vshll.u32 %v9820_v57, 16 }
 0x346   : > { %4626 = vrot.lane.b32.xlu2 %v4535_v39, %s6916_s19  ;;  %v9730_v26 = vpop.permute.xlu2 %4614  ;;  %4688 = vst.msk [vmem:[#allocation3 + $0x54] sm:$0xf] %vm4666_vm6, %v4613_v14  ;;  %v4717_v39 = vld [vmem:[#allocation2 + $0x60] sm:$0xe]  ;;  %v3654_v14 = vld [vmem:[#allocation2 + $0xc8] sm:$0x1] }
 0x347   : > { %v4579_v3 = vpop.permute.xlu0 %4578  ;;  %5025 = vst.msk [vmem:[#allocation3 + $0x54] sm:$0xf] %vm5003_vm14, %v4950_v27  ;;  %v4343_v32 = vsel %vm7087_vm13, %v4338_v22, %v4342_v10  ;;  %v1813_v27 = vsel %vm7022_vm7, 0, %v1812_v37  ;;  %v6410_v62 = vrot.slane %v4717_v39, 9  ;;  %v4159_v10 = vld [vmem:[#allocation2 + $0x6c] sm:$0xf] }
 0x348   : > { %1814 = vst [vmem:[#allocation2 + $0xcc] sm:$0x1] %v1813_v27  ;;  %v4562_v46 = vrot.slane %v4560_v17, 4  ;;  %v3754_v49 = vrot.slane %v9804_v51, 5  ;;  %v3960_v51 = vld [vmem:[#allocation2 + $0x70] sm:$0xf] }
 0x349   : > { %v4840_v12 = vsel %vm7050_vm10, %v6410_v62, %v4839_v31  ;;  %v4358_v31 = vshll.u32 %v4159_v10, 16  ;;  %v6395_v62 = vrot.slane %v3628_v38, 9 }
 0x34a   : > { %3871 = vrot.lane.b32.xlu1 %v3804_v43, %s6914_s17  ;;  %v4556_v43 = vshll.u32 %v4184_v56, 16  ;;  %v4721_v56 = vld [vmem:[#allocation2 + $0x70] sm:$0xf] }
 0x34c   : > { %4628 = vrot.lane.b32.xlu0 %v4545_v42, %s6916_s19  ;;  %v9798_v42 = vld [vmem:[#allocation2 + $0xd0] sm:$0xf]  ;;  %v4558_v13 = vrot.slane %v4556_v43, 5 }
 0x34d   : > { %v4018_v40 = vpop.permute.xlu1 %4017 }
 0x34e   : > { %4965 = vrot.lane.b32.xlu2 %v4899_v35, %s6917_s20  ;;  %v9745_v9 = vpop.permute.xlu2 %4953  ;;  %4110 = vst.msk [vmem:[#allocation3 + $0x10] sm:$0xf] %vm4105_vm12, %v4018_v40  ;;  %v6572_v54 = vld [vmem:[#allocation3 + $0x50] sm:$0xff]  ;;  %v3813_v35 = vrot.slane %v3654_v14, 5  ;;  %v4846_v14 = vrot.slane %v4721_v56, 5  ;;  %v9916_v56 = vld [vmem:[%s6992_s13 + $0x40] sm:$0xff]  }
 0x34f   : > { %v4918_v19 = vpop.permute.xlu0 %4917  ;;  %4671 = vst.msk [vmem:[#allocation3 + $0x10] sm:$0xf] %vm4666_vm6, %v4579_v3  ;;  %6502 = vmatmul.msk.bf16.gmra.mxu2 %vm5168_vm5, %v6572_v54  ;;  %v1878_v45 = vld [vmem:[#allocation2 + $0xcc] sm:$0xf]  ;;  %v1882_v3 = vld [vmem:[#allocation2 + $0xd4] sm:$0x1]  ;;  %v6038_v1 = vunpack.c.l.bf16 %v9916_v56 }
 0x350   : > { %5008 = vst.msk [vmem:[#allocation3 + $0x10] sm:$0xf] %vm5003_vm14, %v9702_v4  ;;  %v4896_v4 = vsel %vm7050_vm10, %v6418_v28, %v4895_v20  ;;  %v1879_v53 = vsel %vm7111_vm0, 0, %v1878_v45  ;;  %v1883_v23 = vsel %vm7022_vm7, 0, %v1882_v3  ;;  %v3814_v15 = vsel %vm7050_vm10, %v3812_v48, %v3813_v35  ;;  %v9858_v35 = vld [vmem:[%s10349_s6] ss:$0 sm:$0xff] }
 0x351   : > { %1880 = vst [vmem:[#allocation2 + $0xcc] sm:$0xf] %v1879_v53  ;;  %v4563_v28 = vor.u32 %v4562_v46, %v4558_v13  ;;  %v9841_v53 = vrot.slane %v4364_v25, 5  ;;  %v4848_v43 = vrot.slane %v4846_v14, 4  ;;  %v4720_v46 = vld [vmem:[#allocation2 + $0x6c] sm:$0xe] }
 0x352   : > { %4067 = vrot.lane.b32.xlu1 %v3974_v6, %s6915_s18  ;;  %1884 = vst [vmem:[#allocation2 + $0xd4] sm:$0x1] %v1883_v23 }
 0x354   : > { %4033 = vrot.lane.b32.xlu0 %v3957_v18, %s6915_s18 }
 0x355   : > { %v4581_v33 = vpop.permute.xlu1 %4580 }
 0x356   : > { %4594 = vrot.lane.b32.xlu2 %v4343_v32, %s6916_s19  ;;  %v4583_v55 = vpop.permute.xlu2 %4582  ;;  %4672 = vst.msk [vmem:[#allocation3 + $0x14] sm:$0xf] %vm4666_vm6, %v4581_v33  ;;  %v4355_v32 = vshrl.u32 %v4159_v10, 16  ;;  %v3756_v33 = vrot.slane %v3754_v49, 4 }
 0x357   : > { %v4054_v58 = vpop.permute.xlu0 %4053  ;;  %5009 = vst.msk [vmem:[#allocation3 + $0x14] sm:$0xf] %vm5003_vm14, %v4918_v19 }
 0x358   : > { %v3975_v40 = vld [vmem:[#allocation2 + $0xcc] sm:$0xf] }
 0x359   : > { %v4744_v6 = vld [vmem:[#allocation2 + $0xcc] sm:$0xe]  ;;  %v4185_v24 = vld [vmem:[#allocation2 + $0xd4] sm:$0x1] }
 0x35a   : > { %4963 = vrot.lane.b32.xlu1 %v4896_v4, %s6917_s20  ;;  %v4183_v18 = vld [vmem:[#allocation2 + $0xcc] sm:$0xf]  ;;  %v6419_v19 = vrot.slane %v4744_v6, 9  ;;  %v4566_v0 = vshll.u32 %v4185_v24, 16 }
 0x35b   : > { %v4547_v54 = vshrl.u32 %v4183_v18, 16  ;;  %v4550_v8 = vshll.u32 %v4183_v18, 16 }
 0x35c   : > { %4596 = vrot.lane.b32.xlu0 %v4353_v29, %s6916_s19  ;;  %v4564_v29 = vrot.slane %v4563_v28, 4 }
 0x35d   : > { %v3860_v2 = vpop.permute.xlu1 %3859  ;;  %v4549_v61 = vrot.slane %v4547_v54, 4  ;;  %v4552_v21 = vrot.slane %v4550_v8, 5 }
 0x35e   : > { %4933 = vrot.lane.b32.xlu2 %v4843_v63, %s6917_s20  ;;  %v9773_v11 = vpop.permute.xlu2 %4921  ;;  %3934 = vst.msk [vmem:[#allocation3 + $0x58] sm:$0xf] %vm3911_vm3, %v3860_v2  ;;  %v6564_v50 = vld [vmem:[#allocation3 + $0x10] sm:$0xff]  ;;  %v4360_v63 = vrot.slane %v4358_v31, 5  ;;  %v4568_v2 = vrot.slane %v4566_v0, 5 }
 0x35f   : > { %v4617_v20 = vpop.permute.xlu0 %4616  ;;  %4128 = vst.msk [vmem:[#allocation3 + $0x58] sm:$0xf] %vm4105_vm12, %v4054_v58  ;;  %6494 = vmatmul.msk.bf16.gmra.mxu1 %vm5168_vm5, %v6564_v50  ;;  %v4553_v41 = vor.u32 %v4552_v21, %v4549_v61  ;;  %v4357_v58 = vrot.slane %v4355_v32, 4  ;;  %v4368_v21 = vshrl.u32 %v9820_v57, 16  ;;  %v3959_v0 = vld [vmem:[#allocation2 + $0x6c] sm:$0xf] }
 0x360   : > { %4689 = vst.msk [vmem:[#allocation3 + $0x58] sm:$0xf] %vm4666_vm6, %v9730_v26 }
 0x361   : > { %v4554_v34 = vrot.slane %v4553_v41, 4  ;;  %v4370_v24 = vrot.slane %v4368_v21, 4 }
 0x362   : > { %4035 = vrot.lane.b32.xlu1 %v3958_v52, %s6915_s18 }
 0x363   : > { %v4559_v52 = vsel %vm7087_vm13, %v4554_v34, %v4558_v13  ;;  %v4371_v34 = vor.u32 %v4370_v24, %v9841_v53 }
 0x364   : > { %3875 = vrot.lane.b32.xlu0 %v3811_v59, %s6914_s17  ;;  %v4361_v59 = vor.u32 %v4360_v63, %v4357_v58  ;;  %v4374_v63 = vshll.u32 %v4161_v30, 16 }
 0x365   : > { %v4056_v16 = vpop.permute.xlu1 %4055 }
 0x366   : > { %v9786_v7 = vpop.permute.xlu2 %4057  ;;  %4129 = vst.msk [vmem:[#allocation3 + $0x5c] sm:$0xf] %vm4105_vm12, %v4056_v16  ;;  %4069 = vrot.lane.b32.xlu2 %v3975_v40, %s6915_s18  ;;  %v4362_v45 = vrot.slane %v4361_v59, 4  ;;  %v9869_v40 = vld [vmem:[%s10350_s7] ss:$0 sm:$0xff] }
 0x367   : > { %v4022_v26 = vpop.permute.xlu0 %4021  ;;  %4690 = vst.msk [vmem:[#allocation3 + $0x5c] sm:$0xf] %vm4666_vm6, %v4617_v20  ;;  %v4569_v20 = vsel %vm7087_vm13, %v4564_v29, %v4568_v2 }
 0x368   : > { %5027 = vst.msk [vmem:[#allocation3 + $0x5c] sm:$0xf] %vm5003_vm14, %v9745_v9  ;;  %v4902_v9 = vrot.slane %v9798_v42, 5 }
 0x369   : > { %4112 = vst.msk [vmem:[#allocation3 + $0x18] sm:$0xf] %vm4105_vm12, %v4022_v26  ;;  %v4367_v26 = vsel %vm7087_vm13, %v4362_v45, %v9841_v53 }
 0x36a   : > { %4931 = vrot.lane.b32.xlu1 %v4840_v12, %s6917_s20  ;;  %4673 = vst.msk [vmem:[#allocation3 + $0x18] sm:$0xf] %vm4666_vm6, %v4583_v55  ;;  %v4903_v44 = vsel %vm7050_vm10, %v6419_v19, %v4902_v9  ;;  %v3630_v55 = vld [vmem:[#allocation2 + $0x68] sm:$0x1]  ;;  %v3755_v12 = vsel %vm7050_vm10, %v6395_v62, %v3754_v49  ;;  %v4904_v49 = vrot.slane %v4902_v9, 4 }
 0x36b   : > { %v3757_v4 = vrot.slane %v3630_v55, 5 }
 0x36c   : > { %4071 = vrot.lane.b32.xlu0 %v3976_v36, %s6915_s18 }
 0x36d   : > { %v4952_v47 = vpop.permute.xlu1 %4951  ;;  %v3758_v50 = vsel %vm7050_vm10, %v3756_v33, %v3757_v4 }
 0x36e   : > { %v9807_v22 = vpop.permute.xlu2 %4620  ;;  %5026 = vst.msk [vmem:[#allocation3 + $0x58] sm:$0xf] %vm5003_vm14, %v4952_v47  ;;  %4632 = vrot.lane.b32.xlu2 %v4569_v20, %s6916_s19  ;;  %v6411_v47 = vrot.slane %v4720_v46, 9 }
 0x36f   : > { %v4585_v5 = vpop.permute.xlu0 %4584 }
 0x370   : > { %v4847_v19 = vsel %vm7050_vm10, %v6411_v47, %v4846_v14 }
 0x372   : > { %3877 = vrot.lane.b32.xlu1 %v3814_v15, %s6914_s17 }
 0x374   : > { %4967 = vrot.lane.b32.xlu0 %v4903_v44, %s6917_s20 }
 0x375   : > { %v4024_v37 = vpop.permute.xlu1 %4023  ;;  %v6573_v27 = vld [vmem:[#allocation3 + $0x58] sm:$0xff] }
 0x376   : > { %v4026_v60 = vpop.permute.xlu2 %4025  ;;  %4113 = vst.msk [vmem:[#allocation3 + $0x1c] sm:$0xf] %vm4105_vm12, %v4024_v37  ;;  %6503 = vmatmul.msk.bf16.gmra.mxu2 %vm5168_vm5, %v6573_v27  ;;  %3843 = vrot.lane.b32.xlu2 %v3755_v12, %s6914_s17 }
 0x377   : > { %4114 = vst.msk [vmem:[#allocation3 + $0x20] sm:$0xf] %vm4105_vm12, %v4026_v60  ;;  %v3864_v39 = vpop.permute.xlu0 %3863 }
 0x378   : > { %4674 = vst.msk [vmem:[#allocation3 + $0x1c] sm:$0xf] %vm4666_vm6, %v4585_v5  ;;  %v4746_v5 = vld [vmem:[#allocation2 + $0xd4] sm:$0x1] }
 0x379   : > { %5011 = vst.msk [vmem:[#allocation3 + $0x1c] sm:$0xf] %vm5003_vm14, %v9773_v11  ;;  %v4905_v31 = vrot.slane %v4746_v5, 5 }
 0x37a   : > { %4630 = vrot.lane.b32.xlu1 %v4559_v52, %s6916_s19  ;;  %3936 = vst.msk [vmem:[#allocation3 + $0x60] sm:$0xf] %vm3911_vm3, %v3864_v39  ;;  %v4372_v52 = vrot.slane %v4371_v34, 4  ;;  %v4376_v39 = vrot.slane %v4374_v63, 5 }
 0x37b   : > { %4130 = vst.msk [vmem:[#allocation3 + $0x60] sm:$0xf] %vm4105_vm12, %v9786_v7  ;;  %v4722_v7 = vld [vmem:[#allocation2 + $0x74] sm:$0x1]  ;;  %v4906_v61 = vsel %vm7050_vm10, %v4904_v49, %v4905_v31 }
 0x37c   : > { %3845 = vrot.lane.b32.xlu0 %v3758_v50, %s6914_s17  ;;  %v4849_v17 = vrot.slane %v4722_v7, 5 }
 0x37d   : > { %v4920_v16 = vpop.permute.xlu1 %4919 }
 0x37e   : > { %v4589_v36 = vpop.permute.xlu2 %4588  ;;  %5010 = vst.msk [vmem:[#allocation3 + $0x18] sm:$0xf] %vm5003_vm14, %v4920_v16  ;;  %v4850_v10 = vsel %vm7050_vm10, %v4848_v43, %v4849_v17  ;;  %4039 = vrot.lane.b32.xlu2 %v3960_v51, %s6915_s18 }
 0x37f   : > { %v4060_v11 = vpop.permute.xlu0 %4059 }
 0x382   : > { %4969 = vrot.lane.b32.xlu1 %v4906_v61, %s6917_s20  ;;  %v6039_v61 = vunpack.c.h.bf16 %v9916_v56 }
 0x384   : > { %4598 = vrot.lane.b32.xlu0 %v4367_v26, %s6916_s19 }
 0x385   : > { %v3866_v23 = vpop.permute.xlu1 %3865  ;;  %v6565_v48 = vld [vmem:[#allocation3 + $0x18] sm:$0xff] }
 0x386   : > { %v3868_v3 = vpop.permute.xlu2 %3867  ;;  %3937 = vst.msk [vmem:[#allocation3 + $0x64] sm:$0xf] %vm3911_vm3, %v3866_v23  ;;  %6495 = vmatmul.msk.bf16.gmra.mxu1 %vm5168_vm5, %v6565_v48  ;;  %4935 = vrot.lane.b32.xlu2 %v4847_v19, %s6917_s20 }
 0x387   : > { %3938 = vst.msk [vmem:[#allocation3 + $0x68] sm:$0xf] %vm3911_vm3, %v3868_v3  ;;  %v4956_v13 = vpop.permute.xlu0 %4955 }
 0x388   : > { %4131 = vst.msk [vmem:[#allocation3 + $0x64] sm:$0xf] %vm4105_vm12, %v4060_v11 }
 0x389   : > { %4692 = vst.msk [vmem:[#allocation3 + $0x64] sm:$0xf] %vm4666_vm6, %v9807_v22  ;;  %v5270_v6 = vpop.f32.mrf.mxu2 }
 0x38a   : > { %v5330_v18 = vmul.f32 %v9858_v35, %v5270_v6  ;;  %4037 = vrot.lane.b32.xlu1 %v3959_v0, %s6915_s18 }
 0x38c   : > { %4937 = vrot.lane.b32.xlu0 %v4850_v10, %s6917_s20  ;;  %v9873_v15 = vadd.f32 %v9869_v40, %v5330_v18 }
 0x38d   : > { %v4619_v8 = vpop.permute.xlu1 %4618 }
 0x38e   : > { %v6524_v22 = vmul.f32 -1.442695, %v9873_v15  ;;  %v9879_v54 = vpop.permute.xlu2 %4063  ;;  %4691 = vst.msk [vmem:[#allocation3 + $0x60] sm:$0xf] %vm4666_vm6, %v4619_v8 }
 0x38f   : > { %v4028_v32 = vpop.permute.xlu0 %4027  ;;  %5028 = vst.msk [vmem:[#allocation3 + $0x60] sm:$0xf] %vm5003_vm14, %v4956_v13 }
 0x390   : > { %6749 = vpow2.f32 %v6524_v22  ;;  %4115 = vst.msk [vmem:[#allocation3 + $0x24] sm:$0xf] %vm4105_vm12, %v4028_v32 }
 0x391   : > { %v5272_v28 = vpop.f32.mrf.mxu2  ;;  %4676 = vst.msk [vmem:[#allocation3 + $0x24] sm:$0xf] %vm4666_vm6, %v4589_v36  ;;  %v4377_v36 = vsel %vm7087_vm13, %v4372_v52, %v4376_v39 }
 0x392   : > { %v5331_v44 = vmul.f32 %v9858_v35, %v5272_v28  ;;  %4600 = vrot.lane.b32.xlu1 %v4377_v36, %s6916_s19 }
 0x393   : > { %v5230_v58 = vpop.f32.mrf.mxu1 }
 0x394   : > { %v9893_v42 = vadd.f32 %v9869_v40, %v5331_v44  ;;  %v5314_v29 = vmul.f32 %v9858_v35, %v5230_v58 }
 0x395   : > { %v4958_v4 = vpop.permute.xlu1 %4957 }
 0x396   : > { %v6750_v9 = vpop.eup %6749  ;;  %v6525_v55 = vmul.f32 -1.442695, %v9893_v42  ;;  %v9896_v33 = vpop.permute.xlu2 %4959  ;;  %5029 = vst.msk [vmem:[#allocation3 + $0x64] sm:$0xf] %vm5003_vm14, %v4958_v4  ;;  %v9902_v60 = vadd.f32 %v9869_v40, %v5314_v29 }
 0x397   : > { %v5494_v41 = vadd.f32 1.0, %v6750_v9  ;;  %v4924_v50 = vpop.permute.xlu0 %4923 }
 0x398   : > { %6751 = vpow2.f32 %v6525_v55  ;;  %v6508_v37 = vmul.f32 -1.442695, %v9902_v60 }
 0x399   : > { %6753 = vrcp.f32 %v5494_v41  ;;  %v5761_v53 = vand.u32 2147483648, %v5494_v41  ;;  %v5759_v11 = vand.u32 2147483647, %v5494_v41  ;;  %vm5755_vm7 = vweird.f32 %v5494_v41 }
 0x39a   : > { %6755 = vpow2.f32 %v6508_v37  ;;  %v323_v37 = vld [vmem:[%s6992_s13] sm:$0xff]  }
 0x39b   : > { %v5232_v38 = vpop.f32.mrf.mxu1  ;;  %v5762_v17 = vor.u32 1.1754944e-38, %v5761_v53  ;;  %vm5760_vm13 = vcmp.eq.f32.partialorder %v5759_v11, 8.507059e+37 }
 0x39c   : > { %v5315_v45 = vmul.f32 %v9858_v35, %v5232_v38 }
 0x39d   : > { %v4587_v25 = vpop.permute.xlu1 %4586  ;;  %v6574_v10 = vld [vmem:[#allocation3 + $0x60] sm:$0xff] }
 0x39e   : > { %v6752_v57 = vpop.eup %6751  ;;  %v4032_v59 = vpop.permute.xlu2 %4031  ;;  %4675 = vst.msk [vmem:[#allocation3 + $0x20] sm:$0xf] %vm4666_vm6, %v4587_v25  ;;  %v9919_v12 = vadd.f32 %v9869_v40, %v5315_v45  ;;  %6504 = vmatmul.msk.bf16.gmra.mxu2 %vm5168_vm5, %v6574_v10 }
 0x39f   : > { %v6754_v27 = vpop.eup %6753  ;;  %v9906_v2 = vadd.f32 1.0, %v6752_v57  ;;  %4117 = vst.msk [vmem:[#allocation3 + $0x2c] sm:$0xf] %vm4105_vm12, %v4032_v59  ;;  %v3870_v51 = vpop.permute.xlu0 %3869  ;;  %v6022_v59 = vunpack.c.l.bf16 %v323_v37 }
 0x3a0   : > { %v5751_v20 = vmul.f32 %v6754_v27, %v5494_v41  ;;  %5012 = vst.msk [vmem:[#allocation3 + $0x20] sm:$0xf] %vm5003_vm14, %v4924_v50  ;;  %vm5756_vm4 = vweird.f32 %v6754_v27  ;;  %v6756_v26 = vpop.eup %6755  ;;  %v6509_v7 = vmul.f32 -1.442695, %v9919_v12 }
 0x3a1   : > { %6757 = vrcp.f32 %v9906_v2  ;;  %vm5757_vm10 = vmor %vm5755_vm7, %vm5756_vm4  ;;  %v9924_v3 = vadd.f32 1.0, %v6756_v26  ;;  %3939 = vst.msk [vmem:[#allocation3 + $0x6c] sm:$0xf] %vm3911_vm3, %v3870_v51  ;;  %v5776_v22 = vand.u32 2147483648, %v9906_v2  ;;  %v5774_v5 = vand.u32 2147483647, %v9906_v2 }
 0x3a2   : > { %v5752_v62 = vsub.f32 1.0, %v5751_v20  ;;  %6759 = vpow2.f32 %v6509_v7  ;;  %4133 = vst.msk [vmem:[#allocation3 + $0x6c] sm:$0xf] %vm4105_vm12, %v9879_v54  ;;  %vm5770_vm15 = vweird.f32 %v9906_v2 }
 0x3a3   : > { %6761 = vrcp.f32 %v9924_v3  ;;  %v5777_v31 = vor.u32 1.1754944e-38, %v5776_v22  ;;  %vm5775_vm8 = vcmp.eq.f32.partialorder %v5774_v5, 8.507059e+37  ;;  %v5519_v34 = vand.u32 2147483647, %v9924_v3 }
 0x3a4   : > { %v5753_v16 = vmul.f32 %v6754_v27, %v5752_v62  ;;  %v5521_v63 = vand.u32 2147483648, %v9924_v3  ;;  %vm5515_vm2 = vweird.f32 %v9924_v3 }
 0x3a5   : > { %v4926_v6 = vpop.permute.xlu1 %4925  ;;  %vm5520_vm7 = vcmp.eq.f32.partialorder %v5519_v34, 8.507059e+37 }
 0x3a6   : > { %v5754_v14 = vadd.f32 %v6754_v27, %v5753_v16  ;;  %v9927_v13 = vpop.permute.xlu2 %4927  ;;  %5013 = vst.msk [vmem:[#allocation3 + $0x24] sm:$0xf] %vm5003_vm14, %v4926_v6  ;;  %v5522_v50 = vor.u32 1.1754944e-38, %v5521_v63 }
 0x3a7   : > { %v6758_v43 = vpop.eup %6757  ;;  %v4623_v9 = vpop.permute.xlu0 %4622 }
 0x3a8   : > { %v5758_v23 = vsel %vm5757_vm10, %v6754_v27, %v5754_v14  ;;  %v5766_v48 = vmul.f32 %v6758_v43, %v9906_v2  ;;  %vm5771_vm0 = vweird.f32 %v6758_v43 }
 0x3a9   : > { %v5763_v46 = vsel %vm5760_vm13, %v5762_v17, %v5758_v23  ;;  %vm5772_vm11 = vmor %vm5770_vm15, %vm5771_vm0 }
 0x3aa   : > { %v6006_v18 = vmul.f32 %v5763_v46, %v9873_v15  ;;  %v5767_v47 = vsub.f32 1.0, %v5766_v48  ;;  %v6760_v15 = vpop.eup %6759  ;;  %v6023_v46 = vunpack.c.h.bf16 %v323_v37 }
 0x3ab   : > { %v6762_v32 = vpop.eup %6761  ;;  %v9946_v28 = vadd.f32 1.0, %v6760_v15 }
 0x3ac   : > { %v6070_v19 = vadd.f32 %v6038_v1, %v6006_v18  ;;  %v5768_v8 = vmul.f32 %v6758_v43, %v5767_v47  ;;  %v5511_v21 = vmul.f32 %v6762_v32, %v9924_v3  ;;  %vm5516_vm9 = vweird.f32 %v6762_v32 }
 0x3ad   : > { %6763 = vrcp.f32 %v9946_v28  ;;  %v4062_v24 = vpop.permute.xlu1 %4061  ;;  %v6566_v29 = vld [vmem:[#allocation3 + $0x20] sm:$0xff]  ;;  %vm5517_vm4 = vmor %vm5515_vm2, %vm5516_vm9  ;;  %v5534_v26 = vand.u32 2147483647, %v9946_v28  ;;  %v5536_v14 = vand.u32 2147483648, %v9946_v28  ;;  %vm5530_vm13 = vweird.f32 %v9946_v28 }
 0x3ae   : > { %v6102_v54 = vpack.c.bf16 %v6070_v19, %v6070_v19  ;;  %v5769_v49 = vadd.f32 %v6758_v43, %v5768_v8  ;;  %v3874_v55 = vpop.permute.xlu2 %3873  ;;  %v5512_v58 = vsub.f32 1.0, %v5511_v21  ;;  %4132 = vst.msk [vmem:[#allocation3 + $0x68] sm:$0xf] %vm4105_vm12, %v4062_v24  ;;  %6496 = vmatmul.msk.bf16.gmra.mxu1 %vm5168_vm5, %v6566_v29 }
 0x3af   : > { %3941 = vst.msk [vmem:[#allocation3 + $0x74] sm:$0xf] %vm3911_vm3, %v3874_v55  ;;  %v4962_v38 = vpop.permute.xlu0 %4961  ;;  %v5537_v48 = vor.u32 1.1754944e-38, %v5536_v14  ;;  %vm5535_vm15 = vcmp.eq.f32.partialorder %v5534_v26, 8.507059e+37 }
 0x3b0   : > { %6135 = vst.msk [vmem:[%s9943_s16 + $0x40] sm:$0xf] %vm6118_vm1, %v6102_v54  ;;  %v5773_v44 = vsel %vm5772_vm11, %v6758_v43, %v5769_v49  ;;  %v5513_v27 = vmul.f32 %v6762_v32, %v5512_v58 }
 0x3b1   : > { %v5778_v41 = vsel %vm5775_vm8, %v5777_v31, %v5773_v44  ;;  %v5275_v4 = vpop.f32.mrf.mxu2  ;;  %4693 = vst.msk [vmem:[#allocation3 + $0x68] sm:$0xf] %vm4666_vm6, %v4623_v9 }
 0x3b2   : > { %v6007_v30 = vmul.f32 %v5778_v41, %v9893_v42  ;;  %v5332_v0 = vmul.f32 %v9858_v35, %v5275_v4  ;;  %5030 = vst.msk [vmem:[#allocation3 + $0x68] sm:$0xf] %vm5003_vm14, %v9896_v33  ;;  %v5514_v52 = vadd.f32 %v6762_v32, %v5513_v27 }
 0x3b3   : > { %v6764_v20 = vpop.eup %6763 }
 0x3b4   : > { %v6071_v57 = vadd.f32 %v6039_v61, %v6007_v30  ;;  %v9965_v42 = vadd.f32 %v9869_v40, %v5332_v0  ;;  %v5518_v25 = vsel %vm5517_vm4, %v6762_v32, %v5514_v52  ;;  %v5526_v33 = vmul.f32 %v6764_v20, %v9946_v28  ;;  %v10011_v30 = vld [vmem:[%s6992_s13 + $0x48] sm:$0xff]  }
 0x3b5   : > { %v5523_v45 = vsel %vm5520_vm7, %v5522_v50, %v5518_v25  ;;  %v4625_v53 = vpop.permute.xlu1 %4624  ;;  %vm5531_vm10 = vweird.f32 %v6764_v20 }
 0x3b6   : > { %v6103_v2 = vpack.c.bf16 %v6071_v57, %v6071_v57  ;;  %v6526_v39 = vmul.f32 -1.442695, %v9965_v42  ;;  %v9972_v62 = vpop.permute.xlu2 %4626  ;;  %v5990_v56 = vmul.f32 %v5523_v45, %v9902_v60  ;;  %v5527_v16 = vsub.f32 1.0, %v5526_v33  ;;  %4694 = vst.msk [vmem:[#allocation3 + $0x6c] sm:$0xf] %vm4666_vm6, %v4625_v53  ;;  %vm5532_vm0 = vmor %vm5530_vm13, %vm5531_vm10 }
 0x3b7   : > { %5031 = vst.msk [vmem:[#allocation3 + $0x6c] sm:$0xf] %vm5003_vm14, %v4962_v38  ;;  %v4591_v6 = vpop.permute.xlu0 %4590 }
 0x3b8   : > { %6136 = vst.msk [vmem:[%s9943_s16 + $0x44] sm:$0xf] %vm6118_vm1, %v6103_v2  ;;  %6765 = vpow2.f32 %v6526_v39  ;;  %v6054_v7 = vadd.f32 %v6022_v59, %v5990_v56  ;;  %v5528_v43 = vmul.f32 %v6764_v20, %v5527_v16  ;;  %v6040_v2 = vunpack.c.l.bf16 %v10011_v30 }
 0x3b9   : > { %v5277_v36 = vpop.f32.mrf.mxu2 }
 0x3ba   : > { %v5333_v11 = vmul.f32 %v9858_v35, %v5277_v36  ;;  %v6086_v60 = vpack.c.bf16 %v6054_v7, %v6054_v7  ;;  %v5529_v3 = vadd.f32 %v6764_v20, %v5528_v43 }
 0x3bb   : > { %v5235_v19 = vpop.f32.mrf.mxu1 }
 0x3bc   : > { %v9981_v17 = vadd.f32 %v9869_v40, %v5333_v11  ;;  %6119 = vst.msk [vmem:[%s9943_s16] sm:$0xf] %vm6118_vm1, %v6086_v60  ;;  %v5533_v10 = vsel %vm5532_vm0, %v6764_v20, %v5529_v3  ;;  %v5316_v5 = vmul.f32 %v9858_v35, %v5235_v19 }
 0x3bd   : > { %v5538_v47 = vsel %vm5535_vm15, %v5537_v48, %v5533_v10  ;;  %v4030_v22 = vpop.permute.xlu1 %4029 }
 0x3be   : > { %v6766_v1 = vpop.eup %6765  ;;  %v6527_v23 = vmul.f32 -1.442695, %v9981_v17  ;;  %v9987_v18 = vpop.permute.xlu2 %4965  ;;  %v5991_v8 = vmul.f32 %v5538_v47, %v9919_v12  ;;  %4116 = vst.msk [vmem:[#allocation3 + $0x28] sm:$0xf] %vm4105_vm12, %v4030_v22  ;;  %v9996_v54 = vadd.f32 %v9869_v40, %v5316_v5  ;;  %v6575_v21 = vld [vmem:[#allocation3 + $0x68] sm:$0xff] }
 0x3bf   : > { %v5496_v51 = vadd.f32 1.0, %v6766_v1  ;;  %4677 = vst.msk [vmem:[#allocation3 + $0x28] sm:$0xf] %vm4666_vm6, %v4591_v6  ;;  %v4930_v61 = vpop.permute.xlu0 %4929  ;;  %6505 = vmatmul.msk.bf16.gmra.mxu2 %vm5168_vm5, %v6575_v21 }
 0x3c0   : > { %6767 = vpow2.f32 %v6527_v23  ;;  %v6055_v15 = vadd.f32 %v6023_v46, %v5991_v8  ;;  %5014 = vst.msk [vmem:[#allocation3 + $0x28] sm:$0xf] %vm5003_vm14, %v9927_v13  ;;  %v6510_v31 = vmul.f32 -1.442695, %v9996_v54 }
 0x3c1   : > { %6769 = vrcp.f32 %v5496_v51  ;;  %v5791_v4 = vand.u32 2147483648, %v5496_v51  ;;  %v5789_v29 = vand.u32 2147483647, %v5496_v51  ;;  %vm5785_vm8 = vweird.f32 %v5496_v51 }
 0x3c2   : > { %v6087_v32 = vpack.c.bf16 %v6055_v15, %v6055_v15  ;;  %6771 = vpow2.f32 %v6510_v31 }
 0x3c3   : > { %v5237_v55 = vpop.f32.mrf.mxu1  ;;  %v5792_v27 = vor.u32 1.1754944e-38, %v5791_v4  ;;  %vm5790_vm2 = vcmp.eq.f32.partialorder %v5789_v29, 8.507059e+37 }
 0x3c4   : > { %6120 = vst.msk [vmem:[%s9943_s16 + $0x4] sm:$0xf] %vm6118_vm1, %v6087_v32  ;;  %v5317_v24 = vmul.f32 %v9858_v35, %v5237_v55 }
 0x3c5   : > { %v4593_v13 = vpop.permute.xlu1 %4592 }
 0x3c6   : > { %v6768_v49 = vpop.eup %6767  ;;  %v10003_v9 = vpop.permute.xlu2 %4594  ;;  %4678 = vst.msk [vmem:[#allocation3 + $0x2c] sm:$0xf] %vm4666_vm6, %v4593_v13  ;;  %v10014_v0 = vadd.f32 %v9869_v40, %v5317_v24 }
 0x3c7   : > { %v6770_v28 = vpop.eup %6769  ;;  %v9999_v44 = vadd.f32 1.0, %v6768_v49  ;;  %5015 = vst.msk [vmem:[#allocation3 + $0x2c] sm:$0xf] %vm5003_vm14, %v4930_v61  ;;  %v4066_v50 = vpop.permute.xlu0 %4065 }
 0x3c8   : > { %v5781_v12 = vmul.f32 %v6770_v28, %v5496_v51  ;;  %vm5786_vm11 = vweird.f32 %v6770_v28  ;;  %v6772_v34 = vpop.eup %6771  ;;  %v6511_v57 = vmul.f32 -1.442695, %v10014_v0  ;;  %v6041_v51 = vunpack.c.h.bf16 %v10011_v30 }
 0x3c9   : > { %6773 = vrcp.f32 %v9999_v44  ;;  %vm5787_vm9 = vmor %vm5785_vm8, %vm5786_vm11  ;;  %v10018_v52 = vadd.f32 1.0, %v6772_v34  ;;  %v5806_v56 = vand.u32 2147483648, %v9999_v44  ;;  %v5804_v14 = vand.u32 2147483647, %v9999_v44 }
 0x3ca   : > { %v5782_v41 = vsub.f32 1.0, %v5781_v12  ;;  %6775 = vpow2.f32 %v6511_v57  ;;  %vm5800_vm7 = vweird.f32 %v9999_v44 }
 0x3cb   : > { %6777 = vrcp.f32 %v10018_v52  ;;  %v5807_v3 = vor.u32 1.1754944e-38, %v5806_v56  ;;  %vm5805_vm13 = vcmp.eq.f32.partialorder %v5804_v14, 8.507059e+37  ;;  %v5551_v15 = vand.u32 2147483648, %v10018_v52 }
 0x3cc   : > { %v5783_v58 = vmul.f32 %v6770_v28, %v5782_v41  ;;  %vm5545_vm15 = vweird.f32 %v10018_v52 }
 0x3cd   : > { %v3872_v33 = vpop.permute.xlu1 %3871  ;;  %v5552_v13 = vor.u32 1.1754944e-38, %v5551_v15 }
 0x3ce   : > { %v5784_v63 = vadd.f32 %v6770_v28, %v5783_v58  ;;  %v10021_v59 = vpop.permute.xlu2 %4933  ;;  %3940 = vst.msk [vmem:[#allocation3 + $0x70] sm:$0xf] %vm3911_vm3, %v3872_v33  ;;  %v6567_v53 = vld [vmem:[#allocation3 + $0x28] sm:$0xff] }
 0x3cf   : > { %v6774_v37 = vpop.eup %6773  ;;  %4134 = vst.msk [vmem:[#allocation3 + $0x70] sm:$0xf] %vm4105_vm12, %v4066_v50  ;;  %6497 = vmatmul.msk.bf16.gmra.mxu1 %vm5168_vm5, %v6567_v53  ;;  %v4629_v46 = vpop.permute.xlu0 %4628 }
 0x3d0   : > { %v5788_v39 = vsel %vm5787_vm9, %v6770_v28, %v5784_v63  ;;  %v5796_v20 = vmul.f32 %v6774_v37, %v9999_v44  ;;  %vm5801_vm4 = vweird.f32 %v6774_v37  ;;  %4695 = vst.msk [vmem:[#allocation3 + $0x70] sm:$0xf] %vm4666_vm6, %v9972_v62  ;;  %v6776_v7 = vpop.eup %6775  ;;  %v5549_v28 = vand.u32 2147483647, %v10018_v52  ;;  %v325_v44 = vld [vmem:[%s6992_s13 + $0x8] sm:$0xff]  }
 0x3d1   : > { %v5793_v25 = vsel %vm5790_vm2, %v5792_v27, %v5788_v39  ;;  %v6778_v60 = vpop.eup %6777  ;;  %vm5802_vm10 = vmor %vm5800_vm7, %vm5801_vm4  ;;  %v10037_v23 = vadd.f32 1.0, %v6776_v7  ;;  %v6024_v4 = vunpack.c.l.bf16 %v325_v44  ;;  %v6025_v53 = vunpack.c.h.bf16 %v325_v44 }
 0x3d2   : > { %v6008_v38 = vmul.f32 %v5793_v25, %v9965_v42  ;;  %v5797_v45 = vsub.f32 1.0, %v5796_v20  ;;  %v5280_v36 = vpop.f32.mrf.mxu2  ;;  %v5541_v10 = vmul.f32 %v6778_v60, %v10018_v52  ;;  %vm5546_vm0 = vweird.f32 %v6778_v60 }
 0x3d3   : > { %v5334_v16 = vmul.f32 %v9858_v35, %v5280_v36  ;;  %6779 = vrcp.f32 %v10037_v23  ;;  %vm5547_vm11 = vmor %vm5545_vm15, %vm5546_vm0  ;;  %vm5550_vm8 = vcmp.eq.f32.partialorder %v5549_v28, 8.507059e+37  ;;  %v5564_v52 = vand.u32 2147483647, %v10037_v23 }
 0x3d4   : > { %v6072_v11 = vadd.f32 %v6040_v2, %v6008_v38  ;;  %v5798_v26 = vmul.f32 %v6774_v37, %v5797_v45  ;;  %v5542_v19 = vsub.f32 1.0, %v5541_v10  ;;  %v5566_v39 = vand.u32 2147483648, %v10037_v23 }
 0x3d5   : > { %v10034_v42 = vadd.f32 %v9869_v40, %v5334_v16  ;;  %v4068_v8 = vpop.permute.xlu1 %4067  ;;  %vm5560_vm2 = vweird.f32 %v10037_v23  ;;  %vm5565_vm7 = vcmp.eq.f32.partialorder %v5564_v52, 8.507059e+37 }
 0x3d6   : > { %v6104_v43 = vpack.c.bf16 %v6072_v11, %v6072_v11  ;;  %v5799_v1 = vadd.f32 %v6774_v37, %v5798_v26  ;;  %v10044_v6 = vpop.permute.xlu2 %4069  ;;  %4135 = vst.msk [vmem:[#allocation3 + $0x74] sm:$0xf] %vm4105_vm12, %v4068_v8  ;;  %v5543_v31 = vmul.f32 %v6778_v60, %v5542_v19  ;;  %v5567_v45 = vor.u32 1.1754944e-38, %v5566_v39 }
 0x3d7   : > { %v6528_v48 = vmul.f32 -1.442695, %v10034_v42  ;;  %4696 = vst.msk [vmem:[#allocation3 + $0x74] sm:$0xf] %vm4666_vm6, %v4629_v46  ;;  %v4034_v30 = vpop.permute.xlu0 %4033 }
 0x3d8   : > { %6137 = vst.msk [vmem:[%s9943_s16 + $0x48] sm:$0xf] %vm6118_vm1, %v6104_v43  ;;  %v5803_v62 = vsel %vm5802_vm10, %v6774_v37, %v5799_v1  ;;  %v5544_v61 = vadd.f32 %v6778_v60, %v5543_v31 }
 0x3d9   : > { %v5808_v47 = vsel %vm5805_vm13, %v5807_v3, %v5803_v62  ;;  %6781 = vpow2.f32 %v6528_v48  ;;  %5033 = vst.msk [vmem:[#allocation3 + $0x74] sm:$0xf] %vm5003_vm14, %v9987_v18  ;;  %v6780_v21 = vpop.eup %6779 }
 0x3da   : > { %v6009_v22 = vmul.f32 %v5808_v47, %v9981_v17  ;;  %v5282_v5 = vpop.f32.mrf.mxu2  ;;  %v5548_v24 = vsel %vm5547_vm11, %v6778_v60, %v5544_v61  ;;  %v5556_v18 = vmul.f32 %v6780_v21, %v10037_v23  ;;  %4118 = vst.msk [vmem:[#allocation3 + $0x30] sm:$0xf] %vm4105_vm12, %v4034_v30  ;;  %vm5561_vm9 = vweird.f32 %v6780_v21 }
 0x3db   : > { %v5335_v49 = vmul.f32 %v9858_v35, %v5282_v5  ;;  %v5553_v29 = vsel %vm5550_vm8, %v5552_v13, %v5548_v24  ;;  %4679 = vst.msk [vmem:[#allocation3 + $0x30] sm:$0xf] %vm4666_vm6, %v10003_v9  ;;  %vm5562_vm4 = vmor %vm5560_vm2, %vm5561_vm9 }
 0x3dc   : > { %v6073_v32 = vadd.f32 %v6041_v51, %v6009_v22  ;;  %v5240_v63 = vpop.f32.mrf.mxu1  ;;  %v5992_v57 = vmul.f32 %v5553_v29, %v9996_v54  ;;  %v5557_v37 = vsub.f32 1.0, %v5556_v18  ;;  %v343_v22 = vld [vmem:[%s6992_s13 + $0x50] sm:$0xff]  }
 0x3dd   : > { %v10057_v17 = vadd.f32 %v9869_v40, %v5335_v49  ;;  %v4964_v27 = vpop.permute.xlu1 %4963  ;;  %v5318_v2 = vmul.f32 %v9858_v35, %v5240_v63  ;;  %v6042_v31 = vunpack.c.l.bf16 %v343_v22 }
 0x3de   : > { %v6105_v12 = vpack.c.bf16 %v6073_v32, %v6073_v32  ;;  %v10064_v58 = vpop.permute.xlu2 %4632  ;;  %5032 = vst.msk [vmem:[#allocation3 + $0x70] sm:$0xf] %vm5003_vm14, %v4964_v27  ;;  %v6056_v20 = vadd.f32 %v6024_v4, %v5992_v57  ;;  %v5558_v50 = vmul.f32 %v6780_v21, %v5557_v37  ;;  %v6043_v57 = vunpack.c.h.bf16 %v343_v22 }
 0x3df   : > { %v6529_v55 = vmul.f32 -1.442695, %v10057_v17  ;;  %v6782_v41 = vpop.eup %6781  ;;  %v10078_v54 = vadd.f32 %v9869_v40, %v5318_v2  ;;  %v4597_v16 = vpop.permute.xlu0 %4596 }
 0x3e0   : > { %6138 = vst.msk [vmem:[%s9943_s16 + $0x4c] sm:$0xf] %vm6118_vm1, %v6105_v12  ;;  %v10066_v34 = vadd.f32 1.0, %v6782_v41  ;;  %v6088_v25 = vpack.c.bf16 %v6056_v20, %v6056_v20  ;;  %v5559_v9 = vadd.f32 %v6780_v21, %v5558_v50 }
 0x3e1   : > { %6783 = vpow2.f32 %v6529_v55  ;;  %v6512_v33 = vmul.f32 -1.442695, %v10078_v54 }
 0x3e2   : > { %6785 = vrcp.f32 %v10066_v34  ;;  %6121 = vst.msk [vmem:[%s9943_s16 + $0x8] sm:$0xf] %vm6118_vm1, %v6088_v25  ;;  %v5563_v36 = vsel %vm5562_vm4, %v6780_v21, %v5559_v9  ;;  %v5821_v62 = vand.u32 2147483648, %v10066_v34  ;;  %v5819_v47 = vand.u32 2147483647, %v10066_v34 }
 0x3e3   : > { %6787 = vpow2.f32 %v6512_v33  ;;  %v5568_v14 = vsel %vm5565_vm7, %v5567_v45, %v5563_v36  ;;  %vm5815_vm13 = vweird.f32 %v10066_v34 }
 0x3e4   : > { %v5242_v7 = vpop.f32.mrf.mxu1  ;;  %v5993_v43 = vmul.f32 %v5568_v14, %v10014_v0  ;;  %vm5820_vm15 = vcmp.eq.f32.partialorder %v5819_v47, 8.507059e+37 }
 0x3e5   : > { %v4036_v60 = vpop.permute.xlu1 %4035  ;;  %v5319_v3 = vmul.f32 %v9858_v35, %v5242_v7  ;;  %v6576_v44 = vld [vmem:[#allocation3 + $0x70] sm:$0xff] }
 0x3e6   : > { %v3844_v11 = vpop.permute.xlu2 %3843  ;;  %4119 = vst.msk [vmem:[#allocation3 + $0x34] sm:$0xf] %vm4105_vm12, %v4036_v60  ;;  %v6057_v23 = vadd.f32 %v6025_v53, %v5993_v43  ;;  %6506 = vmatmul.msk.bf16.gmra.mxu2 %vm5168_vm5, %v6576_v44 }
 0x3e7   : > { %v6784_v38 = vpop.eup %6783  ;;  %3926 = vst.msk [vmem:[#allocation3 + $0x38] sm:$0xf] %vm3911_vm3, %v3844_v11  ;;  %v10097_v0 = vadd.f32 %v9869_v40, %v5319_v3  ;;  %v3876_v28 = vpop.permute.xlu0 %3875 }
 0x3e8   : > { %v10084_v56 = vadd.f32 1.0, %v6784_v38  ;;  %v6786_v26 = vpop.eup %6785  ;;  %4680 = vst.msk [vmem:[#allocation3 + $0x34] sm:$0xf] %vm4666_vm6, %v4597_v16  ;;  %v6089_v10 = vpack.c.bf16 %v6057_v23, %v6057_v23 }
 0x3e9   : > { %v5811_v1 = vmul.f32 %v6786_v26, %v10066_v34  ;;  %5017 = vst.msk [vmem:[#allocation3 + $0x34] sm:$0xf] %vm5003_vm14, %v10021_v59  ;;  %v6788_v51 = vpop.eup %6787  ;;  %vm5816_vm10 = vweird.f32 %v6786_v26  ;;  %v6513_v8 = vmul.f32 -1.442695, %v10097_v0  ;;  %v5822_v59 = vor.u32 1.1754944e-38, %v5821_v62 }
 0x3ea   : > { %6789 = vrcp.f32 %v10084_v56  ;;  %v10101_v19 = vadd.f32 1.0, %v6788_v51  ;;  %6122 = vst.msk [vmem:[%s9943_s16 + $0xc] sm:$0xf] %vm6118_vm1, %v6089_v10  ;;  %vm5817_vm0 = vmor %vm5815_vm13, %vm5816_vm10  ;;  %v5836_v55 = vand.u32 2147483648, %v10084_v56  ;;  %v5834_v24 = vand.u32 2147483647, %v10084_v56 }
 0x3eb   : > { %v5812_v48 = vsub.f32 1.0, %v5811_v1  ;;  %3942 = vst.msk [vmem:[#allocation3 + $0x78] sm:$0xf] %vm3911_vm3, %v3876_v28  ;;  %vm5830_vm8 = vweird.f32 %v10084_v56 }
 0x3ec   : > { %6791 = vrcp.f32 %v10101_v19  ;;  %4136 = vst.msk [vmem:[#allocation3 + $0x78] sm:$0xf] %vm4105_vm12, %v10044_v6  ;;  %v5837_v34 = vor.u32 1.1754944e-38, %v5836_v55  ;;  %vm5835_vm2 = vcmp.eq.f32.partialorder %v5834_v24, 8.507059e+37  ;;  %v5581_v25 = vand.u32 2147483648, %v10101_v19 }
 0x3ed   : > { %v5813_v46 = vmul.f32 %v6786_v26, %v5812_v48  ;;  %6793 = vpow2.f32 %v6513_v8  ;;  %v4932_v21 = vpop.permute.xlu1 %4931  ;;  %v5579_v38 = vand.u32 2147483647, %v10101_v19  ;;  %vm5575_vm7 = vweird.f32 %v10101_v19 }
 0x3ee   : > { %5016 = vst.msk [vmem:[#allocation3 + $0x30] sm:$0xf] %vm5003_vm14, %v4932_v21  ;;  %v4040_v21 = vpop.permute.xlu2 %4039 }
 0x3ef   : > { %v5814_v15 = vadd.f32 %v6786_v26, %v5813_v46  ;;  %v4072_v39 = vpop.permute.xlu0 %4071  ;;  %vm5580_vm13 = vcmp.eq.f32.partialorder %v5579_v38, 8.507059e+37 }
 0x3f0   : > { %v6790_v5 = vpop.eup %6789 }
 0x3f1   : > { %v5826_v49 = vmul.f32 %v6790_v5, %v10084_v56  ;;  %v5818_v32 = vsel %vm5817_vm0, %v6786_v26, %v5814_v15  ;;  %vm5831_vm11 = vweird.f32 %v6790_v5  ;;  %v327_v56 = vld [vmem:[%s6992_s13 + $0x10] sm:$0xff]   ;;  %v5582_v26 = vor.u32 1.1754944e-38, %v5581_v25 }
 0x3f2   : > { %v5823_v12 = vsel %vm5820_vm15, %v5822_v59, %v5818_v32  ;;  %v6792_v18 = vpop.eup %6791  ;;  %vm5832_vm9 = vmor %vm5830_vm8, %vm5831_vm11  ;;  %v6026_v7 = vunpack.c.l.bf16 %v327_v56  ;;  %v6027_v28 = vunpack.c.h.bf16 %v327_v56 }
 0x3f3   : > { %v5827_v61 = vsub.f32 1.0, %v5826_v49  ;;  %v6010_v13 = vmul.f32 %v5823_v12, %v10034_v42  ;;  %v6794_v42 = vpop.eup %6793  ;;  %v5571_v6 = vmul.f32 %v6792_v18, %v10101_v19  ;;  %vm5576_vm4 = vweird.f32 %v6792_v18 }
 0x3f4   : > { %v10119_v37 = vadd.f32 1.0, %v6794_v42  ;;  %vm5577_vm10 = vmor %vm5575_vm7, %vm5576_vm4 }
 0x3f5   : > { %v5828_v41 = vmul.f32 %v6790_v5, %v5827_v61  ;;  %v6074_v4 = vadd.f32 %v6042_v31, %v6010_v13  ;;  %v5572_v52 = vsub.f32 1.0, %v5571_v6  ;;  %v3878_v9 = vpop.permute.xlu1 %3877  ;;  %v6568_v45 = vld [vmem:[#allocation3 + $0x30] sm:$0xff] }
 0x3f6   : > { %6795 = vrcp.f32 %v10119_v37  ;;  %3943 = vst.msk [vmem:[#allocation3 + $0x7c] sm:$0xf] %vm3911_vm3, %v3878_v9  ;;  %6498 = vmatmul.msk.bf16.gmra.mxu1 %vm5168_vm5, %v6568_v45  ;;  %v5594_v47 = vand.u32 2147483647, %v10119_v37  ;;  %v5596_v22 = vand.u32 2147483648, %v10119_v37  ;;  %vm5590_vm15 = vweird.f32 %v10119_v37 }
 0x3f7   : > { %v5829_v30 = vadd.f32 %v6790_v5, %v5828_v41  ;;  %v6106_v29 = vpack.c.bf16 %v6074_v4, %v6074_v4  ;;  %v5573_v33 = vmul.f32 %v6792_v18, %v5572_v52  ;;  %4137 = vst.msk [vmem:[#allocation3 + $0x7c] sm:$0xf] %vm4105_vm12, %v4072_v39  ;;  %v4968_v23 = vpop.permute.xlu0 %4967 }
 0x3f8   : > { %4698 = vst.msk [vmem:[#allocation3 + $0x7c] sm:$0xf] %vm4666_vm6, %v10064_v58  ;;  %v5597_v32 = vor.u32 1.1754944e-38, %v5596_v22  ;;  %vm5595_vm8 = vcmp.eq.f32.partialorder %v5594_v47, 8.507059e+37 }
 0x3f9   : > { %v5833_v63 = vsel %vm5832_vm9, %v6790_v5, %v5829_v30  ;;  %v5285_v27 = vpop.f32.mrf.mxu2  ;;  %6139 = vst.msk [vmem:[%s9943_s16 + $0x50] sm:$0xf] %vm6118_vm1, %v6106_v29 }
 0x3fa   : > { %v5838_v2 = vsel %vm5835_vm2, %v5837_v34, %v5833_v63  ;;  %v5336_v20 = vmul.f32 %v9858_v35, %v5285_v27 }
 0x3fb   : > { %v6011_v50 = vmul.f32 %v5838_v2, %v10057_v17  ;;  %v5574_v17 = vadd.f32 %v6792_v18, %v5573_v33  ;;  %v345_v2 = vld [vmem:[%s6992_s13 + $0x58] sm:$0xff]  }
 0x3fc   : > { %v10130_v53 = vadd.f32 %v9869_v40, %v5336_v20  ;;  %v6796_v43 = vpop.eup %6795  ;;  %v6044_v45 = vunpack.c.l.bf16 %v345_v2  ;;  %v6045_v47 = vunpack.c.h.bf16 %v345_v2  ;;  %v10198_v2 = vld [vmem:[%s10350_s7] ss:$0 sm:$0xff] }
 0x3fd   : > { %v6075_v36 = vadd.f32 %v6043_v57, %v6011_v50  ;;  %v5578_v14 = vsel %vm5577_vm10, %v6792_v18, %v5574_v17  ;;  %v5586_v58 = vmul.f32 %v6796_v43, %v10119_v37  ;;  %v4631_v62 = vpop.permute.xlu1 %4630  ;;  %vm5591_vm0 = vweird.f32 %v6796_v43  ;;  %v4936_v50 = vpop.permute.xlu2 %4935 }
 0x3fe   : > { %v6530_v16 = vmul.f32 -1.442695, %v10130_v53  ;;  %v5583_v1 = vsel %vm5580_vm13, %v5582_v26, %v5578_v14  ;;  %4697 = vst.msk [vmem:[#allocation3 + $0x78] sm:$0xf] %vm4666_vm6, %v4631_v62  ;;  %vm5592_vm11 = vmor %vm5590_vm15, %vm5591_vm0 }
 0x3ff   : > { %v6107_v11 = vpack.c.bf16 %v6075_v36, %v6075_v36  ;;  %v5994_v3 = vmul.f32 %v5583_v1, %v10078_v54  ;;  %v5587_v10 = vsub.f32 1.0, %v5586_v58  ;;  %5034 = vst.msk [vmem:[#allocation3 + $0x78] sm:$0xf] %vm5003_vm14, %v4968_v23  ;;  %v3846_v44 = vpop.permute.xlu0 %3845 }
 0x400   : > { %6797 = vpow2.f32 %v6530_v16  ;;  %3927 = vst.msk [vmem:[#allocation3 + $0x3c] sm:$0xf] %vm3911_vm3, %v3846_v44 }
 0x401   : > { %6140 = vst.msk [vmem:[%s9943_s16 + $0x54] sm:$0xf] %vm6118_vm1, %v6107_v11  ;;  %v5287_v60 = vpop.f32.mrf.mxu2  ;;  %v6058_v51 = vadd.f32 %v6026_v7, %v5994_v3  ;;  %v5588_v8 = vmul.f32 %v6796_v43, %v5587_v10 }
 0x402   : > { %v5337_v48 = vmul.f32 %v9858_v35, %v5287_v60  ;;  %4121 = vst.msk [vmem:[#allocation3 + $0x3c] sm:$0xf] %vm4105_vm12, %v4040_v21 }
 0x403   : > { %v6090_v19 = vpack.c.bf16 %v6058_v51, %v6058_v51  ;;  %v5589_v59 = vadd.f32 %v6796_v43, %v5588_v8  ;;  %v5245_v49 = vpop.f32.mrf.mxu1 }
 0x404   : > { %v10146_v46 = vadd.f32 %v9869_v40, %v5337_v48  ;;  %v5320_v12 = vmul.f32 %v9858_v35, %v5245_v49 }
 0x405   : > { %6123 = vst.msk [vmem:[%s9943_s16 + $0x10] sm:$0xf] %vm6118_vm1, %v6090_v19  ;;  %v5593_v31 = vsel %vm5592_vm11, %v6796_v43, %v5589_v59  ;;  %v4970_v13 = vpop.permute.xlu1 %4969 }
 0x406   : > { %v6798_v54 = vpop.eup %6797  ;;  %v6531_v5 = vmul.f32 -1.442695, %v10146_v46  ;;  %v5598_v61 = vsel %vm5595_vm8, %v5597_v32, %v5593_v31  ;;  %v10160_v41 = vadd.f32 %v9869_v40, %v5320_v12  ;;  %5035 = vst.msk [vmem:[#allocation3 + $0x7c] sm:$0xf] %vm5003_vm14, %v4970_v13  ;;  %v329_v31 = vld [vmem:[%s6992_s13 + $0x18] sm:$0xff]  }
 0x407   : > { %v5500_v15 = vadd.f32 1.0, %v6798_v54  ;;  %v5995_v55 = vmul.f32 %v5598_v61, %v10097_v0  ;;  %v4599_v63 = vpop.permute.xlu0 %4598  ;;  %v6028_v21 = vunpack.c.l.bf16 %v329_v31 }
 0x408   : > { %6799 = vpow2.f32 %v6531_v5  ;;  %v6514_v18 = vmul.f32 -1.442695, %v10160_v41 }
 0x409   : > { %6801 = vrcp.f32 %v5500_v15  ;;  %v6059_v4 = vadd.f32 %v6027_v28, %v5995_v55  ;;  %v5851_v37 = vand.u32 2147483648, %v5500_v15  ;;  %v5849_v39 = vand.u32 2147483647, %v5500_v15 }
 0x40a   : > { %6803 = vpow2.f32 %v6514_v18  ;;  %vm5845_vm9 = vweird.f32 %v5500_v15 }
 0x40b   : > { %v6091_v29 = vpack.c.bf16 %v6059_v4, %v6059_v4  ;;  %v5247_v6 = vpop.f32.mrf.mxu1  ;;  %v5852_v38 = vor.u32 1.1754944e-38, %v5851_v37 }
 0x40c   : > { %v5321_v57 = vmul.f32 %v9858_v35, %v5247_v6 }
 0x40d   : > { %6124 = vst.msk [vmem:[%s9943_s16 + $0x14] sm:$0xf] %vm6118_vm1, %v6091_v29  ;;  %v4038_v27 = vpop.permute.xlu1 %4037 }
 0x40e   : > { %v6800_v24 = vpop.eup %6799  ;;  %4120 = vst.msk [vmem:[#allocation3 + $0x38] sm:$0xf] %vm4105_vm12, %v4038_v27  ;;  %v10170_v20 = vadd.f32 %v9869_v40, %v5321_v57  ;;  %vm5850_vm12 = vcmp.eq.f32.partialorder %v5849_v39, 8.507059e+37  ;;  %v6577_v40 = vld [vmem:[#allocation3 + $0x78] sm:$0xff]  ;;  %v6029_v27 = vunpack.c.h.bf16 %v329_v31 }
 0x40f   : > { %v6802_v30 = vpop.eup %6801  ;;  %v5501_v42 = vadd.f32 1.0, %v6800_v24  ;;  %4681 = vst.msk [vmem:[#allocation3 + $0x38] sm:$0xf] %vm4666_vm6, %v4599_v63  ;;  %6507 = vmatmul.msk.bf16.gmra.mxu2 %vm5168_vm5, %v6577_v40  ;;  %v4938_v3 = vpop.permute.xlu0 %4937  ;;  %v10190_v63 = vld [vmem:[%s10349_s6] ss:$0 sm:$0xff] }
 0x410   : > { %v5841_v34 = vmul.f32 %v6802_v30, %v5500_v15  ;;  %vm5846_vm3 = vweird.f32 %v6802_v30  ;;  %v6804_v25 = vpop.eup %6803  ;;  %5018 = vst.msk [vmem:[#allocation3 + $0x38] sm:$0xf] %vm5003_vm14, %v4936_v50  ;;  %v6515_v35 = vmul.f32 -1.442695, %v10170_v20 }
 0x411   : > { %6805 = vrcp.f32 %v5501_v42  ;;  %vm5847_vm2 = vmor %vm5845_vm9, %vm5846_vm3  ;;  %v5484_v36 = vadd.f32 1.0, %v6804_v25  ;;  %v5866_v14 = vand.u32 2147483648, %v5501_v42  ;;  %v5864_v60 = vand.u32 2147483647, %v5501_v42 }
 0x412   : > { %v5842_v0 = vsub.f32 1.0, %v5841_v34  ;;  %6807 = vpow2.f32 %v6515_v35  ;;  %vm5860_vm7 = vweird.f32 %v5501_v42 }
 0x413   : > { %6809 = vrcp.f32 %v5484_v36  ;;  %v5867_v62 = vor.u32 1.1754944e-38, %v5866_v14  ;;  %vm5865_vm13 = vcmp.eq.f32.partialorder %v5864_v60, 8.507059e+37  ;;  %v5611_v5 = vand.u32 2147483648, %v5484_v36 }
 0x414   : > { %v5843_v52 = vmul.f32 %v6802_v30, %v5842_v0  ;;  %v5609_v49 = vand.u32 2147483647, %v5484_v36 }
 0x415   : > { %v4601_v7 = vpop.permute.xlu1 %4600  ;;  %v5612_v61 = vor.u32 1.1754944e-38, %v5611_v5 }
 0x416   : > { %v5844_v9 = vadd.f32 %v6802_v30, %v5843_v52  ;;  %4682 = vst.msk [vmem:[#allocation3 + $0x3c] sm:$0xf] %vm4666_vm6, %v4601_v7  ;;  %vm5610_vm15 = vcmp.eq.f32.partialorder %v5609_v49, 8.507059e+37 }
 0x417   : > { %v6806_v33 = vpop.eup %6805  ;;  %5019 = vst.msk [vmem:[#allocation3 + $0x3c] sm:$0xf] %vm5003_vm14, %v4938_v3  ;;  %vm5605_vm14 = vweird.f32 %v5484_v36 }
 0x418   : > { %v5848_v56 = vsel %vm5847_vm2, %v6802_v30, %v5844_v9  ;;  %v5856_v17 = vmul.f32 %v6806_v33, %v5501_v42  ;;  %vm5861_vm4 = vweird.f32 %v6806_v33  ;;  %v6808_v58 = vpop.eup %6807 }
 0x419   : > { %v5853_v16 = vsel %vm5850_vm12, %v5852_v38, %v5848_v56  ;;  %vm5862_vm10 = vmor %vm5860_vm7, %vm5861_vm4  ;;  %v5485_v51 = vadd.f32 1.0, %v6808_v58 }
 0x41a   : > { %v6012_v11 = vmul.f32 %v5853_v16, %v10130_v53  ;;  %v5857_v26 = vsub.f32 1.0, %v5856_v17  ;;  %v6810_v53 = vpop.eup %6809 }
 0x41b   : > { %v5601_v22 = vmul.f32 %v6810_v53, %v5484_v36  ;;  %6811 = vrcp.f32 %v5485_v51  ;;  %vm5606_vm6 = vweird.f32 %v6810_v53  ;;  %v5626_v18 = vand.u32 2147483648, %v5485_v51 }
 0x41c   : > { %v6076_v43 = vadd.f32 %v6044_v45, %v6012_v11  ;;  %v5858_v1 = vmul.f32 %v6806_v33, %v5857_v26  ;;  %vm5607_vm0 = vmor %vm5605_vm14, %vm5606_vm6  ;;  %v5624_v29 = vand.u32 2147483647, %v5485_v51 }
 0x41d   : > { %v5602_v8 = vsub.f32 1.0, %v5601_v22 }
 0x41e   : > { %v6108_v23 = vpack.c.bf16 %v6076_v43, %v6076_v43  ;;  %v5859_v48 = vadd.f32 %v6806_v33, %v5858_v1  ;;  %v6569_v32 = vld [vmem:[#allocation3 + $0x38] sm:$0xff]  ;;  %vm5625_vm3 = vcmp.eq.f32.partialorder %v5624_v29, 8.507059e+37 }
 0x41f   : > { %v5603_v59 = vmul.f32 %v6810_v53, %v5602_v8  ;;  %6499 = vmatmul.msk.bf16.gmra.mxu1 %vm5168_vm5, %v6569_v32  ;;  %vm5620_vm5 = vweird.f32 %v5485_v51 }
 0x420   : > { %6141 = vst.msk [vmem:[%s9943_s16 + $0x58] sm:$0xf] %vm6118_vm1, %v6108_v23  ;;  %v5863_v10 = vsel %vm5862_vm10, %v6806_v33, %v5859_v48  ;;  %v347_v23 = vld [vmem:[%s6992_s13 + $0x60] sm:$0xff]  }
 0x421   : > { %v5868_v54 = vsel %vm5865_vm13, %v5867_v62, %v5863_v10  ;;  %v5604_v44 = vadd.f32 %v6810_v53, %v5603_v59  ;;  %v6812_v12 = vpop.eup %6811  ;;  %v5290_v34 = vpop.f32.mrf.mxu2 }
 0x422   : > { %v6013_v19 = vmul.f32 %v5868_v54, %v10146_v46  ;;  %v5616_v13 = vmul.f32 %v6812_v12, %v5485_v51  ;;  %vm5621_vm11 = vweird.f32 %v6812_v12  ;;  %v5338_v57 = vmul.f32 %v10190_v63, %v5290_v34 }
 0x423   : > { %v5608_v46 = vsel %vm5607_vm0, %v6810_v53, %v5604_v44  ;;  %vm5622_vm8 = vmor %vm5620_vm5, %vm5621_vm11 }
 0x424   : > { %v6077_v15 = vadd.f32 %v6045_v47, %v6013_v19  ;;  %v5613_v55 = vsel %vm5610_vm15, %v5612_v61, %v5608_v46  ;;  %v5617_v4 = vsub.f32 1.0, %v5616_v13  ;;  %v5374_v52 = vadd.f32 %v10198_v2, %v5338_v57 }
 0x425   : > { %v5996_v24 = vmul.f32 %v5613_v55, %v10160_v41  ;;  %v5627_v41 = vor.u32 1.1754944e-38, %v5626_v18  ;;  %v6046_v19 = vunpack.c.l.bf16 %v347_v23 }
 0x426   : > { %v6109_v28 = vpack.c.bf16 %v6077_v15, %v6077_v15  ;;  %v5618_v42 = vmul.f32 %v6812_v12, %v5617_v4  ;;  %v6532_v25 = vmul.f32 -1.442695, %v5374_v52 }
 0x427   : > { %v6060_v30 = vadd.f32 %v6028_v21, %v5996_v24 }
 0x428   : > { %6142 = vst.msk [vmem:[%s9943_s16 + $0x5c] sm:$0xf] %vm6118_vm1, %v6109_v28  ;;  %v5619_v0 = vadd.f32 %v6812_v12, %v5618_v42  ;;  %6813 = vpow2.f32 %v6532_v25  ;;  %v6047_v42 = vunpack.c.h.bf16 %v347_v23  ;;  %v331_v25 = vld [vmem:[%s6992_s13 + $0x20] sm:$0xff]  }
 0x429   : > { %v6092_v6 = vpack.c.bf16 %v6060_v30, %v6060_v30  ;;  %v5292_v35 = vpop.f32.mrf.mxu2 }
 0x42a   : > { %v5623_v37 = vsel %vm5622_vm8, %v6812_v12, %v5619_v0  ;;  %v5339_v38 = vmul.f32 %v10190_v63, %v5292_v35 }
 0x42b   : > { %6125 = vst.msk [vmem:[%s9943_s16 + $0x18] sm:$0xf] %vm6118_vm1, %v6092_v6  ;;  %v5628_v39 = vsel %vm5625_vm3, %v5627_v41, %v5623_v37  ;;  %v5250_v40 = vpop.f32.mrf.mxu1 }
 0x42c   : > { %v5997_v50 = vmul.f32 %v5628_v39, %v10170_v20  ;;  %v10206_v45 = vadd.f32 %v10198_v2, %v5339_v38  ;;  %v5322_v20 = vmul.f32 %v10190_v63, %v5250_v40  ;;  %v6030_v40 = vunpack.c.l.bf16 %v331_v25 }
 0x42e   : > { %v6061_v9 = vadd.f32 %v6029_v27, %v5997_v50  ;;  %v6814_v36 = vpop.eup %6813  ;;  %v6533_v56 = vmul.f32 -1.442695, %v10206_v45  ;;  %v10211_v16 = vadd.f32 %v10198_v2, %v5322_v20 }
 0x42f   : > { %v5502_v17 = vadd.f32 1.0, %v6814_v36 }
 0x430   : > { %v6093_v33 = vpack.c.bf16 %v6061_v9, %v6061_v9  ;;  %6815 = vpow2.f32 %v6533_v56  ;;  %v6516_v26 = vmul.f32 -1.442695, %v10211_v16 }
 0x431   : > { %6817 = vrcp.f32 %v5502_v17  ;;  %v5881_v58 = vand.u32 2147483648, %v5502_v17  ;;  %v5879_v53 = vand.u32 2147483647, %v5502_v17  ;;  %vm5875_vm2 = vweird.f32 %v5502_v17 }
 0x432   : > { %6126 = vst.msk [vmem:[%s9943_s16 + $0x1c] sm:$0xf] %vm6118_vm1, %v6093_v33  ;;  %6819 = vpow2.f32 %v6516_v26 }
 0x433   : > { %v5252_v1 = vpop.f32.mrf.mxu1  ;;  %v5882_v54 = vor.u32 1.1754944e-38, %v5881_v58  ;;  %vm5880_vm4 = vcmp.eq.f32.partialorder %v5879_v53, 8.507059e+37 }
 0x434   : > { %v5323_v3 = vmul.f32 %v10190_v63, %v5252_v1 }
 0x436   : > { %v6816_v11 = vpop.eup %6815  ;;  %v10217_v62 = vadd.f32 %v10198_v2, %v5323_v3 }
 0x437   : > { %v6818_v14 = vpop.eup %6817  ;;  %v5503_v7 = vadd.f32 1.0, %v6816_v11 }
 0x438   : > { %v5871_v43 = vmul.f32 %v6818_v14, %v5502_v17  ;;  %vm5876_vm9 = vweird.f32 %v6818_v14  ;;  %v6820_v51 = vpop.eup %6819  ;;  %v6517_v47 = vmul.f32 -1.442695, %v10217_v62 }
 0x439   : > { %6821 = vrcp.f32 %v5503_v7  ;;  %vm5877_vm12 = vmor %vm5875_vm2, %vm5876_vm9  ;;  %v5486_v8 = vadd.f32 1.0, %v6820_v51  ;;  %v5894_v44 = vand.u32 2147483647, %v5503_v7  ;;  %v5896_v12 = vand.u32 2147483648, %v5503_v7 }
 0x43a   : > { %v5872_v60 = vsub.f32 1.0, %v5871_v43  ;;  %6823 = vpow2.f32 %v6517_v47  ;;  %vm5890_vm10 = vweird.f32 %v5503_v7 }
 0x43b   : > { %6825 = vrcp.f32 %v5486_v8  ;;  %v5897_v30 = vor.u32 1.1754944e-38, %v5896_v12  ;;  %vm5895_vm6 = vcmp.eq.f32.partialorder %v5894_v44, 8.507059e+37  ;;  %v5641_v39 = vand.u32 2147483648, %v5486_v8 }
 0x43c   : > { %v5873_v48 = vmul.f32 %v6818_v14, %v5872_v60  ;;  %vm5635_vm0 = vweird.f32 %v5486_v8 }
 0x43d   : > { %v5642_v17 = vor.u32 1.1754944e-38, %v5641_v39 }
 0x43e   : > { %v5874_v10 = vadd.f32 %v6818_v14, %v5873_v48 }
 0x43f   : > { %v6822_v22 = vpop.eup %6821 }
 0x440   : > { %v5878_v5 = vsel %vm5877_vm12, %v6818_v14, %v5874_v10  ;;  %v5886_v15 = vmul.f32 %v6822_v22, %v5503_v7  ;;  %vm5891_vm7 = vweird.f32 %v6822_v22  ;;  %v6824_v13 = vpop.eup %6823 }
 0x441   : > { %v5883_v59 = vsel %vm5880_vm4, %v5882_v54, %v5878_v5  ;;  %v6826_v18 = vpop.eup %6825  ;;  %vm5892_vm13 = vmor %vm5890_vm10, %vm5891_vm7  ;;  %v5487_v29 = vadd.f32 1.0, %v6824_v13 }
 0x442   : > { %v5295_v49 = vpop.f32.mrf.mxu2  ;;  %v6014_v32 = vmul.f32 %v5883_v59, %v5374_v52  ;;  %v5887_v31 = vsub.f32 1.0, %v5886_v15  ;;  %v5631_v6 = vmul.f32 %v6826_v18, %v5486_v8  ;;  %v5639_v52 = vand.u32 2147483647, %v5486_v8 }
 0x443   : > { %v5340_v28 = vmul.f32 %v10190_v63, %v5295_v49  ;;  %vm5636_vm14 = vweird.f32 %v6826_v18  ;;  %v5654_v3 = vand.u32 2147483647, %v5487_v29  ;;  %v5656_v58 = vand.u32 2147483648, %v5487_v29 }
 0x444   : > { %v6078_v61 = vadd.f32 %v6046_v19, %v6014_v32  ;;  %v5888_v46 = vmul.f32 %v6822_v22, %v5887_v31  ;;  %v5632_v37 = vsub.f32 1.0, %v5631_v6  ;;  %vm5637_vm15 = vmor %vm5635_vm0, %vm5636_vm14  ;;  %vm5640_vm11 = vcmp.eq.f32.partialorder %v5639_v52, 8.507059e+37 }
 0x445   : > { %v10222_v21 = vadd.f32 %v10198_v2, %v5340_v28  ;;  %vm5650_vm8 = vweird.f32 %v5487_v29  ;;  %v6031_v19 = vunpack.c.h.bf16 %v331_v25  ;;  %vm5655_vm9 = vcmp.eq.f32.partialorder %v5654_v3, 8.507059e+37 }
 0x446   : > { %v6110_v55 = vpack.c.bf16 %v6078_v61, %v6078_v61  ;;  %v5889_v24 = vadd.f32 %v6822_v22, %v5888_v46  ;;  %v5633_v9 = vmul.f32 %v6826_v18, %v5632_v37  ;;  %v349_v46 = vld [vmem:[%s6992_s13 + $0x68] sm:$0xff]  }
 0x447   : > { %v6534_v4 = vmul.f32 -1.442695, %v10222_v21 }
 0x448   : > { %6143 = vst.msk [vmem:[%s9943_s16 + $0x60] sm:$0xf] %vm6118_vm1, %v6110_v55  ;;  %v5893_v34 = vsel %vm5892_vm13, %v6822_v22, %v5889_v24  ;;  %v5634_v36 = vadd.f32 %v6826_v18, %v5633_v9 }
 0x449   : > { %6827 = vpow2.f32 %v6534_v4  ;;  %v5898_v0 = vsel %vm5895_vm6, %v5897_v30, %v5893_v34 }
 0x44a   : > { %6829 = vrcp.f32 %v5487_v29  ;;  %v5297_v57 = vpop.f32.mrf.mxu2  ;;  %v6015_v41 = vmul.f32 %v5898_v0, %v10206_v45  ;;  %v5638_v11 = vsel %vm5637_vm15, %v6826_v18, %v5634_v36 }
 0x44b   : > { %v5341_v27 = vmul.f32 %v10190_v63, %v5297_v57  ;;  %v5643_v7 = vsel %vm5640_vm11, %v5642_v17, %v5638_v11 }
 0x44c   : > { %v6079_v50 = vadd.f32 %v6047_v42, %v6015_v41  ;;  %v5255_v14 = vpop.f32.mrf.mxu1  ;;  %v5998_v43 = vmul.f32 %v5643_v7, %v10211_v16  ;;  %v5657_v16 = vor.u32 1.1754944e-38, %v5656_v58 }
 0x44d   : > { %v10231_v35 = vadd.f32 %v10198_v2, %v5341_v27  ;;  %v5324_v60 = vmul.f32 %v10190_v63, %v5255_v14 }
 0x44e   : > { %v6111_v38 = vpack.c.bf16 %v6079_v50, %v6079_v50  ;;  %v6062_v23 = vadd.f32 %v6030_v40, %v5998_v43 }
 0x44f   : > { %v6828_v33 = vpop.eup %6827  ;;  %v6535_v56 = vmul.f32 -1.442695, %v10231_v35  ;;  %v10239_v53 = vadd.f32 %v10198_v2, %v5324_v60 }
 0x450   : > { %v6830_v45 = vpop.eup %6829  ;;  %v5504_v20 = vadd.f32 1.0, %v6828_v33  ;;  %6144 = vst.msk [vmem:[%s9943_s16 + $0x64] sm:$0xf] %vm6118_vm1, %v6111_v38  ;;  %v6094_v10 = vpack.c.bf16 %v6062_v23, %v6062_v23 }
 0x451   : > { %v5646_v26 = vmul.f32 %v6830_v45, %v5487_v29  ;;  %6831 = vpow2.f32 %v6535_v56  ;;  %vm5651_vm5 = vweird.f32 %v6830_v45  ;;  %v6518_v22 = vmul.f32 -1.442695, %v10239_v53 }
 0x452   : > { %6833 = vrcp.f32 %v5504_v20  ;;  %vm5652_vm3 = vmor %vm5650_vm8, %vm5651_vm5  ;;  %6127 = vst.msk [vmem:[%s9943_s16 + $0x20] sm:$0xf] %vm6118_vm1, %v6094_v10  ;;  %v5909_v44 = vand.u32 2147483647, %v5504_v20  ;;  %v5911_v12 = vand.u32 2147483648, %v5504_v20  ;;  %vm5905_vm12 = vweird.f32 %v5504_v20 }
 0x453   : > { %v5647_v1 = vsub.f32 1.0, %v5646_v26  ;;  %6835 = vpow2.f32 %v6518_v22  ;;  %v6048_v29 = vunpack.c.l.bf16 %v349_v46 }
 0x454   : > { %v5257_v59 = vpop.f32.mrf.mxu1  ;;  %v5912_v42 = vor.u32 1.1754944e-38, %v5911_v12  ;;  %vm5910_vm7 = vcmp.eq.f32.partialorder %v5909_v44, 8.507059e+37 }
 0x455   : > { %v5648_v48 = vmul.f32 %v6830_v45, %v5647_v1  ;;  %v5325_v28 = vmul.f32 %v10190_v63, %v5257_v59  ;;  %v333_v1 = vld [vmem:[%s6992_s13 + $0x28] sm:$0xff]  }
 0x456   : > { %v6032_v10 = vunpack.c.l.bf16 %v333_v1 }
 0x457   : > { %v6832_v51 = vpop.eup %6831  ;;  %v5649_v47 = vadd.f32 %v6830_v45, %v5648_v48  ;;  %v10248_v55 = vadd.f32 %v10198_v2, %v5325_v28 }
 0x458   : > { %v6834_v54 = vpop.eup %6833  ;;  %v5505_v8 = vadd.f32 1.0, %v6832_v51 }
 0x459   : > { %v5653_v5 = vsel %vm5652_vm3, %v6830_v45, %v5649_v47  ;;  %v5901_v15 = vmul.f32 %v6834_v54, %v5504_v20  ;;  %vm5906_vm2 = vweird.f32 %v6834_v54  ;;  %v6836_v24 = vpop.eup %6835  ;;  %v6519_v30 = vmul.f32 -1.442695, %v10248_v55 }
 0x45a   : > { %v5658_v49 = vsel %vm5655_vm9, %v5657_v16, %v5653_v5  ;;  %6837 = vrcp.f32 %v5505_v8  ;;  %vm5907_vm4 = vmor %vm5905_vm12, %vm5906_vm2  ;;  %v5488_v34 = vadd.f32 1.0, %v6836_v24  ;;  %v5926_v27 = vand.u32 2147483648, %v5505_v8 }
 0x45b   : > { %v5999_v32 = vmul.f32 %v5658_v49, %v10217_v62  ;;  %v5902_v31 = vsub.f32 1.0, %v5901_v15  ;;  %6839 = vpow2.f32 %v6519_v30  ;;  %v5924_v50 = vand.u32 2147483647, %v5505_v8 }
 0x45c   : > { %6841 = vrcp.f32 %v5488_v34  ;;  %vm5920_vm13 = vweird.f32 %v5505_v8  ;;  %v5927_v36 = vor.u32 1.1754944e-38, %v5926_v27  ;;  %v5669_v26 = vand.u32 2147483647, %v5488_v34 }
 0x45d   : > { %v6063_v61 = vadd.f32 %v6031_v19, %v5999_v32  ;;  %v5903_v13 = vmul.f32 %v6834_v54, %v5902_v31  ;;  %vm5925_vm14 = vcmp.eq.f32.partialorder %v5924_v50, 8.507059e+37  ;;  %v5671_v14 = vand.u32 2147483648, %v5488_v34 }
 0x45e   : > { %vm5665_vm15 = vweird.f32 %v5488_v34  ;;  %vm5670_vm5 = vcmp.eq.f32.partialorder %v5669_v26, 8.507059e+37 }
 0x45f   : > { %v6095_v4 = vpack.c.bf16 %v6063_v61, %v6063_v61  ;;  %v5904_v18 = vadd.f32 %v6834_v54, %v5903_v13  ;;  %v6033_v13 = vunpack.c.h.bf16 %v333_v1 }
 0x460   : > { %v6838_v62 = vpop.eup %6837 }
 0x461   : > { %6128 = vst.msk [vmem:[%s9943_s16 + $0x24] sm:$0xf] %vm6118_vm1, %v6095_v4  ;;  %v5908_v6 = vsel %vm5907_vm4, %v6834_v54, %v5904_v18  ;;  %v5916_v0 = vmul.f32 %v6838_v62, %v5505_v8  ;;  %vm5921_vm10 = vweird.f32 %v6838_v62  ;;  %v6840_v25 = vpop.eup %6839 }
 0x462   : > { %v5913_v57 = vsel %vm5910_vm7, %v5912_v42, %v5908_v6  ;;  %v6842_v38 = vpop.eup %6841  ;;  %vm5922_vm6 = vmor %vm5920_vm13, %vm5921_vm10  ;;  %v5489_v56 = vadd.f32 1.0, %v6840_v25  ;;  %v351_v25 = vld [vmem:[%s6992_s13 + $0x70] sm:$0xff]  }
 0x463   : > { %v6016_v41 = vmul.f32 %v5913_v57, %v10222_v21  ;;  %v5917_v37 = vsub.f32 1.0, %v5916_v0  ;;  %v6049_v21 = vunpack.c.h.bf16 %v349_v46  ;;  %v5661_v17 = vmul.f32 %v6842_v38, %v5488_v34 }
 0x464   : > { %6843 = vrcp.f32 %v5489_v56  ;;  %vm5666_vm0 = vweird.f32 %v6842_v38  ;;  %v5684_v5 = vand.u32 2147483647, %v5489_v56  ;;  %v5686_v15 = vand.u32 2147483648, %v5489_v56 }
 0x465   : > { %v6080_v52 = vadd.f32 %v6048_v29, %v6016_v41  ;;  %v5918_v39 = vmul.f32 %v6838_v62, %v5917_v37  ;;  %v5662_v11 = vsub.f32 1.0, %v5661_v17  ;;  %vm5667_vm11 = vmor %vm5665_vm15, %vm5666_vm0  ;;  %vm5680_vm3 = vweird.f32 %v5489_v56 }
 0x466   : > { %v5687_v61 = vor.u32 1.1754944e-38, %v5686_v15  ;;  %vm5685_vm2 = vcmp.eq.f32.partialorder %v5684_v5, 8.507059e+37 }
 0x467   : > { %v6112_v9 = vpack.c.bf16 %v6080_v52, %v6080_v52  ;;  %v5919_v33 = vadd.f32 %v6838_v62, %v5918_v39  ;;  %v5663_v60 = vmul.f32 %v6842_v38, %v5662_v11 }
 0x469   : > { %6145 = vst.msk [vmem:[%s9943_s16 + $0x68] sm:$0xf] %vm6118_vm1, %v6112_v9  ;;  %v5923_v45 = vsel %vm5922_vm6, %v6838_v62, %v5919_v33  ;;  %v5300_v7 = vpop.f32.mrf.mxu2  ;;  %v5664_v23 = vadd.f32 %v6842_v38, %v5663_v60 }
 0x46a   : > { %v5928_v40 = vsel %vm5925_vm14, %v5927_v36, %v5923_v45  ;;  %v5342_v3 = vmul.f32 %v10190_v63, %v5300_v7  ;;  %v6844_v51 = vpop.eup %6843 }
 0x46b   : > { %v6017_v20 = vmul.f32 %v5928_v40, %v10231_v35  ;;  %v5672_v35 = vor.u32 1.1754944e-38, %v5671_v14  ;;  %v5668_v47 = vsel %vm5667_vm11, %v6842_v38, %v5664_v23  ;;  %v5676_v22 = vmul.f32 %v6844_v51, %v5489_v56 }
 0x46c   : > { %v10260_v48 = vadd.f32 %v10198_v2, %v5342_v3  ;;  %vm5681_vm8 = vweird.f32 %v6844_v51  ;;  %v6050_v40 = vunpack.c.l.bf16 %v351_v25 }
 0x46d   : > { %v6081_v43 = vadd.f32 %v6049_v21, %v6017_v20  ;;  %v5673_v16 = vsel %vm5670_vm5, %v5672_v35, %v5668_v47  ;;  %v5677_v8 = vsub.f32 1.0, %v5676_v22  ;;  %vm5682_vm9 = vmor %vm5680_vm3, %vm5681_vm8  ;;  %v6051_v22 = vunpack.c.h.bf16 %v351_v25 }
 0x46e   : > { %v6536_v54 = vmul.f32 -1.442695, %v10260_v48  ;;  %v6000_v19 = vmul.f32 %v5673_v16, %v10239_v53 }
 0x46f   : > { %v6113_v58 = vpack.c.bf16 %v6081_v43, %v6081_v43  ;;  %v5678_v32 = vmul.f32 %v6844_v51, %v5677_v8 }
 0x470   : > { %6845 = vpow2.f32 %v6536_v54  ;;  %v6064_v49 = vadd.f32 %v6032_v10, %v6000_v19 }
 0x471   : > { %6146 = vst.msk [vmem:[%s9943_s16 + $0x6c] sm:$0xf] %vm6118_vm1, %v6113_v58  ;;  %v5302_v59 = vpop.f32.mrf.mxu2  ;;  %v5679_v44 = vadd.f32 %v6844_v51, %v5678_v32 }
 0x472   : > { %v5343_v31 = vmul.f32 %v10190_v63, %v5302_v59  ;;  %v6096_v28 = vpack.c.bf16 %v6064_v49, %v6064_v49 }
 0x473   : > { %v5683_v46 = vsel %vm5682_vm9, %v6844_v51, %v5679_v44  ;;  %v5260_v62 = vpop.f32.mrf.mxu1  ;;  %v335_v44 = vld [vmem:[%s6992_s13 + $0x30] sm:$0xff]  }
 0x474   : > { %v10268_v12 = vadd.f32 %v10198_v2, %v5343_v31  ;;  %6129 = vst.msk [vmem:[%s9943_s16 + $0x28] sm:$0xf] %vm6118_vm1, %v6096_v28  ;;  %v5688_v4 = vsel %vm5685_vm2, %v5687_v61, %v5683_v46  ;;  %v5326_v29 = vmul.f32 %v10190_v63, %v5260_v62 }
 0x475   : > { %v6001_v30 = vmul.f32 %v5688_v4, %v10248_v55  ;;  %v6034_v4 = vunpack.c.l.bf16 %v335_v44 }
 0x476   : > { %v6846_v53 = vpop.eup %6845  ;;  %v6537_v24 = vmul.f32 -1.442695, %v10268_v12  ;;  %v10276_v6 = vadd.f32 %v10198_v2, %v5326_v29 }
 0x477   : > { %v5506_v18 = vadd.f32 1.0, %v6846_v53  ;;  %v6065_v42 = vadd.f32 %v6033_v13, %v6001_v30 }
 0x478   : > { %6847 = vpow2.f32 %v6537_v24  ;;  %v6520_v57 = vmul.f32 -1.442695, %v10276_v6 }
 0x479   : > { %6849 = vrcp.f32 %v5506_v18  ;;  %v6097_v34 = vpack.c.bf16 %v6065_v42, %v6065_v42  ;;  %v5941_v50 = vand.u32 2147483648, %v5506_v18  ;;  %v5939_v33 = vand.u32 2147483647, %v5506_v18 }
 0x47a   : > { %6851 = vpow2.f32 %v6520_v57  ;;  %vm5935_vm4 = vweird.f32 %v5506_v18 }
 0x47b   : > { %6130 = vst.msk [vmem:[%s9943_s16 + $0x2c] sm:$0xf] %vm6118_vm1, %v6097_v34  ;;  %v5262_v55 = vpop.f32.mrf.mxu1  ;;  %v5942_v17 = vor.u32 1.1754944e-38, %v5941_v50  ;;  %vm5940_vm10 = vcmp.eq.f32.partialorder %v5939_v33, 8.507059e+37 }
 0x47c   : > { %v5327_v39 = vmul.f32 %v10190_v63, %v5262_v55 }
 0x47e   : > { %v6848_v0 = vpop.eup %6847  ;;  %v10284_v38 = vadd.f32 %v10198_v2, %v5327_v39 }
 0x47f   : > { %v6850_v41 = vpop.eup %6849  ;;  %v5507_v37 = vadd.f32 1.0, %v6848_v0 }
 0x480   : > { %v5931_v27 = vmul.f32 %v6850_v41, %v5506_v18  ;;  %vm5936_vm12 = vweird.f32 %v6850_v41  ;;  %v6852_v36 = vpop.eup %6851  ;;  %v6521_v45 = vmul.f32 -1.442695, %v10284_v38 }
 0x481   : > { %6853 = vrcp.f32 %v5507_v37  ;;  %vm5937_vm7 = vmor %vm5935_vm4, %vm5936_vm12  ;;  %v5490_v20 = vadd.f32 1.0, %v6852_v36  ;;  %v5956_v1 = vand.u32 2147483648, %v5507_v37  ;;  %v5954_v58 = vand.u32 2147483647, %v5507_v37 }
 0x482   : > { %v5932_v52 = vsub.f32 1.0, %v5931_v27  ;;  %6855 = vpow2.f32 %v6521_v45  ;;  %vm5950_vm6 = vweird.f32 %v5507_v37 }
 0x483   : > { %6857 = vrcp.f32 %v5490_v20  ;;  %v5957_v47 = vor.u32 1.1754944e-38, %v5956_v1  ;;  %vm5955_vm0 = vcmp.eq.f32.partialorder %v5954_v58, 8.507059e+37  ;;  %v5699_v32 = vand.u32 2147483647, %v5490_v20 }
 0x484   : > { %v5933_v9 = vmul.f32 %v6850_v41, %v5932_v52  ;;  %v5701_v31 = vand.u32 2147483648, %v5490_v20  ;;  %vm5695_vm11 = vweird.f32 %v5490_v20 }
 0x485   : > { %vm5700_vm8 = vcmp.eq.f32.partialorder %v5699_v32, 8.507059e+37 }
 0x486   : > { %v5934_v56 = vadd.f32 %v6850_v41, %v5933_v9 }
 0x487   : > { %v6854_v21 = vpop.eup %6853 }
 0x488   : > { %v5938_v11 = vsel %vm5937_vm7, %v6850_v41, %v5934_v56  ;;  %v5946_v26 = vmul.f32 %v6854_v21, %v5507_v37  ;;  %vm5951_vm13 = vweird.f32 %v6854_v21  ;;  %v6856_v23 = vpop.eup %6855  ;;  %v6035_v56 = vunpack.c.h.bf16 %v335_v44 }
 0x489   : > { %v5943_v14 = vsel %vm5940_vm10, %v5942_v17, %v5938_v11  ;;  %v6858_v10 = vpop.eup %6857  ;;  %vm5952_vm14 = vmor %vm5950_vm6, %vm5951_vm13  ;;  %v5491_v54 = vadd.f32 1.0, %v6856_v23  ;;  %v353_v23 = vld [vmem:[%s6992_s13 + $0x78] sm:$0xff]  }
 0x48a   : > { %v6018_v7 = vmul.f32 %v5943_v14, %v10260_v48  ;;  %v5947_v43 = vsub.f32 1.0, %v5946_v26  ;;  %v5691_v19 = vmul.f32 %v6858_v10, %v5490_v20  ;;  %vm5696_vm15 = vweird.f32 %v6858_v10 }
 0x48b   : > { %6859 = vrcp.f32 %v5491_v54  ;;  %vm5697_vm5 = vmor %vm5695_vm11, %vm5696_vm15  ;;  %v5714_v41 = vand.u32 2147483647, %v5491_v54  ;;  %v5716_v37 = vand.u32 2147483648, %v5491_v54  ;;  %vm5710_vm9 = vweird.f32 %v5491_v54 }
 0x48c   : > { %v6082_v60 = vadd.f32 %v6050_v40, %v6018_v7  ;;  %v5948_v3 = vmul.f32 %v6854_v21, %v5947_v43  ;;  %v5692_v59 = vsub.f32 1.0, %v5691_v19  ;;  %v6052_v19 = vunpack.c.l.bf16 %v353_v23 }
 0x48d   : > { %vm5715_vm12 = vcmp.eq.f32.partialorder %v5714_v41, 8.507059e+37 }
 0x48e   : > { %v6114_v51 = vpack.c.bf16 %v6082_v60, %v6082_v60  ;;  %v5949_v35 = vadd.f32 %v6854_v21, %v5948_v3  ;;  %v5693_v61 = vmul.f32 %v6858_v10, %v5692_v59 }
 0x490   : > { %6147 = vst.msk [vmem:[%s9943_s16 + $0x70] sm:$0xf] %vm6118_vm1, %v6114_v51  ;;  %v5953_v48 = vsel %vm5952_vm14, %v6854_v21, %v5949_v35  ;;  %v5694_v13 = vadd.f32 %v6858_v10, %v5693_v61 }
 0x491   : > { %v5958_v5 = vsel %vm5955_vm0, %v5957_v47, %v5953_v48  ;;  %v6860_v24 = vpop.eup %6859 }
 0x492   : > { %v5305_v16 = vpop.f32.mrf.mxu2  ;;  %v6019_v15 = vmul.f32 %v5958_v5, %v10268_v12  ;;  %v5702_v12 = vor.u32 1.1754944e-38, %v5701_v31  ;;  %v5698_v30 = vsel %vm5697_vm5, %v6858_v10, %v5694_v13  ;;  %v5706_v62 = vmul.f32 %v6860_v24, %v5491_v54 }
 0x493   : > { %v5344_v8 = vmul.f32 %v10190_v63, %v5305_v16  ;;  %vm5711_vm3 = vweird.f32 %v6860_v24 }
 0x494   : > { %v6083_v28 = vadd.f32 %v6051_v22, %v6019_v15  ;;  %v5703_v29 = vsel %vm5700_vm8, %v5702_v12, %v5698_v30  ;;  %v5707_v0 = vsub.f32 1.0, %v5706_v62  ;;  %vm5712_vm2 = vmor %vm5710_vm9, %vm5711_vm3 }
 0x495   : > { %v10293_v49 = vadd.f32 %v10198_v2, %v5344_v8  ;;  %v6002_v34 = vmul.f32 %v5703_v29, %v10276_v6  ;;  %v5717_v6 = vor.u32 1.1754944e-38, %v5716_v37  ;;  %v337_v37 = vld [vmem:[%s6992_s13 + $0x38] sm:$0xff]  }
 0x496   : > { %v6115_v46 = vpack.c.bf16 %v6083_v28, %v6083_v28  ;;  %v5708_v52 = vmul.f32 %v6860_v24, %v5707_v0 }
 0x497   : > { %v6538_v53 = vmul.f32 -1.442695, %v10293_v49  ;;  %v6066_v55 = vadd.f32 %v6034_v4, %v6002_v34 }
 0x498   : > { %6148 = vst.msk [vmem:[%s9943_s16 + $0x74] sm:$0xf] %vm6118_vm1, %v6115_v46  ;;  %v5709_v9 = vadd.f32 %v6860_v24, %v5708_v52 }
 0x499   : > { %6861 = vpow2.f32 %v6538_v53  ;;  %v6098_v25 = vpack.c.bf16 %v6066_v55, %v6066_v55 }
 0x49a   : > { %v5307_v18 = vpop.f32.mrf.mxu2  ;;  %v5713_v36 = vsel %vm5712_vm2, %v6860_v24, %v5709_v9 }
 0x49b   : > { %v5345_v42 = vmul.f32 %v10190_v63, %v5307_v18  ;;  %6131 = vst.msk [vmem:[%s9943_s16 + $0x30] sm:$0xf] %vm6118_vm1, %v6098_v25  ;;  %v5718_v21 = vsel %vm5715_vm12, %v5717_v6, %v5713_v36  ;;  %v6036_v25 = vunpack.c.l.bf16 %v337_v37 }
 0x49c   : > { %v5265_v33 = vpop.f32.mrf.mxu1  ;;  %v6003_v17 = vmul.f32 %v5718_v21, %v10284_v38 }
 0x49d   : > { %v10302_v57 = vadd.f32 %v10198_v2, %v5345_v42  ;;  %v5328_v45 = vmul.f32 %v10190_v63, %v5265_v33 }
 0x49e   : > { %v6067_v11 = vadd.f32 %v6035_v56, %v6003_v17 }
 0x49f   : > { %v6862_v27 = vpop.eup %6861  ;;  %v6539_v39 = vmul.f32 -1.442695, %v10302_v57  ;;  %v10310_v40 = vadd.f32 %v10198_v2, %v5328_v45 }
 0x4a0   : > { %v5508_v50 = vadd.f32 1.0, %v6862_v27  ;;  %v6099_v43 = vpack.c.bf16 %v6067_v11, %v6067_v11 }
 0x4a1   : > { %6863 = vpow2.f32 %v6539_v39  ;;  %v6522_v26 = vmul.f32 -1.442695, %v10310_v40 }
 0x4a2   : > { %6865 = vrcp.f32 %v5508_v50  ;;  %6132 = vst.msk [vmem:[%s9943_s16 + $0x34] sm:$0xf] %vm6118_vm1, %v6099_v43  ;;  %v5971_v58 = vand.u32 2147483648, %v5508_v50  ;;  %v5969_v35 = vand.u32 2147483647, %v5508_v50  ;;  %vm5965_vm7 = vweird.f32 %v5508_v50 }
 0x4a3   : > { %6867 = vpow2.f32 %v6522_v26 }
 0x4a4   : > { %v5267_v60 = vpop.f32.mrf.mxu1  ;;  %v5972_v48 = vor.u32 1.1754944e-38, %v5971_v58  ;;  %vm5970_vm13 = vcmp.eq.f32.partialorder %v5969_v35, 8.507059e+37 }
 0x4a5   : > { %v5329_v38 = vmul.f32 %v10190_v63, %v5267_v60 }
 0x4a7   : > { %v6864_v20 = vpop.eup %6863  ;;  %v10318_v10 = vadd.f32 %v10198_v2, %v5329_v38 }
 0x4a8   : > { %v6866_v14 = vpop.eup %6865  ;;  %v5509_v7 = vadd.f32 1.0, %v6864_v20 }
 0x4a9   : > { %v5961_v1 = vmul.f32 %v6866_v14, %v5508_v50  ;;  %vm5966_vm4 = vweird.f32 %v6866_v14  ;;  %v6868_v47 = vpop.eup %6867  ;;  %v6523_v54 = vmul.f32 -1.442695, %v10318_v10 }
 0x4aa   : > { %6869 = vrcp.f32 %v5509_v7  ;;  %vm5967_vm10 = vmor %vm5965_vm7, %vm5966_vm4  ;;  %v5492_v8 = vadd.f32 1.0, %v6868_v47  ;;  %v5986_v32 = vand.u32 2147483648, %v5509_v7  ;;  %v5984_v44 = vand.u32 2147483647, %v5509_v7 }
 0x4ab   : > { %v5962_v3 = vsub.f32 1.0, %v5961_v1  ;;  %6871 = vpow2.f32 %v6523_v54  ;;  %vm5980_vm14 = vweird.f32 %v5509_v7 }
 0x4ac   : > { %6873 = vrcp.f32 %v5492_v8  ;;  %v5987_v24 = vor.u32 1.1754944e-38, %v5986_v32  ;;  %vm5985_vm15 = vcmp.eq.f32.partialorder %v5984_v44, 8.507059e+37  ;;  %v5731_v29 = vand.u32 2147483648, %v5492_v8 }
 0x4ad   : > { %v5963_v51 = vmul.f32 %v6866_v14, %v5962_v3  ;;  %v5729_v41 = vand.u32 2147483647, %v5492_v8  ;;  %vm5725_vm5 = vweird.f32 %v5492_v8 }
 0x4ae   : > { %v5732_v39 = vor.u32 1.1754944e-38, %v5731_v29 }
 0x4af   : > { %v5964_v22 = vadd.f32 %v6866_v14, %v5963_v51  ;;  %vm5730_vm3 = vcmp.eq.f32.partialorder %v5729_v41, 8.507059e+37 }
 0x4b0   : > { %v6870_v16 = vpop.eup %6869 }
 0x4b1   : > { %v5968_v5 = vsel %vm5967_vm10, %v6866_v14, %v5964_v22  ;;  %v5976_v63 = vmul.f32 %v6870_v16, %v5509_v7  ;;  %vm5981_vm6 = vweird.f32 %v6870_v16  ;;  %v6872_v61 = vpop.eup %6871  ;;  %v6037_v14 = vunpack.c.h.bf16 %v337_v37 }
 0x4b2   : > { %v5973_v15 = vsel %vm5970_vm13, %v5972_v48, %v5968_v5  ;;  %v6874_v13 = vpop.eup %6873  ;;  %vm5982_vm0 = vmor %vm5980_vm14, %vm5981_vm6  ;;  %v5493_v12 = vadd.f32 1.0, %v6872_v61 }
 0x4b3   : > { %v6020_v2 = vmul.f32 %v5973_v15, %v10293_v49  ;;  %v5977_v59 = vsub.f32 1.0, %v5976_v63  ;;  %v6053_v49 = vunpack.c.h.bf16 %v353_v23  ;;  %v5721_v18 = vmul.f32 %v6874_v13, %v5492_v8 }
 0x4b4   : > { %6875 = vrcp.f32 %v5493_v12  ;;  %vm5726_vm11 = vweird.f32 %v6874_v13  ;;  %v5746_v36 = vand.u32 2147483648, %v5493_v12  ;;  %v5744_v21 = vand.u32 2147483647, %v5493_v12 }
 0x4b5   : > { %v6084_v31 = vadd.f32 %v6052_v19, %v6020_v2  ;;  %v5978_v28 = vmul.f32 %v6870_v16, %v5977_v59  ;;  %v5722_v42 = vsub.f32 1.0, %v5721_v18  ;;  %vm5727_vm8 = vmor %vm5725_vm5, %vm5726_vm11  ;;  %vm5740_vm2 = vweird.f32 %v5493_v12 }
 0x4b6   : > { %v5747_v11 = vor.u32 1.1754944e-38, %v5746_v36  ;;  %vm5745_vm4 = vcmp.eq.f32.partialorder %v5744_v21, 8.507059e+37 }
 0x4b7   : > { %v6116_v53 = vpack.c.bf16 %v6084_v31, %v6084_v31  ;;  %v5979_v46 = vadd.f32 %v6870_v16, %v5978_v28  ;;  %v5723_v0 = vmul.f32 %v6874_v13, %v5722_v42 }
 0x4b9   : > { %6149 = vst.msk [vmem:[%s9943_s16 + $0x78] sm:$0xf] %vm6118_vm1, %v6116_v53  ;;  %v5983_v4 = vsel %vm5982_vm0, %v6870_v16, %v5979_v46  ;;  %v5724_v55 = vadd.f32 %v6874_v13, %v5723_v0 }
 0x4ba   : > { %v5988_v30 = vsel %vm5985_vm15, %v5987_v24, %v5983_v4  ;;  %v6876_v52 = vpop.eup %6875 }
 0x4bb   : > { %v6021_v62 = vmul.f32 %v5988_v30, %v10302_v57  ;;  %v5728_v50 = vsel %vm5727_vm8, %v6874_v13, %v5724_v55  ;;  %v5736_v57 = vmul.f32 %v6876_v52, %v5493_v12  ;;  %vm5741_vm9 = vweird.f32 %v6876_v52 }
 0x4bc   : > { %v5733_v9 = vsel %vm5730_vm3, %v5732_v39, %v5728_v50  ;;  %vm5742_vm12 = vmor %vm5740_vm2, %vm5741_vm9 }
 0x4bd   : > { %v6085_v34 = vadd.f32 %v6053_v49, %v6021_v62  ;;  %v6004_v33 = vmul.f32 %v5733_v9, %v10310_v40  ;;  %v5737_v6 = vsub.f32 1.0, %v5736_v57 }
 0x4bf   : > { %v6117_v27 = vpack.c.bf16 %v6085_v34, %v6085_v34  ;;  %v6068_v56 = vadd.f32 %v6036_v25, %v6004_v33  ;;  %v5738_v45 = vmul.f32 %v6876_v52, %v5737_v6 }
 0x4c1   : > { %6150 = vst.msk [vmem:[%s9943_s16 + $0x7c] sm:$0xf] %vm6118_vm1, %v6117_v27  ;;  %v6100_v17 = vpack.c.bf16 %v6068_v56, %v6068_v56  ;;  %v5739_v20 = vadd.f32 %v6876_v52, %v5738_v45 }
 0x4c3   : > { %6133 = vst.msk [vmem:[%s9943_s16 + $0x38] sm:$0xf] %vm6118_vm1, %v6100_v17  ;;  %v5743_v26 = vsel %vm5742_vm12, %v6876_v52, %v5739_v20 }
 0x4c4   : > { %v5748_v7 = vsel %vm5745_vm4, %v5747_v11, %v5743_v26 }
 0x4c5   : > { %v6005_v40 = vmul.f32 %v5748_v7, %v10318_v10 }
 0x4c7   : > { %v6069_v43 = vadd.f32 %v6037_v14, %v6005_v40 }
 0x4c9   : > { %v6101_v1 = vpack.c.bf16 %v6069_v43, %v6069_v43 }
 0x4cb   : > { %6134 = vst.msk [vmem:[%s9943_s16 + $0x3c] sm:$0xf] %vm6118_vm1, %v6101_v1 }
 0x4cc PF: > { %s18_s28 = sadd.s32 1, %s6907_s28   ;;  %s10626_s26 = smov %s6903_s27 }
 0x4cd   : > { %p15_p5 = scmp.ge.s32.totalorder %s18_s28, 4   ;;  %s10627_s27 = smov %s10629_s29 }
 0x4cf   :  { %17 = sbr.rel (!%p15_p5) target bundleno = 2 (0x2), region = 82 }
 0x4d4   :  { %6181 = vsyncmov [#allocation5] }
 0x4d7   :  { %s6182_s13 = vpop.sfrf %6181 }
 0x4d8   :  { %p6542_p6 = scmp.ne.s32.totalorder %s6182_s13, 0 }
 0x4da   :  { %6186 = shalt.err (%p6542_p6)  }
 0x4db   :  { %6188 = vsyncmov [#allocation5 + $0x1] }
 0x4de   :  { %s6189_s19 = vpop.sfrf %6188 }
 0x4df   :  { %p6543_p7 = scmp.ne.s32.totalorder %s6189_s19, 0 }
 0x4e1   :  { %6193 = shalt.err (%p6543_p7)  }

</bundles_post_ra>
